<compile_context>
chip_gen: v5e
topology: v5e:2x2
jax: 0.10.0
libtpu: 0.0.40
codegen_flags: <defaults>
</compile_context>

<pallas_src>
import functools
import math

import jax
import jax.numpy as jnp
from jax import lax
from jax.experimental import pallas as pl
from jax.experimental.pallas import tpu as pltpu


def _bottleneck_kernel(x_ref, r_ref, hh_ref, ww_ref,
                       w1_ref, b1_ref, w2_ref, b2_ref, w3_ref, b3_ref,
                       o_ref, buf_ref, *, H, W, dilation, pad_rows):
    """Fused Bottleneck for one image.

    x_ref:  (H*W, Cin)    r_ref: (H*W, Cout)    o_ref: (H*W, Cout)
    hh_ref, ww_ref: (H*W, 1) int32 spatial row / col index of each flattened pixel
    w1_ref: (Cin, Cb)  b1_ref: (1, Cb)          # conv1 + bn1 folded
    w2_ref: (3, 3, Cb, Cb)  b2_ref: (1, Cb)     # conv2 + bn2 folded
    w3_ref: (Cb, Cout) b3_ref: (1, Cout)        # conv3 + bn3 folded
    buf_ref: VMEM scratch (H*W + 2*pad_rows, Cb) used to stage the conv2 input.
    """
    HW = H * W
    d = dilation

    x = x_ref[...].astype(jnp.float32)                              # (HW, Cin)

    # ---- conv1 (1x1) + folded BN1 + ReLU: a channel matmul on the MXU.
    t1 = jnp.dot(x, w1_ref[...], preferred_element_type=jnp.float32)
    t1 = jnp.maximum(t1 + b1_ref[...], 0.0)                         # (HW, Cb)

    # ---- conv2 (3x3, padding=dilation, dilation=d, stride=1) + folded BN2 + ReLU.
    # Stage t1 into a sublane-padded scratch buffer; each of the 9 taps is then a
    # static-offset window read, masked to zero where the tap falls outside the image.
    buf_ref[...] = jnp.zeros_like(buf_ref)
    buf_ref[pl.ds(pad_rows, HW), :] = t1

    hh = hh_ref[...]                                                # (HW, 1) row index
    ww = ww_ref[...]                                                # (HW, 1) col index

    cb = w2_ref.shape[-1]
    acc = jnp.zeros((HW, cb), jnp.float32)
    for kh in range(3):
        for kw in range(3):
            oh = (kh - 1) * d
            ow = (kw - 1) * d
            shift = oh * W + ow                                     # flattened tap offset
            win = buf_ref[pl.ds(pad_rows + shift, HW), :]           # (HW, Cb)
            valid = ((hh + oh >= 0) & (hh + oh < H) &
                     (ww + ow >= 0) & (ww + ow < W))                # zero padding + no wrap
            tap = jnp.where(valid, win, 0.0)
            acc = acc + jnp.dot(tap, w2_ref[kh, kw],
                                preferred_element_type=jnp.float32)
    t2 = jnp.maximum(acc + b2_ref[...], 0.0)                        # (HW, Cb)

    # ---- conv3 (1x1) + folded BN3 + residual + ReLU, fused epilogue in VMEM.
    out = jnp.dot(t2, w3_ref[...], preferred_element_type=jnp.float32)
    out = out + b3_ref[...] + r_ref[...].astype(jnp.float32)
    o_ref[...] = jnp.maximum(out, 0.0).astype(o_ref.dtype)


def _fold_bn(conv_w, gamma, beta, mean, var, eps=1e-5):
    """Fold inference-mode BatchNorm into an OIHW conv weight. Returns (w, bias)."""
    scale = gamma / jnp.sqrt(var + eps)                 # (Cout,)
    w = conv_w * scale[:, None, None, None]
    b = beta - mean * scale
    return w, b


def bottleneck_forward(x, params, *, stride=1, dilation=1, residual=None):
    """Pallas TPU forward of the DLA Bottleneck module (eval-mode BatchNorm).

    x: (N, Cin, H, W) in NCHW, exactly like the PyTorch module.
    """
    if stride != 1:
        # TODO(synk): stride > 1 needs spatial subsampling after conv2.
        raise NotImplementedError("BottleneckPallas currently supports stride=1 only")

    N, Cin, H, W = x.shape
    w1, b1 = _fold_bn(params["conv1_w"], *params["bn1"])
    w2, b2 = _fold_bn(params["conv2_w"], *params["bn2"])
    w3, b3 = _fold_bn(params["conv3_w"], *params["bn3"])
    Cb = w1.shape[0]
    Cout = w3.shape[0]

    if residual is None:
        residual = x
    assert residual.shape == (N, Cout, H, W), "residual shape must match the output"

    HW = H * W
    f32 = jnp.float32

    # Channels-last, spatial flattened onto the MXU row (sublane) axis.
    x2 = jnp.transpose(x, (0, 2, 3, 1)).reshape(N, HW, Cin).astype(f32)
    r2 = jnp.transpose(residual, (0, 2, 3, 1)).reshape(N, HW, Cout).astype(f32)

    # Folded weights in matmul layout.
    w1m = jnp.transpose(w1[:, :, 0, 0], (1, 0)).astype(f32)         # (Cin, Cb)
    w2m = jnp.transpose(w2, (2, 3, 1, 0)).astype(f32)               # (3, 3, Cb_in, Cb_out)
    w3m = jnp.transpose(w3[:, :, 0, 0], (1, 0)).astype(f32)         # (Cb, Cout)
    b1m = b1.reshape(1, Cb).astype(f32)
    b2m = b2.reshape(1, Cb).astype(f32)
    b3m = b3.reshape(1, Cout).astype(f32)

    # Precomputed spatial (row, col) index of every flattened pixel (avoids in-kernel
    # integer div/mod); tiny and reused for every image.
    p = jnp.arange(HW, dtype=jnp.int32)
    hh = (p // W).reshape(HW, 1)
    ww = (p % W).reshape(HW, 1)

    # Scratch staging buffer: pad enough rows (rounded to a sublane multiple) so every
    # tap window read stays inside the allocation.
    max_shift = dilation * (W + 1)
    pad_rows = ((max_shift + 7) // 8) * 8

    kernel = functools.partial(_bottleneck_kernel, H=H, W=W,
                               dilation=dilation, pad_rows=pad_rows)

    out2 = pl.pallas_call(
        kernel,
        out_shape=jax.ShapeDtypeStruct((N, HW, Cout), f32),
        grid_spec=pltpu.PrefetchScalarGridSpec(
            num_scalar_prefetch=0,
            grid=(N,),
            in_specs=[
                pl.BlockSpec((None, HW, Cin), lambda n: (n, 0, 0)),    # x
                pl.BlockSpec((None, HW, Cout), lambda n: (n, 0, 0)),   # residual
                pl.BlockSpec((HW, 1), lambda n: (0, 0)),               # hh
                pl.BlockSpec((HW, 1), lambda n: (0, 0)),               # ww
                pl.BlockSpec((Cin, Cb), lambda n: (0, 0)),             # w1 (folded)
                pl.BlockSpec((1, Cb), lambda n: (0, 0)),               # b1
                pl.BlockSpec((3, 3, Cb, Cb), lambda n: (0, 0, 0, 0)),  # w2 (folded)
                pl.BlockSpec((1, Cb), lambda n: (0, 0)),               # b2
                pl.BlockSpec((Cb, Cout), lambda n: (0, 0)),            # w3 (folded)
                pl.BlockSpec((1, Cout), lambda n: (0, 0)),             # b3
            ],
            out_specs=pl.BlockSpec((None, HW, Cout), lambda n: (n, 0, 0)),
            scratch_shapes=[pltpu.VMEM((HW + 2 * pad_rows, Cb), f32)],
        ),
        compiler_params=pltpu.CompilerParams(
            dimension_semantics=("parallel",),    # batch axis splits across TCs (v7x)
        ),
    )(x2, r2, hh, ww, w1m, b1m, w2m, b2m, w3m, b3m)

    out = out2.reshape(N, H, W, Cout).transpose(0, 3, 1, 2)
    return out.astype(x.dtype)


class BottleneckPallas:
    """JAX/Pallas mirror of DLA's Bottleneck (inference-mode BatchNorm)."""

    expansion = 4

    def __init__(self, inplanes, planes, stride=1, dilation=1, *, key,
                 dtype=jnp.float32):
        bottle_planes = planes // self.expansion
        ks = jax.random.split(key, 6)

        def bn_params(k, c):
            k0, k1, k2, k3 = jax.random.split(k, 4)
            gamma = jax.random.uniform(k0, (c,), dtype, 0.5, 1.5)
            beta = 0.1 * jax.random.normal(k1, (c,), dtype)
            mean = 0.1 * jax.random.normal(k2, (c,), dtype)
            var = jax.random.uniform(k3, (c,), dtype, 0.5, 1.5)
            return gamma, beta, mean, var

        self.params = {
            "conv1_w": jax.random.normal(ks[0], (bottle_planes, inplanes, 1, 1),
                                         dtype) / math.sqrt(inplanes),
            "conv2_w": jax.random.normal(ks[1], (bottle_planes, bottle_planes, 3, 3),
                                         dtype) / math.sqrt(9 * bottle_planes),
            "conv3_w": jax.random.normal(ks[2], (planes, bottle_planes, 1, 1),
                                         dtype) / math.sqrt(bottle_planes),
            "bn1": bn_params(ks[3], bottle_planes),
            "bn2": bn_params(ks[4], bottle_planes),
            "bn3": bn_params(ks[5], planes),
        }
        self.stride = stride
        self.dilation = dilation

    def __call__(self, x, residual=None):
        return bottleneck_forward(x, self.params, stride=self.stride,
                                  dilation=self.dilation, residual=residual)


def bottleneck_reference(x, params, *, stride=1, dilation=1, residual=None, eps=1e-5):
    """Pure-JAX (XLA) reference matching the PyTorch module in eval mode."""

    def conv(v, w, stride=1, dilation=1, padding=0):
        return lax.conv_general_dilated(
            v, w, window_strides=(stride, stride),
            padding=[(padding, padding), (padding, padding)],
            rhs_dilation=(dilation, dilation),
            dimension_numbers=("NCHW", "OIHW", "NCHW"),
            precision=lax.Precision.HIGHEST)

    def bn(v, p):
        gamma, beta, mean, var = p
        s = gamma / jnp.sqrt(var + eps)
        return v * s[None, :, None, None] + (beta - mean * s)[None, :, None, None]

    if residual is None:
        residual = x
    out = jax.nn.relu(bn(conv(x, params["conv1_w"]), params["bn1"]))
    out = jax.nn.relu(bn(conv(out, params["conv2_w"], stride=stride,
                              dilation=dilation, padding=dilation), params["bn2"]))
    out = bn(conv(out, params["conv3_w"]), params["bn3"])
    return jax.nn.relu(out + residual)


if __name__ == "__main__":
    key = jax.random.PRNGKey(0)
    k_mod, k_x = jax.random.split(key)

    # Small NCHW input; planes=64 -> bottle_planes=16 (expansion=4).
    N, C, H, W = 2, 64, 16, 16
    x = jax.random.normal(k_x, (N, C, H, W), dtype=jnp.float32)

    mod = BottleneckPallas(inplanes=C, planes=C, stride=1, dilation=1, key=k_mod)
    y = jax.block_until_ready(mod(x))

    assert y.shape == x.shape and y.dtype == x.dtype

    y_ref = jax.block_until_ready(
        bottleneck_reference(x, mod.params, stride=1, dilation=1))
    err = float(jnp.max(jnp.abs(y - y_ref)))
    assert err < 2e-2, f"max |pallas - reference| = {err}"

    print("KERNEL_OK")
</pallas_src>

<mosaic_0001>
module attributes {stable_mosaic.version = 11 : i64} {
  func.func @_bottleneck_kernel(%arg0: i32, %arg1: memref<1x256x64xf32, #tpu.memory_space<vmem>>, %arg2: memref<1x256x64xf32, #tpu.memory_space<vmem>>, %arg3: memref<256x1xi32, #tpu.memory_space<vmem>>, %arg4: memref<256x1xi32, #tpu.memory_space<vmem>>, %arg5: memref<64x16xf32, #tpu.memory_space<vmem>>, %arg6: memref<1x16xf32, #tpu.memory_space<vmem>>, %arg7: memref<3x3x16x16xf32, #tpu.memory_space<vmem>>, %arg8: memref<1x16xf32, #tpu.memory_space<vmem>>, %arg9: memref<16x64xf32, #tpu.memory_space<vmem>>, %arg10: memref<1x64xf32, #tpu.memory_space<vmem>>, %arg11: memref<1x256x64xf32, #tpu.memory_space<vmem>>, %arg12: memref<304x16xf32, #tpu.memory_space<vmem>>) attributes {dimension_semantics = [#tpu.dimension_semantics<parallel>], iteration_bounds = array<i64: 2>, scalar_prefetch = 0 : i64, scratch_operands = 1 : i64, tpu.core_type = #tpu.core_type<tc>, window_params = [{transform_indices = @transform_0, window_bounds = array<i64: 1, 256, 64>}, {transform_indices = @transform_1, window_bounds = array<i64: 1, 256, 64>}, {pipeline_mode = #tpu.pipeline_mode<synchronous>, transform_indices = @transform_2, window_bounds = array<i64: 256, 1>}, {pipeline_mode = #tpu.pipeline_mode<synchronous>, transform_indices = @transform_3, window_bounds = array<i64: 256, 1>}, {pipeline_mode = #tpu.pipeline_mode<synchronous>, transform_indices = @transform_4, window_bounds = array<i64: 64, 16>}, {pipeline_mode = #tpu.pipeline_mode<synchronous>, transform_indices = @transform_5, window_bounds = array<i64: 1, 16>}, {pipeline_mode = #tpu.pipeline_mode<synchronous>, transform_indices = @transform_6, window_bounds = array<i64: 3, 3, 16, 16>}, {pipeline_mode = #tpu.pipeline_mode<synchronous>, transform_indices = @transform_7, window_bounds = array<i64: 1, 16>}, {pipeline_mode = #tpu.pipeline_mode<synchronous>, transform_indices = @transform_8, window_bounds = array<i64: 16, 64>}, {pipeline_mode = #tpu.pipeline_mode<synchronous>, transform_indices = @transform_9, window_bounds = array<i64: 1, 64>}, {transform_indices = @transform_10, window_bounds = array<i64: 1, 256, 64>}]} {
    %c0 = arith.constant 0 : index
    %c0_0 = arith.constant 0 : index
    %c0_1 = arith.constant 0 : index
    %0 = vector.load %arg1[%c0, %c0_0, %c0_1] : memref<1x256x64xf32, #tpu.memory_space<vmem>>, vector<1x256x64xf32>
    %1 = vector.shape_cast %0 : vector<1x256x64xf32> to vector<256x64xf32>
    %c0_2 = arith.constant 0 : index
    %c0_3 = arith.constant 0 : index
    %2 = vector.load %arg5[%c0_2, %c0_3] : memref<64x16xf32, #tpu.memory_space<vmem>>, vector<64x16xf32>
    %cst = arith.constant dense<0.000000e+00> : vector<256x16xf32>
    %3 = tpu.matmul %1, %2, %cst {dimension_numbers = #tpu.dot_dimension_numbers<[1], [0], [0], [1], [0, 0, 1, 1], [], []>} : vector<256x64xf32>, vector<64x16xf32>, vector<256x16xf32> -> vector<256x16xf32>
    %c0_4 = arith.constant 0 : index
    %c0_5 = arith.constant 0 : index
    %4 = vector.load %arg6[%c0_4, %c0_5] : memref<1x16xf32, #tpu.memory_space<vmem>>, vector<1x16xf32>
    %5 = vector.broadcast %4 : vector<1x16xf32> to vector<256x16xf32>
    %6 = arith.addf %3, %5 : vector<256x16xf32>
    %cst_6 = arith.constant 0.000000e+00 : f32
    %7 = vector.broadcast %cst_6 : f32 to vector<256x16xf32>
    %8 = arith.maximumf %6, %7 : vector<256x16xf32>
    %cst_7 = arith.constant 0.000000e+00 : f32
    %9 = vector.broadcast %cst_7 : f32 to vector<304x16xf32>
    %c0_8 = arith.constant 0 : index
    %c0_9 = arith.constant 0 : index
    %10 = vector.load %arg12[%c0_8, %c0_9] : memref<304x16xf32, #tpu.memory_space<vmem>>, vector<304x16xf32>
    tpu.vector_store %arg12[%c0_8, %c0_9], %9 {strides = array<i32>} : memref<304x16xf32, #tpu.memory_space<vmem>>, vector<304x16xf32>,
    %c24 = arith.constant 24 : index
    %c0_10 = arith.constant 0 : index
    %11 = vector.load %arg12[%c24, %c0_10] : memref<304x16xf32, #tpu.memory_space<vmem>>, vector<256x16xf32>
    tpu.vector_store %arg12[%c24, %c0_10], %8 {strides = array<i32>} : memref<304x16xf32, #tpu.memory_space<vmem>>, vector<256x16xf32>,
    %c0_11 = arith.constant 0 : index
    %c0_12 = arith.constant 0 : index
    %12 = vector.load %arg3[%c0_11, %c0_12] : memref<256x1xi32, #tpu.memory_space<vmem>>, vector<256x1xi32>
    %c0_13 = arith.constant 0 : index
    %c0_14 = arith.constant 0 : index
    %13 = vector.load %arg4[%c0_13, %c0_14] : memref<256x1xi32, #tpu.memory_space<vmem>>, vector<256x1xi32>
    %cst_15 = arith.constant 0.000000e+00 : f32
    %14 = vector.broadcast %cst_15 : f32 to vector<256x16xf32>
    %c7 = arith.constant 7 : index
    %c0_16 = arith.constant 0 : index
    %15 = vector.load %arg12[%c7, %c0_16] : memref<304x16xf32, #tpu.memory_space<vmem>>, vector<256x16xf32>
    %c-1_i32 = arith.constant -1 : i32
    %16 = vector.broadcast %c-1_i32 : i32 to vector<256x1xi32>
    %17 = arith.addi %12, %16 : vector<256x1xi32>
    %c0_i32 = arith.constant 0 : i32
    %18 = vector.broadcast %c0_i32 : i32 to vector<256x1xi32>
    %19 = arith.cmpi sge, %17, %18 : vector<256x1xi32>
    %c-1_i32_17 = arith.constant -1 : i32
    %20 = vector.broadcast %c-1_i32_17 : i32 to vector<256x1xi32>
    %21 = arith.addi %12, %20 : vector<256x1xi32>
    %c16_i32 = arith.constant 16 : i32
    %22 = vector.broadcast %c16_i32 : i32 to vector<256x1xi32>
    %23 = arith.cmpi slt, %21, %22 : vector<256x1xi32>
    %24 = arith.andi %19, %23 : vector<256x1xi1>
    %c-1_i32_18 = arith.constant -1 : i32
    %25 = vector.broadcast %c-1_i32_18 : i32 to vector<256x1xi32>
    %26 = arith.addi %13, %25 : vector<256x1xi32>
    %c0_i32_19 = arith.constant 0 : i32
    %27 = vector.broadcast %c0_i32_19 : i32 to vector<256x1xi32>
    %28 = arith.cmpi sge, %26, %27 : vector<256x1xi32>
    %29 = arith.andi %24, %28 : vector<256x1xi1>
    %c-1_i32_20 = arith.constant -1 : i32
    %30 = vector.broadcast %c-1_i32_20 : i32 to vector<256x1xi32>
    %31 = arith.addi %13, %30 : vector<256x1xi32>
    %c16_i32_21 = arith.constant 16 : i32
    %32 = vector.broadcast %c16_i32_21 : i32 to vector<256x1xi32>
    %33 = arith.cmpi slt, %31, %32 : vector<256x1xi32>
    %34 = arith.andi %29, %33 : vector<256x1xi1>
    %cst_22 = arith.constant 0.000000e+00 : f32
    %35 = vector.shape_cast %34 : vector<256x1xi1> to vector<256x1xi1>
    %36 = vector.broadcast %35 : vector<256x1xi1> to vector<256x16xi1>
    %37 = vector.broadcast %cst_22 : f32 to vector<256x16xf32>
    %38 = arith.select %36, %15, %37 : vector<256x16xi1>, vector<256x16xf32>
    %c0_23 = arith.constant 0 : index
    %c0_24 = arith.constant 0 : index
    %c0_25 = arith.constant 0 : index
    %c0_26 = arith.constant 0 : index
    %39 = vector.load %arg7[%c0_23, %c0_24, %c0_25, %c0_26] : memref<3x3x16x16xf32, #tpu.memory_space<vmem>>, vector<1x1x16x16xf32>
    %40 = vector.shape_cast %39 : vector<1x1x16x16xf32> to vector<16x16xf32>
    %cst_27 = arith.constant dense<0.000000e+00> : vector<256x16xf32>
    %41 = tpu.matmul %38, %40, %cst_27 {dimension_numbers = #tpu.dot_dimension_numbers<[1], [0], [0], [1], [0, 0, 1, 1], [], []>} : vector<256x16xf32>, vector<16x16xf32>, vector<256x16xf32> -> vector<256x16xf32>
    %42 = arith.addf %14, %41 : vector<256x16xf32>
    %c8 = arith.constant 8 : index
    %c0_28 = arith.constant 0 : index
    %43 = vector.load %arg12[%c8, %c0_28] : memref<304x16xf32, #tpu.memory_space<vmem>>, vector<256x16xf32>
    %c-1_i32_29 = arith.constant -1 : i32
    %44 = vector.broadcast %c-1_i32_29 : i32 to vector<256x1xi32>
    %45 = arith.addi %12, %44 : vector<256x1xi32>
    %c0_i32_30 = arith.constant 0 : i32
    %46 = vector.broadcast %c0_i32_30 : i32 to vector<256x1xi32>
    %47 = arith.cmpi sge, %45, %46 : vector<256x1xi32>
    %c-1_i32_31 = arith.constant -1 : i32
    %48 = vector.broadcast %c-1_i32_31 : i32 to vector<256x1xi32>
    %49 = arith.addi %12, %48 : vector<256x1xi32>
    %c16_i32_32 = arith.constant 16 : i32
    %50 = vector.broadcast %c16_i32_32 : i32 to vector<256x1xi32>
    %51 = arith.cmpi slt, %49, %50 : vector<256x1xi32>
    %52 = arith.andi %47, %51 : vector<256x1xi1>
    %c0_i32_33 = arith.constant 0 : i32
    %53 = vector.broadcast %c0_i32_33 : i32 to vector<256x1xi32>
    %54 = arith.addi %13, %53 : vector<256x1xi32>
    %c0_i32_34 = arith.constant 0 : i32
    %55 = vector.broadcast %c0_i32_34 : i32 to vector<256x1xi32>
    %56 = arith.cmpi sge, %54, %55 : vector<256x1xi32>
    %57 = arith.andi %52, %56 : vector<256x1xi1>
    %c0_i32_35 = arith.constant 0 : i32
    %58 = vector.broadcast %c0_i32_35 : i32 to vector<256x1xi32>
    %59 = arith.addi %13, %58 : vector<256x1xi32>
    %c16_i32_36 = arith.constant 16 : i32
    %60 = vector.broadcast %c16_i32_36 : i32 to vector<256x1xi32>
    %61 = arith.cmpi slt, %59, %60 : vector<256x1xi32>
    %62 = arith.andi %57, %61 : vector<256x1xi1>
    %cst_37 = arith.constant 0.000000e+00 : f32
    %63 = vector.shape_cast %62 : vector<256x1xi1> to vector<256x1xi1>
    %64 = vector.broadcast %63 : vector<256x1xi1> to vector<256x16xi1>
    %65 = vector.broadcast %cst_37 : f32 to vector<256x16xf32>
    %66 = arith.select %64, %43, %65 : vector<256x16xi1>, vector<256x16xf32>
    %c0_38 = arith.constant 0 : index
    %c1 = arith.constant 1 : index
    %c0_39 = arith.constant 0 : index
    %c0_40 = arith.constant 0 : index
    %67 = vector.load %arg7[%c0_38, %c1, %c0_39, %c0_40] : memref<3x3x16x16xf32, #tpu.memory_space<vmem>>, vector<1x1x16x16xf32>
    %68 = vector.shape_cast %67 : vector<1x1x16x16xf32> to vector<16x16xf32>
    %cst_41 = arith.constant dense<0.000000e+00> : vector<256x16xf32>
    %69 = tpu.matmul %66, %68, %cst_41 {dimension_numbers = #tpu.dot_dimension_numbers<[1], [0], [0], [1], [0, 0, 1, 1], [], []>} : vector<256x16xf32>, vector<16x16xf32>, vector<256x16xf32> -> vector<256x16xf32>
    %70 = arith.addf %42, %69 : vector<256x16xf32>
    %c9 = arith.constant 9 : index
    %c0_42 = arith.constant 0 : index
    %71 = vector.load %arg12[%c9, %c0_42] : memref<304x16xf32, #tpu.memory_space<vmem>>, vector<256x16xf32>
    %c-1_i32_43 = arith.constant -1 : i32
    %72 = vector.broadcast %c-1_i32_43 : i32 to vector<256x1xi32>
    %73 = arith.addi %12, %72 : vector<256x1xi32>
    %c0_i32_44 = arith.constant 0 : i32
    %74 = vector.broadcast %c0_i32_44 : i32 to vector<256x1xi32>
    %75 = arith.cmpi sge, %73, %74 : vector<256x1xi32>
    %c-1_i32_45 = arith.constant -1 : i32
    %76 = vector.broadcast %c-1_i32_45 : i32 to vector<256x1xi32>
    %77 = arith.addi %12, %76 : vector<256x1xi32>
    %c16_i32_46 = arith.constant 16 : i32
    %78 = vector.broadcast %c16_i32_46 : i32 to vector<256x1xi32>
    %79 = arith.cmpi slt, %77, %78 : vector<256x1xi32>
    %80 = arith.andi %75, %79 : vector<256x1xi1>
    %c1_i32 = arith.constant 1 : i32
    %81 = vector.broadcast %c1_i32 : i32 to vector<256x1xi32>
    %82 = arith.addi %13, %81 : vector<256x1xi32>
    %c0_i32_47 = arith.constant 0 : i32
    %83 = vector.broadcast %c0_i32_47 : i32 to vector<256x1xi32>
    %84 = arith.cmpi sge, %82, %83 : vector<256x1xi32>
    %85 = arith.andi %80, %84 : vector<256x1xi1>
    %c1_i32_48 = arith.constant 1 : i32
    %86 = vector.broadcast %c1_i32_48 : i32 to vector<256x1xi32>
    %87 = arith.addi %13, %86 : vector<256x1xi32>
    %c16_i32_49 = arith.constant 16 : i32
    %88 = vector.broadcast %c16_i32_49 : i32 to vector<256x1xi32>
    %89 = arith.cmpi slt, %87, %88 : vector<256x1xi32>
    %90 = arith.andi %85, %89 : vector<256x1xi1>
    %cst_50 = arith.constant 0.000000e+00 : f32
    %91 = vector.shape_cast %90 : vector<256x1xi1> to vector<256x1xi1>
    %92 = vector.broadcast %91 : vector<256x1xi1> to vector<256x16xi1>
    %93 = vector.broadcast %cst_50 : f32 to vector<256x16xf32>
    %94 = arith.select %92, %71, %93 : vector<256x16xi1>, vector<256x16xf32>
    %c0_51 = arith.constant 0 : index
    %c2 = arith.constant 2 : index
    %c0_52 = arith.constant 0 : index
    %c0_53 = arith.constant 0 : index
    %95 = vector.load %arg7[%c0_51, %c2, %c0_52, %c0_53] : memref<3x3x16x16xf32, #tpu.memory_space<vmem>>, vector<1x1x16x16xf32>
    %96 = vector.shape_cast %95 : vector<1x1x16x16xf32> to vector<16x16xf32>
    %cst_54 = arith.constant dense<0.000000e+00> : vector<256x16xf32>
    %97 = tpu.matmul %94, %96, %cst_54 {dimension_numbers = #tpu.dot_dimension_numbers<[1], [0], [0], [1], [0, 0, 1, 1], [], []>} : vector<256x16xf32>, vector<16x16xf32>, vector<256x16xf32> -> vector<256x16xf32>
    %98 = arith.addf %70, %97 : vector<256x16xf32>
    %c23 = arith.constant 23 : index
    %c0_55 = arith.constant 0 : index
    %99 = vector.load %arg12[%c23, %c0_55] : memref<304x16xf32, #tpu.memory_space<vmem>>, vector<256x16xf32>
    %c0_i32_56 = arith.constant 0 : i32
    %100 = vector.broadcast %c0_i32_56 : i32 to vector<256x1xi32>
    %101 = arith.addi %12, %100 : vector<256x1xi32>
    %c0_i32_57 = arith.constant 0 : i32
    %102 = vector.broadcast %c0_i32_57 : i32 to vector<256x1xi32>
    %103 = arith.cmpi sge, %101, %102 : vector<256x1xi32>
    %c0_i32_58 = arith.constant 0 : i32
    %104 = vector.broadcast %c0_i32_58 : i32 to vector<256x1xi32>
    %105 = arith.addi %12, %104 : vector<256x1xi32>
    %c16_i32_59 = arith.constant 16 : i32
    %106 = vector.broadcast %c16_i32_59 : i32 to vector<256x1xi32>
    %107 = arith.cmpi slt, %105, %106 : vector<256x1xi32>
    %108 = arith.andi %103, %107 : vector<256x1xi1>
    %c-1_i32_60 = arith.constant -1 : i32
    %109 = vector.broadcast %c-1_i32_60 : i32 to vector<256x1xi32>
    %110 = arith.addi %13, %109 : vector<256x1xi32>
    %c0_i32_61 = arith.constant 0 : i32
    %111 = vector.broadcast %c0_i32_61 : i32 to vector<256x1xi32>
    %112 = arith.cmpi sge, %110, %111 : vector<256x1xi32>
    %113 = arith.andi %108, %112 : vector<256x1xi1>
    %c-1_i32_62 = arith.constant -1 : i32
    %114 = vector.broadcast %c-1_i32_62 : i32 to vector<256x1xi32>
    %115 = arith.addi %13, %114 : vector<256x1xi32>
    %c16_i32_63 = arith.constant 16 : i32
    %116 = vector.broadcast %c16_i32_63 : i32 to vector<256x1xi32>
    %117 = arith.cmpi slt, %115, %116 : vector<256x1xi32>
    %118 = arith.andi %113, %117 : vector<256x1xi1>
    %cst_64 = arith.constant 0.000000e+00 : f32
    %119 = vector.shape_cast %118 : vector<256x1xi1> to vector<256x1xi1>
    %120 = vector.broadcast %119 : vector<256x1xi1> to vector<256x16xi1>
    %121 = vector.broadcast %cst_64 : f32 to vector<256x16xf32>
    %122 = arith.select %120, %99, %121 : vector<256x16xi1>, vector<256x16xf32>
    %c1_65 = arith.constant 1 : index
    %c0_66 = arith.constant 0 : index
    %c0_67 = arith.constant 0 : index
    %c0_68 = arith.constant 0 : index
    %123 = vector.load %arg7[%c1_65, %c0_66, %c0_67, %c0_68] : memref<3x3x16x16xf32, #tpu.memory_space<vmem>>, vector<1x1x16x16xf32>
    %124 = vector.shape_cast %123 : vector<1x1x16x16xf32> to vector<16x16xf32>
    %cst_69 = arith.constant dense<0.000000e+00> : vector<256x16xf32>
    %125 = tpu.matmul %122, %124, %cst_69 {dimension_numbers = #tpu.dot_dimension_numbers<[1], [0], [0], [1], [0, 0, 1, 1], [], []>} : vector<256x16xf32>, vector<16x16xf32>, vector<256x16xf32> -> vector<256x16xf32>
    %126 = arith.addf %98, %125 : vector<256x16xf32>
    %c24_70 = arith.constant 24 : index
    %c0_71 = arith.constant 0 : index
    %127 = vector.load %arg12[%c24_70, %c0_71] : memref<304x16xf32, #tpu.memory_space<vmem>>, vector<256x16xf32>
    %c0_i32_72 = arith.constant 0 : i32
    %128 = vector.broadcast %c0_i32_72 : i32 to vector<256x1xi32>
    %129 = arith.addi %12, %128 : vector<256x1xi32>
    %c0_i32_73 = arith.constant 0 : i32
    %130 = vector.broadcast %c0_i32_73 : i32 to vector<256x1xi32>
    %131 = arith.cmpi sge, %129, %130 : vector<256x1xi32>
    %c0_i32_74 = arith.constant 0 : i32
    %132 = vector.broadcast %c0_i32_74 : i32 to vector<256x1xi32>
    %133 = arith.addi %12, %132 : vector<256x1xi32>
    %c16_i32_75 = arith.constant 16 : i32
    %134 = vector.broadcast %c16_i32_75 : i32 to vector<256x1xi32>
    %135 = arith.cmpi slt, %133, %134 : vector<256x1xi32>
    %136 = arith.andi %131, %135 : vector<256x1xi1>
    %c0_i32_76 = arith.constant 0 : i32
    %137 = vector.broadcast %c0_i32_76 : i32 to vector<256x1xi32>
    %138 = arith.addi %13, %137 : vector<256x1xi32>
    %c0_i32_77 = arith.constant 0 : i32
    %139 = vector.broadcast %c0_i32_77 : i32 to vector<256x1xi32>
    %140 = arith.cmpi sge, %138, %139 : vector<256x1xi32>
    %141 = arith.andi %136, %140 : vector<256x1xi1>
    %c0_i32_78 = arith.constant 0 : i32
    %142 = vector.broadcast %c0_i32_78 : i32 to vector<256x1xi32>
    %143 = arith.addi %13, %142 : vector<256x1xi32>
    %c16_i32_79 = arith.constant 16 : i32
    %144 = vector.broadcast %c16_i32_79 : i32 to vector<256x1xi32>
    %145 = arith.cmpi slt, %143, %144 : vector<256x1xi32>
    %146 = arith.andi %141, %145 : vector<256x1xi1>
    %cst_80 = arith.constant 0.000000e+00 : f32
    %147 = vector.shape_cast %146 : vector<256x1xi1> to vector<256x1xi1>
    %148 = vector.broadcast %147 : vector<256x1xi1> to vector<256x16xi1>
    %149 = vector.broadcast %cst_80 : f32 to vector<256x16xf32>
    %150 = arith.select %148, %127, %149 : vector<256x16xi1>, vector<256x16xf32>
    %c1_81 = arith.constant 1 : index
    %c1_82 = arith.constant 1 : index
    %c0_83 = arith.constant 0 : index
    %c0_84 = arith.constant 0 : index
    %151 = vector.load %arg7[%c1_81, %c1_82, %c0_83, %c0_84] : memref<3x3x16x16xf32, #tpu.memory_space<vmem>>, vector<1x1x16x16xf32>
    %152 = vector.shape_cast %151 : vector<1x1x16x16xf32> to vector<16x16xf32>
    %cst_85 = arith.constant dense<0.000000e+00> : vector<256x16xf32>
    %153 = tpu.matmul %150, %152, %cst_85 {dimension_numbers = #tpu.dot_dimension_numbers<[1], [0], [0], [1], [0, 0, 1, 1], [], []>} : vector<256x16xf32>, vector<16x16xf32>, vector<256x16xf32> -> vector<256x16xf32>
    %154 = arith.addf %126, %153 : vector<256x16xf32>
    %c25 = arith.constant 25 : index
    %c0_86 = arith.constant 0 : index
    %155 = vector.load %arg12[%c25, %c0_86] : memref<304x16xf32, #tpu.memory_space<vmem>>, vector<256x16xf32>
    %c0_i32_87 = arith.constant 0 : i32
    %156 = vector.broadcast %c0_i32_87 : i32 to vector<256x1xi32>
    %157 = arith.addi %12, %156 : vector<256x1xi32>
    %c0_i32_88 = arith.constant 0 : i32
    %158 = vector.broadcast %c0_i32_88 : i32 to vector<256x1xi32>
    %159 = arith.cmpi sge, %157, %158 : vector<256x1xi32>
    %c0_i32_89 = arith.constant 0 : i32
    %160 = vector.broadcast %c0_i32_89 : i32 to vector<256x1xi32>
    %161 = arith.addi %12, %160 : vector<256x1xi32>
    %c16_i32_90 = arith.constant 16 : i32
    %162 = vector.broadcast %c16_i32_90 : i32 to vector<256x1xi32>
    %163 = arith.cmpi slt, %161, %162 : vector<256x1xi32>
    %164 = arith.andi %159, %163 : vector<256x1xi1>
    %c1_i32_91 = arith.constant 1 : i32
    %165 = vector.broadcast %c1_i32_91 : i32 to vector<256x1xi32>
    %166 = arith.addi %13, %165 : vector<256x1xi32>
    %c0_i32_92 = arith.constant 0 : i32
    %167 = vector.broadcast %c0_i32_92 : i32 to vector<256x1xi32>
    %168 = arith.cmpi sge, %166, %167 : vector<256x1xi32>
    %169 = arith.andi %164, %168 : vector<256x1xi1>
    %c1_i32_93 = arith.constant 1 : i32
    %170 = vector.broadcast %c1_i32_93 : i32 to vector<256x1xi32>
    %171 = arith.addi %13, %170 : vector<256x1xi32>
    %c16_i32_94 = arith.constant 16 : i32
    %172 = vector.broadcast %c16_i32_94 : i32 to vector<256x1xi32>
    %173 = arith.cmpi slt, %171, %172 : vector<256x1xi32>
    %174 = arith.andi %169, %173 : vector<256x1xi1>
    %cst_95 = arith.constant 0.000000e+00 : f32
    %175 = vector.shape_cast %174 : vector<256x1xi1> to vector<256x1xi1>
    %176 = vector.broadcast %175 : vector<256x1xi1> to vector<256x16xi1>
    %177 = vector.broadcast %cst_95 : f32 to vector<256x16xf32>
    %178 = arith.select %176, %155, %177 : vector<256x16xi1>, vector<256x16xf32>
    %c1_96 = arith.constant 1 : index
    %c2_97 = arith.constant 2 : index
    %c0_98 = arith.constant 0 : index
    %c0_99 = arith.constant 0 : index
    %179 = vector.load %arg7[%c1_96, %c2_97, %c0_98, %c0_99] : memref<3x3x16x16xf32, #tpu.memory_space<vmem>>, vector<1x1x16x16xf32>
    %180 = vector.shape_cast %179 : vector<1x1x16x16xf32> to vector<16x16xf32>
    %cst_100 = arith.constant dense<0.000000e+00> : vector<256x16xf32>
    %181 = tpu.matmul %178, %180, %cst_100 {dimension_numbers = #tpu.dot_dimension_numbers<[1], [0], [0], [1], [0, 0, 1, 1], [], []>} : vector<256x16xf32>, vector<16x16xf32>, vector<256x16xf32> -> vector<256x16xf32>
    %182 = arith.addf %154, %181 : vector<256x16xf32>
    %c39 = arith.constant 39 : index
    %c0_101 = arith.constant 0 : index
    %183 = vector.load %arg12[%c39, %c0_101] : memref<304x16xf32, #tpu.memory_space<vmem>>, vector<256x16xf32>
    %c1_i32_102 = arith.constant 1 : i32
    %184 = vector.broadcast %c1_i32_102 : i32 to vector<256x1xi32>
    %185 = arith.addi %12, %184 : vector<256x1xi32>
    %c0_i32_103 = arith.constant 0 : i32
    %186 = vector.broadcast %c0_i32_103 : i32 to vector<256x1xi32>
    %187 = arith.cmpi sge, %185, %186 : vector<256x1xi32>
    %c1_i32_104 = arith.constant 1 : i32
    %188 = vector.broadcast %c1_i32_104 : i32 to vector<256x1xi32>
    %189 = arith.addi %12, %188 : vector<256x1xi32>
    %c16_i32_105 = arith.constant 16 : i32
    %190 = vector.broadcast %c16_i32_105 : i32 to vector<256x1xi32>
    %191 = arith.cmpi slt, %189, %190 : vector<256x1xi32>
    %192 = arith.andi %187, %191 : vector<256x1xi1>
    %c-1_i32_106 = arith.constant -1 : i32
    %193 = vector.broadcast %c-1_i32_106 : i32 to vector<256x1xi32>
    %194 = arith.addi %13, %193 : vector<256x1xi32>
    %c0_i32_107 = arith.constant 0 : i32
    %195 = vector.broadcast %c0_i32_107 : i32 to vector<256x1xi32>
    %196 = arith.cmpi sge, %194, %195 : vector<256x1xi32>
    %197 = arith.andi %192, %196 : vector<256x1xi1>
    %c-1_i32_108 = arith.constant -1 : i32
    %198 = vector.broadcast %c-1_i32_108 : i32 to vector<256x1xi32>
    %199 = arith.addi %13, %198 : vector<256x1xi32>
    %c16_i32_109 = arith.constant 16 : i32
    %200 = vector.broadcast %c16_i32_109 : i32 to vector<256x1xi32>
    %201 = arith.cmpi slt, %199, %200 : vector<256x1xi32>
    %202 = arith.andi %197, %201 : vector<256x1xi1>
    %cst_110 = arith.constant 0.000000e+00 : f32
    %203 = vector.shape_cast %202 : vector<256x1xi1> to vector<256x1xi1>
    %204 = vector.broadcast %203 : vector<256x1xi1> to vector<256x16xi1>
    %205 = vector.broadcast %cst_110 : f32 to vector<256x16xf32>
    %206 = arith.select %204, %183, %205 : vector<256x16xi1>, vector<256x16xf32>
    %c2_111 = arith.constant 2 : index
    %c0_112 = arith.constant 0 : index
    %c0_113 = arith.constant 0 : index
    %c0_114 = arith.constant 0 : index
    %207 = vector.load %arg7[%c2_111, %c0_112, %c0_113, %c0_114] : memref<3x3x16x16xf32, #tpu.memory_space<vmem>>, vector<1x1x16x16xf32>
    %208 = vector.shape_cast %207 : vector<1x1x16x16xf32> to vector<16x16xf32>
    %cst_115 = arith.constant dense<0.000000e+00> : vector<256x16xf32>
    %209 = tpu.matmul %206, %208, %cst_115 {dimension_numbers = #tpu.dot_dimension_numbers<[1], [0], [0], [1], [0, 0, 1, 1], [], []>} : vector<256x16xf32>, vector<16x16xf32>, vector<256x16xf32> -> vector<256x16xf32>
    %210 = arith.addf %182, %209 : vector<256x16xf32>
    %c40 = arith.constant 40 : index
    %c0_116 = arith.constant 0 : index
    %211 = vector.load %arg12[%c40, %c0_116] : memref<304x16xf32, #tpu.memory_space<vmem>>, vector<256x16xf32>
    %c1_i32_117 = arith.constant 1 : i32
    %212 = vector.broadcast %c1_i32_117 : i32 to vector<256x1xi32>
    %213 = arith.addi %12, %212 : vector<256x1xi32>
    %c0_i32_118 = arith.constant 0 : i32
    %214 = vector.broadcast %c0_i32_118 : i32 to vector<256x1xi32>
    %215 = arith.cmpi sge, %213, %214 : vector<256x1xi32>
    %c1_i32_119 = arith.constant 1 : i32
    %216 = vector.broadcast %c1_i32_119 : i32 to vector<256x1xi32>
    %217 = arith.addi %12, %216 : vector<256x1xi32>
    %c16_i32_120 = arith.constant 16 : i32
    %218 = vector.broadcast %c16_i32_120 : i32 to vector<256x1xi32>
    %219 = arith.cmpi slt, %217, %218 : vector<256x1xi32>
    %220 = arith.andi %215, %219 : vector<256x1xi1>
    %c0_i32_121 = arith.constant 0 : i32
    %221 = vector.broadcast %c0_i32_121 : i32 to vector<256x1xi32>
    %222 = arith.addi %13, %221 : vector<256x1xi32>
    %c0_i32_122 = arith.constant 0 : i32
    %223 = vector.broadcast %c0_i32_122 : i32 to vector<256x1xi32>
    %224 = arith.cmpi sge, %222, %223 : vector<256x1xi32>
    %225 = arith.andi %220, %224 : vector<256x1xi1>
    %c0_i32_123 = arith.constant 0 : i32
    %226 = vector.broadcast %c0_i32_123 : i32 to vector<256x1xi32>
    %227 = arith.addi %13, %226 : vector<256x1xi32>
    %c16_i32_124 = arith.constant 16 : i32
    %228 = vector.broadcast %c16_i32_124 : i32 to vector<256x1xi32>
    %229 = arith.cmpi slt, %227, %228 : vector<256x1xi32>
    %230 = arith.andi %225, %229 : vector<256x1xi1>
    %cst_125 = arith.constant 0.000000e+00 : f32
    %231 = vector.shape_cast %230 : vector<256x1xi1> to vector<256x1xi1>
    %232 = vector.broadcast %231 : vector<256x1xi1> to vector<256x16xi1>
    %233 = vector.broadcast %cst_125 : f32 to vector<256x16xf32>
    %234 = arith.select %232, %211, %233 : vector<256x16xi1>, vector<256x16xf32>
    %c2_126 = arith.constant 2 : index
    %c1_127 = arith.constant 1 : index
    %c0_128 = arith.constant 0 : index
    %c0_129 = arith.constant 0 : index
    %235 = vector.load %arg7[%c2_126, %c1_127, %c0_128, %c0_129] : memref<3x3x16x16xf32, #tpu.memory_space<vmem>>, vector<1x1x16x16xf32>
    %236 = vector.shape_cast %235 : vector<1x1x16x16xf32> to vector<16x16xf32>
    %cst_130 = arith.constant dense<0.000000e+00> : vector<256x16xf32>
    %237 = tpu.matmul %234, %236, %cst_130 {dimension_numbers = #tpu.dot_dimension_numbers<[1], [0], [0], [1], [0, 0, 1, 1], [], []>} : vector<256x16xf32>, vector<16x16xf32>, vector<256x16xf32> -> vector<256x16xf32>
    %238 = arith.addf %210, %237 : vector<256x16xf32>
    %c41 = arith.constant 41 : index
    %c0_131 = arith.constant 0 : index
    %239 = vector.load %arg12[%c41, %c0_131] : memref<304x16xf32, #tpu.memory_space<vmem>>, vector<256x16xf32>
    %c1_i32_132 = arith.constant 1 : i32
    %240 = vector.broadcast %c1_i32_132 : i32 to vector<256x1xi32>
    %241 = arith.addi %12, %240 : vector<256x1xi32>
    %c0_i32_133 = arith.constant 0 : i32
    %242 = vector.broadcast %c0_i32_133 : i32 to vector<256x1xi32>
    %243 = arith.cmpi sge, %241, %242 : vector<256x1xi32>
    %c1_i32_134 = arith.constant 1 : i32
    %244 = vector.broadcast %c1_i32_134 : i32 to vector<256x1xi32>
    %245 = arith.addi %12, %244 : vector<256x1xi32>
    %c16_i32_135 = arith.constant 16 : i32
    %246 = vector.broadcast %c16_i32_135 : i32 to vector<256x1xi32>
    %247 = arith.cmpi slt, %245, %246 : vector<256x1xi32>
    %248 = arith.andi %243, %247 : vector<256x1xi1>
    %c1_i32_136 = arith.constant 1 : i32
    %249 = vector.broadcast %c1_i32_136 : i32 to vector<256x1xi32>
    %250 = arith.addi %13, %249 : vector<256x1xi32>
    %c0_i32_137 = arith.constant 0 : i32
    %251 = vector.broadcast %c0_i32_137 : i32 to vector<256x1xi32>
    %252 = arith.cmpi sge, %250, %251 : vector<256x1xi32>
    %253 = arith.andi %248, %252 : vector<256x1xi1>
    %c1_i32_138 = arith.constant 1 : i32
    %254 = vector.broadcast %c1_i32_138 : i32 to vector<256x1xi32>
    %255 = arith.addi %13, %254 : vector<256x1xi32>
    %c16_i32_139 = arith.constant 16 : i32
    %256 = vector.broadcast %c16_i32_139 : i32 to vector<256x1xi32>
    %257 = arith.cmpi slt, %255, %256 : vector<256x1xi32>
    %258 = arith.andi %253, %257 : vector<256x1xi1>
    %cst_140 = arith.constant 0.000000e+00 : f32
    %259 = vector.shape_cast %258 : vector<256x1xi1> to vector<256x1xi1>
    %260 = vector.broadcast %259 : vector<256x1xi1> to vector<256x16xi1>
    %261 = vector.broadcast %cst_140 : f32 to vector<256x16xf32>
    %262 = arith.select %260, %239, %261 : vector<256x16xi1>, vector<256x16xf32>
    %c2_141 = arith.constant 2 : index
    %c2_142 = arith.constant 2 : index
    %c0_143 = arith.constant 0 : index
    %c0_144 = arith.constant 0 : index
    %263 = vector.load %arg7[%c2_141, %c2_142, %c0_143, %c0_144] : memref<3x3x16x16xf32, #tpu.memory_space<vmem>>, vector<1x1x16x16xf32>
    %264 = vector.shape_cast %263 : vector<1x1x16x16xf32> to vector<16x16xf32>
    %cst_145 = arith.constant dense<0.000000e+00> : vector<256x16xf32>
    %265 = tpu.matmul %262, %264, %cst_145 {dimension_numbers = #tpu.dot_dimension_numbers<[1], [0], [0], [1], [0, 0, 1, 1], [], []>} : vector<256x16xf32>, vector<16x16xf32>, vector<256x16xf32> -> vector<256x16xf32>
    %266 = arith.addf %238, %265 : vector<256x16xf32>
    %c0_146 = arith.constant 0 : index
    %c0_147 = arith.constant 0 : index
    %267 = vector.load %arg8[%c0_146, %c0_147] : memref<1x16xf32, #tpu.memory_space<vmem>>, vector<1x16xf32>
    %268 = vector.broadcast %267 : vector<1x16xf32> to vector<256x16xf32>
    %269 = arith.addf %266, %268 : vector<256x16xf32>
    %cst_148 = arith.constant 0.000000e+00 : f32
    %270 = vector.broadcast %cst_148 : f32 to vector<256x16xf32>
    %271 = arith.maximumf %269, %270 : vector<256x16xf32>
    %c0_149 = arith.constant 0 : index
    %c0_150 = arith.constant 0 : index
    %272 = vector.load %arg9[%c0_149, %c0_150] : memref<16x64xf32, #tpu.memory_space<vmem>>, vector<16x64xf32>
    %cst_151 = arith.constant dense<0.000000e+00> : vector<256x64xf32>
    %273 = tpu.matmul %271, %272, %cst_151 {dimension_numbers = #tpu.dot_dimension_numbers<[1], [0], [0], [1], [0, 0, 1, 1], [], []>} : vector<256x16xf32>, vector<16x64xf32>, vector<256x64xf32> -> vector<256x64xf32>
    %c0_152 = arith.constant 0 : index
    %c0_153 = arith.constant 0 : index
    %274 = vector.load %arg10[%c0_152, %c0_153] : memref<1x64xf32, #tpu.memory_space<vmem>>, vector<1x64xf32>
    %275 = vector.broadcast %274 : vector<1x64xf32> to vector<256x64xf32>
    %276 = arith.addf %273, %275 : vector<256x64xf32>
    %c0_154 = arith.constant 0 : index
    %c0_155 = arith.constant 0 : index
    %c0_156 = arith.constant 0 : index
    %277 = vector.load %arg2[%c0_154, %c0_155, %c0_156] : memref<1x256x64xf32, #tpu.memory_space<vmem>>, vector<1x256x64xf32>
    %278 = vector.shape_cast %277 : vector<1x256x64xf32> to vector<256x64xf32>
    %279 = arith.addf %276, %278 : vector<256x64xf32>
    %cst_157 = arith.constant 0.000000e+00 : f32
    %280 = vector.broadcast %cst_157 : f32 to vector<256x64xf32>
    %281 = arith.maximumf %279, %280 : vector<256x64xf32>
    %c0_158 = arith.constant 0 : index
    %c0_159 = arith.constant 0 : index
    %c0_160 = arith.constant 0 : index
    %282 = vector.load %arg11[%c0_158, %c0_159, %c0_160] : memref<1x256x64xf32, #tpu.memory_space<vmem>>, vector<1x256x64xf32>
    %283 = vector.shape_cast %282 : vector<1x256x64xf32> to vector<256x64xf32>
    %284 = vector.shape_cast %281 : vector<256x64xf32> to vector<1x256x64xf32>
    tpu.vector_store %arg11[%c0_158, %c0_159, %c0_160], %284 {strides = array<i32>} : memref<1x256x64xf32, #tpu.memory_space<vmem>>, vector<1x256x64xf32>,
    return
  }
  func.func @transform_0(%arg0: i32) -> (i32, i32, i32) {
    %c0_i32 = arith.constant 0 : i32
    %c0_i32_0 = arith.constant 0 : i32
    %c0_i32_1 = arith.constant 0 : i32
    return %arg0, %c0_i32, %c0_i32_0 : i32, i32, i32
  }
  func.func @transform_1(%arg0: i32) -> (i32, i32, i32) {
    %c0_i32 = arith.constant 0 : i32
    %c0_i32_0 = arith.constant 0 : i32
    %c0_i32_1 = arith.constant 0 : i32
    return %arg0, %c0_i32, %c0_i32_0 : i32, i32, i32
  }
  func.func @transform_2(%arg0: i32) -> (i32, i32) {
    %c0_i32 = arith.constant 0 : i32
    %c0_i32_0 = arith.constant 0 : i32
    %c0_i32_1 = arith.constant 0 : i32
    return %c0_i32, %c0_i32_0 : i32, i32
  }
  func.func @transform_3(%arg0: i32) -> (i32, i32) {
    %c0_i32 = arith.constant 0 : i32
    %c0_i32_0 = arith.constant 0 : i32
    %c0_i32_1 = arith.constant 0 : i32
    return %c0_i32, %c0_i32_0 : i32, i32
  }
  func.func @transform_4(%arg0: i32) -> (i32, i32) {
    %c0_i32 = arith.constant 0 : i32
    %c0_i32_0 = arith.constant 0 : i32
    %c0_i32_1 = arith.constant 0 : i32
    return %c0_i32, %c0_i32_0 : i32, i32
  }
  func.func @transform_5(%arg0: i32) -> (i32, i32) {
    %c0_i32 = arith.constant 0 : i32
    %c0_i32_0 = arith.constant 0 : i32
    %c0_i32_1 = arith.constant 0 : i32
    return %c0_i32, %c0_i32_0 : i32, i32
  }
  func.func @transform_6(%arg0: i32) -> (i32, i32, i32, i32) {
    %c0_i32 = arith.constant 0 : i32
    %c0_i32_0 = arith.constant 0 : i32
    %c0_i32_1 = arith.constant 0 : i32
    %c0_i32_2 = arith.constant 0 : i32
    %c0_i32_3 = arith.constant 0 : i32
    return %c0_i32, %c0_i32_0, %c0_i32_1, %c0_i32_2 : i32, i32, i32, i32
  }
  func.func @transform_7(%arg0: i32) -> (i32, i32) {
    %c0_i32 = arith.constant 0 : i32
    %c0_i32_0 = arith.constant 0 : i32
    %c0_i32_1 = arith.constant 0 : i32
    return %c0_i32, %c0_i32_0 : i32, i32
  }
  func.func @transform_8(%arg0: i32) -> (i32, i32) {
    %c0_i32 = arith.constant 0 : i32
    %c0_i32_0 = arith.constant 0 : i32
    %c0_i32_1 = arith.constant 0 : i32
    return %c0_i32, %c0_i32_0 : i32, i32
  }
  func.func @transform_9(%arg0: i32) -> (i32, i32) {
    %c0_i32 = arith.constant 0 : i32
    %c0_i32_0 = arith.constant 0 : i32
    %c0_i32_1 = arith.constant 0 : i32
    return %c0_i32, %c0_i32_0 : i32, i32
  }
  func.func @transform_10(%arg0: i32) -> (i32, i32, i32) {
    %c0_i32 = arith.constant 0 : i32
    %c0_i32_0 = arith.constant 0 : i32
    %c0_i32_1 = arith.constant 0 : i32
    return %arg0, %c0_i32, %c0_i32_0 : i32, i32, i32
  }
}

</mosaic_0001>

<bundles_post_ra>
// kernel: tpu_custom_call.1
= control target key start
LH: loop header
LB: loop body
LE: loop exit
PB: predicated region body
PF: predicated region fallthrough
CT: control target
= control target key end

     0   :  { %s7195_s13 = smov 0   ;;  %s14272_s0 = inlined_call_operand.vmem [shape: f32[2,256,64], index: 0, kind: input, shape index: {}]   ;;  %s14273_s1 = inlined_call_operand.vmem [shape: f32[2,256,64], index: 1, kind: input, shape index: {}]   ;;  %s14274_s2 = inlined_call_operand.vmem [shape: s32[256,1], index: 2, kind: input, shape index: {}]   ;;  %s14275_s3 = inlined_call_operand.vmem [shape: s32[256,1], index: 3, kind: input, shape index: {}]   ;;  %s14276_s4 = inlined_call_operand.vmem [shape: f32[64,16], index: 4, kind: input, shape index: {}]   ;;  %s14277_s5 = inlined_call_operand.vmem [shape: f32[1,16], index: 5, kind: input, shape index: {}]   ;;  %s14278_s6 = inlined_call_operand.vmem [shape: f32[3,3,16,16], index: 6, kind: input, shape index: {}]   ;;  %s14279_s7 = inlined_call_operand.vmem [shape: f32[1,16], index: 7, kind: input, shape index: {}]   ;;  %s14280_s8 = inlined_call_operand.vmem [shape: f32[16,64], index: 8, kind: input, shape index: {}]   ;;  %s14281_s9 = inlined_call_operand.vmem [shape: f32[1,64], index: 9, kind: input, shape index: {}]   ;;  %s14282_s10 = inlined_call_operand.vmem [shape: f32[2,256,64], index: 10, kind: output, shape index: {}]  }
   0x1 LB: > { %s6610_s14 = sadd.s32 4294967295, %s7136_s13   ;;  %p6614_p0 = scmp.ge.s32.totalorder %s7136_s13, 1  ;;  %s7136_s13 = sphi %s7195_s13, %s20_s13  }
   0x2   : > { %p322_p1 = scmp.lt.s32.totalorder %s7136_s13, 3 }
   0x4   : > { %p323_p2 = pnand %p6614_p0, %p322_p1 }
   0x6   : > { %326 = sbr.rel (%p323_p2) target bundleno = 1376 (0x560), region = 60 }
   0xb   : > { %v419_v0 = vld [vmem:[%s14276_s4 + $0x38] sm:$0xff]  ;;  %v418_v1 = vld [vmem:[%s14276_s4 + $0x30] sm:$0xff]  ;;  %p7209_p3 = scmp.lt.s32.totalorder %s6610_s14, 1  ;;  %v417_v2 = vld [vmem:[%s14276_s4 + $0x28] sm:$0xff]  ;;  %v14346_v3 = vmov 0   ;;  %v14886_v16 = vmov 0 }
   0xc   : > { %529 = vmatpush.msra.mxu0 %v419_v0  ;;  %7012 = vset.pattern.permute.xlu2 %v14346_v3  ;;  %v741_v4 = vld [vmem:[%s14274_s2 + $0x20] sm:$0xff]  ;;  %v739_v8 = vld [vmem:[%s14274_s2 + $0x10] sm:$0xff]  ;;  %v742_v17 = vld [vmem:[%s14274_s2 + $0x28] sm:$0xff]  ;;  %v14890_v24 = vmov 0  ;;  %v14898_v40 = vmov 0  ;;  %v14902_v46 = vmov 0 }
   0xd   : > { %v7223_v5 = vld [vmem:[%s14275_s3 + $0x20] sm:$0xff]  ;;  %7011 = vset.pattern.permute.xlu1 %v14346_v3  ;;  %7010 = vset.pattern.permute.xlu0 %v14346_v3  ;;  %v837_v6 = vadd.s32 4294967295, %v741_v4  ;;  %v7236_v9 = vld [vmem:[%s14275_s3 + $0x10] sm:$0xff]  ;;  %v835_v11 = vadd.s32 4294967295, %v739_v8  ;;  %s17075_s14 = smov (!%p7209_p3, %s6610_s14), 1  ;;  %v7266_v18 = vld [vmem:[%s14275_s3 + $0x28] sm:$0xff] }
   0xe   : > { %14881 = vst [vmem:[#allocation3_spill] sm:$0xff] %v7223_v5  ;;  %v7228_v7 = vadd.s32 4294967295, %v7223_v5  ;;  %v737_v10 = vld [vmem:[%s14274_s2] sm:$0xff]  ;;  %530 = vmatpush.msra.mxu0 %v418_v1  ;;  %v7242_v12 = vadd.s32 4294967295, %v7236_v9  ;;  %v415_v20 = vld [vmem:[%s14276_s4 + $0x18] sm:$0xff]  ;;  %v838_v21 = vadd.s32 4294967295, %v742_v17 }
   0xf   : > { %14883 = vst [vmem:[#allocation5_spill] sm:$0xff] %v7236_v9  ;;  %v7247_v13 = vld [vmem:[%s14275_s3] sm:$0xff]  ;;  %v833_v14 = vadd.s32 4294967295, %v737_v10  ;;  %vm869_vm0 = vcmp.ge.s32.totalorder %v837_v6, 0  ;;  %vm901_vm1 = vcmp.lt.s32.totalorder %v837_v6, 16  ;;  %vm867_vm5 = vcmp.ge.s32.totalorder %v835_v11, 0 }
  0x10   : > { %14882 = vst [vmem:[#allocation4_spill] sm:$0xff] %v7228_v7  ;;  %v416_v15 = vld [vmem:[%s14276_s4 + $0x20] sm:$0xff]  ;;  %vm14284_vm2 = vcmp.ge.s32.totalorder %v7228_v7, 0  ;;  %vm14283_vm3 = vcmp.lt.s32.totalorder %v7228_v7, 16  ;;  %531 = vmatpush.msra.mxu0 %v417_v2  ;;  %vm7256_vm4 = vmand %vm869_vm0, %vm901_vm1  ;;  %vm899_vm6 = vcmp.lt.s32.totalorder %v835_v11, 16  ;;  %vm14290_vm8 = vcmp.ge.s32.totalorder %v7242_v12, 0 }
  0x11   : > { %14884 = vst [vmem:[#allocation6_spill] sm:$0xff] %v7242_v12  ;;  %v14887_v16 = vsel %vm7256_vm4, 4294967295, %v14886_v16  ;;  %vm1029_vm7 = vmand %vm7256_vm4, %vm14284_vm2  ;;  %v7274_v19 = vadd.s32 4294967295, %v7247_v13  ;;  %vm14288_vm10 = vcmp.lt.s32.totalorder %v7242_v12, 16  ;;  %v740_v22 = vld [vmem:[%s14274_s2 + $0x18] sm:$0xff]  ;;  %s7285_s26 = sshll.u32 %s17075_s14, 8 }
  0x12   : > { %14885 = vst [vmem:[#allocation7_spill] sm:$0xff] %v7247_v13  ;;  %532 = vmatpush.msra.mxu0 %v416_v15  ;;  %vm1093_vm9 = vmand %vm1029_vm7, %vm14283_vm3  ;;  %vm865_vm12 = vcmp.ge.s32.totalorder %v833_v14, 0  ;;  %vm897_vm13 = vcmp.lt.s32.totalorder %v833_v14, 16  ;;  %v414_v25 = vld [vmem:[%s14276_s4 + $0x10] sm:$0xff]  ;;  %v7297_v26 = vadd.s32 4294967295, %v7266_v18  ;;  %v7302_v27 = vld [vmem:[%s14275_s3 + $0x18] sm:$0xff]  ;;  %s7322_s18 = scalar_lea.vmem %s14272_s0, %s7285_s26  ;;  %s14013_s20 = scalar_lea.vmem %s14273_s1, %s7285_s26 }
  0x13   : > { %14888 = vst [vmem:[#allocation8_spill] sm:$0xff] %v7266_v18  ;;  %v1125_v23 = vsel %vm1093_vm9, 1, %v14346_v3  ;;  %vm7289_vm11 = vmand %vm867_vm5, %vm899_vm6  ;;  %vm14286_vm15 = vcmp.ge.s32.totalorder %v7274_v19, 0  ;;  %vm14285_vm1 = vcmp.lt.s32.totalorder %v7274_v19, 16  ;;  %v413_v28 = vld [vmem:[%s14276_s4 + $0x8] sm:$0xff]  ;;  %v836_v29 = vadd.s32 4294967295, %v740_v22  ;;  %s14032_s25 = scalar_lea.vmem %s14282_s10, %s7285_s26 }
  0x14   : > { %14889 = vst [vmem:[#allocation9_spill] sm:$0xff] %v7274_v19  ;;  %v14891_v24 = vsel %vm7289_vm11, 4294967295, %v14890_v24  ;;  %1166 = vperm.xlu2 %7012, %v1125_v23   ;;  %vm1027_vm14 = vmand %vm7289_vm11, %vm14290_vm8  ;;  %533 = vmatpush.msra.mxu0 %v415_v20  ;;  %v738_v30 = vld [vmem:[%s14274_s2 + $0x8] sm:$0xff]  ;;  %vm870_vm6 = vcmp.ge.s32.totalorder %v838_v21, 0  ;;  %vm902_vm7 = vcmp.lt.s32.totalorder %v838_v21, 16  ;;  %v7332_v33 = vadd.s32 4294967295, %v7302_v27 }
  0x15   : > { %14892 = vst [vmem:[#allocation10_spill] sm:$0xff] %v7297_v26  ;;  %vm1091_vm0 = vmand %vm1027_vm14, %vm14288_vm10  ;;  %v7337_v34 = vld [vmem:[%s14275_s3 + $0x8] sm:$0xff]  ;;  %v412_v35 = vld [vmem:[%s14276_s4] sm:$0xff]  ;;  %vm14289_vm14 = vcmp.lt.s32.totalorder %v7297_v26, 16  ;;  %v834_v36 = vadd.s32 4294967295, %v738_v30  ;;  %vm868_vm2 = vcmp.ge.s32.totalorder %v836_v29, 0 }
  0x16   : > { %14893 = vst [vmem:[#allocation11_spill] sm:$0xff] %v7302_v27  ;;  %v1123_v31 = vsel %vm1091_vm0, 1, %v14346_v3  ;;  %vm7327_vm5 = vmand %vm865_vm12, %vm897_vm13  ;;  %534 = vmatpush.msra.mxu0 %v414_v25  ;;  %vm14287_vm12 = vcmp.ge.s32.totalorder %v7297_v26, 0  ;;  %v380_v37 = vld [vmem:[%s7322_s18] sm:$0xff]  ;;  %vm14294_vm0 = vcmask 523264   ;;  %v7362_v41 = vadd.s32 4294967295, %v7337_v34 }
  0x17   : > { %14896 = vst [vmem:[#allocation12_spill] sm:$0xff] %v7332_v33  ;;  %1160 = vperm.xlu1 %7011, %v1123_v31   ;;  %vm1025_vm9 = vmand %vm7327_vm5, %vm14286_vm15  ;;  %v745_v38 = vld [vmem:[%s14274_s2 + $0x40] sm:$0xff]  ;;  %v744_v44 = vld [vmem:[%s14274_s2 + $0x38] sm:$0xff]  ;;  %vm898_vm10 = vcmp.lt.s32.totalorder %v834_v36, 16  ;;  %v14906_v52 = vmov 0  ;;  %v14911_v60 = vmov 0 }
  0x18   : > { %14897 = vst [vmem:[#allocation13_spill] sm:$0xff] %v7337_v34  ;;  %vm1089_vm13 = vmand %vm1025_vm9, %vm14285_vm1  ;;  %535 = vmatpush.msra.mxu0 %v413_v28  ;;  %vm900_vm9 = vcmp.lt.s32.totalorder %v836_v29, 16  ;;  %v7367_v42 = vld [vmem:[%s14275_s3 + $0x40] sm:$0xff]  ;;  %vm14292_vm1 = vcmp.lt.s32.totalorder %v7332_v33, 16  ;;  %v841_v43 = vadd.s32 4294967295, %v745_v38  ;;  %v7392_v48 = vld [vmem:[%s14275_s3 + $0x38] sm:$0xff] }
  0x19   : > { %v1121_v39 = vsel %vm1089_vm13, 1, %v14346_v3  ;;  %vm7357_vm3 = vmand %vm870_vm6, %vm902_vm7  ;;  %14900 = vst [vmem:[#allocation14_spill] sm:$0xff] %v7362_v41  ;;  %vm14291_vm7 = vcmp.ge.s32.totalorder %v7332_v33, 0  ;;  %v7387_v47 = vadd.s32 4294967295, %v7367_v42  ;;  %v840_v49 = vadd.s32 4294967295, %v744_v44  ;;  %v743_v50 = vld [vmem:[%s14274_s2 + $0x30] sm:$0xff] }
  0x1a   : > { %v14899_v40 = vsel %vm7357_vm3, 4294967295, %v14898_v40  ;;  %14901 = vst [vmem:[#allocation15_spill] sm:$0xff] %v7367_v42  ;;  %1154 = vperm.xlu0 %7010, %v1121_v39   ;;  %536 = vmatpush.msra.mxu0 %v412_v35  ;;  %vm1030_vm6 = vmand %vm7357_vm3, %vm14287_vm12  ;;  %vm866_vm12 = vcmp.ge.s32.totalorder %v834_v36, 0  ;;  %vm873_vm8 = vcmp.ge.s32.totalorder %v841_v43, 0  ;;  %v7411_v53 = vadd.s32 4294967295, %v7392_v48  ;;  %v7416_v54 = vld [vmem:[%s14275_s3 + $0x30] sm:$0xff] }
  0x1b   : > { %vm1094_vm13 = vmand %vm1030_vm6, %vm14289_vm14  ;;  %6621 = vmatmul.msk.f32.vlgmr.msra.gmra.mxu0 %vm14294_vm0, %v380_v37  ;;  %14904 = vst [vmem:[#allocation16_spill] sm:$0xff] %v7387_v47  ;;  %v381_v55 = vld [vmem:[%s7322_s18 + $0x8] sm:$0xff]  ;;  %v748_v56 = vld [vmem:[%s14274_s2 + $0x58] sm:$0xff]  ;;  %v839_v57 = vadd.s32 4294967295, %v743_v50  ;;  %vm904_vm0 = vcmp.lt.s32.totalorder %v840_v49, 16  ;;  %v7441_v61 = vadd.s32 4294967295, %v7416_v54 }
  0x1c   : > { %v1126_v45 = vsel %vm1094_vm13, 1, %v14346_v3  ;;  %vm7382_vm15 = vmand %vm868_vm2, %vm900_vm9  ;;  %14905 = vst [vmem:[#allocation17_spill] sm:$0xff] %v7392_v48  ;;  %vm14293_vm9 = vcmp.ge.s32.totalorder %v7362_v41, 0  ;;  %vm14295_vm13 = vcmp.lt.s32.totalorder %v7362_v41, 16  ;;  %v7433_v58 = vld [vmem:[%s14275_s3 + $0x58] sm:$0xff]  ;;  %v844_v62 = vadd.s32 4294967295, %v748_v56 }
  0x1d   : > { %v14903_v46 = vsel %vm7382_vm15, 4294967295, %v14902_v46  ;;  %1169 = vperm.xlu2 %7012, %v1126_v45   ;;  %vm1028_vm2 = vmand %vm7382_vm15, %vm14291_vm7  ;;  %vm905_vm7 = vcmp.lt.s32.totalorder %v841_v43, 16  ;;  %14908 = vst [vmem:[#allocation18_spill] sm:$0xff] %v7411_v53  ;;  %v747_v63 = vld [vmem:[%s14274_s2 + $0x50] sm:$0xff]  ;;  %v14916_v1 = vmov 0  ;;  %v7461_v2 = vadd.s32 4294967295, %v7433_v58 }
  0x1e   : > { %vm1092_vm6 = vmand %vm1028_vm2, %vm14292_vm1  ;;  %14909 = vst [vmem:[#allocation19_spill] sm:$0xff] %v7416_v54  ;;  %v7466_v4 = vld [vmem:[%s14275_s3 + $0x50] sm:$0xff]  ;;  %v843_v6 = vadd.s32 4294967295, %v747_v63  ;;  %v746_v8 = vld [vmem:[%s14274_s2 + $0x48] sm:$0xff]  ;;  %v14921_v11 = vmov 0  ;;  %v14925_v23 = vmov 0 }
  0x1f   : > { %v1124_v51 = vsel %vm1092_vm6, 1, %v14346_v3  ;;  %vm7406_vm14 = vmand %vm866_vm12, %vm898_vm10  ;;  %vm14298_vm10 = vcmp.ge.s32.totalorder %v7387_v47, 0  ;;  %14910 = vst [vmem:[#allocation20_spill] sm:$0xff] %v7433_v58  ;;  %vm14914_vm6 = vcmask 523264   ;;  %v7485_v14 = vadd.s32 4294967295, %v7466_v4  ;;  %v7490_v15 = vld [vmem:[%s14275_s3 + $0x48] sm:$0xff] }
  0x20   : > { %v14907_v52 = vsel %vm7406_vm14, 4294967295, %v14906_v52  ;;  %1163 = vperm.xlu1 %7011, %v1124_v51   ;;  %vm1026_vm2 = vmand %vm7406_vm14, %vm14293_vm9  ;;  %vm872_vm9 = vcmp.ge.s32.totalorder %v840_v49, 0  ;;  %14913 = vst [vmem:[#allocation21_spill] sm:$0xff] %v7441_v61  ;;  %v382_v17 = vld [vmem:[%s7322_s18 + $0x10] sm:$0xff]  ;;  %v842_v20 = vadd.s32 4294967295, %v746_v8  ;;  %v7510_v25 = vadd.s32 4294967295, %v7490_v15 }
  0x21   : > { %vm1090_vm12 = vmand %vm1026_vm2, %vm14295_vm13  ;;  %vm903_vm13 = vcmp.lt.s32.totalorder %v839_v57, 16  ;;  %14918 = vst [vmem:[#allocation22_spill] sm:$0xff] %v7461_v2  ;;  %v751_v21 = vld [vmem:[%s14274_s2 + $0x70] sm:$0xff]  ;;  %v750_v30 = vld [vmem:[%s14274_s2 + $0x68] sm:$0xff]  ;;  %v14931_v35 = vmov 0  ;;  %v14935_v45 = vmov 0 }
  0x22   : > { %v1122_v59 = vsel %vm1090_vm12, 1, %v14346_v3  ;;  %vm7436_vm1 = vmand %vm873_vm8, %vm905_vm7  ;;  %vm14915_vm8 = vcmp.lt.s32.totalorder %v7387_v47, 16  ;;  %vm14301_vm12 = vcmp.lt.s32.totalorder %v7411_v53, 16  ;;  %14919 = vst [vmem:[#allocation23_spill] sm:$0xff] %v7466_v4  ;;  %v7516_v28 = vld [vmem:[%s14275_s3 + $0x70] sm:$0xff]  ;;  %v847_v29 = vadd.s32 4294967295, %v751_v21 }
  0x23   : > { %v14912_v60 = vsel %vm7436_vm1, 4294967295, %v14911_v60  ;;  %1157 = vperm.xlu0 %7010, %v1122_v59   ;;  %vm1033_vm2 = vmand %vm7436_vm1, %vm14298_vm10  ;;  %6622 = vmatmul.msk.f32.gmra.mxu0 %vm14914_vm6, %v381_v55  ;;  %vm871_vm10 = vcmp.ge.s32.totalorder %v839_v57, 0  ;;  %vm14920_vm6 = vcmp.ge.s32.totalorder %v7411_v53, 0  ;;  %vm876_vm1 = vcmp.ge.s32.totalorder %v844_v62, 0  ;;  %14923 = vst [vmem:[#allocation24_spill] sm:$0xff] %v7485_v14  ;;  %v7540_v37 = vld [vmem:[%s14275_s3 + $0x68] sm:$0xff] }
  0x24   : > { %vm1097_vm7 = vmand %vm1033_vm2, %vm14915_vm8  ;;  %vm14305_vm8 = vcmp.lt.s32.totalorder %v7441_v61, 16  ;;  %14924 = vst [vmem:[#allocation25_spill] sm:$0xff] %v7490_v15  ;;  %v7535_v36 = vadd.s32 4294967295, %v7516_v28  ;;  %v846_v38 = vadd.s32 4294967295, %v750_v30  ;;  %v749_v39 = vld [vmem:[%s14274_s2 + $0x60] sm:$0xff]  ;;  %v383_v43 = vld [vmem:[%s7322_s18 + $0x18] sm:$0xff] }
  0x25   : > { %v1129_v0 = vsel %vm1097_vm7, 1, %v14346_v3  ;;  %vm7456_vm4 = vmand %vm872_vm9, %vm904_vm0  ;;  %vm14304_vm9 = vcmp.ge.s32.totalorder %v7441_v61, 0  ;;  %14927 = vst [vmem:[#allocation26_spill] sm:$0xff] %v7510_v25  ;;  %v7560_v49 = vadd.s32 4294967295, %v7540_v37  ;;  %v7565_v50 = vld [vmem:[%s14275_s3 + $0x60] sm:$0xff]  ;;  %v845_v51 = vadd.s32 4294967295, %v749_v39 }
  0x26   : > { %v14917_v1 = vsel %vm7456_vm4, 4294967295, %v14916_v1  ;;  %1178 = vperm.xlu2 %7012, %v1129_v0   ;;  %vm1032_vm0 = vmand %vm7456_vm4, %vm14920_vm6  ;;  %vm908_vm6 = vcmp.lt.s32.totalorder %v844_v62, 16  ;;  %vm875_vm4 = vcmp.ge.s32.totalorder %v843_v6, 0  ;;  %14929 = vst [vmem:[#allocation27_spill] sm:$0xff] %v7516_v28  ;;  %v754_v55 = vld [vmem:[%s14274_s2 + $0x88] sm:$0xff]  ;;  %v14940_v57 = vmov 0 }
  0x27   : > { %vm1096_vm2 = vmand %vm1032_vm0, %vm14301_vm12  ;;  %14933 = vst [vmem:[#allocation28_spill] sm:$0xff] %v7535_v36  ;;  %v7585_v59 = vadd.s32 4294967295, %v7565_v50  ;;  %v7590_v62 = vld [vmem:[%s14275_s3 + $0x88] sm:$0xff]  ;;  %v850_v63 = vadd.s32 4294967295, %v754_v55  ;;  %v753_v0 = vld [vmem:[%s14274_s2 + $0x80] sm:$0xff]  ;;  %v14945_v8 = vmov 0 }
  0x28   : > { %v1128_v10 = vsel %vm1096_vm2, 1, %v14346_v3  ;;  %vm7480_vm7 = vmand %vm871_vm10, %vm903_vm13  ;;  %vm14308_vm2 = vcmp.lt.s32.totalorder %v7461_v2, 16  ;;  %vm14928_vm10 = vcmask 523264   ;;  %14934 = vst [vmem:[#allocation29_spill] sm:$0xff] %v7540_v37  ;;  %v849_v21 = vadd.s32 4294967295, %v753_v0  ;;  %v756_v0 = vld [vmem:[%s14274_s2 + $0x98] sm:$0xff] }
  0x29   : > { %v14922_v11 = vsel %vm7480_vm7, 4294967295, %v14921_v11  ;;  %1175 = vperm.xlu1 %7011, %v1128_v10   ;;  %vm1031_vm13 = vmand %vm7480_vm7, %vm14304_vm9  ;;  %vm907_vm9 = vcmp.lt.s32.totalorder %v843_v6, 16  ;;  %14937 = vst [vmem:[#allocation30_spill] sm:$0xff] %v7560_v49  ;;  %v7609_v10 = vadd.s32 4294967295, %v7590_v62  ;;  %v14949_v30 = vmov 0  ;;  %v762_v47 = vld [vmem:[%s14274_s2 + $0xc8] sm:$0xff] }
  0x2a   : > { %vm1095_vm0 = vmand %vm1031_vm13, %vm14305_vm8  ;;  %vm14930_vm13 = vcmp.ge.s32.totalorder %v7461_v2, 0  ;;  %vm14312_vm8 = vcmp.lt.s32.totalorder %v7485_v14, 16  ;;  %14938 = vst [vmem:[#allocation31_spill] sm:$0xff] %v7565_v50  ;;  %v14978_v2 = vmov 0  ;;  %v14987_v53 = vmov 0  ;;  %v765_v12 = vld [vmem:[%s14274_s2 + $0xe0] sm:$0xff] }
  0x2b   : > { %v1127_v22 = vsel %vm1095_vm0, 1, %v14346_v3  ;;  %vm7505_vm12 = vmand %vm876_vm1, %vm908_vm6  ;;  %6623 = vmatmul.msk.f32.gmra.mxu0 %vm14928_vm10, %v382_v17  ;;  %vm14309_vm6 = vcmp.ge.s32.totalorder %v7485_v14, 0  ;;  %14942 = vst [vmem:[#allocation32_spill] sm:$0xff] %v7585_v59  ;;  %v7614_v17 = vld [vmem:[%s14275_s3 + $0x80] sm:$0xff]  ;;  %v14983_v14 = vmov 0  ;;  %v14992_v26 = vmov 0 }
  0x2c   : > { %v14926_v23 = vsel %vm7505_vm12, 4294967295, %v14925_v23  ;;  %1172 = vperm.xlu0 %7010, %v1127_v22   ;;  %vm1036_vm1 = vmand %vm7505_vm12, %vm14930_vm13  ;;  %vm874_vm13 = vcmp.ge.s32.totalorder %v842_v20, 0  ;;  %vm906_vm12 = vcmp.lt.s32.totalorder %v842_v20, 16  ;;  %14943 = vst [vmem:[#allocation33_spill] sm:$0xff] %v7590_v62  ;;  %v384_v20 = vld [vmem:[%s7322_s18 + $0x20] sm:$0xff]  ;;  %v752_v22 = vld [vmem:[%s14274_s2 + $0x78] sm:$0xff] }
  0x2d   : > { %vm1100_vm0 = vmand %vm1036_vm1, %vm14308_vm2  ;;  %14947 = vst [vmem:[#allocation34_spill] sm:$0xff] %v7609_v10  ;;  %v848_v39 = vadd.s32 4294967295, %v752_v22  ;;  %v7688_v22 = vld [vmem:[%s14275_s3 + $0x98] sm:$0xff] }
  0x2e   : > { %v1132_v31 = vsel %vm1100_vm0, 1, %v14346_v3  ;;  %vm7530_vm10 = vmand %vm875_vm4, %vm907_vm9  ;;  %vm14315_vm4 = vcmp.ge.s32.totalorder %v7510_v25, 0  ;;  %vm14316_vm0 = vcmp.lt.s32.totalorder %v7510_v25, 16  ;;  %14948 = vst [vmem:[#allocation35_spill] sm:$0xff] %v7614_v17 }
  0x2f   : > { %v14932_v35 = vsel %vm7530_vm10, 4294967295, %v14931_v35  ;;  %1187 = vperm.xlu2 %7012, %v1132_v31   ;;  %vm1035_vm1 = vmand %vm7530_vm10, %vm14309_vm6  ;;  %vm879_vm6 = vcmp.ge.s32.totalorder %v847_v29, 0  ;;  %vm911_vm10 = vcmp.lt.s32.totalorder %v847_v29, 16  ;;  %v7634_v31 = vadd.s32 4294967295, %v7614_v17  ;;  %14962 = vst [vmem:[#allocation41_spill] sm:$0xff] %v7688_v22 }
  0x30   : > { %vm1099_vm9 = vmand %vm1035_vm1, %vm14312_vm8  ;;  %vm14939_vm8 = vcmask 523264  }
  0x31   : > { %v1131_v44 = vsel %vm1099_vm9, 1, %v14346_v3  ;;  %vm7555_vm2 = vmand %vm874_vm13, %vm906_vm12  ;;  %vm14319_vm9 = vcmp.lt.s32.totalorder %v7535_v36, 16  ;;  %vm910_vm12 = vcmp.lt.s32.totalorder %v846_v38, 16  ;;  %14951 = vst [vmem:[#allocation36_spill] sm:$0xff] %v7634_v31 }
  0x32   : > { %v14936_v45 = vsel %vm7555_vm2, 4294967295, %v14935_v45  ;;  %1184 = vperm.xlu1 %7011, %v1131_v44   ;;  %vm1034_vm1 = vmand %vm7555_vm2, %vm14315_vm4  ;;  %vm878_vm4 = vcmp.ge.s32.totalorder %v846_v38, 0  ;;  %vm877_vm2 = vcmp.ge.s32.totalorder %v845_v51, 0  ;;  %v7639_v38 = vld [vmem:[%s14275_s3 + $0x78] sm:$0xff] }
  0x33   : > { %vm1098_vm13 = vmand %vm1034_vm1, %vm14316_vm0  ;;  %6624 = vmatmul.msk.f32.gmra.mxu0 %vm14939_vm8, %v383_v43  ;;  %vm14944_vm8 = vcmp.ge.s32.totalorder %v7535_v36, 0  ;;  %14952 = vst [vmem:[#allocation37_spill] sm:$0xff] %v7639_v38  ;;  %v757_v43 = vld [vmem:[%s14274_s2 + $0xa0] sm:$0xff]  ;;  %v7659_v55 = vadd.s32 4294967295, %v7639_v38  ;;  %v14972_v36 = vmov 0  }
  0x34   : > { %v1130_v56 = vsel %vm1098_vm13, 1, %v14346_v3  ;;  %vm7580_vm7 = vmand %vm879_vm6, %vm911_vm10  ;;  %vm14320_vm10 = vcmp.ge.s32.totalorder %v7560_v49, 0  ;;  %vm14323_vm13 = vcmp.lt.s32.totalorder %v7560_v49, 16  ;;  %v14973_v49 = vmov 0 }
  0x35   : > { %v14941_v57 = vsel %vm7580_vm7, 4294967295, %v14940_v57  ;;  %1181 = vperm.xlu0 %7010, %v1130_v56   ;;  %vm1039_vm6 = vmand %vm7580_vm7, %vm14944_vm8  ;;  %vm909_vm8 = vcmp.lt.s32.totalorder %v845_v51, 16  ;;  %v14954_v51 = vmov 0  ;;  %14956 = vst [vmem:[#allocation38_spill] sm:$0xff] %v7659_v55  ;;  %v7664_v56 = vld [vmem:[%s14275_s3 + $0xa0] sm:$0xff] }
  0x36   : > { %vm1103_vm1 = vmand %vm1039_vm6, %vm14319_vm9  ;;  %14957 = vst [vmem:[#allocation39_spill] sm:$0xff] %v7664_v56 }
  0x37   : > { %v1135_v6 = vsel %vm1103_vm1, 1, %v14346_v3  ;;  %vm7604_vm0 = vmand %vm878_vm4, %vm910_vm12  ;;  %vm14326_vm4 = vcmp.ge.s32.totalorder %v7585_v59, 0  ;;  %vm14327_vm1 = vcmp.lt.s32.totalorder %v7585_v59, 16 }
  0x38   : > { %v14946_v8 = vsel %vm7604_vm0, 4294967295, %v14945_v8  ;;  %1196 = vperm.xlu2 %7012, %v1135_v6   ;;  %vm1038_vm6 = vmand %vm7604_vm0, %vm14320_vm10  ;;  %vm882_vm10 = vcmp.ge.s32.totalorder %v850_v63, 0  ;;  %vm914_vm0 = vcmp.lt.s32.totalorder %v850_v63, 16  ;;  %v853_v63 = vadd.s32 4294967295, %v757_v43  ;;  %v755_v43 = vld [vmem:[%s14274_s2 + $0x90] sm:$0xff] }
  0x39   : > { %vm1102_vm12 = vmand %vm1038_vm6, %vm14323_vm13  ;;  %vm14330_vm13 = vcmp.lt.s32.totalorder %v7609_v10, 16 }
  0x3a   : > { %v1134_v29 = vsel %vm1102_vm12, 1, %v14346_v3  ;;  %vm7629_vm9 = vmand %vm877_vm2, %vm909_vm8  ;;  %vm14953_vm8 = vcmask 523264   ;;  %vm913_vm2 = vcmp.lt.s32.totalorder %v849_v21, 16 }
  0x3b   : > { %v14950_v30 = vsel %vm7629_vm9, 4294967295, %v14949_v30  ;;  %1193 = vperm.xlu1 %7011, %v1134_v29   ;;  %vm1037_vm6 = vmand %vm7629_vm9, %vm14326_vm4  ;;  %6625 = vmatmul.msk.f32.gmra.mxu0 %vm14953_vm8, %v384_v20  ;;  %vm881_vm4 = vcmp.ge.s32.totalorder %v849_v21, 0  ;;  %v14959_v20 = vmov 0  ;;  %vm880_vm9 = vcmp.ge.s32.totalorder %v848_v39, 0  ;;  %v385_v29 = vld [vmem:[%s7322_s18 + $0x28] sm:$0xff] }
  0x3c   : > { %vm1101_vm12 = vmand %vm1037_vm6, %vm14327_vm1  ;;  %vm14958_vm6 = vcmp.ge.s32.totalorder %v7609_v10, 0  ;;  %v7683_v21 = vadd.s32 4294967295, %v7664_v56  ;;  %v7708_v10 = vadd.s32 4294967295, %v7688_v22 }
  0x3d   : > { %v1133_v44 = vsel %vm1101_vm12, 1, %v14346_v3  ;;  %vm7654_vm7 = vmand %vm882_vm10, %vm914_vm0  ;;  %vm14333_vm10 = vcmp.ge.s32.totalorder %v7634_v31, 0  ;;  %vm14338_vm12 = vcmp.lt.s32.totalorder %v7634_v31, 16  ;;  %v7713_v31 = vld [vmem:[%s14275_s3 + $0x90] sm:$0xff] }
  0x3e   : > { %v14955_v51 = vsel %vm7654_vm7, 4294967295, %v14954_v51  ;;  %1190 = vperm.xlu0 %7010, %v1133_v44   ;;  %vm1042_vm0 = vmand %vm7654_vm7, %vm14958_vm6  ;;  %vm912_vm6 = vcmp.lt.s32.totalorder %v848_v39, 16  ;;  %14961 = vst [vmem:[#allocation40_spill] sm:$0xff] %v7683_v21  ;;  %v852_v39 = vadd.s32 4294967295, %v756_v0  ;;  %vm885_vm7 = vcmp.ge.s32.totalorder %v853_v63, 0  ;;  %v760_v0 = vld [vmem:[%s14274_s2 + $0xb8] sm:$0xff] }
  0x3f   : > { %vm1106_vm8 = vmand %vm1042_vm0, %vm14330_vm13  ;;  %14965 = vst [vmem:[#allocation42_spill] sm:$0xff] %v7708_v10  ;;  %v7733_v59 = vadd.s32 4294967295, %v7713_v31 }
  0x40   : > { %v1138_v6 = vsel %vm1106_vm8, 1, %v14346_v3  ;;  %vm7678_vm1 = vmand %vm881_vm4, %vm913_vm2  ;;  %vm14339_vm2 = vcmp.ge.s32.totalorder %v7659_v55, 0  ;;  %vm14350_vm8 = vcmp.lt.s32.totalorder %v7659_v55, 16  ;;  %14966 = vst [vmem:[#allocation43_spill] sm:$0xff] %v7713_v31  ;;  %v7738_v55 = vld [vmem:[%s14275_s3 + $0xb8] sm:$0xff] }
  0x41   : > { %v14960_v20 = vsel %vm7678_vm1, 4294967295, %v14959_v20  ;;  %1205 = vperm.xlu2 %7012, %v1138_v6   ;;  %vm1041_vm4 = vmand %vm7678_vm1, %vm14333_vm10  ;;  %v14963_v6 = vmov 0  ;;  %vm917_vm10 = vcmp.lt.s32.totalorder %v853_v63, 16  ;;  %v851_v63 = vadd.s32 4294967295, %v755_v43  ;;  %14970 = vst [vmem:[#allocation44_spill] sm:$0xff] %v7733_v59  ;;  %v759_v43 = vld [vmem:[%s14274_s2 + $0xb0] sm:$0xff] }
  0x42   : > { %vm1105_vm0 = vmand %vm1041_vm4, %vm14338_vm12  ;;  %vm14967_vm4 = vcmask 523264   ;;  %vm14360_vm12 = vcmp.lt.s32.totalorder %v7683_v21, 16  ;;  %vm916_vm1 = vcmp.lt.s32.totalorder %v852_v39, 16  ;;  %14971 = vst [vmem:[#allocation45_spill] sm:$0xff] %v7738_v55  ;;  %v7758_v25 = vadd.s32 4294967295, %v7738_v55 }
  0x43   : > { %v1137_v44 = vsel %vm1105_vm0, 1, %v14346_v3  ;;  %vm7703_vm13 = vmand %vm880_vm9, %vm912_vm6  ;;  %6626 = vmatmul.msk.f32.gmra.mxu0 %vm14967_vm4, %v385_v29  ;;  %vm14353_vm6 = vcmp.ge.s32.totalorder %v7683_v21, 0  ;;  %v758_v21 = vld [vmem:[%s14274_s2 + $0xa8] sm:$0xff] }
  0x44   : > { %v14964_v6 = vsel %vm7703_vm13, 4294967295, %v14963_v6  ;;  %1202 = vperm.xlu1 %7011, %v1137_v44   ;;  %vm1040_vm9 = vmand %vm7703_vm13, %vm14339_vm2  ;;  %v14968_v44 = vmov 0  ;;  %vm884_vm2 = vcmp.ge.s32.totalorder %v852_v39, 0  ;;  %v856_v39 = vadd.s32 4294967295, %v760_v0  ;;  %14975 = vst [vmem:[#allocation46_spill] sm:$0xff] %v7758_v25  ;;  %v7763_v0 = vld [vmem:[%s14275_s3 + $0xb0] sm:$0xff] }
  0x45   : > { %vm1104_vm0 = vmand %vm1040_vm9, %vm14350_vm8  ;;  %14976 = vst [vmem:[#allocation47_spill] sm:$0xff] %v7763_v0 }
  0x46   : > { %v1136_v29 = vsel %vm1104_vm0, 1, %v14346_v3  ;;  %vm7728_vm4 = vmand %vm885_vm7, %vm917_vm10  ;;  %vm14365_vm7 = vcmp.ge.s32.totalorder %v7708_v10, 0  ;;  %vm14368_vm0 = vcmp.lt.s32.totalorder %v7708_v10, 16  ;;  %v386_v3 = vld [vmem:[%s7322_s18 + $0x30] sm:$0xff]  ;;  %v7783_v10 = vadd.s32 4294967295, %v7763_v0 }
  0x47   : > { %v14969_v44 = vsel %vm7728_vm4, 4294967295, %v14968_v44  ;;  %1199 = vperm.xlu0 %7010, %v1136_v29   ;;  %vm1045_vm9 = vmand %vm7728_vm4, %vm14353_vm6  ;;  %vm883_vm6 = vcmp.ge.s32.totalorder %v851_v63, 0  ;;  %vm915_vm4 = vcmp.lt.s32.totalorder %v851_v63, 16  ;;  %v855_v63 = vadd.s32 4294967295, %v759_v43  ;;  %v7788_v43 = vld [vmem:[%s14275_s3 + $0xa8] sm:$0xff] }
  0x48   : > { %vm1109_vm10 = vmand %vm1045_vm9, %vm14360_vm12  ;;  %vm14977_vm12 = vcmask 523264   ;;  %14980 = vst [vmem:[#allocation48_spill] sm:$0xff] %v7783_v10  ;;  %v7807_v61 = vadd.s32 4294967295, %v7788_v43 }
  0x49   : > { %v1141_v29 = vsel %vm1109_vm10, 1, %v14972_v36  ;;  %vm7753_vm8 = vmand %vm884_vm2, %vm916_vm1  ;;  %vm14379_vm10 = vcmp.lt.s32.totalorder %v7733_v59, 16  ;;  %vm920_vm1 = vcmp.lt.s32.totalorder %v856_v39, 16  ;;  %14981 = vst [vmem:[#allocation49_spill] sm:$0xff] %v7788_v43 }
  0x4a   : > { %v14974_v49 = vsel %vm7753_vm8, 4294967295, %v14973_v49  ;;  %1214 = vperm.xlu2 %7012, %v1141_v29   ;;  %vm1044_vm9 = vmand %vm7753_vm8, %vm14365_vm7  ;;  %vm888_vm7 = vcmp.ge.s32.totalorder %v856_v39, 0  ;;  %v763_v39 = vld [vmem:[%s14274_s2 + $0xd0] sm:$0xff]  ;;  %vm887_vm8 = vcmp.ge.s32.totalorder %v855_v63, 0  ;;  %14985 = vst [vmem:[#allocation50_spill] sm:$0xff] %v7807_v61 }
  0x4b   : > { %vm1108_vm2 = vmand %vm1044_vm9, %vm14368_vm0  ;;  %6627 = vmatmul.msk.f32.gmra.mxu0 %vm14977_vm12, %v386_v3  ;;  %vm14982_vm9 = vcmp.ge.s32.totalorder %v7733_v59, 0  ;;  %v854_v3 = vadd.s32 4294967295, %v758_v21  ;;  %v7812_v59 = vld [vmem:[%s14275_s3 + $0xd0] sm:$0xff]  ;;  %v387_v21 = vld [vmem:[%s7322_s18 + $0x38] sm:$0xff] }
  0x4c   : > { %v1140_v29 = vsel %vm1108_vm2, 1, %v14972_v36  ;;  %vm7778_vm13 = vmand %vm883_vm6, %vm915_vm4  ;;  %vm14382_vm6 = vcmp.ge.s32.totalorder %v7758_v25, 0  ;;  %vm14389_vm2 = vcmp.lt.s32.totalorder %v7758_v25, 16  ;;  %14986 = vst [vmem:[#allocation51_spill] sm:$0xff] %v7812_v59  ;;  %v7832_v33 = vadd.s32 4294967295, %v7812_v59  ;;  %v7837_v25 = vld [vmem:[%s14275_s3 + $0xc8] sm:$0xff] }
  0x4d   : > { %v14979_v2 = vsel %vm7778_vm13, 4294967295, %v14978_v2  ;;  %1211 = vperm.xlu1 %7011, %v1140_v29   ;;  %vm1043_vm12 = vmand %vm7778_vm13, %vm14982_vm9  ;;  %vm919_vm9 = vcmp.lt.s32.totalorder %v855_v63, 16  ;;  %v859_v63 = vadd.s32 4294967295, %v763_v39  ;;  %14990 = vst [vmem:[#allocation53_spill] sm:$0xff] %v7837_v25  ;;  %v761_v39 = vld [vmem:[%s14274_s2 + $0xc0] sm:$0xff] }
  0x4e   : > { %vm1107_vm4 = vmand %vm1043_vm12, %vm14379_vm10  ;;  %14989 = vst [vmem:[#allocation52_spill] sm:$0xff] %v7832_v33 }
  0x4f   : > { %v1139_v29 = vsel %vm1107_vm4, 1, %v14972_v36  ;;  %vm7802_vm0 = vmand %vm888_vm7, %vm920_vm1  ;;  %vm14394_vm7 = vcmp.ge.s32.totalorder %v7783_v10, 0  ;;  %vm14399_vm4 = vcmp.lt.s32.totalorder %v7783_v10, 16  ;;  %v766_v10 = vld [vmem:[%s14274_s2 + $0xe8] sm:$0xff] }
  0x50   : > { %v14984_v14 = vsel %vm7802_vm0, 4294967295, %v14983_v14  ;;  %1208 = vperm.xlu0 %7010, %v1139_v29   ;;  %vm1048_vm12 = vmand %vm7802_vm0, %vm14382_vm6  ;;  %vm886_vm6 = vcmp.ge.s32.totalorder %v854_v3, 0  ;;  %vm918_vm0 = vcmp.lt.s32.totalorder %v854_v3, 16  ;;  %v858_v3 = vadd.s32 4294967295, %v762_v47  ;;  %v7862_v47 = vld [vmem:[%s14275_s3 + $0xc0] sm:$0xff] }
  0x51   : > { %vm1112_vm1 = vmand %vm1048_vm12, %vm14389_vm2  ;;  %vm14410_vm2 = vcmp.lt.s32.totalorder %v7807_v61, 16  ;;  %14995 = vst [vmem:[#allocation55_spill] sm:$0xff] %v7862_v47  ;;  %v7881_v19 = vadd.s32 4294967295, %v7862_v47 }
  0x52   : > { %v1144_v29 = vsel %vm1112_vm1, 1, %v14972_v36  ;;  %vm7827_vm10 = vmand %vm887_vm8, %vm919_vm9  ;;  %vm14991_vm9 = vcmask 523264   ;;  %vm923_vm8 = vcmp.lt.s32.totalorder %v859_v63, 16 }
  0x53   : > { %v14988_v53 = vsel %vm7827_vm10, 4294967295, %v14987_v53  ;;  %1223 = vperm.xlu2 %7012, %v1144_v29   ;;  %vm1047_vm12 = vmand %vm7827_vm10, %vm14394_vm7  ;;  %6628 = vmatmul.msk.f32.gmra.mxu0 %vm14991_vm9, %v387_v21  ;;  %vm891_vm7 = vcmp.ge.s32.totalorder %v859_v63, 0  ;;  %v7857_v21 = vadd.s32 4294967295, %v7837_v25  ;;  %v857_v63 = vadd.s32 4294967295, %v761_v39  ;;  %15000 = vst [vmem:[#allocation57_spill] sm:$0xff] %v7881_v19  ;;  %v388_v39 = vld [vmem:[%s7322_s18 + $0x40] sm:$0xff] }
  0x54   : > { %vm1111_vm1 = vmand %vm1047_vm12, %vm14399_vm4  ;;  %vm14996_vm12 = vcmp.ge.s32.totalorder %v7807_v61, 0  ;;  %vm890_vm10 = vcmp.ge.s32.totalorder %v858_v3, 0  ;;  %v7886_v61 = vld [vmem:[%s14275_s3 + $0xe8] sm:$0xff] }
  0x55   : > { %v1143_v29 = vsel %vm1111_vm1, 1, %v14972_v36  ;;  %vm7852_vm13 = vmand %vm886_vm6, %vm918_vm0  ;;  %14994 = vst [vmem:[#allocation54_spill] sm:$0xff] %v7857_v21  ;;  %vm14413_vm6 = vcmp.ge.s32.totalorder %v7832_v33, 0  ;;  %vm14418_vm1 = vcmp.lt.s32.totalorder %v7832_v33, 16  ;;  %v7906_v25 = vadd.s32 4294967295, %v7886_v61  ;;  %v7911_v33 = vld [vmem:[%s14275_s3 + $0xe0] sm:$0xff] }
  0x56   : > { %v14993_v26 = vsel %vm7852_vm13, 4294967295, %v14992_v26  ;;  %1220 = vperm.xlu1 %7011, %v1143_v29   ;;  %vm1046_vm0 = vmand %vm7852_vm13, %vm14996_vm12  ;;  %v14997_v29 = vmov 0  ;;  %vm922_vm12 = vcmp.lt.s32.totalorder %v858_v3, 16  ;;  %15001 = vst [vmem:[#allocation58_spill] sm:$0xff] %v7886_v61  ;;  %v862_v3 = vadd.s32 4294967295, %v766_v10 }
  0x57   : > { %vm1110_vm9 = vmand %vm1046_vm0, %vm14410_vm2  ;;  %vm889_vm13 = vcmp.ge.s32.totalorder %v857_v63, 0  ;;  %15005 = vst [vmem:[#allocation60_spill] sm:$0xff] %v7906_v25  ;;  %v861_v10 = vadd.s32 4294967295, %v765_v12  ;;  %v7931_v61 = vadd.s32 4294967295, %v7911_v33 }
  0x58   : > { %v1142_v7 = vsel %vm1110_vm9, 1, %v14972_v36  ;;  %vm7876_vm4 = vmand %vm891_vm7, %vm923_vm8  ;;  %vm14419_vm8 = vcmp.ge.s32.totalorder %v7857_v21, 0  ;;  %vm14428_vm9 = vcmp.lt.s32.totalorder %v7857_v21, 16  ;;  %15006 = vst [vmem:[#allocation61_spill] sm:$0xff] %v7911_v33  ;;  %v7936_v21 = vld [vmem:[%s14275_s3 + $0xd8] sm:$0xff]  ;;  %v389_v33 = vld [vmem:[%s7322_s18 + $0x48] sm:$0xff] }
  0x59   : > { %v14998_v29 = vsel %vm7876_vm4, 4294967295, %v14997_v29  ;;  %1217 = vperm.xlu0 %7010, %v1142_v7   ;;  %vm1051_vm7 = vmand %vm7876_vm4, %vm14413_vm6  ;;  %v15002_v7 = vmov 0  ;;  %vm921_vm6 = vcmp.lt.s32.totalorder %v857_v63, 16  ;;  %v764_v63 = vld [vmem:[%s14274_s2 + $0xd8] sm:$0xff]  ;;  %15010 = vst [vmem:[#allocation62_spill] sm:$0xff] %v7931_v61  ;;  %vm925_vm4 = vcmp.lt.s32.totalorder %v861_v10, 16 }
  0x5a   : > { %14999 = vst [vmem:[#allocation56_spill] sm:$0xff] %v14998_v29  ;;  %vm1115_vm0 = vmand %vm1051_vm7, %vm14418_vm1  ;;  %vm15007_vm7 = vcmask 523264   ;;  %vm14436_vm1 = vcmp.lt.s32.totalorder %v7881_v19, 16  ;;  %v860_v12 = vadd.s32 4294967295, %v764_v63  ;;  %v7956_v29 = vadd.s32 4294967295, %v7936_v21  ;;  %v7961_v63 = vld [vmem:[%s14275_s3 + $0xf8] sm:$0xff] }
  0x5b   : > { %v1147_v41 = vsel %vm1115_vm0, 1, %v14972_v36  ;;  %vm7901_vm2 = vmand %vm890_vm10, %vm922_vm12  ;;  %6629 = vmatmul.msk.f32.gmra.mxu0 %vm15007_vm7, %v388_v39  ;;  %vm14431_vm12 = vcmp.ge.s32.totalorder %v7881_v19, 0  ;;  %v15008_v39 = vmov 0  ;;  %15011 = vst [vmem:[#allocation63_spill] sm:$0xff] %v7936_v21  ;;  %v15017_v21 = vmov 0 }
  0x5c   : > { %v15003_v7 = vsel %vm7901_vm2, 4294967295, %v15002_v7  ;;  %1232 = vperm.xlu2 %7012, %v1147_v41   ;;  %vm1050_vm10 = vmand %vm7901_vm2, %vm14419_vm8  ;;  %vm894_vm8 = vcmp.ge.s32.totalorder %v862_v3, 0  ;;  %vm926_vm2 = vcmp.lt.s32.totalorder %v862_v3, 16  ;;  %v768_v3 = vld [vmem:[%s14274_s2 + $0xf8] sm:$0xff]  ;;  %15014 = vst [vmem:[#allocation64_spill] sm:$0xff] %v7956_v29  ;;  %vm892_vm3 = vcmp.ge.s32.totalorder %v860_v12, 0 }
  0x5d   : > { %15004 = vst [vmem:[#allocation59_spill] sm:$0xff] %v15003_v7  ;;  %vm1114_vm0 = vmand %vm1050_vm10, %vm14428_vm9  ;;  %v15012_v7 = vmov 0  ;;  %vm924_vm14 = vcmp.lt.s32.totalorder %v860_v12, 16 }
  0x5e   : > { %v1146_v41 = vsel %vm1114_vm0, 1, %v14972_v36  ;;  %vm7926_vm7 = vmand %vm889_vm13, %vm921_vm6  ;;  %vm14448_vm13 = vcmp.ge.s32.totalorder %v7906_v25, 0  ;;  %vm14447_vm0 = vcmp.lt.s32.totalorder %v7906_v25, 16  ;;  %15015 = vst [vmem:[#allocation65_spill] sm:$0xff] %v7961_v63 }
  0x5f   : > { %v15009_v39 = vsel %vm7926_vm7, 4294967295, %v15008_v39  ;;  %1229 = vperm.xlu1 %7011, %v1146_v41   ;;  %vm1049_vm10 = vmand %vm7926_vm7, %vm14431_vm12  ;;  %vm893_vm12 = vcmp.ge.s32.totalorder %v861_v10, 0  ;;  %v864_v10 = vadd.s32 4294967295, %v768_v3  ;;  %v15021_v3 = vmov 0 }
  0x60   : > { %vm1113_vm6 = vmand %vm1049_vm10, %vm14436_vm1  ;;  %vm15016_vm1 = vcmask 523264  }
  0x61   : > { %v1145_v41 = vsel %vm1113_vm6, 1, %v14972_v36  ;;  %vm7951_vm9 = vmand %vm894_vm8, %vm926_vm2  ;;  %vm14454_vm2 = vcmp.ge.s32.totalorder %v7931_v61, 0  ;;  %vm14449_vm6 = vcmp.lt.s32.totalorder %v7931_v61, 16  ;;  %v390_v61 = vld [vmem:[%s7322_s18 + $0x50] sm:$0xff] }
  0x62   : > { %v15013_v7 = vsel %vm7951_vm9, 4294967295, %v15012_v7  ;;  %1226 = vperm.xlu0 %7010, %v1145_v41   ;;  %vm1054_vm10 = vmand %vm7951_vm9, %vm14448_vm13  ;;  %v7978_v41 = vadd.s32 4294967295, %v7961_v63  ;;  %vm928_vm13 = vcmp.lt.s32.totalorder %v864_v10, 16 }
  0x63   : > { %vm1118_vm8 = vmand %vm1054_vm10, %vm14447_vm0  ;;  %6630 = vmatmul.msk.f32.gmra.mxu0 %vm15016_vm1, %v389_v33  ;;  %vm14457_vm1 = vcmp.ge.s32.totalorder %v7956_v29, 0  ;;  %v767_v33 = vld [vmem:[%s14274_s2 + $0xf0] sm:$0xff]  ;;  %vm896_vm0 = vcmp.ge.s32.totalorder %v864_v10, 0 }
  0x64   : > { %v1150_v19 = vsel %vm1118_vm8, 1, %v14972_v36  ;;  %vm7973_vm7 = vmand %vm893_vm12, %vm925_vm4  ;;  %15019 = vst [vmem:[#allocation66_spill] sm:$0xff] %v7978_v41  ;;  %vm14458_vm12 = vcmp.lt.s32.totalorder %v7956_v29, 16  ;;  %v863_v25 = vadd.s32 4294967295, %v767_v33  ;;  %v7019_v29 = vld [vmem:[%s14275_s3 + $0x20] sm:$0xff] }
  0x65   : > { %v15018_v21 = vsel %vm7973_vm7, 4294967295, %v15017_v21  ;;  %1241 = vperm.xlu2 %7012, %v1150_v19   ;;  %vm1053_vm10 = vmand %vm7973_vm7, %vm14454_vm2  ;;  %v7994_v19 = vld [vmem:[%s14275_s3 + $0xf0] sm:$0xff] }
  0x66   : > { %vm1117_vm4 = vmand %vm1053_vm10, %vm14449_vm6  ;;  %15020 = vst [vmem:[#allocation67_spill] sm:$0xff] %v7994_v19  ;;  %vm14463_vm6 = vcmp.ge.s32.totalorder %v7978_v41, 0  ;;  %v8011_v63 = vadd.s32 4294967295, %v7994_v19 }
  0x67   : > { %v1149_v12 = vsel %vm1117_vm4, 1, %v14972_v36  ;;  %vm7997_vm8 = vmand %vm892_vm3, %vm924_vm14  ;;  %vm14464_vm3 = vcmp.lt.s32.totalorder %v7978_v41, 16  ;;  %vm14470_vm4 = vcmp.ge.s32.totalorder %v7247_v13, 0  ;;  %v7139_v41 = vmov 0.0  }
  0x68   : > { %v15022_v3 = vsel %vm7997_vm8, 4294967295, %v15021_v3  ;;  %1238 = vperm.xlu1 %7011, %v1149_v12   ;;  %vm1052_vm10 = vmand %vm7997_vm8, %vm14457_vm1  ;;  %15023 = vst [vmem:[#allocation68_spill] sm:$0xff] %v8011_v63  ;;  %v15024_v12 = vmov 0  ;;  %vm14468_vm9 = vcmp.ge.s32.totalorder %v8011_v63, 0 }
  0x69   : > { %vm1116_vm2 = vmand %vm1052_vm10, %vm14458_vm12  ;;  %vm14467_vm10 = vcmp.lt.s32.totalorder %v7247_v13, 16  ;;  %vm15026_vm12 = vcmask 523264  }
  0x6a   : > { %v1148_v10 = vsel %vm1116_vm2, 1, %v14972_v36  ;;  %vm8014_vm14 = vmand %vm896_vm0, %vm928_vm13  ;;  %vm895_vm2 = vcmp.ge.s32.totalorder %v863_v25, 0  ;;  %vm927_vm13 = vcmp.lt.s32.totalorder %v863_v25, 16 }
  0x6b   : > { %v15025_v12 = vsel %vm8014_vm14, 4294967295, %v15024_v12  ;;  %1235 = vperm.xlu0 %7010, %v1148_v10   ;;  %vm1056_vm1 = vmand %vm8014_vm14, %vm14463_vm6  ;;  %6631 = vmatmul.msk.f32.gmra.mxu0 %vm15026_vm12, %v390_v61  ;;  %vm14469_vm12 = vcmp.lt.s32.totalorder %v8011_v63, 16  ;;  %vm14531_vm14 = vcmp.lt.s32.totalorder %v7614_v17, 16 }
  0x6c   : > { %vm1120_vm7 = vmand %vm1056_vm1, %vm14464_vm3  ;;  %vm14513_vm1 = vcmask 130048  }
  0x6d   : > { %v1152_v33 = vsel %vm1120_vm7, 1, %v14972_v36  ;;  %vm1379_vm0 = vmand %vm7327_vm5, %vm14470_vm4  ;;  %vm14471_vm7 = vcmp.ge.s32.totalorder %v7236_v9, 0  ;;  %667 = vst.msk [vmem:[#allocation2] sm:$0xff] %vm14513_vm1, %v7139_v41  ;;  %vm15030_vm4 = vcmask 523264  }
  0x6e   : > { %vm1443_vm6 = vmand %vm1379_vm0, %vm14467_vm10  ;;  %v8036_v61 = vpop.permute.xlu2 %1166  ;;  %vm14472_vm10 = vcmp.lt.s32.totalorder %v7236_v9, 16  ;;  %668 = vst.msk [vmem:[#allocation2 + $0x8] sm:$0xff] %vm14513_vm1, %v7139_v41 }
  0x6f   : > { %15027 = vst [vmem:[#allocation69_spill] sm:$0xff] %v8036_v61  ;;  %v1475_v25 = vsel %vm1443_vm6, 1, %v14972_v36  ;;  %vm8039_vm3 = vmand %vm895_vm2, %vm927_vm13  ;;  %v391_v61 = vld [vmem:[%s7322_s18 + $0x58] sm:$0xff]  ;;  %vm14473_vm2 = vcmp.ge.s32.totalorder %v7302_v27, 0 }
  0x70   : > { %1247 = vperm.xlu1 %7011, %v1152_v33   ;;  %1508 = vperm.xlu2 %7012, %v1475_v25   ;;  %vm1055_vm0 = vmand %vm8039_vm3, %vm14468_vm9  ;;  %669 = vst.msk [vmem:[#allocation2 + $0x10] sm:$0xff] %vm14513_vm1, %v7139_v41  ;;  %vm14474_vm9 = vcmp.lt.s32.totalorder %v7302_v27, 16 }
  0x71   : > { %vm1119_vm6 = vmand %vm1055_vm0, %vm14469_vm12  ;;  %670 = vst.msk [vmem:[#allocation2 + $0x18] sm:$0xff] %vm14513_vm1, %v7139_v41  ;;  %vm14477_vm12 = vcmp.ge.s32.totalorder %v7337_v34, 0 }
  0x72   : > { %v1151_v33 = vsel %vm1119_vm6, 1, %v14972_v36  ;;  %vm1381_vm13 = vmand %vm7289_vm11, %vm14471_vm7  ;;  %671 = vst.msk [vmem:[#allocation2 + $0x20] sm:$0xff] %vm14513_vm1, %v7139_v41  ;;  %vm14483_vm7 = vcmp.lt.s32.totalorder %v7416_v54, 16  ;;  %vm15037_vm11 = vnez %v14922_v11 }
  0x73   : > { %1244 = vperm.xlu0 %7010, %v1151_v33   ;;  %vm1445_vm0 = vmand %vm1381_vm13, %vm14472_vm10  ;;  %6632 = vmatmul.msk.f32.gmra.mxu0 %vm15030_vm4, %v391_v61  ;;  %672 = vst.msk [vmem:[#allocation2 + $0x28] sm:$0xff] %vm14513_vm1, %v7139_v41  ;;  %vm14482_vm4 = vcmp.ge.s32.totalorder %v7266_v18, 0  ;;  %vm15031_vm10 = vnez %v14907_v52 }
  0x74   : > { %vm1382_vm6 = vmand %vm7382_vm15, %vm14473_vm2  ;;  %v1477_v25 = vsel %vm1445_vm0, 1, %v14972_v36  ;;  %673 = vst.msk [vmem:[#allocation2 + $0x30] sm:$0xff] %vm14513_vm1, %v7139_v41  ;;  %vm15032_vm0 = vcmp.lt.s32.totalorder %v7337_v34, 16  ;;  %v392_v34 = vld [vmem:[%s7322_s18 + $0x60] sm:$0xff] }
  0x75   : > { %vm1446_vm13 = vmand %vm1382_vm6, %vm14474_vm9  ;;  %674 = vst.msk [vmem:[#allocation2 + $0x38] sm:$0xff] %vm14513_vm1, %v7139_v41  ;;  %vm14484_vm9 = vcmp.ge.s32.totalorder %v7223_v5, 0 }
  0x76   : > { %v1478_v61 = vsel %vm1446_vm13, 1, %v14972_v36  ;;  %vm1380_vm2 = vmand %vm15031_vm10, %vm14477_vm12  ;;  %675 = vst.msk [vmem:[#allocation2 + $0x40] sm:$0xff] %vm14513_vm1, %v7139_v41  ;;  %vm15034_vm13 = vnez %v14899_v40 }
  0x77   : > { %vm1444_vm6 = vmand %vm1380_vm2, %vm15032_vm0  ;;  %v8097_v33 = vpop.permute.xlu2 %1169  ;;  %676 = vst.msk [vmem:[#allocation2 + $0x48] sm:$0xff] %vm14513_vm1, %v7139_v41  ;;  %vm15035_vm2 = vcmp.lt.s32.totalorder %v7266_v18, 16 }
  0x78   : > { %15033 = vst [vmem:[#allocation70_spill] sm:$0xff] %v8097_v33  ;;  %1514 = vperm.xlu1 %7011, %v1477_v25   ;;  %1517 = vperm.xlu2 %7012, %v1478_v61   ;;  %v1476_v27 = vsel %vm1444_vm6, 1, %v14972_v36  ;;  %vm1384_vm12 = vmand %vm15034_vm13, %vm14482_vm4  ;;  %vm15036_vm6 = vcmp.ge.s32.totalorder %v7416_v54, 0  ;;  %v15086_v33 = vld [vmem:[#allocation59_spill] sm:$0xff] }
  0x79   : > { %vm1448_vm0 = vmand %vm1384_vm12, %vm15035_vm2  ;;  %677 = vst.msk [vmem:[#allocation2 + $0x50] sm:$0xff] %vm14513_vm1, %v7139_v41  ;;  %vm14485_vm12 = vcmp.ge.s32.totalorder %v7367_v42, 0  ;;  %vm15038_vm2 = vcmask 523264  }
  0x7a   : > { %vm1385_vm15 = vmand %vm15037_vm11, %vm15036_vm6  ;;  %678 = vst.msk [vmem:[#allocation2 + $0x58] sm:$0xff] %vm14513_vm1, %v7139_v41  ;;  %vm15039_vm6 = vnez %v14887_v16 }
  0x7b   : > { %1511 = vperm.xlu0 %7010, %v1476_v27   ;;  %vm1449_vm13 = vmand %vm1385_vm15, %vm14483_vm7  ;;  %6633 = vmatmul.msk.f32.gmra.mxu0 %vm15038_vm2, %v392_v34  ;;  %679 = vst.msk [vmem:[#allocation2 + $0x60] sm:$0xff] %vm14513_vm1, %v7139_v41  ;;  %v1480_v27 = vsel %vm1448_vm0, 1, %v14972_v36  ;;  %vm15040_vm15 = vcmp.lt.s32.totalorder %v7223_v5, 16  ;;  %vm14490_vm7 = vcmp.ge.s32.totalorder %v7490_v15, 0 }
  0x7c   : > { %vm1383_vm11 = vmand %vm15039_vm6, %vm14484_vm9  ;;  %680 = vst.msk [vmem:[#allocation2 + $0x68] sm:$0xff] %vm14513_vm1, %v7139_v41  ;;  %v1481_v25 = vsel %vm1449_vm13, 1, %v14972_v36  ;;  %vm15041_vm9 = vnez %v14912_v60  ;;  %vm14491_vm6 = vcmp.lt.s32.totalorder %v7490_v15, 16  ;;  %vm15042_vm13 = vcmp.lt.s32.totalorder %v7367_v42, 16  ;;  %v393_v42 = vld [vmem:[%s7322_s18 + $0x68] sm:$0xff]  ;;  %v399_v15 = vld [vmem:[%s7322_s18 + $0x98] sm:$0xff] }
  0x7d   : > { %vm1447_vm2 = vmand %vm1383_vm11, %vm15040_vm15  ;;  %681 = vst.msk [vmem:[#allocation2 + $0x70] sm:$0xff] %vm14513_vm1, %v7139_v41  ;;  %vm14492_vm11 = vcmp.ge.s32.totalorder %v7392_v48, 0  ;;  %vm15045_vm15 = vnez %v14936_v45 }
  0x7e   : > { %vm1387_vm4 = vmand %vm15041_vm9, %vm14485_vm12  ;;  %682 = vst.msk [vmem:[#allocation2 + $0x78] sm:$0xff] %vm14513_vm1, %v7139_v41  ;;  %v1479_v61 = vsel %vm1447_vm2, 1, %v14972_v36  ;;  %vm15046_vm2 = vnez %v14917_v1 }
  0x7f   : > { %vm8151_vm0 = vmand %vm1387_vm4, %vm15042_vm13  ;;  %683 = vst.msk [vmem:[#allocation2 + $0x80] sm:$0xff] %vm14513_vm1, %v7139_v41  ;;  %vm14493_vm13 = vcmp.lt.s32.totalorder %v7392_v48, 16 }
  0x80   : > { %1523 = vperm.xlu1 %7011, %v1480_v27   ;;  %1526 = vperm.xlu2 %7012, %v1481_v25   ;;  %vm1388_vm12 = vmand %vm15045_vm15, %vm14490_vm7  ;;  %v8163_v5 = vpop.permute.xlu2 %1178  ;;  %684 = vst.msk [vmem:[#allocation2 + $0x88] sm:$0xff] %vm14513_vm1, %v7139_v41  ;;  %vm14494_vm7 = vcmp.ge.s32.totalorder %v7433_v58, 0  ;;  %vm15047_vm15 = vcmask 523264   ;;  %v1483_v27 = vsel %vm8151_vm0, 1, %v14972_v36  ;;  %vm15049_vm0 = vnez %v14950_v30 }
  0x81   : > { %vm1452_vm4 = vmand %vm1388_vm12, %vm14491_vm6  ;;  %685 = vst.msk [vmem:[#allocation2 + $0x90] sm:$0xff] %vm14513_vm1, %v7139_v41  ;;  %vm14495_vm6 = vcmp.ge.s32.totalorder %v7565_v50, 0 }
  0x82   : > { %vm1386_vm9 = vmand %vm15046_vm2, %vm14492_vm11  ;;  %686 = vst.msk [vmem:[#allocation2 + $0x98] sm:$0xff] %vm14513_vm1, %v7139_v41  ;;  %v1484_v25 = vsel %vm1452_vm4, 1, %v14972_v36  ;;  %vm14496_vm2 = vcmp.lt.s32.totalorder %v7433_v58, 16 }
  0x83   : > { %1520 = vperm.xlu0 %7010, %v1479_v61   ;;  %6634 = vmatmul.msk.f32.gmra.mxu0 %vm15047_vm15, %v393_v42  ;;  %687 = vst.msk [vmem:[#allocation2 + $0xa0] sm:$0xff] %vm14513_vm1, %v7139_v41  ;;  %vm1450_vm12 = vmand %vm1386_vm9, %vm14493_vm13  ;;  %vm15048_vm15 = vnez %v14926_v23  ;;  %vm14497_vm9 = vcmp.ge.s32.totalorder %v7466_v4, 0  ;;  %v394_v61 = vld [vmem:[%s7322_s18 + $0x70] sm:$0xff] }
  0x84   : > { %688 = vst.msk [vmem:[#allocation2 + $0xa8] sm:$0xff] %vm14513_vm1, %v7139_v41  ;;  %vm1390_vm11 = vmand %vm15048_vm15, %vm14494_vm7  ;;  %v1482_v42 = vsel %vm1450_vm12, 1, %v14972_v36  ;;  %vm14502_vm15 = vcmp.lt.s32.totalorder %v7466_v4, 16 }
  0x85   : > { %689 = vst.msk [vmem:[#allocation2 + $0xb0] sm:$0xff] %vm14513_vm1, %v7139_v41  ;;  %vm1391_vm4 = vmand %vm15049_vm0, %vm14495_vm6  ;;  %vm15052_vm6 = vnez %v14932_v35 }
  0x86   : > { %690 = vst.msk [vmem:[#allocation2 + $0xb8] sm:$0xff] %vm14513_vm1, %v7139_v41  ;;  %vm8212_vm7 = vmand %vm1390_vm11, %vm14496_vm2  ;;  %vm15054_vm11 = vcmp.lt.s32.totalorder %v7565_v50, 16  ;;  %vm14503_vm2 = vcmp.ge.s32.totalorder %v7516_v28, 0  ;;  %v395_v50 = vld [vmem:[%s7322_s18 + $0x78] sm:$0xff] }
  0x87   : > { %691 = vst.msk [vmem:[#allocation2 + $0xc0] sm:$0xff] %vm14513_vm1, %v7139_v41  ;;  %vm1389_vm13 = vmand %vm15052_vm6, %vm14497_vm9  ;;  %vm15055_vm9 = vcmask 523264  }
  0x88   : > { %1532 = vperm.xlu1 %7011, %v1483_v27   ;;  %1535 = vperm.xlu2 %7012, %v1484_v25   ;;  %692 = vst.msk [vmem:[#allocation2 + $0xc8] sm:$0xff] %vm14513_vm1, %v7139_v41  ;;  %vm1455_vm12 = vmand %vm1391_vm4, %vm15054_vm11  ;;  %vm14508_vm4 = vcmp.ge.s32.totalorder %v7639_v38, 0  ;;  %vm14509_vm11 = vcmp.lt.s32.totalorder %v7516_v28, 16 }
  0x89   : > { %v8224_v27 = vpop.permute.xlu2 %1187  ;;  %v8226_v25 = vpop.permute.xlu1 %1160  ;;  %693 = vst.msk [vmem:[#allocation2 + $0xd0] sm:$0xff] %vm14513_vm1, %v7139_v41  ;;  %vm8240_vm0 = vmand %vm1389_vm13, %vm14502_vm15  ;;  %vm15058_vm13 = vnez %v14941_v57  ;;  %vm14510_vm15 = vcmp.ge.s32.totalorder %v7540_v37, 0 }
  0x8a   : > { %15053 = vst [vmem:[#allocation71_spill] sm:$0xff] %v8226_v25  ;;  %v1485_v34 = vsel %vm8240_vm0, 1, %v14972_v36  ;;  %vm14514_vm0 = vcmp.lt.s32.totalorder %v7540_v37, 16  ;;  %v396_v37 = vld [vmem:[%s7322_s18 + $0x80] sm:$0xff]  ;;  %v8570_v25 = vadd.s32 1, %v7019_v29  ;;  %v7020_v29 = vld [vmem:[%s14275_s3 + $0x10] sm:$0xff] }
  0x8b   : > { %694 = vst.msk [vmem:[#allocation2 + $0xd8] sm:$0xff] %vm14513_vm1, %v7139_v41  ;;  %1529 = vperm.xlu0 %7010, %v1482_v42   ;;  %6635 = vmatmul.msk.f32.gmra.mxu0 %vm15055_vm9, %v394_v61  ;;  %v1486_v42 = vsel %vm8212_vm7, 1, %v14972_v36  ;;  %v1487_v61 = vsel %vm1455_vm12, 1, %v14972_v36  ;;  %vm1393_vm9 = vmand %vm15058_vm13, %vm14503_vm2  ;;  %vm15059_vm7 = vnez %v14964_v6  ;;  %vm15063_vm13 = vcmp.lt.s32.totalorder %v7639_v38, 16 }
  0x8c   : > { %695 = vst.msk [vmem:[#allocation2 + $0xe0] sm:$0xff] %vm14513_vm1, %v7139_v41  ;;  %v8244_v48 = vpop.permute.xlu0 %1154  ;;  %vm1394_vm12 = vmand %vm15059_vm7, %vm14508_vm4  ;;  %vm15062_vm4 = vnez %v14946_v8  ;;  %vm15065_vm7 = vcmask 523264  }
  0x8d   : > { %696 = vst.msk [vmem:[#allocation2 + $0xe8] sm:$0xff] %vm14513_vm1, %v7139_v41  ;;  %vm8277_vm2 = vmand %vm1393_vm9, %vm14509_vm11  ;;  %vm14515_vm11 = vcmp.ge.s32.totalorder %v7590_v62, 0 }
  0x8e   : > { %697 = vst.msk [vmem:[#allocation2 + $0xf0] sm:$0xff] %vm14513_vm1, %v7139_v41  ;;  %vm1392_vm6 = vmand %vm15062_vm4, %vm14510_vm15 }
  0x8f   : > { %698 = vst.msk [vmem:[#allocation2 + $0xf8] sm:$0xff] %vm14513_vm1, %v7139_v41  ;;  %vm1458_vm9 = vmand %vm1394_vm12, %vm15063_vm13  ;;  %vm14522_vm13 = vcmp.ge.s32.totalorder %v7713_v31, 0 }
  0x90   : > { %699 = vst.msk [vmem:[#allocation2 + $0x100] sm:$0xff] %vm14513_vm1, %v7139_v41  ;;  %1541 = vperm.xlu1 %7011, %v1486_v42   ;;  %1544 = vperm.xlu2 %7012, %v1487_v61   ;;  %vm1456_vm15 = vmand %vm1392_vm6, %vm14514_vm0  ;;  %v1489_v61 = vsel %vm8277_vm2, 1, %v14972_v36  ;;  %vm14525_vm6 = vcmp.ge.s32.totalorder %v7614_v17, 0  ;;  %vm15067_vm2 = vnez %v14979_v2  ;;  %vm14528_vm0 = vcmp.lt.s32.totalorder %v7713_v31, 16 }
  0x91   : > { %700 = vst.msk [vmem:[#allocation2 + $0x108] sm:$0xff] %vm14513_vm1, %v7139_v41  ;;  %v1488_v4 = vsel %vm1456_vm15, 1, %v14972_v36  ;;  %vm15069_vm15 = vcmask 523264  }
  0x92   : > { %701 = vst.msk [vmem:[#allocation2 + $0x110] sm:$0xff] %vm14513_vm1, %v7139_v41  ;;  %v8293_v58 = vpop.permute.xlu2 %1196  ;;  %v8295_v42 = vpop.permute.xlu1 %1163 }
  0x93   : > { %702 = vst.msk [vmem:[#allocation2 + $0x118] sm:$0xff] %vm14513_vm1, %v7139_v41  ;;  %1538 = vperm.xlu0 %7010, %v1485_v34   ;;  %6636 = vmatmul.msk.f32.gmra.mxu0 %vm15065_vm7, %v395_v50  ;;  %v1490_v34 = vsel %vm1458_vm9, 1, %v14972_v36  ;;  %vm15066_vm7 = vnez %v14955_v51  ;;  %v8320_v50 = vld [vmem:[%s14277_s5] ss:$0 sm:$0xff]  ;;  %vm1397_vm9 = vmand %vm15067_vm2, %vm14522_vm13  ;;  %vm14530_vm2 = vcmp.ge.s32.totalorder %v7664_v56, 0 }
  0x94   : > { %15064 = vst [vmem:[#allocation72_spill] sm:$0xff] %v8295_v42  ;;  %vm1396_vm12 = vmand %vm15066_vm7, %vm14515_vm11  ;;  %vm15068_vm7 = vnez %v14960_v20  ;;  %v7017_v42 = vld [vmem:[%s14275_s3 + $0x8] sm:$0xff] }
  0x95   : > { %703 = vst.msk [vmem:[#allocation2 + $0x120] sm:$0xff] %vm14513_vm1, %v7139_v41  ;;  %v8310_v38 = vpop.permute.xlu0 %1157  ;;  %vm1395_vm4 = vmand %vm15068_vm7, %vm14525_vm6  ;;  %vm14534_vm6 = vcmp.ge.s32.totalorder %v7788_v43, 0  ;;  %vm14542_vm7 = vcmp.lt.s32.totalorder %v7664_v56, 16  ;;  %v8501_v13 = vadd.s32 1, %v7017_v42 }
  0x96   : > { %704 = vst.msk [vmem:[#allocation2 + $0x128] sm:$0xff] %vm14513_vm1, %v7139_v41  ;;  %vm14529_vm1 = vcmp.lt.s32.totalorder %v7590_v62, 16  ;;  %vm1461_vm13 = vmand %vm1397_vm9, %vm14528_vm0  ;;  %vm15070_vm9 = vcmask 130048   ;;  %vm15071_vm0 = vnez %v14969_v44 }
  0x97   : > { %vm1460_vm11 = vmand %vm1396_vm12, %vm14529_vm1  ;;  %v1493_v31 = vsel %vm1461_vm13, 1, %v14972_v36  ;;  %vm14540_vm13 = vcmp.lt.s32.totalorder %v7788_v43, 16  ;;  %15099 = vst [vmem:[#allocation74_spill] sm:$0xff] %v8501_v13 }
  0x98   : > { %1550 = vperm.xlu1 %7011, %v1489_v61   ;;  %1553 = vperm.xlu2 %7012, %v1490_v34   ;;  %v538_v41 = vpop.f32.mrf.mxu0  ;;  %vm1459_vm12 = vmand %vm1395_vm4, %vm14531_vm14  ;;  %vm14537_vm4 = vcmp.ge.s32.totalorder %v7688_v22, 0  ;;  %15112 = vst [vmem:[#allocation77_spill] sm:$0xff] %v8570_v25 }
  0x99   : > { %v539_v28 = vadd.f32 %v8320_v50, %v538_v41  ;;  %v1492_v41 = vsel %vm1460_vm11, 1, %v14972_v36  ;;  %vm1399_vm1 = vmand %vm15071_vm0, %vm14530_vm2  ;;  %vm15074_vm2 = vnez %v14974_v49  ;;  %vm14541_vm0 = vcmp.lt.s32.totalorder %v7688_v22, 16 }
  0x9a   : > { %vm1398_vm14 = vmand %vm15074_vm2, %vm14537_vm4  ;;  %vm14546_vm4 = vcmp.ge.s32.totalorder %v7862_v47, 0  ;;  %vm14553_vm2 = vcmp.lt.s32.totalorder %v7763_v0, 16 }
  0x9b   : > { %1547 = vperm.xlu0 %7010, %v1488_v4   ;;  %v8341_v61 = vpop.permute.xlu2 %1205  ;;  %v8343_v34 = vpop.permute.xlu1 %1175  ;;  %v634_v62 = vmax.f32 %v539_v28, 0.0  ;;  %6637 = vmatmul.msk.f32.gmra.mxu0 %vm15069_vm15, %v396_v37  ;;  %vm15073_vm15 = vnez %v14993_v26  ;;  %v1491_v37 = vsel %vm1459_vm12, 1, %v14972_v36  ;;  %v397_v4 = vld [vmem:[%s7322_s18 + $0x88] sm:$0xff]  ;;  %vm15075_vm12 = vcmask 523264  }
  0x9c   : > { %vm1400_vm11 = vmand %vm15073_vm15, %vm14534_vm6  ;;  %vm14543_vm15 = vcmp.ge.s32.totalorder %v7738_v55, 0 }
  0x9d   : > { %705 = vst.msk [vmem:[#allocation2 + $0x18] sm:$0xff] %vm15070_vm9, %v634_v62  ;;  %vm1463_vm9 = vmand %vm1399_vm1, %vm14542_vm7  ;;  %vm15078_vm7 = vnez %v15009_v39 }
  0x9e   : > { %v8357_v28 = vpop.permute.xlu0 %1172  ;;  %vm1464_vm6 = vmand %vm1400_vm11, %vm14540_vm13  ;;  %vm15076_vm11 = vcmask 130048  }
  0x9f   : > { %15072 = vst [vmem:[#allocation73_spill] sm:$0xff] %v8357_v28  ;;  %vm1462_vm1 = vmand %vm1398_vm14, %vm14541_vm0  ;;  %v1496_v43 = vsel %vm1464_vm6, 1, %v14972_v36  ;;  %vm14547_vm14 = vcmp.lt.s32.totalorder %v7738_v55, 16  ;;  %vm14559_vm0 = vcmp.ge.s32.totalorder %v7763_v0, 0  ;;  %vm14552_vm6 = vcmp.lt.s32.totalorder %v7862_v47, 16 }
  0xa0   : > { %1559 = vperm.xlu1 %7011, %v1492_v41   ;;  %1562 = vperm.xlu2 %7012, %v1493_v31   ;;  %v541_v62 = vpop.f32.mrf.mxu0 }
  0xa1   : > { %v542_v17 = vadd.f32 %v8320_v50, %v541_v62  ;;  %v1495_v62 = vsel %vm1463_vm9, 1, %v14972_v36  ;;  %vm1403_vm9 = vmand %vm15078_vm7, %vm14546_vm4  ;;  %vm14558_vm7 = vcmp.ge.s32.totalorder %v7812_v59, 0 }
  0xa2   : > { %vm1467_vm4 = vmand %vm1403_vm9, %vm14552_vm6  ;;  %vm15082_vm9 = vcmask 130048  }
  0xa3   : > { %1556 = vperm.xlu0 %7010, %v1491_v37   ;;  %v635_v31 = vmax.f32 %v542_v17, 0.0  ;;  %6638 = vmatmul.msk.f32.gmra.mxu0 %vm15075_vm12, %v397_v4  ;;  %vm15077_vm12 = vnez %v14984_v14  ;;  %v1494_v37 = vsel %vm1462_vm1, 1, %v14972_v36  ;;  %vm15080_vm1 = vcmask 523264  }
  0xa4   : > { %v8381_v41 = vpop.permute.xlu2 %1214  ;;  %v8383_v56 = vpop.permute.xlu1 %1184  ;;  %vm1402_vm13 = vmand %vm15077_vm12, %vm14543_vm15  ;;  %vm15079_vm15 = vnez %v14988_v53  ;;  %v1499_v28 = vsel %vm1467_vm4, 1, %v14972_v36 }
  0xa5   : > { %706 = vst.msk [vmem:[#allocation2 + $0x20] sm:$0xff] %vm15076_vm11, %v635_v31  ;;  %vm1466_vm11 = vmand %vm1402_vm13, %vm14547_vm14  ;;  %v398_v31 = vld [vmem:[%s7322_s18 + $0x90] sm:$0xff] }
  0xa6   : > { %vm1401_vm12 = vmand %vm15079_vm15, %vm14559_vm0  ;;  %v1498_v55 = vsel %vm1466_vm11, 1, %v14972_v36 }
  0xa7   : > { %v8395_v17 = vpop.permute.xlu0 %1181  ;;  %vm1465_vm13 = vmand %vm1401_vm12, %vm14553_vm2  ;;  %vm14569_vm12 = vcmp.lt.s32.totalorder %v7812_v59, 16 }
  0xa8   : > { %1568 = vperm.xlu1 %7011, %v1495_v62   ;;  %1571 = vperm.xlu2 %7012, %v1496_v43   ;;  %v544_v4 = vpop.f32.mrf.mxu0  ;;  %v15081_v62 = vld [vmem:[#allocation63_spill] sm:$0xff] }
  0xa9   : > { %v545_v22 = vadd.f32 %v8320_v50, %v544_v4  ;;  %vm14560_vm14 = vcmp.ge.s32.totalorder %v15081_v62, 0  ;;  %vm14570_vm11 = vcmp.lt.s32.totalorder %v15081_v62, 16 }
  0xaa   : > { %vm1406_vm4 = vmand %vm7997_vm8, %vm14560_vm14  ;;  %vm15089_vm8 = vcmask 523264  }
  0xab   : > { %1565 = vperm.xlu0 %7010, %v1494_v37   ;;  %v636_v43 = vmax.f32 %v545_v22, 0.0  ;;  %6639 = vmatmul.msk.f32.gmra.mxu0 %vm15080_vm1, %v398_v31  ;;  %v15083_v22 = vld [vmem:[#allocation56_spill] sm:$0xff]  ;;  %v15085_v37 = vld [vmem:[#allocation53_spill] sm:$0xff]  ;;  %v1497_v31 = vsel %vm1465_vm13, 1, %v14972_v36 }
  0xac   : > { %vm15084_vm1 = vnez %v15083_v22  ;;  %vm14566_vm2 = vcmp.ge.s32.totalorder %v15085_v37, 0  ;;  %vm14582_vm14 = vcmp.lt.s32.totalorder %v15085_v37, 16  ;;  %v15095_v37 = vld [vmem:[#allocation61_spill] sm:$0xff] }
  0xad   : > { %v8421_v4 = vpop.permute.xlu2 %1223  ;;  %v8423_v47 = vpop.permute.xlu1 %1193  ;;  %707 = vst.msk [vmem:[#allocation2 + $0x28] sm:$0xff] %vm15082_vm9, %v636_v43  ;;  %vm1405_vm6 = vmand %vm15084_vm1, %vm14558_vm7  ;;  %vm15087_vm7 = vnez %v15086_v33 }
  0xae   : > { %vm1469_vm9 = vmand %vm1405_vm6, %vm14569_vm12  ;;  %vm15092_vm12 = vcmask 130048  }
  0xaf   : > { %vm1404_vm0 = vmand %vm15087_vm7, %vm14566_vm2  ;;  %vm14579_vm2 = vcmp.ge.s32.totalorder %v7994_v19, 0  ;;  %v1501_v18 = vsel %vm1469_vm9, 1, %v14972_v36 }
  0xb0   : > { %1577 = vperm.xlu1 %7011, %v1498_v55   ;;  %1580 = vperm.xlu2 %7012, %v1499_v28   ;;  %v8438_v43 = vpop.permute.xlu0 %1190  ;;  %v547_v0 = vpop.f32.mrf.mxu0  ;;  %vm1470_vm1 = vmand %vm1406_vm4, %vm14570_vm11  ;;  %v15088_v55 = vld [vmem:[#allocation58_spill] sm:$0xff]  ;;  %vm15093_vm4 = vnez %v15013_v7 }
  0xb1   : > { %v548_v54 = vadd.f32 %v8320_v50, %v547_v0  ;;  %vm14581_vm13 = vcmp.ge.s32.totalorder %v15088_v55, 0  ;;  %vm8455_vm6 = vmand %vm1404_vm0, %vm14582_vm14  ;;  %v1502_v0 = vsel %vm1470_vm1, 1, %v14972_v36  ;;  %vm14583_vm0 = vcmp.ge.s32.totalorder %v15095_v37, 0 }
  0xb2   : > { %vm1408_vm11 = vmand %vm15093_vm4, %vm14581_vm13  ;;  %v1500_v9 = vsel %vm8455_vm6, 1, %v14972_v36  ;;  %vm15100_vm6 = vnez %v15018_v21  ;;  %vm15101_vm14 = vcmask 523264   ;;  %vm14595_vm4 = vcmp.ge.s32.totalorder %v8501_v13, 0  ;;  %v6754_v21 = vld [vmem:[%s14278_s6 + $0x38] sm:$0xff] }
  0xb3   : > { %1574 = vperm.xlu0 %7010, %v1497_v31   ;;  %v637_v28 = vmax.f32 %v548_v54, 0.0  ;;  %6640 = vmatmul.msk.f32.gmra.mxu0 %vm15089_vm8, %v399_v15  ;;  %vm14580_vm8 = vcmp.lt.s32.totalorder %v15088_v55, 16  ;;  %v8471_v54 = vld [vmem:[%s14278_s6 + $0x8] sm:$0xff]  ;;  %vm1409_vm1 = vmand %vm8039_vm3, %vm14579_vm2 }
  0xb4   : > { %6996 = vmatpush.msra.mxu2 %v8471_v54  ;;  %vm8494_vm9 = vmand %vm1408_vm11, %vm14580_vm8  ;;  %vm14585_vm11 = vcmp.lt.s32.totalorder %v15095_v37, 16 }
  0xb5   : > { %708 = vst.msk [vmem:[#allocation2 + $0x30] sm:$0xff] %vm15092_vm12, %v637_v28  ;;  %v7016_v28 = vld [vmem:[%s14275_s3] sm:$0xff]  ;;  %vm14598_vm12 = vcmp.lt.s32.totalorder %v7994_v19, 16  ;;  %vm1407_vm2 = vmand %vm15100_vm6, %vm14583_vm0 }
  0xb6   : > { %v8473_v15 = vpop.permute.xlu2 %1232  ;;  %v8475_v31 = vpop.permute.xlu1 %1202  ;;  %v8481_v62 = vadd.s32 1, %v7016_v28  ;;  %vm1473_vm8 = vmand %vm1409_vm1, %vm14598_vm12 }
  0xb7   : > { %15094 = vst [vmem:[#allocation56_spill] sm:$0xff] %v8473_v15  ;;  %v400_v15 = vld [vmem:[%s7322_s18 + $0xa0] sm:$0xff]  ;;  %vm8523_vm0 = vmand %vm1407_vm2, %vm14585_vm11 }
  0xb8   : > { %15096 = vst [vmem:[#allocation59_spill] sm:$0xff] %v8481_v62  ;;  %1586 = vperm.xlu1 %7011, %v1501_v18   ;;  %1589 = vperm.xlu2 %7012, %v1502_v0   ;;  %v550_v63 = vpop.f32.mrf.mxu0  ;;  %vm14596_vm13 = vcmp.ge.s32.totalorder %v8481_v62, 0  ;;  %v8519_v0 = vld [vmem:[%s14278_s6] sm:$0xff]  ;;  %vm14591_vm1 = vcmp.lt.s32.totalorder %v8481_v62, 16  ;;  %v8589_v62 = vadd.s32 1, %v7020_v29 }
  0xb9   : > { %v8504_v18 = vpop.permute.xlu0 %1199  ;;  %v551_v59 = vadd.f32 %v8320_v50, %v550_v63  ;;  %6997 = vmatpush.msra.mxu2 %v8519_v0  ;;  %v1505_v63 = vsel %vm1473_vm8, 1, %v14972_v36  ;;  %vm2184_vm2 = vmand %vm7327_vm5, %vm14596_vm13  ;;  %vm14597_vm5 = vcmp.lt.s32.totalorder %v8501_v13, 16  ;;  %vm14600_vm13 = vcmp.ge.s32.totalorder %v8570_v25, 0 }
  0xba   : > { %vm8551_vm8 = vmand %vm15031_vm10, %vm14595_vm4  ;;  %vm15113_vm10 = vnez %v15025_v12  ;;  %15114 = vst [vmem:[#allocation78_spill] sm:$0xff] %v8589_v62  ;;  %v7048_v12 = vld [vmem:[%s14274_s2 + $0x8] sm:$0xff] }
  0xbb   : > { %1583 = vperm.xlu0 %7010, %v1500_v9   ;;  %v638_v42 = vmax.f32 %v551_v59, 0.0  ;;  %6641 = vmatmul.msk.f32.gmra.mxu0 %vm15101_vm14, %v400_v15  ;;  %v1504_v9 = vsel %vm8494_vm9, 1, %v14972_v36  ;;  %vm15104_vm14 = vcmask 130048   ;;  %v15105_v15 = vld [vmem:[#allocation65_spill] sm:$0xff]  ;;  %v7018_v59 = vld [vmem:[%s14275_s3 + $0x18] sm:$0xff]  ;;  %vm8563_vm9 = vmand %vm2184_vm2, %vm14591_vm1 }
  0xbc   : > { %vm14594_vm11 = vcmp.ge.s32.totalorder %v15105_v15, 0  ;;  %v8543_v28 = vadd.s32 1, %v7018_v59  ;;  %vm2249_vm2 = vmand %vm8551_vm8, %vm14597_vm5  ;;  %v2280_v32 = vsel %vm8563_vm9, 1, %v14972_v36  ;;  %vm15116_vm8 = vcmask 130048  }
  0xbd   : > { %709 = vst.msk [vmem:[#allocation2 + $0x38] sm:$0xff] %vm15104_vm14, %v638_v42  ;;  %v1503_v42 = vsel %vm8523_vm0, 1, %v14972_v36  ;;  %vm1410_vm0 = vmand %vm15113_vm10, %vm14594_vm11  ;;  %vm14609_vm14 = vcmp.lt.s32.totalorder %v15105_v15, 16  ;;  %vm15115_vm11 = vcmask 523264   ;;  %vm15117_vm5 = vnez %v14903_v46  ;;  %v402_v15 = vld [vmem:[%s7322_s18 + $0xb0] sm:$0xff] }
  0xbe   : > { %15106 = vst [vmem:[#allocation75_spill] sm:$0xff] %v8543_v28  ;;  %vm14607_vm1 = vcmp.ge.s32.totalorder %v8543_v28, 0  ;;  %vm1474_vm4 = vmand %vm1410_vm0, %vm14609_vm14  ;;  %vm14606_vm0 = vcmp.ge.s32.totalorder %v8589_v62, 0  ;;  %vm15119_vm9 = vnez %v14887_v16  ;;  %v7022_v16 = vld [vmem:[%s14275_s3 + $0x38] sm:$0xff] }
  0xbf   : > { %v8545_v37 = vpop.permute.xlu1 %1211  ;;  %v8559_v59 = vpop.permute.xlu2 %1241  ;;  %vm2187_vm12 = vmand %vm15117_vm5, %vm14607_vm1  ;;  %vm14608_vm5 = vcmp.lt.s32.totalorder %v8570_v25, 16  ;;  %v1506_v46 = vsel %vm1474_vm4, 1, %v14972_v36  ;;  %vm15125_vm4 = vnez %v14891_v24 }
  0xc0   : > { %1595 = vperm.xlu1 %7011, %v1504_v9   ;;  %1598 = vperm.xlu2 %7012, %v1505_v63   ;;  %15109 = vst [vmem:[#allocation76_spill] sm:$0xff] %v8559_v59  ;;  %v553_v52 = vpop.f32.mrf.mxu0  ;;  %v401_v9 = vld [vmem:[%s7322_s18 + $0xa8] sm:$0xff] }
  0xc1   : > { %v554_v55 = vadd.f32 %v8320_v50, %v553_v52  ;;  %v2281_v52 = vsel %vm2249_vm2, 1, %v14972_v36  ;;  %vm8615_vm2 = vmand %vm15119_vm9, %vm14600_vm13  ;;  %vm14610_vm13 = vcmp.lt.s32.totalorder %v8589_v62, 16  ;;  %v15431_v62 = vmov 0 }
  0xc2   : > { %v8579_v63 = vpop.permute.xlu0 %1208  ;;  %vm2186_vm9 = vmand %vm15125_vm4, %vm14606_vm0  ;;  %vm15127_vm4 = vcmask 523264   ;;  %vm1256_vm0 = vcmp.eq.s32.totalorder %v8343_v34, 1 }
  0xc3   : > { %1592 = vperm.xlu0 %7010, %v1503_v42   ;;  %v639_v59 = vmax.f32 %v554_v55, 0.0  ;;  %6642 = vmatmul.msk.f32.gmra.mxu0 %vm15115_vm11, %v401_v9  ;;  %vm14601_vm11 = vcmp.lt.s32.totalorder %v8543_v28, 16  ;;  %v7021_v42 = vld [vmem:[%s14275_s3 + $0x30] sm:$0xff]  ;;  %vm8659_vm1 = vmand %vm2186_vm9, %vm14610_vm13 }
  0xc4   : > { %v8609_v19 = vadd.s32 1, %v7021_v42  ;;  %v8632_v42 = vadd.s32 1, %v7022_v16  ;;  %v7023_v16 = vld [vmem:[%s14275_s3 + $0x28] sm:$0xff] }
  0xc5   : > { %710 = vst.msk [vmem:[#allocation2 + $0x40] sm:$0xff] %vm15116_vm8, %v639_v59  ;;  %vm8625_vm8 = vmand %vm2187_vm12, %vm14601_vm11  ;;  %v8651_v28 = vadd.s32 1, %v7023_v16 }
  0xc6   : > { %15118 = vst [vmem:[#allocation79_spill] sm:$0xff] %v8609_v19  ;;  %vm2252_vm12 = vmand %vm8615_vm2, %vm14608_vm5  ;;  %vm14618_vm11 = vcmp.ge.s32.totalorder %v8609_v19, 0  ;;  %vm15130_vm5 = vcmask 130048   ;;  %vm14614_vm9 = vcmp.lt.s32.totalorder %v8609_v19, 16 }
  0xc7   : > { %15124 = vst [vmem:[#allocation80_spill] sm:$0xff] %v8632_v42  ;;  %v2284_v16 = vsel %vm2252_vm12, 1, %v14972_v36  ;;  %vm14613_vm13 = vcmp.ge.s32.totalorder %v8651_v28, 0  ;;  %vm15132_vm2 = vmmov %vm15130_vm5 }
  0xc8   : > { %2313 = vperm.xlu1 %7011, %v2280_v32   ;;  %2316 = vperm.xlu2 %7012, %v2281_v52   ;;  %v8621_v9 = vpop.permute.xlu1 %1220  ;;  %v556_v29 = vpop.f32.mrf.mxu0  ;;  %15126 = vst [vmem:[#allocation81_spill] sm:$0xff] %v8651_v28 }
  0xc9   : > { %v557_v32 = vadd.f32 %v8320_v50, %v556_v29 }
  0xca   : > { %v8641_v52 = vpop.permute.xlu2 %1508 }
  0xcb   : > { %1601 = vperm.xlu0 %7010, %v1506_v46   ;;  %v8653_v24 = vpop.permute.xlu0 %1217  ;;  %v640_v13 = vmax.f32 %v557_v32, 0.0  ;;  %6643 = vmatmul.msk.f32.gmra.mxu0 %vm15127_vm4, %v402_v15  ;;  %v2283_v46 = vsel %vm8625_vm8, 1, %v14972_v36  ;;  %vm15131_vm4 = vnez %v14922_v11  ;;  %v7024_v15 = vld [vmem:[%s14275_s3 + $0x48] sm:$0xff]  ;;  %vm15135_vm8 = vnez %v14917_v1  ;;  %v7025_v1 = vld [vmem:[%s14275_s3 + $0x50] sm:$0xff]  ;;  %v7027_v32 = vld [vmem:[%s14275_s3 + $0x60] sm:$0xff] }
  0xcc   : > { %v808_v29 = vld [vmem:[#allocation2 + $0x3f] sm:$0xff]  ;;  %vm2190_vm14 = vmand %vm15131_vm4, %vm14618_vm11  ;;  %v8679_v55 = vadd.s32 1, %v7024_v15  ;;  %v2282_v11 = vsel %vm8659_vm1, 1, %v14972_v36  ;;  %vm15141_vm1 = vnez %v14899_v40 }
  0xcd   : > { %711 = vst.msk [vmem:[#allocation2 + $0x48] sm:$0xff] %vm15130_vm5, %v640_v13  ;;  %v1288_v34 = vsel %vm1256_vm0, %v808_v29, 0.0  ;;  %vm15134_vm5 = vcmp.ge.s32.totalorder %v8632_v42, 0  ;;  %vm14617_vm0 = vcmp.lt.s32.totalorder %v8632_v42, 16  ;;  %v403_v15 = vld [vmem:[%s7322_s18 + $0xb8] sm:$0xff]  ;;  %vm2189_vm4 = vmand %vm15141_vm1, %vm14613_vm13  ;;  %vm15143_vm1 = vcmask 523264  }
  0xce   : > { %6694 = vmatmul.msk.f32.vlgmr.msra.gmra.mxu2 %vm15132_vm2, %v1288_v34  ;;  %15133 = vst [vmem:[#allocation82_spill] sm:$0xff] %v8679_v55  ;;  %vm8685_vm12 = vmand %vm15135_vm8, %vm15134_vm5  ;;  %v8702_v34 = vadd.s32 1, %v7025_v1  ;;  %vm14628_vm8 = vcmp.ge.s32.totalorder %v8679_v55, 0  ;;  %v7026_v1 = vld [vmem:[%s14275_s3 + $0x40] sm:$0xff]  ;;  %vm1257_vm13 = vcmp.eq.s32.totalorder %v8163_v5, 1 }
  0xcf   : > { %vm8695_vm2 = vmand %vm2190_vm14, %vm14614_vm9  ;;  %vm14619_vm14 = vcmp.lt.s32.totalorder %v8651_v28, 16  ;;  %v8723_v19 = vadd.s32 1, %v7026_v1  ;;  %v7030_v1 = vld [vmem:[%s14275_s3 + $0x78] sm:$0xff]  ;;  %v15418_v28 = vmov 0 }
  0xd0   : > { %2322 = vperm.xlu1 %7011, %v2283_v46   ;;  %2325 = vperm.xlu2 %7012, %v2284_v16   ;;  %v559_v29 = vpop.f32.mrf.mxu0  ;;  %15140 = vst [vmem:[#allocation83_spill] sm:$0xff] %v8702_v34  ;;  %vm2255_vm5 = vmand %vm8685_vm12, %vm14617_vm0  ;;  %vm15147_vm0 = vnez %v14936_v45  ;;  %v6654_v45 = vld [vmem:[%s14278_s6 + $0x18] sm:$0xff] }
  0xd1   : > { %v8705_v46 = vpop.permute.xlu1 %1229  ;;  %v560_v59 = vadd.f32 %v8320_v50, %v559_v29  ;;  %15142 = vst [vmem:[#allocation84_spill] sm:$0xff] %v8723_v19  ;;  %vm8731_vm9 = vmand %vm2189_vm4, %vm14619_vm14  ;;  %vm14627_vm4 = vcmp.lt.s32.totalorder %v8679_v55, 16  ;;  %vm14625_vm14 = vcmp.ge.s32.totalorder %v8723_v19, 0  ;;  %6994 = vmatpush.msra.mxu1 %v6654_v45  ;;  %1780 = vmatpush.msrb.mxu0 %v6654_v45 }
  0xd2   : > { %v8713_v16 = vpop.permute.xlu2 %1517  ;;  %vm2193_vm11 = vmand %vm15147_vm0, %vm14628_vm8 }
  0xd3   : > { %2319 = vperm.xlu0 %7010, %v2282_v11   ;;  %v641_v40 = vmax.f32 %v560_v59, 0.0  ;;  %6644 = vmatmul.msk.f32.gmra.mxu0 %vm15143_vm1, %v403_v15  ;;  %v2286_v11 = vsel %vm8695_vm2, 1, %v14972_v36  ;;  %v2287_v59 = vsel %vm2255_vm5, 1, %v14972_v36  ;;  %vm15146_vm1 = vcmask 130048   ;;  %vm8767_vm0 = vmand %vm2193_vm11, %vm14627_vm4 }
  0xd4   : > { %v8727_v29 = vpop.permute.xlu0 %1226  ;;  %v809_v42 = vld [vmem:[#allocation2 + $0x47] sm:$0xff]  ;;  %vm15148_vm12 = vmmov %vm15146_vm1  ;;  %v8751_v15 = vadd.s32 1, %v7027_v32  ;;  %vm15150_vm2 = vcmp.ge.s32.totalorder %v8702_v34, 0  ;;  %vm15151_vm5 = vnez %v14932_v35 }
  0xd5   : > { %712 = vst.msk [vmem:[#allocation2 + $0x50] sm:$0xff] %vm15146_vm1, %v641_v40  ;;  %v1289_v5 = vsel %vm1257_vm13, %v809_v42, 0.0  ;;  %vm8757_vm1 = vmand %vm15151_vm5, %vm15150_vm2  ;;  %vm14622_vm13 = vcmp.lt.s32.totalorder %v8702_v34, 16  ;;  %v2285_v42 = vsel %vm8731_vm9, 1, %v14972_v36  ;;  %v7028_v35 = vld [vmem:[%s14275_s3 + $0x68] sm:$0xff]  ;;  %v404_v32 = vld [vmem:[%s7322_s18 + $0xc0] sm:$0xff] }
  0xd6   : > { %6695 = vmatmul.msk.f32.gmra.mxu2 %vm15148_vm12, %v1289_v5  ;;  %15149 = vst [vmem:[#allocation85_spill] sm:$0xff] %v8751_v15  ;;  %v8774_v5 = vadd.s32 1, %v7028_v35  ;;  %vm15157_vm12 = vnez %v14912_v60  ;;  %vm14626_vm9 = vcmp.lt.s32.totalorder %v8723_v19, 16  ;;  %vm8791_vm11 = vmand %vm8757_vm1, %vm14622_vm13  ;;  %vm14636_vm5 = vcmp.ge.s32.totalorder %v8751_v15, 0  ;;  %v7029_v60 = vld [vmem:[%s14275_s3 + $0x58] sm:$0xff] }
  0xd7   : > { %vm2192_vm2 = vmand %vm15157_vm12, %vm14625_vm14  ;;  %v8799_v55 = vadd.s32 1, %v7029_v60  ;;  %vm15161_vm12 = vcmask 523264   ;;  %vm1258_vm1 = vcmp.eq.s32.totalorder %v8395_v17, 1  ;;  %v2290_v17 = vsel %vm8791_vm11, 1, %v14972_v36 }
  0xd8   : > { %2331 = vperm.xlu1 %7011, %v2286_v11   ;;  %2334 = vperm.xlu2 %7012, %v2287_v59   ;;  %v562_v40 = vpop.f32.mrf.mxu0  ;;  %15156 = vst [vmem:[#allocation86_spill] sm:$0xff] %v8774_v5  ;;  %vm8808_vm13 = vmand %vm2192_vm2, %vm14626_vm9  ;;  %vm14631_vm14 = vcmp.ge.s32.totalorder %v8774_v5, 0  ;;  %vm15165_vm2 = vnez %v14950_v30  ;;  %vm14629_vm4 = vcmp.lt.s32.totalorder %v8751_v15, 16  ;;  %v8836_v35 = vadd.s32 1, %v7030_v1  ;;  %v6653_v30 = vld [vmem:[%s14278_s6 + $0x10] sm:$0xff]  ;;  %v7031_v1 = vld [vmem:[%s14275_s3 + $0x80] sm:$0xff] }
  0xd9   : > { %v563_v13 = vadd.f32 %v8320_v50, %v562_v40  ;;  %15160 = vst [vmem:[#allocation87_spill] sm:$0xff] %v8799_v55  ;;  %vm8826_vm9 = vmand %vm15165_vm2, %vm14636_vm5  ;;  %vm14630_vm8 = vcmp.ge.s32.totalorder %v8799_v55, 0  ;;  %vm15170_vm11 = vnez %v14946_v8  ;;  %6995 = vmatpush.msra.mxu1 %v6653_v30  ;;  %1781 = vmatpush.msrb.mxu0 %v6653_v30  ;;  %v8864_v30 = vadd.s32 1, %v7031_v1 }
  0xda   : > { %v8783_v11 = vpop.permute.xlu1 %1238  ;;  %v8785_v59 = vpop.permute.xlu2 %1526  ;;  %15169 = vst [vmem:[#allocation88_spill] sm:$0xff] %v8836_v35  ;;  %vm8857_vm2 = vmand %vm8826_vm9, %vm14629_vm4  ;;  %vm14643_vm4 = vcmp.ge.s32.totalorder %v8836_v35, 0 }
  0xdb   : > { %2328 = vperm.xlu0 %7010, %v2285_v42   ;;  %v642_v40 = vmax.f32 %v563_v13, 0.0  ;;  %6645 = vmatmul.msk.f32.gmra.mxu0 %vm15161_vm12, %v404_v32  ;;  %v2289_v32 = vsel %vm8767_vm0, 1, %v14972_v36  ;;  %vm15164_vm12 = vcmask 130048   ;;  %15175 = vst [vmem:[#allocation89_spill] sm:$0xff] %v8864_v30 }
  0xdc   : > { %v810_v60 = vld [vmem:[#allocation2 + $0x4f] sm:$0xff]  ;;  %vm15168_vm0 = vmmov %vm15164_vm12  ;;  %1989 = vmatpush.msra.mxu0 %v8471_v54  ;;  %3213 = vmatpush.msrb.mxu1 %v6754_v21 }
  0xdd   : > { %v8813_v42 = vpop.permute.xlu0 %1235  ;;  %713 = vst.msk [vmem:[#allocation2 + $0x58] sm:$0xff] %vm15164_vm12, %v642_v40  ;;  %v1290_v45 = vsel %vm1258_vm1, %v810_v60, 0.0  ;;  %vm8845_vm1 = vmand %vm15170_vm11, %vm14631_vm14  ;;  %vm14635_vm12 = vcmp.lt.s32.totalorder %v8774_v5, 16  ;;  %v2288_v60 = vsel %vm8808_vm13, 1, %v14972_v36  ;;  %vm15176_vm13 = vnez %v14926_v23  ;;  %v7032_v23 = vld [vmem:[%s14275_s3 + $0x70] sm:$0xff] }
  0xde   : > { %6696 = vmatmul.msk.f32.gmra.mxu2 %vm15168_vm0, %v1290_v45  ;;  %vm2195_vm0 = vmand %vm15176_vm13, %vm14630_vm8  ;;  %vm14634_vm11 = vcmp.lt.s32.totalorder %v8799_v55, 16  ;;  %v8886_v1 = vadd.s32 1, %v7032_v23  ;;  %vm15178_vm13 = vcmask 523264   ;;  %vm1259_vm8 = vcmp.eq.s32.totalorder %v8383_v56, 1  ;;  %1990 = vmatpush.msra.mxu0 %v8519_v0  ;;  %v7033_v0 = vld [vmem:[%s14275_s3 + $0x90] sm:$0xff]  ;;  %v7036_v23 = vld [vmem:[%s14275_s3 + $0xa8] sm:$0xff] }
  0xdf   : > { %vm2261_vm9 = vmand %vm8845_vm1, %vm14635_vm12  ;;  %vm14637_vm12 = vcmp.lt.s32.totalorder %v8836_v35, 16  ;;  %v8915_v8 = vadd.s32 1, %v7033_v0  ;;  %v7055_v55 = vld [vmem:[%s14274_s2 + $0x38] sm:$0xff]  ;;  %v15353_v35 = vmov 0 }
  0xe0   : > { %2340 = vperm.xlu1 %7011, %v2289_v32   ;;  %2343 = vperm.xlu2 %7012, %v2290_v17   ;;  %v565_v45 = vpop.f32.mrf.mxu0  ;;  %v405_v32 = vld [vmem:[%s7322_s18 + $0xc8] sm:$0xff]  ;;  %15177 = vst [vmem:[#allocation90_spill] sm:$0xff] %v8886_v1  ;;  %vm8892_vm14 = vmand %vm2195_vm0, %vm14634_vm11  ;;  %vm15182_vm0 = vnez %v14964_v6  ;;  %vm14638_vm5 = vcmp.ge.s32.totalorder %v8886_v1, 0 }
  0xe1   : > { %v566_v34 = vadd.f32 %v8320_v50, %v565_v45  ;;  %vm2199_vm11 = vmand %vm15182_vm0, %vm14643_vm4  ;;  %15184 = vst [vmem:[#allocation91_spill] sm:$0xff] %v8915_v8  ;;  %vm15192_vm0 = vnez %v14941_v57  ;;  %v7035_v57 = vld [vmem:[%s14275_s3 + $0x88] sm:$0xff] }
  0xe2   : > { %v8874_v17 = vpop.permute.xlu1 %1247  ;;  %v8876_v13 = vpop.permute.xlu2 %1535  ;;  %v8959_v0 = vadd.s32 1, %v7035_v57  ;;  %v7037_v57 = vld [vmem:[%s14275_s3 + $0xb0] sm:$0xff] }
  0xe3   : > { %2337 = vperm.xlu0 %7010, %v2288_v60   ;;  %v643_v45 = vmax.f32 %v566_v34, 0.0  ;;  %6646 = vmatmul.msk.f32.gmra.mxu0 %vm15178_vm13, %v405_v32  ;;  %v2292_v60 = vsel %vm8857_vm2, 1, %v14972_v36  ;;  %v2293_v32 = vsel %vm2261_vm9, 1, %v14972_v36  ;;  %vm15181_vm13 = vcmask 130048  }
  0xe4   : > { %v811_v40 = vld [vmem:[#allocation2 + $0x57] sm:$0xff]  ;;  %vm15183_vm1 = vmmov %vm15181_vm13  ;;  %vm15185_vm2 = vcmp.ge.s32.totalorder %v8864_v30, 0  ;;  %vm15186_vm9 = vnez %v14960_v20  ;;  %v2291_v34 = vsel %vm8892_vm14, 1, %v14972_v36  ;;  %vm14641_vm14 = vcmp.lt.s32.totalorder %v8886_v1, 16  ;;  %15193 = vst [vmem:[#allocation93_spill] sm:$0xff] %v8959_v0  ;;  %v7043_v1 = vld [vmem:[%s14275_s3 + $0xe0] sm:$0xff] }
  0xe5   : > { %v8898_v5 = vpop.permute.xlu0 %1244  ;;  %714 = vst.msk [vmem:[#allocation2 + $0x60] sm:$0xff] %vm15181_vm13, %v643_v45  ;;  %v1291_v56 = vsel %vm1259_vm8, %v811_v40, 0.0  ;;  %vm8921_vm13 = vmand %vm15186_vm9, %vm15185_vm2  ;;  %vm14642_vm8 = vcmp.lt.s32.totalorder %v8864_v30, 16  ;;  %v7034_v20 = vld [vmem:[%s14275_s3 + $0x98] sm:$0xff]  ;;  %vm14667_vm9 = vcmp.ge.s32.totalorder %v8915_v8, 0  ;;  %vm14647_vm4 = vcmp.ge.s32.totalorder %v8959_v0, 0 }
  0xe6   : > { %6697 = vmatmul.msk.f32.gmra.mxu2 %vm15183_vm1, %v1291_v56  ;;  %vm8931_vm1 = vmand %vm2199_vm11, %vm14637_vm12  ;;  %v8938_v40 = vadd.s32 1, %v7034_v20  ;;  %v406_v56 = vld [vmem:[%s7322_s18 + $0xd0] sm:$0xff]  ;;  %vm1260_vm12 = vcmp.eq.s32.totalorder %v8224_v27, 1 }
  0xe7   : > { %vm2198_vm2 = vmand %vm15192_vm0, %vm14638_vm5  ;;  %vm15194_vm0 = vcmask 523264  }
  0xe8   : > { %2349 = vperm.xlu1 %7011, %v2292_v60   ;;  %2352 = vperm.xlu2 %7012, %v2293_v32   ;;  %v568_v45 = vpop.f32.mrf.mxu0  ;;  %15191 = vst [vmem:[#allocation92_spill] sm:$0xff] %v8938_v40  ;;  %vm2264_vm11 = vmand %vm8921_vm13, %vm14642_vm8  ;;  %vm14646_vm8 = vcmp.lt.s32.totalorder %v8915_v8, 16  ;;  %v7038_v8 = vld [vmem:[%s14275_s3 + $0xa0] sm:$0xff] }
  0xe9   : > { %v569_v54 = vadd.f32 %v8320_v50, %v568_v45  ;;  %vm8965_vm5 = vmand %vm2198_vm2, %vm14641_vm14  ;;  %vm15198_vm2 = vnez %v14979_v2 }
  0xea   : > { %v8947_v60 = vpop.permute.xlu1 %1514  ;;  %v8949_v32 = vpop.permute.xlu2 %1544  ;;  %vm2202_vm14 = vmand %vm15198_vm2, %vm14667_vm9  ;;  %vm15208_vm2 = vnez %v14955_v51 }
  0xeb   : > { %2346 = vperm.xlu0 %7010, %v2291_v34   ;;  %v644_v20 = vmax.f32 %v569_v54, 0.0  ;;  %6647 = vmatmul.msk.f32.gmra.mxu0 %vm15194_vm0, %v406_v56  ;;  %v2295_v34 = vsel %vm8931_vm1, 1, %v14972_v36  ;;  %v2296_v54 = vsel %vm2264_vm11, 1, %v14972_v36  ;;  %vm15197_vm0 = vcmask 130048  }
  0xec   : > { %v812_v6 = vld [vmem:[#allocation2 + $0x5f] sm:$0xff]  ;;  %vm15199_vm13 = vmmov %vm15197_vm0  ;;  %v8987_v56 = vadd.s32 1, %v7036_v23  ;;  %vm15201_vm1 = vcmp.ge.s32.totalorder %v8938_v40, 0  ;;  %vm15202_vm11 = vnez %v14974_v49 }
  0xed   : > { %v8970_v30 = vpop.permute.xlu0 %1511  ;;  %715 = vst.msk [vmem:[#allocation2 + $0x68] sm:$0xff] %vm15197_vm0, %v644_v20  ;;  %v1292_v27 = vsel %vm1260_vm12, %v812_v6, 0.0  ;;  %vm8993_vm0 = vmand %vm15202_vm11, %vm15201_vm1  ;;  %vm14651_vm12 = vcmp.lt.s32.totalorder %v8938_v40, 16  ;;  %v9001_v20 = vadd.s32 1, %v7037_v57  ;;  %v2294_v6 = vsel %vm8965_vm5, 1, %v14972_v36  ;;  %v407_v23 = vld [vmem:[%s7322_s18 + $0xd8] sm:$0xff] }
  0xee   : > { %6698 = vmatmul.msk.f32.gmra.mxu2 %vm15199_vm13, %v1292_v27  ;;  %15200 = vst [vmem:[#allocation94_spill] sm:$0xff] %v8987_v56  ;;  %vm9008_vm13 = vmand %vm2202_vm14, %vm14646_vm8  ;;  %vm14648_vm11 = vcmp.lt.s32.totalorder %v8959_v0, 16  ;;  %vm14664_vm14 = vcmp.ge.s32.totalorder %v8987_v56, 0  ;;  %vm15212_vm8 = vcmask 523264  }
  0xef   : > { %15205 = vst [vmem:[#allocation95_spill] sm:$0xff] %v9001_v20  ;;  %vm9017_vm1 = vmand %vm15208_vm2, %vm14647_vm4  ;;  %vm14660_vm2 = vcmp.ge.s32.totalorder %v9001_v20, 0  ;;  %vm1261_vm4 = vcmp.eq.s32.totalorder %v8438_v43, 1  ;;  %v2298_v2 = vsel %vm9008_vm13, 1, %v14972_v36  ;;  %vm15217_vm13 = vnez %v14993_v26 }
  0xf0   : > { %2358 = vperm.xlu1 %7011, %v2295_v34   ;;  %2361 = vperm.xlu2 %7012, %v2296_v54   ;;  %v571_v27 = vpop.f32.mrf.mxu0  ;;  %vm2267_vm5 = vmand %vm8993_vm0, %vm14651_vm12  ;;  %vm15219_vm12 = vcmask 130048  }
  0xf1   : > { %v572_v45 = vadd.f32 %v8320_v50, %v571_v27  ;;  %v9036_v27 = vadd.s32 1, %v7038_v8  ;;  %vm9047_vm0 = vmand %vm9017_vm1, %vm14648_vm11  ;;  %v7039_v8 = vld [vmem:[%s14275_s3 + $0xc0] sm:$0xff]  ;;  %v2299_v49 = vsel %vm2267_vm5, 1, %v14972_v36  ;;  %vm14659_vm11 = vcmp.lt.s32.totalorder %v8987_v56, 16 }
  0xf2   : > { %v9023_v34 = vpop.permute.xlu1 %1523  ;;  %v9025_v54 = vpop.permute.xlu2 %1553  ;;  %vm2205_vm1 = vmand %vm15217_vm13, %vm14664_vm14  ;;  %v2297_v26 = vsel %vm9047_vm0, 1, %v14972_v36  ;;  %vm1262_vm14 = vcmp.eq.s32.totalorder %v8423_v47, 1  ;;  %v6788_v47 = vld [vmem:[%s14278_s6 + $0x48] sm:$0xff] }
  0xf3   : > { %2355 = vperm.xlu0 %7010, %v2294_v6   ;;  %v645_v51 = vmax.f32 %v572_v45, 0.0  ;;  %15211 = vst [vmem:[#allocation96_spill] sm:$0xff] %v9036_v27  ;;  %6648 = vmatmul.msk.f32.gmra.mxu0 %vm15212_vm8, %v407_v23  ;;  %v9054_v23 = vadd.s32 1, %v7039_v8  ;;  %vm15216_vm8 = vcmask 130048   ;;  %v7040_v8 = vld [vmem:[%s14275_s3 + $0xc8] sm:$0xff]  ;;  %vm2206_vm5 = vmand %vm15079_vm15, %vm14660_vm2  ;;  %vm14661_vm13 = vcmp.ge.s32.totalorder %v9036_v27, 0 }
  0xf4   : > { %v813_v45 = vld [vmem:[#allocation2 + $0x67] sm:$0xff]  ;;  %v9068_v0 = vadd.s32 1, %v7040_v8  ;;  %v7041_v6 = vld [vmem:[%s14275_s3 + $0xb8] sm:$0xff]  ;;  %3745 = vmatpush.msrb.mxu2 %v6788_v47  ;;  %v7058_v47 = vld [vmem:[%s14274_s2 + $0x50] sm:$0xff] }
  0xf5   : > { %15215 = vst [vmem:[#allocation97_spill] sm:$0xff] %v9054_v23  ;;  %v9056_v43 = vpop.permute.xlu0 %1520  ;;  %v1293_v57 = vsel %vm1261_vm4, %v813_v45, 0.0  ;;  %vm9082_vm4 = vmand %vm2205_vm1, %vm14659_vm11  ;;  %vm14665_vm15 = vcmp.ge.s32.totalorder %v9054_v23, 0  ;;  %v408_v45 = vld [vmem:[%s7322_s18 + $0xe0] sm:$0xff]  ;;  %vm15225_vm1 = vnez %v14969_v44  ;;  %vm15229_vm11 = vnez %v15009_v39  ;;  %v7044_v44 = vld [vmem:[%s14275_s3 + $0xd0] sm:$0xff] }
  0xf6   : > { %716 = vst.msk [vmem:[#allocation2 + $0x70] sm:$0xff] %vm15216_vm8, %v645_v51  ;;  %vm14656_vm8 = vcmp.lt.s32.totalorder %v9001_v20, 16  ;;  %6699 = vmatmul.msk.f32.gmra.mxu2 %vm15219_vm12, %v1293_v57  ;;  %vm14666_vm0 = vcmp.ge.s32.totalorder %v9068_v0, 0  ;;  %vm9123_vm2 = vmand %vm15229_vm11, %vm14665_vm15  ;;  %vm14671_vm15 = vcmp.lt.s32.totalorder %v9068_v0, 16  ;;  %v1324_v57 = vld [vmem:[#allocation2 + $0x50] sm:$0xff] }
  0xf7   : > { %15218 = vst [vmem:[#allocation98_spill] sm:$0xff] %v9068_v0  ;;  %vm9090_vm12 = vmand %vm2206_vm5, %vm14656_vm8  ;;  %vm14696_vm8 = vcmp.lt.s32.totalorder %v9036_v27, 16  ;;  %v15327_v27 = vld [vmem:[#allocation10_spill] sm:$0xff] }
  0xf8   : > { %2367 = vperm.xlu1 %7011, %v2298_v2   ;;  %2370 = vperm.xlu2 %7012, %v2299_v49   ;;  %v574_v53 = vpop.f32.mrf.mxu0  ;;  %v9099_v49 = vadd.s32 1, %v7041_v6  ;;  %vm9109_vm5 = vmand %vm15225_vm1, %vm14661_vm13  ;;  %vm14672_vm1 = vcmp.lt.s32.totalorder %v9054_v23, 16  ;;  %vm15232_vm13 = vcmask 523264   ;;  %v2302_v51 = vsel %vm9090_vm12, 1, %v14972_v36 }
  0xf9   : > { %v575_v2 = vadd.f32 %v8320_v50, %v574_v53  ;;  %v7042_v53 = vld [vmem:[%s14275_s3 + $0xd8] sm:$0xff]  ;;  %vm9139_vm11 = vmand %vm15087_vm7, %vm14666_vm0  ;;  %vm15238_vm7 = vcmask 130048   ;;  %v15349_v23 = vmov 0 }
  0xfa   : > { %15224 = vst [vmem:[#allocation99_spill] sm:$0xff] %v9099_v49  ;;  %v9101_v8 = vpop.permute.xlu1 %1532  ;;  %v9103_v56 = vpop.permute.xlu2 %1562  ;;  %v9117_v6 = vadd.s32 1, %v7042_v53  ;;  %v9132_v53 = vadd.s32 1, %v7043_v1  ;;  %v2301_v1 = vsel %vm9082_vm4, 1, %v14972_v36  ;;  %vm14673_vm0 = vcmp.ge.s32.totalorder %v9099_v49, 0  ;;  %vm9164_vm4 = vmand %vm9123_vm2, %vm14672_vm1 }
  0xfb   : > { %2364 = vperm.xlu0 %7010, %v2297_v26   ;;  %v646_v40 = vmax.f32 %v575_v2, 0.0  ;;  %6649 = vmatmul.msk.f32.gmra.mxu0 %vm15232_vm13, %v408_v45  ;;  %v1322_v26 = vld [vmem:[#allocation2 + $0x40] sm:$0xff]  ;;  %vm9151_vm13 = vmand %vm9109_vm5, %vm14696_vm8 }
  0xfc   : > { %15228 = vst [vmem:[#allocation100_spill] sm:$0xff] %v9117_v6  ;;  %vm15241_vm5 = vmmov %vm15238_vm7  ;;  %vm14674_vm12 = vcmp.ge.s32.totalorder %v9132_v53, 0 }
  0xfd   : > { %15233 = vst [vmem:[#allocation101_spill] sm:$0xff] %v9132_v53  ;;  %v814_v45 = vld [vmem:[#allocation2 + $0x6f] sm:$0xff]  ;;  %v1530_v2 = vpop.permute.xlu0 %1529  ;;  %vm15245_vm2 = vmmov %vm15241_vm5 }
  0xfe   : > { %717 = vst.msk [vmem:[#allocation2 + $0x78] sm:$0xff] %vm15238_vm7, %v646_v40  ;;  %v1294_v33 = vsel %vm1262_vm14, %v814_v45, 0.0  ;;  %vm1610_vm9 = vcmp.eq.s32.totalorder %v1530_v2, 1  ;;  %vm14670_vm7 = vcmp.ge.s32.totalorder %v9117_v6, 0  ;;  %vm9174_vm14 = vmand %vm9139_vm11, %vm14671_vm15  ;;  %v9182_v45 = vadd.s32 1, %v7044_v44 }
  0xff   : > { %6700 = vmatmul.msk.f32.gmra.mxu2 %vm15241_vm5, %v1294_v33  ;;  %v1642_v40 = vsel %vm1610_vm9, %v1322_v26, 0.0  ;;  %v2300_v26 = vsel %vm9151_vm13, 1, %v14972_v36  ;;  %vm15246_vm9 = vnez %v14984_v14  ;;  %vm14675_vm5 = vcmp.lt.s32.totalorder %v9099_v49, 16  ;;  %v409_v33 = vld [vmem:[%s7322_s18 + $0xe8] sm:$0xff]  ;;  %v15317_v49 = vld [vmem:[#allocation9_spill] sm:$0xff] }
 0x100   : > { %15244 = vst [vmem:[#allocation102_spill] sm:$0xff] %v9182_v45  ;;  %6662 = vmatmul.msk.f32.vlgmr.msra.gmra.mxu1 %vm15245_vm2, %v1642_v40  ;;  %2376 = vperm.xlu1 %7011, %v2301_v1   ;;  %vm9192_vm11 = vmand %vm15246_vm9, %vm14673_vm0  ;;  %v577_v2 = vpop.f32.mrf.mxu0  ;;  %v7045_v1 = vld [vmem:[%s14275_s3 + $0xf0] sm:$0xff]  ;;  %vm15250_vm13 = vnez %v15022_v3  ;;  %vm14678_vm9 = vcmp.lt.s32.totalorder %v9117_v6, 16  ;;  %vm14684_vm1 = vcmp.ge.s32.totalorder %v9182_v45, 0  ;;  %vm15258_vm0 = vcmask 523264  }
 0x101   : > { %v9201_v40 = vadd.s32 1, %v7045_v1  ;;  %2379 = vperm.xlu2 %7012, %v2302_v51   ;;  %v578_v14 = vadd.f32 %v8320_v50, %v577_v2  ;;  %vm9211_vm2 = vmand %vm15250_vm13, %vm14670_vm7  ;;  %v7046_v1 = vld [vmem:[%s14275_s3 + $0xf8] sm:$0xff]  ;;  %vm14679_vm7 = vcmp.lt.s32.totalorder %v9132_v53, 16  ;;  %v2305_v21 = vsel %vm9174_vm14, 1, %v14972_v36 }
 0x102   : > { %v9219_v0 = vadd.s32 1, %v7046_v1  ;;  %v9221_v51 = vpop.permute.xlu1 %1541  ;;  %v9223_v2 = vpop.permute.xlu2 %1571  ;;  %vm9229_vm13 = vmand %vm15100_vm6, %vm14674_vm12  ;;  %vm1263_vm6 = vcmp.eq.s32.totalorder %v8293_v58, 1  ;;  %vm1611_vm12 = vcmp.eq.s32.totalorder %v9101_v8, 1  ;;  %v2304_v58 = vsel %vm9164_vm4, 1, %v14972_v36 }
 0x103   : > { %15249 = vst [vmem:[#allocation103_spill] sm:$0xff] %v9201_v40  ;;  %2373 = vperm.xlu0 %7010, %v2300_v26   ;;  %vm9238_vm15 = vmand %vm9192_vm11, %vm14675_vm5  ;;  %v647_v1 = vmax.f32 %v578_v14, 0.0  ;;  %6650 = vmatmul.msk.f32.gmra.mxu0 %vm15258_vm0, %v409_v33  ;;  %v1323_v26 = vld [vmem:[#allocation2 + $0x48] sm:$0xff]  ;;  %vm14681_vm0 = vcmp.ge.s32.totalorder %v9201_v40, 0  ;;  %vm15261_vm5 = vcmask 130048   ;;  %vm15264_vm4 = vnez %v15083_v22 }
 0x104   : > { %15253 = vst [vmem:[#allocation104_spill] sm:$0xff] %v9219_v0  ;;  %vm9253_vm11 = vmand %vm9211_vm2, %vm14678_vm9  ;;  %vm14680_vm9 = vcmp.ge.s32.totalorder %v9219_v0, 0  ;;  %v1643_v3 = vsel %vm1611_vm12, %v1323_v26, 0.0  ;;  %v7047_v22 = vld [vmem:[%s14275_s3 + $0xe8] sm:$0xff]  ;;  %v2303_v8 = vsel %vm9238_vm15, 1, %v14972_v36  ;;  %vm14692_vm12 = vcmp.lt.s32.totalorder %v9219_v0, 16 }
 0x105   : > { %v815_v14 = vld [vmem:[#allocation2 + $0x77] sm:$0xff]  ;;  %v9258_v33 = vpop.permute.xlu0 %1538  ;;  %718 = vst.msk [vmem:[#allocation2 + $0x80] sm:$0xff] %vm15261_vm5, %v647_v1  ;;  %vm9268_vm2 = vmand %vm9229_vm13, %vm14679_vm7  ;;  %vm14683_vm13 = vcmp.lt.s32.totalorder %v9182_v45, 16  ;;  %vm15267_vm7 = vcmask 130048   ;;  %v9300_v1 = vadd.s32 1, %v7047_v22  ;;  %vm2781_vm15 = vcmp.lt.s32.totalorder %v7048_v12, 16 }
 0x106   : > { %v1295_v6 = vsel %vm1263_vm6, %v815_v14, 0.0  ;;  %vm9280_vm5 = vmand %vm15264_vm4, %vm14684_vm1  ;;  %vm14682_vm6 = vcmp.lt.s32.totalorder %v9201_v40, 16  ;;  %v410_v26 = vld [vmem:[%s7322_s18 + $0xf0] sm:$0xff]  ;;  %v7052_v40 = vld [vmem:[%s14274_s2 + $0x20] sm:$0xff]  ;;  %v15315_v53 = vmov 0 }
 0x107   : > { %6701 = vmatmul.msk.f32.gmra.mxu2 %vm15267_vm7, %v1295_v6  ;;  %vm9292_vm14 = vmand %vm8039_vm3, %vm14681_vm0  ;;  %15270 = vst [vmem:[#allocation105_spill] sm:$0xff] %v9300_v1  ;;  %v2307_v6 = vsel %vm9253_vm11, 1, %v14972_v36 }
 0x108   : > { %6663 = vmatmul.msk.f32.gmra.mxu1 %vm15267_vm7, %v1643_v3  ;;  %2385 = vperm.xlu1 %7011, %v2304_v58   ;;  %v580_v10 = vpop.f32.mrf.mxu0  ;;  %vm9310_vm3 = vmand %vm15113_vm10, %vm14680_vm9  ;;  %vm2749_vm10 = vcmp.ge.s32.totalorder %v7048_v12, 0 }
 0x109   : > { %2388 = vperm.xlu2 %7012, %v2305_v21   ;;  %vm9320_vm4 = vmand %vm9280_vm5, %vm14683_vm13  ;;  %v581_v14 = vadd.f32 %v8320_v50, %v580_v10  ;;  %v7049_v50 = vld [vmem:[%s14274_s2 + $0x10] sm:$0xff]  ;;  %vm1264_vm13 = vcmp.eq.s32.totalorder %v8504_v18, 1  ;;  %v15283_v18 = vmov 0  ;;  %v7060_v21 = vld [vmem:[%s14274_s2 + $0x48] sm:$0xff] }
 0x10a   : > { %v9328_v58 = vpop.permute.xlu1 %1550  ;;  %v9330_v3 = vpop.permute.xlu2 %1580  ;;  %vm9336_vm5 = vmand %vm9292_vm14, %vm14682_vm6  ;;  %vm2750_vm7 = vcmp.ge.s32.totalorder %v7049_v50, 0  ;;  %vm2782_vm9 = vcmp.lt.s32.totalorder %v7049_v50, 16  ;;  %vm14693_vm14 = vcmp.ge.s32.totalorder %v9300_v1, 0  ;;  %vm15279_vm6 = vcmask 523264   ;;  %v15289_v50 = vld [vmem:[#allocation14_spill] sm:$0xff] }
 0x10b   : > { %2382 = vperm.xlu0 %7010, %v2303_v8   ;;  %v648_v20 = vmax.f32 %v581_v14, 0.0  ;;  %vm9347_vm0 = vmand %vm9310_vm3, %vm14692_vm12  ;;  %6651 = vmatmul.msk.f32.gmra.mxu0 %vm15279_vm6, %v410_v26  ;;  %v15280_v8 = vmov 0  ;;  %vm15282_vm3 = vcmask 130048   ;;  %v2308_v26 = vsel %vm9268_vm2, 1, %v14972_v36 }
 0x10c   : > { %v816_v10 = vld [vmem:[#allocation2 + $0x7f] sm:$0xff]  ;;  %vm9356_vm1 = vmand %vm2749_vm10, %vm2781_vm15  ;;  %vm1612_vm10 = vcmp.eq.s32.totalorder %v8876_v13, 1  ;;  %vm15285_vm15 = vnez %v15013_v7  ;;  %v2306_v7 = vsel %vm9320_vm4, 1, %v14972_v36  ;;  %v15306_v13 = vmov 0 }
 0x10d   : > { %v15281_v8 = vsel %vm9356_vm1, 4294967295, %v15280_v8  ;;  %v9360_v14 = vpop.permute.xlu0 %1547  ;;  %719 = vst.msk [vmem:[#allocation2 + $0x88] sm:$0xff] %vm15282_vm3, %v648_v20  ;;  %v1296_v0 = vsel %vm1264_vm13, %v816_v10, 0.0  ;;  %vm9367_vm6 = vmand %vm2750_vm7, %vm2782_vm9  ;;  %vm14689_vm9 = vcmp.lt.s32.totalorder %v9300_v1, 16  ;;  %v1644_v12 = vsel %vm1612_vm10, %v1324_v57, 0.0  ;;  %v15294_v20 = vld [vmem:[#allocation6_spill] sm:$0xff] }
 0x10e   : > { %v15284_v18 = vsel %vm9367_vm6, 4294967295, %v15283_v18  ;;  %vm9379_vm11 = vmand %vm15285_vm15, %vm14693_vm14  ;;  %vm15290_vm7 = vcmp.ge.s32.totalorder %v15289_v50, 0  ;;  %vm15295_vm15 = vcmp.ge.s32.totalorder %v15294_v20, 0  ;;  %v7050_v57 = vld [vmem:[%s14274_s2] sm:$0xff]  ;;  %v411_v10 = vld [vmem:[%s7322_s18 + $0xf8] sm:$0xff]  ;;  %vm15303_vm8 = vcmp.lt.s32.totalorder %v15294_v20, 16 }
 0x10f   : > { %vm15288_vm13 = vmmov %vm15282_vm3  ;;  %vm1265_vm12 = vcmp.eq.s32.totalorder %v8475_v31, 1 }
 0x110   : > { %6702 = vmatmul.msk.f32.gmra.mxu2 %vm15288_vm13, %v1296_v0  ;;  %vm9389_vm3 = vmand %vm9356_vm1, %vm15290_vm7  ;;  %2394 = vperm.xlu1 %7011, %v2307_v6   ;;  %v583_v44 = vpop.f32.mrf.mxu0  ;;  %vm2780_vm7 = vcmp.lt.s32.totalorder %v7050_v57, 16  ;;  %v9420_v6 = vld [vmem:[%s14277_s5] ss:$0 sm:$0xff]  ;;  %v1325_v0 = vld [vmem:[#allocation2 + $0x58] sm:$0xff] }
 0x111   : > { %vm15293_vm2 = vmmov %vm15288_vm13  ;;  %vm2748_vm13 = vcmp.ge.s32.totalorder %v7050_v57, 0  ;;  %2397 = vperm.xlu2 %7012, %v2308_v26   ;;  %v15310_v57 = vmov 0 }
 0x112   : > { %6664 = vmatmul.msk.f32.gmra.mxu1 %vm15293_vm2, %v1644_v12  ;;  %vm9401_vm10 = vmand %vm9367_vm6, %vm15295_vm15  ;;  %v584_v12 = vadd.f32 %v9420_v6, %v583_v44  ;;  %vm2784_vm15 = vcmp.lt.s32.totalorder %v7052_v40, 16  ;;  %v9426_v26 = vpop.permute.xlu1 %1559  ;;  %v9428_v39 = vpop.permute.xlu2 %1589  ;;  %v7053_v44 = vld [vmem:[%s14274_s2 + $0x28] sm:$0xff] }
 0x113   : > { %vm9413_vm4 = vmand %vm9379_vm11, %vm14689_vm9  ;;  %vm15300_vm11 = vcmp.lt.s32.totalorder %v15289_v50, 16  ;;  %2391 = vperm.xlu0 %7010, %v2306_v7   ;;  %v6720_v7 = vld [vmem:[%s14278_s6 + $0x28] sm:$0xff] }
 0x114   : > { %vm9434_vm9 = vmand %vm9389_vm3, %vm15300_vm11  ;;  %v649_v45 = vmax.f32 %v584_v12, 0.0  ;;  %vm15308_vm11 = vcmask 523264   ;;  %v817_v12 = vld [vmem:[#allocation2 + $0x87] sm:$0xff]  ;;  %6998 = vmatpush.msra.mxu3 %v6720_v7 }
 0x115   : > { %vm9445_vm2 = vmand %vm9401_vm10, %vm15303_vm8  ;;  %6652 = vmatmul.msk.f32.gmra.mxu0 %vm15308_vm11, %v411_v10  ;;  %vm15309_vm8 = vcmp.ge.s32.totalorder %v7052_v40, 0  ;;  %v9467_v20 = vpop.permute.xlu0 %1556  ;;  %v2310_v10 = vsel %vm9336_vm5, 1, %v14972_v36  ;;  %v1297_v31 = vsel %vm1265_vm12, %v817_v12, 0.0  ;;  %vm15314_vm11 = vcmp.ge.s32.totalorder %v7053_v44, 0  ;;  %v15323_v12 = vld [vmem:[#allocation4_spill] sm:$0xff] }
 0x116   : > { %vm9451_vm3 = vmand %vm2748_vm13, %vm2780_vm7  ;;  %vm15312_vm13 = vcmask 130048   ;;  %vm15313_vm7 = vcmp.lt.s32.totalorder %v7053_v44, 16  ;;  %v2311_v40 = vsel %vm9347_vm0, 1, %v14972_v36  ;;  %v1315_v44 = vld [vmem:[#allocation2 + $0x8] sm:$0xff]  ;;  %vm15324_vm0 = vcmp.ge.s32.totalorder %v15323_v12, 0 }
 0x117   : > { %v15307_v13 = vsel %vm9451_vm3, 4294967295, %v15306_v13  ;;  %vm9463_vm10 = vmand %vm15309_vm8, %vm2784_vm15  ;;  %720 = vst.msk [vmem:[#allocation2 + $0x90] sm:$0xff] %vm15312_vm13, %v649_v45  ;;  %vm15318_vm15 = vcmp.ge.s32.totalorder %v15317_v49, 0  ;;  %v6719_v45 = vld [vmem:[%s14278_s6 + $0x20] sm:$0xff]  ;;  %vm15348_vm12 = vcmp.ge.s32.totalorder %v7055_v55, 0  ;;  %v2910_v1 = vsel %vm9445_vm2, 1, %v14972_v36 }
 0x118   : > { %v15311_v57 = vsel %vm9463_vm10, 4294967295, %v15310_v57  ;;  %vm9475_vm14 = vmand %vm15314_vm11, %vm15313_vm7  ;;  %6999 = vmatpush.msra.mxu3 %v6719_v45  ;;  %2403 = vperm.xlu1 %7011, %v2310_v10   ;;  %vm15334_vm11 = vcmp.eq.s32.totalorder %v8641_v52, 1 }
 0x119   : > { %v15316_v53 = vsel %vm9475_vm14, 4294967295, %v15315_v53  ;;  %vm9486_vm8 = vmand %vm9451_vm3, %vm15318_vm15  ;;  %2406 = vperm.xlu2 %7012, %v2311_v40   ;;  %vm15331_vm15 = vcmp.lt.s32.totalorder %v15317_v49, 16  ;;  %v1635_v15 = vsel %vm15334_vm11, %v1315_v44, 0.0  ;;  %vm15343_vm11 = vcmp.lt.s32.totalorder %v15327_v27, 16  ;;  %v15395_v44 = vld [vmem:[#allocation24_spill] sm:$0xff] }
 0x11a   : > { %vm15321_vm5 = vmmov %vm15312_vm13  ;;  %vm15322_vm13 = vcmp.eq.s32.totalorder %v9258_v33, 1  ;;  %v2309_v33 = vsel %vm9413_vm4, 1, %v14972_v36  ;;  %v9537_v40 = vpop.permute.xlu1 %1568  ;;  %v9539_v49 = vpop.permute.xlu2 %1598 }
 0x11b   : > { %6703 = vmatmul.msk.f32.gmra.mxu2 %vm15321_vm5, %v1297_v31  ;;  %v1645_v22 = vsel %vm15322_vm13, %v1325_v0, 0.0  ;;  %vm9501_vm7 = vmand %vm9463_vm10, %vm15324_vm0  ;;  %v7054_v31 = vld [vmem:[%s14274_s2 + $0x18] sm:$0xff]  ;;  %v586_v0 = vpop.f32.mrf.mxu0  ;;  %vm15328_vm13 = vcmp.ge.s32.totalorder %v15327_v27, 0  ;;  %15335 = vst [vmem:[#allocation106_spill] sm:$0xff] %v9539_v49  ;;  %2400 = vperm.xlu0 %7010, %v2309_v33   ;;  %v15380_v27 = vld [vmem:[#allocation21_spill] sm:$0xff] }
 0x11c   : > { %6665 = vmatmul.msk.f32.gmra.mxu1 %vm15321_vm5, %v1645_v22  ;;  %vm9516_vm0 = vmand %vm9475_vm14, %vm15328_vm13  ;;  %v587_v10 = vadd.f32 %v9420_v6, %v586_v0  ;;  %v7056_v22 = vld [vmem:[%s14274_s2 + $0x40] sm:$0xff]  ;;  %vm15339_vm5 = vcmp.lt.s32.totalorder %v7054_v31, 16  ;;  %vm15340_vm10 = vcmp.ge.s32.totalorder %v7054_v31, 0  ;;  %v15341_v0 = vmov 0 }
 0x11d   : > { %vm9527_vm4 = vmand %vm9486_vm8, %vm15331_vm15  ;;  %vm15336_vm8 = vcmp.lt.s32.totalorder %v15323_v12, 16  ;;  %v1326_v31 = vld [vmem:[#allocation2 + $0x60] sm:$0xff]  ;;  %vm15351_vm6 = vcmp.lt.s32.totalorder %v7056_v22, 16  ;;  %vm15352_vm3 = vcmp.ge.s32.totalorder %v7056_v22, 0  ;;  %v15365_v12 = vld [vmem:[#allocation16_spill] sm:$0xff] }
 0x11e   : > { %vm9545_vm15 = vmand %vm9501_vm7, %vm15336_vm8  ;;  %v650_v52 = vmax.f32 %v587_v10, 0.0  ;;  %vm15346_vm7 = vcmask 130048   ;;  %vm15347_vm8 = vcmp.lt.s32.totalorder %v7055_v55, 16  ;;  %v818_v33 = vld [vmem:[#allocation2 + $0x8f] sm:$0xff]  ;;  %v2909_v55 = vsel %vm9434_vm9, 1, %v14972_v36  ;;  %v1318_v10 = vld [vmem:[#allocation2 + $0x20] sm:$0xff] }
 0x11f   : > { %vm9551_vm14 = vmand %vm15340_vm10, %vm15339_vm5  ;;  %6655 = vmatmul.msk.f32.vlgmr.msrb.gmra.mxu0 %vm15346_vm7, %v1635_v15  ;;  %vm1266_vm10 = vcmp.eq.s32.totalorder %v8341_v61, 1  ;;  %vm1614_vm5 = vcmp.eq.s32.totalorder %v9221_v51, 1  ;;  %v9578_v15 = vpop.permute.xlu0 %1565  ;;  %v15356_v61 = vld [vmem:[#allocation12_spill] sm:$0xff]  ;;  %v15448_v51 = vmov 0 }
 0x120   : > { %v15342_v0 = vsel %vm9551_vm14, 4294967295, %v15341_v0  ;;  %vm9559_vm13 = vmand %vm9516_vm0, %vm15343_vm11  ;;  %2585 = vmatpush.msrb.mxu0 %v6720_v7  ;;  %vm15357_vm11 = vcmp.ge.s32.totalorder %v15356_v61, 0  ;;  %v1298_v22 = vsel %vm1266_vm10, %v818_v33, 0.0  ;;  %v7057_v7 = vld [vmem:[%s14274_s2 + $0x30] sm:$0xff]  ;;  %vm1604_vm10 = vcmp.eq.s32.totalorder %v8970_v30, 1  ;;  %2944 = vperm.xlu1 %7011, %v2909_v55  }
 0x121   : > { %vm9566_vm1 = vmand %vm15348_vm12, %vm15347_vm8  ;;  %v1316_v33 = vld [vmem:[#allocation2 + $0x10] sm:$0xff]  ;;  %v15369_v30 = vmov 0  ;;  %2947 = vperm.xlu2 %7012, %v2910_v1  }
 0x122   : > { %v15350_v23 = vsel %vm9566_vm1, 4294967295, %v15349_v23  ;;  %vm9574_vm0 = vmand %vm15352_vm3, %vm15351_vm6  ;;  %vm2754_vm6 = vcmp.ge.s32.totalorder %v7057_v7, 0  ;;  %vm2786_vm3 = vcmp.lt.s32.totalorder %v7057_v7, 16  ;;  %2586 = vmatpush.msrb.mxu0 %v6719_v45  ;;  %v1646_v7 = vsel %vm1614_vm5, %v1326_v31, 0.0  ;;  %v9640_v1 = vpop.permute.xlu2 %2316 }
 0x123   : > { %v15354_v35 = vsel %vm9574_vm0, 4294967295, %v15353_v35  ;;  %vm15355_vm12 = vmmov %vm15346_vm7  ;;  %v2908_v45 = vsel %vm9527_vm4, 1, %v14972_v36  ;;  %vm15371_vm5 = vcmp.lt.s32.totalorder %v15356_v61, 16  ;;  %v1636_v55 = vsel %vm1604_vm10, %v1316_v33, 0.0  ;;  %v1327_v61 = vld [vmem:[#allocation2 + $0x68] sm:$0xff] }
 0x124   : > { %721 = vst.msk [vmem:[#allocation2 + $0x98] sm:$0xff] %vm15355_vm12, %v650_v52  ;;  %vm9588_vm7 = vmand %vm9551_vm14, %vm15357_vm11  ;;  %v15361_v52 = vld [vmem:[#allocation18_spill] sm:$0xff]  ;;  %vm15366_vm11 = vcmp.ge.s32.totalorder %v15365_v12, 0  ;;  %2941 = vperm.xlu0 %7010, %v2908_v45   ;;  %vm15377_vm10 = vcmp.lt.s32.totalorder %v15365_v12, 16  ;;  %v2912_v12 = vsel %vm9545_vm15, 1, %v14972_v36 }
 0x125   : > { %vm15360_vm9 = vmmov %vm15355_vm12  ;;  %vm15362_vm8 = vcmp.ge.s32.totalorder %v15361_v52, 0 }
 0x126   : > { %6704 = vmatmul.msk.f32.gmra.mxu2 %vm15360_vm9, %v1298_v22  ;;  %vm9603_vm12 = vmand %vm9566_vm1, %vm15362_vm8  ;;  %6666 = vmatmul.msk.f32.gmra.mxu1 %vm15360_vm9, %v1646_v7  ;;  %v589_v22 = vpop.f32.mrf.mxu0  ;;  %v9638_v7 = vpop.permute.xlu1 %1577  ;;  %vm15383_vm1 = vcmp.lt.s32.totalorder %v7058_v47, 16 }
 0x127   : > { %vm9614_vm2 = vmand %vm9574_vm0, %vm15366_vm11  ;;  %v590_v31 = vadd.f32 %v9420_v6, %v589_v22  ;;  %v7059_v22 = vld [vmem:[%s14274_s2 + $0x58] sm:$0xff]  ;;  %vm15384_vm0 = vcmp.ge.s32.totalorder %v7058_v47, 0  ;;  %v9673_v50 = vpop.permute.xlu0 %1574  ;;  %v2913_v47 = vsel %vm9559_vm13, 1, %v14972_v36  ;;  %vm15396_vm13 = vcmp.ge.s32.totalorder %v15395_v44, 0 }
 0x128   : > { %vm9622_vm8 = vmand %vm2754_vm6, %vm2786_vm3  ;;  %vm15374_vm3 = vcmp.lt.s32.totalorder %v15361_v52, 16  ;;  %2953 = vperm.xlu1 %7011, %v2912_v12   ;;  %v7063_v52 = vld [vmem:[%s14274_s2 + $0x60] sm:$0xff] }
 0x129   : > { %v15370_v30 = vsel %vm9622_vm8, 4294967295, %v15369_v30  ;;  %vm9630_vm11 = vmand %vm9588_vm7, %vm15371_vm5  ;;  %vm2791_vm5 = vcmp.lt.s32.totalorder %v7059_v22, 16  ;;  %v651_v33 = vmax.f32 %v590_v31, 0.0  ;;  %v15385_v31 = vmov 0  ;;  %2956 = vperm.xlu2 %7012, %v2913_v47   ;;  %v7061_v47 = vld [vmem:[%s14274_s2 + $0x68] sm:$0xff] }
 0x12a   : > { %vm9646_vm7 = vmand %vm9603_vm12, %vm15374_vm3  ;;  %vm15381_vm12 = vcmp.ge.s32.totalorder %v15380_v27, 0  ;;  %v9718_v12 = vpop.permute.xlu2 %2325 }
 0x12b   : > { %vm9657_vm4 = vmand %vm9614_vm2, %vm15377_vm10  ;;  %v819_v45 = vld [vmem:[#allocation2 + $0x97] sm:$0xff]  ;;  %15402 = vst [vmem:[#allocation107_spill] sm:$0xff] %v9718_v12  ;;  %v7068_v12 = vld [vmem:[%s14274_s2 + $0xa0] sm:$0xff] }
 0x12c   : > { %vm2850_vm3 = vmand %vm9622_vm8, %vm15381_vm12  ;;  %vm1615_vm12 = vcmp.eq.s32.totalorder %v8949_v32, 1 }
 0x12d   : > { %vm15382_vm6 = vmmov %vm15360_vm9  ;;  %vm1267_vm9 = vcmp.eq.s32.totalorder %v8579_v63, 1  ;;  %v15389_v63 = vmov 0  ;;  %v1647_v32 = vsel %vm1615_vm12, %v1327_v61, 0.0  ;;  %v15400_v61 = vmov 0 }
 0x12e   : > { %6656 = vmatmul.msk.f32.gmra.mxu0 %vm15382_vm6, %v1636_v55  ;;  %vm9669_vm14 = vmand %vm15384_vm0, %vm15383_vm1  ;;  %v1299_v19 = vsel %vm1267_vm9, %v819_v45, 0.0  ;;  %vm15391_vm1 = vcmp.lt.s32.totalorder %v15380_v27, 16  ;;  %vm2757_vm9 = vcmp.ge.s32.totalorder %v7060_v21, 0  ;;  %v15398_v45 = vld [vmem:[#allocation22_spill] sm:$0xff] }
 0x12f   : > { %v15386_v31 = vsel %vm9669_vm14, 4294967295, %v15385_v31  ;;  %vm15387_vm2 = vmmov %vm15382_vm6  ;;  %vm15388_vm6 = vcmp.ge.s32.totalorder %v7059_v22, 0  ;;  %v1317_v22 = vld [vmem:[#allocation2 + $0x18] sm:$0xff]  ;;  %v9745_v27 = vpop.permute.xlu0 %1583 }
 0x130   : > { %722 = vst.msk [vmem:[#allocation2 + $0xa0] sm:$0xff] %vm15387_vm2, %v651_v33  ;;  %vm9680_vm10 = vmand %vm15388_vm6, %vm2791_vm5  ;;  %vm2789_vm5 = vcmp.lt.s32.totalorder %v7060_v21, 16  ;;  %v592_v33 = vpop.f32.mrf.mxu0 }
 0x131   : > { %v15390_v63 = vsel %vm9680_vm10, 4294967295, %v15389_v63  ;;  %vm9690_vm0 = vmand %vm2850_vm3, %vm15391_vm1  ;;  %vm15399_vm1 = vcmp.ge.s32.totalorder %v15398_v45, 0 }
 0x132   : > { %vm15394_vm15 = vmmov %vm15387_vm2  ;;  %vm1605_vm2 = vcmp.eq.s32.totalorder %v8947_v60, 1  ;;  %v593_v60 = vadd.f32 %v9420_v6, %v592_v33 }
 0x133   : > { %6705 = vmatmul.msk.f32.gmra.mxu2 %vm15394_vm15, %v1299_v19  ;;  %vm2854_vm3 = vmand %vm9669_vm14, %vm15396_vm13  ;;  %v2911_v19 = vsel %vm9630_vm11, 1, %v14972_v36  ;;  %v1637_v21 = vsel %vm1605_vm2, %v1317_v22, 0.0  ;;  %vm15403_vm11 = vcmp.lt.s32.totalorder %v15395_v44, 16  ;;  %v7062_v44 = vld [vmem:[%s14274_s2 + $0x70] sm:$0xff]  ;;  %vm1268_vm14 = vcmp.eq.s32.totalorder %v8545_v37, 1 }
 0x134   : > { %vm15397_vm6 = vmmov %vm15394_vm15  ;;  %2950 = vperm.xlu0 %7010, %v2911_v19   ;;  %v652_v33 = vmax.f32 %v593_v60, 0.0  ;;  %v1328_v19 = vld [vmem:[#allocation2 + $0x70] sm:$0xff]  ;;  %v15410_v60 = vld [vmem:[#allocation26_spill] sm:$0xff]  ;;  %v15415_v37 = vmov 0 }
 0x135   : > { %6667 = vmatmul.msk.f32.gmra.mxu1 %vm15397_vm6, %v1647_v32  ;;  %vm2855_vm15 = vmand %vm9680_vm10, %vm15399_vm1  ;;  %v9716_v32 = vpop.permute.xlu1 %1586  ;;  %vm15414_vm10 = vcmp.ge.s32.totalorder %v7061_v47, 0 }
 0x136   : > { %vm9712_vm12 = vmand %vm2757_vm9, %vm2789_vm5  ;;  %vm15406_vm5 = vcmp.lt.s32.totalorder %v15398_v45, 16  ;;  %vm15411_vm9 = vcmp.ge.s32.totalorder %v15410_v60, 0 }
 0x137   : > { %v15401_v61 = vsel %vm9712_vm12, 4294967295, %v15400_v61  ;;  %vm9722_vm13 = vmand %vm2854_vm3, %vm15403_vm11  ;;  %vm2762_vm3 = vcmp.ge.s32.totalorder %v7062_v44, 0  ;;  %vm2794_vm11 = vcmp.lt.s32.totalorder %v7062_v44, 16  ;;  %v820_v45 = vld [vmem:[#allocation2 + $0x9f] sm:$0xff]  ;;  %v9820_v49 = vpop.permute.xlu0 %1592 }
 0x138   : > { %vm9731_vm2 = vmand %vm2855_vm15, %vm15406_vm5  ;;  %v1300_v44 = vsel %vm1268_vm14, %v820_v45, 0.0  ;;  %vm15420_vm14 = vcmp.lt.s32.totalorder %v15410_v60, 16  ;;  %v15426_v60 = vld [vmem:[#allocation28_spill] sm:$0xff]  ;;  %15440 = vst [vmem:[#allocation109_spill] sm:$0xff] %v9820_v49  ;;  %v7070_v49 = vld [vmem:[%s14274_s2 + $0xb0] sm:$0xff] }
 0x139   : > { %vm15409_vm1 = vmmov %vm15397_vm6  ;;  %vm1616_vm6 = vcmp.eq.s32.totalorder %v9360_v14, 1  ;;  %v2916_v14 = vsel %vm9657_vm4, 1, %v14972_v36  ;;  %vm2760_vm4 = vcmp.ge.s32.totalorder %v7063_v52, 0 }
 0x13a   : > { %6657 = vmatmul.msk.f32.gmra.mxu0 %vm15409_vm1, %v1637_v21  ;;  %vm2853_vm15 = vmand %vm9712_vm12, %vm15411_vm9  ;;  %v2915_v21 = vsel %vm9646_vm7, 1, %v14972_v36  ;;  %vm1606_vm7 = vcmp.eq.s32.totalorder %v8713_v16, 1  ;;  %v1648_v45 = vsel %vm1616_vm6, %v1328_v19, 0.0  ;;  %v2914_v16 = vsel %vm9690_vm0, 1, %v14972_v36  ;;  %v15424_v19 = vld [vmem:[#allocation30_spill] sm:$0xff]  ;;  %2965 = vperm.xlu2 %7012, %v2916_v14  }
 0x13b   : > { %vm15412_vm5 = vmmov %vm15409_vm1  ;;  %vm15413_vm1 = vcmp.lt.s32.totalorder %v7061_v47, 16  ;;  %2962 = vperm.xlu1 %7011, %v2915_v21   ;;  %vm15425_vm6 = vcmp.ge.s32.totalorder %v15424_v19, 0  ;;  %v1638_v21 = vsel %vm1606_vm7, %v1318_v10, 0.0  ;;  %v2095_v14 = vld [vmem:[#allocation2 + $0x41] sm:$0xff]  ;;  %vm15441_vm7 = vcmask 130048  }
 0x13c   : > { %723 = vst.msk [vmem:[#allocation2 + $0xa8] sm:$0xff] %vm15412_vm5, %v652_v33  ;;  %vm9753_vm8 = vmand %vm15414_vm10, %vm15413_vm1  ;;  %v595_v33 = vpop.f32.mrf.mxu0  ;;  %2959 = vperm.xlu0 %7010, %v2914_v16   ;;  %v7064_v10 = vld [vmem:[%s14274_s2 + $0x80] sm:$0xff]  ;;  %v1329_v16 = vld [vmem:[#allocation2 + $0x78] sm:$0xff] }
 0x13d   : > { %v15416_v37 = vsel %vm9753_vm8, 4294967295, %v15415_v37  ;;  %vm15417_vm9 = vmmov %vm15412_vm5  ;;  %vm2792_vm5 = vcmp.lt.s32.totalorder %v7063_v52, 16  ;;  %v9792_v55 = vpop.permute.xlu1 %1595  ;;  %v2335_v52 = vpop.permute.xlu2 %2334 }
 0x13e   : > { %6706 = vmatmul.msk.f32.gmra.mxu2 %vm15417_vm9, %v1300_v44  ;;  %vm9761_vm12 = vmand %vm2762_vm3, %vm2794_vm11  ;;  %v596_v44 = vadd.f32 %v9420_v6, %v595_v33  ;;  %15430 = vst [vmem:[#allocation108_spill] sm:$0xff] %v9792_v55 }
 0x13f   : > { %v15419_v28 = vsel %vm9761_vm12, 4294967295, %v15418_v28  ;;  %vm9768_vm10 = vmand %vm2853_vm15, %vm15420_vm14  ;;  %vm15427_vm15 = vcmp.ge.s32.totalorder %v15426_v60, 0  ;;  %vm15433_vm14 = vcmp.lt.s32.totalorder %v15424_v19, 16 }
 0x140   : > { %vm15423_vm3 = vmmov %vm15417_vm9  ;;  %vm2415_vm9 = vcmp.eq.s32.totalorder %v2335_v52, 1  ;;  %v653_v33 = vmax.f32 %v596_v44, 0.0 }
 0x141   : > { %6668 = vmatmul.msk.f32.gmra.mxu1 %vm15423_vm3, %v1648_v45  ;;  %vm2857_vm11 = vmand %vm9753_vm8, %vm15425_vm6  ;;  %vm15436_vm6 = vcmask 130048   ;;  %v2447_v52 = vsel %vm2415_vm9, %v2095_v14, 0.0  ;;  %v15443_v45 = vld [vmem:[#allocation32_spill] sm:$0xff]  ;;  %vm15447_vm8 = vcmp.ge.s32.totalorder %v7064_v10, 0 }
 0x142   : > { %vm9788_vm1 = vmand %vm9761_vm12, %vm15427_vm15  ;;  %6658 = vmatmul.msk.f32.gmra.mxu0 %vm15436_vm6, %v1638_v21  ;;  %vm15437_vm15 = vcmp.lt.s32.totalorder %v15426_v60, 16  ;;  %v7065_v21 = vld [vmem:[%s14274_s2 + $0x88] sm:$0xff]  ;;  %6728 = vmatmul.msk.f32.vlgmr.msra.gmra.mxu3 %vm15441_vm7, %v2447_v52  ;;  %v2919_v60 = vsel %vm9731_vm2, 1, %v14972_v36 }
 0x143   : > { %vm9794_vm0 = vmand %vm2760_vm4, %vm2792_vm5  ;;  %vm1269_vm5 = vcmp.eq.s32.totalorder %v8381_v41, 1  ;;  %v821_v19 = vld [vmem:[#allocation2 + $0xa7] sm:$0xff]  ;;  %vm2797_vm6 = vcmp.lt.s32.totalorder %v7065_v21, 16  ;;  %v2918_v41 = vsel %vm9722_vm13, 1, %v14972_v36  ;;  %vm1617_vm4 = vcmp.eq.s32.totalorder %v9328_v58, 1  ;;  %2974 = vperm.xlu2 %7012, %v2919_v60  }
 0x144   : > { %v15432_v62 = vsel %vm9794_vm0, 4294967295, %v15431_v62  ;;  %vm9800_vm3 = vmand %vm2857_vm11, %vm15433_vm14  ;;  %v1301_v14 = vsel %vm1269_vm5, %v821_v19, 0.0  ;;  %vm1607_vm13 = vcmp.eq.s32.totalorder %v9056_v43, 1  ;;  %v1649_v52 = vsel %vm1617_vm4, %v1329_v16, 0.0  ;;  %2971 = vperm.xlu1 %7011, %v2918_v41   ;;  %v598_v43 = vpop.f32.mrf.mxu0 }
 0x145   : > { %vm9813_vm11 = vmand %vm9788_vm1, %vm15437_vm15  ;;  %vm15444_vm1 = vcmp.ge.s32.totalorder %v15443_v45, 0  ;;  %v15451_v19 = vmov 0  ;;  %v2917_v58 = vsel %vm9768_vm10, 1, %v14972_v36  ;;  %v599_v16 = vadd.f32 %v9420_v6, %v598_v43  ;;  %v9866_v41 = vpop.permute.xlu1 %2313 }
 0x146   : > { %vm15442_vm9 = vmmov %vm15441_vm7  ;;  %2968 = vperm.xlu0 %7010, %v2917_v58   ;;  %v15463_v43 = vmov 0  ;;  %v7067_v58 = vld [vmem:[%s14274_s2 + $0x98] sm:$0xff]  ;;  %v2922_v25 = vsel %vm9813_vm11, 1, %v14972_v36 }
 0x147   : > { %724 = vst.msk [vmem:[#allocation2 + $0xb0] sm:$0xff] %vm15442_vm9, %v653_v33  ;;  %vm2856_vm15 = vmand %vm9794_vm0, %vm15444_vm1  ;;  %v1319_v33 = vld [vmem:[#allocation2 + $0x28] sm:$0xff]  ;;  %vm15450_vm9 = vcmp.ge.s32.totalorder %v7065_v21, 0  ;;  %v15457_v21 = vld [vmem:[#allocation36_spill] sm:$0xff]  ;;  %v654_v60 = vmax.f32 %v599_v16, 0.0  ;;  %v9893_v16 = vpop.permute.xlu0 %1601 }
 0x148   : > { %vm15445_vm14 = vmmov %vm15441_vm7  ;;  %vm15446_vm7 = vcmp.lt.s32.totalorder %v7064_v10, 16  ;;  %v7066_v10 = vld [vmem:[%s14274_s2 + $0x78] sm:$0xff]  ;;  %v1639_v47 = vsel %vm1607_vm13, %v1319_v33, 0.0  ;;  %vm1270_vm13 = vcmp.eq.s32.totalorder %v8653_v24, 1  ;;  %v1330_v33 = vld [vmem:[#allocation2 + $0x80] sm:$0xff]  ;;  %15468 = vst [vmem:[#allocation110_spill] sm:$0xff] %v9893_v16 }
 0x149   : > { %6707 = vmatmul.msk.f32.gmra.mxu2 %vm15445_vm14, %v1301_v14  ;;  %vm9838_vm12 = vmand %vm15447_vm8, %vm15446_vm7  ;;  %vm15454_vm8 = vcmp.lt.s32.totalorder %v15443_v45, 16  ;;  %vm2763_vm4 = vcmp.ge.s32.totalorder %v7066_v10, 0  ;;  %v9868_v14 = vpop.permute.xlu2 %2343  ;;  %v2921_v24 = vsel %vm9800_vm3, 1, %v14972_v36 }
 0x14a   : > { %v15449_v51 = vsel %vm9838_vm12, 4294967295, %v15448_v51  ;;  %vm9844_vm5 = vmand %vm15450_vm9, %vm2797_vm6  ;;  %vm15458_vm6 = vcmp.ge.s32.totalorder %v15457_v21, 0 }
 0x14b   : > { %v15452_v19 = vsel %vm9844_vm5, 4294967295, %v15451_v19  ;;  %vm15453_vm1 = vmmov %vm15445_vm14  ;;  %vm2795_vm14 = vcmp.lt.s32.totalorder %v7066_v10, 16  ;;  %2983 = vperm.xlu2 %7012, %v2922_v25   ;;  %v15485_v25 = vld [vmem:[#allocation42_spill] sm:$0xff] }
 0x14c   : > { %6669 = vmatmul.msk.f32.gmra.mxu1 %vm15453_vm1, %v1649_v52  ;;  %vm9854_vm2 = vmand %vm2856_vm15, %vm15454_vm8  ;;  %v15459_v52 = vld [vmem:[#allocation34_spill] sm:$0xff]  ;;  %6659 = vmatmul.msk.f32.gmra.mxu0 %vm15453_vm1, %v1639_v47  ;;  %vm15465_vm8 = vcmp.lt.s32.totalorder %v15457_v21, 16  ;;  %v601_v44 = vpop.f32.mrf.mxu0 }
 0x14d   : > { %vm2860_vm10 = vmand %vm9838_vm12, %vm15458_vm6  ;;  %vm15460_vm15 = vcmp.ge.s32.totalorder %v15459_v52, 0  ;;  %vm15476_vm12 = vcmp.ge.s32.totalorder %v7067_v58, 0  ;;  %2980 = vperm.xlu1 %7011, %v2921_v24   ;;  %v9944_v24 = vpop.permute.xlu1 %2322 }
 0x14e   : > { %vm9874_vm7 = vmand %vm9844_vm5, %vm15460_vm15  ;;  %v822_v55 = vld [vmem:[#allocation2 + $0xaf] sm:$0xff] }
 0x14f   : > { %vm9878_vm9 = vmand %vm2763_vm4, %vm2795_vm14  ;;  %v1302_v21 = vsel %vm1270_vm13, %v822_v55, 0.0  ;;  %vm2800_vm4 = vcmp.lt.s32.totalorder %v7068_v12, 16  ;;  %vm1618_vm14 = vcmp.eq.s32.totalorder %v9025_v54, 1  ;;  %v1320_v55 = vld [vmem:[#allocation2 + $0x30] sm:$0xff]  ;;  %vm1608_vm13 = vcmp.eq.s32.totalorder %v9023_v34, 1  ;;  %v7072_v34 = vld [vmem:[%s14274_s2 + $0xa8] sm:$0xff] }
 0x150   : > { %v15464_v43 = vsel %vm9878_vm9, 4294967295, %v15463_v43  ;;  %vm9886_vm6 = vmand %vm2860_vm10, %vm15465_vm8  ;;  %vm15470_vm10 = vcmp.lt.s32.totalorder %v15459_v52, 16  ;;  %vm2768_vm8 = vcmp.ge.s32.totalorder %v7068_v12, 0  ;;  %v1650_v45 = vsel %vm1618_vm14, %v1330_v33, 0.0 }
 0x151   : > { %vm15469_vm15 = vmmov %vm15453_vm1  ;;  %v15477_v12 = vmov 0  ;;  %v2920_v54 = vsel %vm9854_vm2, 1, %v14972_v36  ;;  %v602_v33 = vadd.f32 %v9420_v6, %v601_v44  ;;  %v1640_v22 = vsel %vm1608_vm13, %v1320_v55, 0.0  ;;  %v1331_v55 = vld [vmem:[#allocation2 + $0x88] sm:$0xff] }
 0x152   : > { %725 = vst.msk [vmem:[#allocation2 + $0xb8] sm:$0xff] %vm15469_vm15, %v654_v60  ;;  %vm9903_vm1 = vmand %vm9874_vm7, %vm15470_vm10  ;;  %v15473_v60 = vld [vmem:[#allocation38_spill] sm:$0xff]  ;;  %6708 = vmatmul.msk.f32.gmra.mxu2 %vm15469_vm15, %v1302_v21  ;;  %vm15475_vm10 = vcmp.lt.s32.totalorder %v7067_v58, 16  ;;  %v15480_v21 = vmov 0  ;;  %v7069_v58 = vld [vmem:[%s14274_s2 + $0x90] sm:$0xff]  ;;  %vm15486_vm2 = vcmp.ge.s32.totalorder %v15485_v25, 0  ;;  %2977 = vperm.xlu0 %7010, %v2920_v54   ;;  %v9966_v54 = vpop.permute.xlu0 %2319 }
 0x153   : > { %vm15474_vm3 = vcmp.ge.s32.totalorder %v15473_v60, 0  ;;  %vm9922_vm5 = vmand %vm15476_vm12, %vm15475_vm10  ;;  %vm15482_vm14 = vcmp.lt.s32.totalorder %v15473_v60, 16  ;;  %vm2766_vm12 = vcmp.ge.s32.totalorder %v7069_v58, 0  ;;  %v655_v52 = vmax.f32 %v602_v33, 0.0  ;;  %v15487_v60 = vld [vmem:[#allocation40_spill] sm:$0xff] }
 0x154   : > { %vm2859_vm7 = vmand %vm9878_vm9, %vm15474_vm3  ;;  %v15478_v12 = vsel %vm9922_vm5, 4294967295, %v15477_v12  ;;  %6660 = vmatmul.msk.f32.gmra.mxu0 %vm15469_vm15, %v1640_v22  ;;  %vm1271_vm13 = vcmp.eq.s32.totalorder %v8621_v9, 1  ;;  %v2924_v33 = vsel %vm9886_vm6, 1, %v14972_v36  ;;  %v2925_v10 = vsel %vm9903_vm1, 1, %v14972_v36  ;;  %v7073_v22 = vld [vmem:[%s14274_s2 + $0xc8] sm:$0xff] }
 0x155   : > { %vm15479_vm0 = vmmov %vm15469_vm15  ;;  %vm15497_vm6 = vcmp.lt.s32.totalorder %v15487_v60, 16  ;;  %2989 = vperm.xlu1 %7011, %v2924_v33   ;;  %2992 = vperm.xlu2 %7012, %v2925_v10   ;;  %v10017_v33 = vpop.permute.xlu1 %2331 }
 0x156   : > { %6670 = vmatmul.msk.f32.gmra.mxu1 %vm15479_vm0, %v1650_v45  ;;  %vm9930_vm11 = vmand %vm2768_vm8, %vm2800_vm4  ;;  %vm2798_vm0 = vcmp.lt.s32.totalorder %v7069_v58, 16  ;;  %v9946_v45 = vpop.permute.xlu2 %2352  ;;  %vm15488_vm8 = vcmp.ge.s32.totalorder %v15487_v60, 0  ;;  %v15491_v58 = vmov 0  ;;  %15511 = vst [vmem:[#allocation113_spill] sm:$0xff] %v10017_v33 }
 0x157   : > { %v15481_v21 = vsel %vm9930_vm11, 4294967295, %v15480_v21  ;;  %vm9936_vm3 = vmand %vm2859_vm7, %vm15482_vm14 }
 0x158   : > { %vm2863_vm4 = vmand %vm9922_vm5, %vm15486_vm2  ;;  %vm15494_vm2 = vcmp.lt.s32.totalorder %v15485_v25, 16  ;;  %v15501_v25 = vld [vmem:[#allocation44_spill] sm:$0xff]  ;;  %v2923_v44 = vsel %vm9936_vm3, 1, %v14972_v36 }
 0x159   : > { %vm9956_vm7 = vmand %vm9930_vm11, %vm15488_vm8  ;;  %v823_v16 = vld [vmem:[#allocation2 + $0xb7] sm:$0xff]  ;;  %vm15502_vm1 = vcmp.ge.s32.totalorder %v15501_v25, 0  ;;  %vm15512_vm3 = vcmp.lt.s32.totalorder %v15501_v25, 16  ;;  %v15517_v25 = vld [vmem:[#allocation46_spill] sm:$0xff] }
 0x15a   : > { %vm9962_vm10 = vmand %vm2766_vm12, %vm2798_vm0  ;;  %v1303_v9 = vsel %vm1271_vm13, %v823_v16, 0.0  ;;  %vm2802_vm0 = vcmp.lt.s32.totalorder %v7070_v49, 16  ;;  %v7071_v16 = vld [vmem:[%s14274_s2 + $0xb8] sm:$0xff]  ;;  %vm1609_vm12 = vcmp.eq.s32.totalorder %v8785_v59, 1  ;;  %2986 = vperm.xlu0 %7010, %v2923_v44  }
 0x15b   : > { %v15492_v58 = vsel %vm9962_vm10, 4294967295, %v15491_v58  ;;  %vm15493_vm14 = vmmov %vm15469_vm15  ;;  %vm1619_vm15 = vcmp.eq.s32.totalorder %v9467_v20, 1  ;;  %v1321_v20 = vld [vmem:[#allocation2 + $0x38] sm:$0xff] }
 0x15c   : > { %726 = vst.msk [vmem:[#allocation2 + $0xc0] sm:$0xff] %vm15493_vm14, %v655_v52  ;;  %vm9974_vm8 = vmand %vm2863_vm4, %vm15494_vm2  ;;  %vm2803_vm2 = vcmp.lt.s32.totalorder %v7071_v16, 16  ;;  %v1651_v47 = vsel %vm1619_vm15, %v1331_v55, 0.0  ;;  %v15508_v55 = vmov 0  ;;  %v7076_v52 = vld [vmem:[%s14274_s2 + $0xe0] sm:$0xff] }
 0x15d   : > { %vm9989_vm4 = vmand %vm9956_vm7, %vm15497_vm6 }
 0x15e   : > { %vm15500_vm13 = vmmov %vm15493_vm14  ;;  %vm2771_vm14 = vcmp.ge.s32.totalorder %v7071_v16, 0  ;;  %v15505_v16 = vmov 0  ;;  %v10019_v60 = vpop.permute.xlu2 %2361 }
 0x15f   : > { %6709 = vmatmul.msk.f32.gmra.mxu2 %vm15500_vm13, %v1303_v9  ;;  %vm2862_vm7 = vmand %vm9962_vm10, %vm15502_vm1  ;;  %v604_v9 = vpop.f32.mrf.mxu0 }
 0x160   : > { %vm15503_vm6 = vmmov %vm15500_vm13  ;;  %vm15504_vm13 = vcmp.ge.s32.totalorder %v7070_v49, 0  ;;  %v605_v59 = vadd.f32 %v9420_v6, %v604_v9  ;;  %v15515_v9 = vld [vmem:[#allocation48_spill] sm:$0xff] }
 0x161   : > { %6671 = vmatmul.msk.f32.gmra.mxu1 %vm15503_vm6, %v1651_v47  ;;  %vm10008_vm5 = vmand %vm15504_vm13, %vm2802_vm0  ;;  %v1641_v47 = vsel %vm1609_vm12, %v1321_v20, 0.0  ;;  %vm2769_vm0 = vcmp.ge.s32.totalorder %v7072_v34, 0  ;;  %vm15516_vm12 = vcmp.ge.s32.totalorder %v15515_v9, 0  ;;  %v1332_v20 = vld [vmem:[#allocation2 + $0x90] sm:$0xff]  ;;  %vm15518_vm13 = vcmp.ge.s32.totalorder %v15517_v25, 0 }
 0x162   : > { %v15506_v16 = vsel %vm10008_vm5, 4294967295, %v15505_v16  ;;  %vm10013_vm15 = vmand %vm2771_vm14, %vm2803_vm2  ;;  %vm2801_vm14 = vcmp.lt.s32.totalorder %v7072_v34, 16  ;;  %v656_v10 = vmax.f32 %v605_v59, 0.0  ;;  %6661 = vmatmul.msk.f32.gmra.mxu0 %vm15503_vm6, %v1641_v47  ;;  %v10044_v59 = vpop.permute.xlu0 %2328  ;;  %v2927_v34 = vsel %vm9974_vm8, 1, %v14972_v36 }
 0x163   : > { %15507 = vst [vmem:[#allocation111_spill] sm:$0xff] %v15506_v16  ;;  %v15509_v55 = vsel %vm10013_vm15, 4294967295, %v15508_v55  ;;  %vm10023_vm1 = vmand %vm2862_vm7, %vm15512_vm3  ;;  %vm1272_vm7 = vcmp.eq.s32.totalorder %v8421_v4, 1  ;;  %v824_v44 = vld [vmem:[#allocation2 + $0xbf] sm:$0xff]  ;;  %v15523_v4 = vmov 0  ;;  %v2928_v16 = vsel %vm9989_vm4, 1, %v14972_v36  ;;  %2998 = vperm.xlu1 %7011, %v2927_v34  }
 0x164   : > { %15510 = vst [vmem:[#allocation112_spill] sm:$0xff] %v15509_v55  ;;  %vm2866_vm2 = vmand %vm10008_vm5, %vm15516_vm12  ;;  %v1304_v47 = vsel %vm1272_vm7, %v824_v44, 0.0  ;;  %vm1620_vm5 = vcmp.eq.s32.totalorder %v9426_v26, 1  ;;  %vm1249_vm7 = vcmp.eq.s32.totalorder %v8244_v48, 1  ;;  %vm15529_vm4 = vcmp.lt.s32.totalorder %v15517_v25, 16  ;;  %v7074_v44 = vld [vmem:[%s14274_s2 + $0xd0] sm:$0xff]  ;;  %3001 = vperm.xlu2 %7012, %v2928_v16  }
 0x165   : > { %vm10040_vm3 = vmand %vm10013_vm15, %vm15518_vm13  ;;  %15521 = vst [vmem:[#allocation114_spill] sm:$0xff] %v10044_v59  ;;  %vm15525_vm13 = vcmp.lt.s32.totalorder %v15515_v9, 16  ;;  %v1652_v26 = vsel %vm1620_vm5, %v1332_v20, 0.0  ;;  %v2926_v48 = vsel %vm10023_vm1, 1, %v14972_v36  ;;  %v15532_v20 = vld [vmem:[#allocation50_spill] sm:$0xff]  ;;  %v15538_v25 = vmov 0 }
 0x166   : > { %vm15522_vm12 = vmmov %vm15503_vm6  ;;  %vm15533_vm5 = vcmp.ge.s32.totalorder %v15532_v20, 0  ;;  %v10097_v49 = vpop.permute.xlu2 %2370  ;;  %2995 = vperm.xlu0 %7010, %v2926_v48   ;;  %v15545_v9 = vld [vmem:[#allocation54_spill] sm:$0xff]  ;;  %v15589_v59 = vmov 0 }
 0x167   : > { %727 = vst.msk [vmem:[#allocation2 + $0xc8] sm:$0xff] %vm15522_vm12, %v656_v10  ;;  %vm10050_vm6 = vmand %vm2769_vm0, %vm2801_vm14  ;;  %vm2773_vm0 = vcmp.ge.s32.totalorder %v7073_v22, 0  ;;  %vm2805_vm14 = vcmp.lt.s32.totalorder %v7073_v22, 16  ;;  %v801_v10 = vld [vmem:[#allocation2 + $0x7] sm:$0xff]  ;;  %v607_v33 = vpop.f32.mrf.mxu0 }
 0x168   : > { %v15524_v4 = vsel %vm10050_vm6, 4294967295, %v15523_v4  ;;  %vm10060_vm15 = vmand %vm2866_vm2, %vm15525_vm13  ;;  %vm2806_vm13 = vcmp.lt.s32.totalorder %v7074_v44, 16  ;;  %v1281_v34 = vsel %vm1249_vm7, %v801_v10, 0.0  ;;  %15537 = vst [vmem:[#allocation116_spill] sm:$0xff] %v10097_v49  ;;  %v7075_v10 = vld [vmem:[%s14274_s2 + $0xc0] sm:$0xff]  ;;  %vm15544_vm7 = vcmask 130048  }
 0x169   : > { %vm15528_vm8 = vmmov %vm15522_vm12  ;;  %vm2774_vm12 = vcmp.ge.s32.totalorder %v7074_v44, 0  ;;  %v15534_v44 = vmov 0  ;;  %v15550_v49 = vld [vmem:[#allocation52_spill] sm:$0xff]  ;;  %v2930_v55 = vsel %vm10060_vm15, 1, %v14972_v36  ;;  %v7077_v48 = vld [vmem:[%s14274_s2 + $0xe8] sm:$0xff] }
 0x16a   : > { %6710 = vmatmul.msk.f32.gmra.mxu2 %vm15528_vm8, %v1304_v47  ;;  %vm10073_vm2 = vmand %vm10040_vm3, %vm15529_vm4  ;;  %6672 = vmatmul.msk.f32.gmra.mxu1 %vm15528_vm8, %v1652_v26  ;;  %v608_v47 = vadd.f32 %v9420_v6, %v607_v33  ;;  %v10095_v26 = vpop.permute.xlu1 %2340  ;;  %vm15541_vm8 = vcmp.lt.s32.totalorder %v15532_v20, 16  ;;  %v1333_v33 = vld [vmem:[#allocation2 + $0x98] sm:$0xff]  ;;  %v2338_v20 = vpop.permute.xlu0 %2337 }
 0x16b   : > { %vm2865_vm3 = vmand %vm10050_vm6, %vm15533_vm5  ;;  %6687 = vmatmul.msk.f32.vlgmr.msra.gmra.mxu0 %vm15544_vm7, %v1281_v34  ;;  %3007 = vperm.xlu1 %7011, %v2930_v55  }
 0x16c   : > { %vm10091_vm4 = vmand %vm2773_vm0, %vm2805_vm14  ;;  %v657_v22 = vmax.f32 %v608_v47, 0.0  ;;  %vm15551_vm0 = vcmp.ge.s32.totalorder %v15550_v49, 0  ;;  %vm2416_vm14 = vcmp.eq.s32.totalorder %v2338_v20, 1 }
 0x16d   : > { %v15535_v44 = vsel %vm10091_vm4, 4294967295, %v15534_v44  ;;  %vm10099_vm1 = vmand %vm2774_vm12, %vm2806_vm13  ;;  %vm1273_vm12 = vcmp.eq.s32.totalorder %v8727_v29, 1  ;;  %vm15546_vm13 = vcmp.ge.s32.totalorder %v15545_v9, 0 }
 0x16e   : > { %15536 = vst [vmem:[#allocation115_spill] sm:$0xff] %v15535_v44  ;;  %v15539_v25 = vsel %vm10099_vm1, 4294967295, %v15538_v25  ;;  %vm10105_vm5 = vmand %vm2865_vm3, %vm15541_vm8  ;;  %v825_v47 = vld [vmem:[#allocation2 + $0xc7] sm:$0xff]  ;;  %vm15555_vm8 = vcmp.ge.s32.totalorder %v7075_v10, 0  ;;  %v10188_v55 = vpop.permute.xlu2 %2379 }
 0x16f   : > { %15540 = vst [vmem:[#allocation117_spill] sm:$0xff] %v15539_v25  ;;  %vm10118_vm3 = vmand %vm10091_vm4, %vm15546_vm13  ;;  %v1305_v34 = vsel %vm1273_vm12, %v825_v47, 0.0  ;;  %vm1621_vm13 = vcmp.eq.s32.totalorder %v9103_v56, 1  ;;  %v2096_v44 = vld [vmem:[#allocation2 + $0x49] sm:$0xff]  ;;  %v15556_v25 = vmov 0  ;;  %vm15559_vm12 = vcmp.lt.s32.totalorder %v15545_v9, 16 }
 0x170   : > { %vm15549_vm6 = vmmov %vm15544_vm7  ;;  %v802_v47 = vld [vmem:[#allocation2 + $0xf] sm:$0xff]  ;;  %v1653_v56 = vsel %vm1621_vm13, %v1333_v33, 0.0  ;;  %v2448_v20 = vsel %vm2416_vm14, %v2096_v44, 0.0  ;;  %v2929_v44 = vsel %vm10105_vm5, 1, %v14972_v36  ;;  %vm15563_vm14 = vcmp.lt.s32.totalorder %v15550_v49, 16  ;;  %v610_v33 = vpop.f32.mrf.mxu0  ;;  %15572 = vst [vmem:[#allocation119_spill] sm:$0xff] %v10188_v55 }
 0x171   : > { %728 = vst.msk [vmem:[#allocation2 + $0xd0] sm:$0xff] %vm15549_vm6, %v657_v22  ;;  %vm10128_vm7 = vmand %vm10099_vm1, %vm15551_vm0  ;;  %v2931_v22 = vsel %vm10073_vm2, 1, %v14972_v36  ;;  %vm15554_vm6 = vcmp.lt.s32.totalorder %v7075_v10, 16  ;;  %vm15558_vm0 = vcmask 130048   ;;  %vm2776_vm2 = vcmp.ge.s32.totalorder %v7076_v52, 0  ;;  %3004 = vperm.xlu0 %7010, %v2929_v44   ;;  %v2097_v49 = vld [vmem:[#allocation2 + $0x51] sm:$0xff] }
 0x172   : > { %vm10141_vm4 = vmand %vm15555_vm8, %vm15554_vm6  ;;  %6711 = vmatmul.msk.f32.gmra.mxu2 %vm15558_vm0, %v1305_v34  ;;  %vm2808_vm8 = vcmp.lt.s32.totalorder %v7076_v52, 16  ;;  %6729 = vmatmul.msk.f32.gmra.mxu3 %vm15558_vm0, %v2448_v20  ;;  %vm2777_vm13 = vcmp.ge.s32.totalorder %v7077_v48, 0  ;;  %v15566_v34 = vld [vmem:[#allocation57_spill] sm:$0xff]  ;;  %v611_v16 = vadd.f32 %v9420_v6, %v610_v33  ;;  %v15569_v20 = vmov 0  ;;  %v7078_v52 = vld [vmem:[%s14274_s2 + $0xd8] sm:$0xff]  ;;  %v10206_v33 = vpop.permute.xlu0 %2346 }
 0x173   : > { %v15557_v25 = vsel %vm10141_vm4, 4294967295, %v15556_v25  ;;  %vm10150_vm15 = vmand %vm10118_vm3, %vm15559_vm12  ;;  %vm2809_vm12 = vcmp.lt.s32.totalorder %v7077_v48, 16  ;;  %3010 = vperm.xlu2 %7012, %v2931_v22   ;;  %v15573_v48 = vmov 0  ;;  %v10240_v10 = vld [vmem:[#allocation2 + $0x17] sm:$0xff] }
 0x174   : > { %vm15562_vm6 = vmmov %vm15558_vm0  ;;  %v658_v22 = vmax.f32 %v611_v16, 0.0  ;;  %v2933_v9 = vsel %vm10150_vm15, 1, %v14972_v36  ;;  %15591 = vst [vmem:[#allocation120_spill] sm:$0xff] %v10240_v10 }
 0x175   : > { %6673 = vmatmul.msk.f32.gmra.mxu1 %vm15562_vm6, %v1653_v56  ;;  %vm10166_vm3 = vmand %vm10128_vm7, %vm15563_vm14  ;;  %vm15567_vm6 = vcmp.ge.s32.totalorder %v15566_v34, 0  ;;  %vm15568_vm7 = vcmp.eq.s32.totalorder %v8310_v38, 1  ;;  %v10180_v56 = vpop.permute.xlu1 %2349  ;;  %v1334_v38 = vld [vmem:[#allocation2 + $0xa0] sm:$0xff]  ;;  %3016 = vperm.xlu1 %7011, %v2933_v9  }
 0x176   : > { %vm2868_vm5 = vmand %vm10141_vm4, %vm15567_vm6  ;;  %v1282_v29 = vsel %vm15568_vm7, %v802_v47, 0.0  ;;  %vm15575_vm6 = vcmask 130048   ;;  %vm1274_vm7 = vcmp.eq.s32.totalorder %v8705_v46, 1  ;;  %v15579_v46 = vld [vmem:[#allocation62_spill] sm:$0xff]  ;;  %v10279_v55 = vpop.permute.xlu2 %2388  ;;  %v10325_v47 = vld [vmem:[#allocation2 + $0x1f] sm:$0xff] }
 0x177   : > { %vm10184_vm0 = vmand %vm2776_vm2, %vm2808_vm8  ;;  %6688 = vmatmul.msk.f32.gmra.mxu0 %vm15575_vm6, %v1282_v29  ;;  %vm15576_vm2 = vcmp.lt.s32.totalorder %v15566_v34, 16  ;;  %729 = vst.msk [vmem:[#allocation2 + $0xd8] sm:$0xff] %vm15575_vm6, %v658_v22  ;;  %vm15580_vm1 = vcmp.ge.s32.totalorder %v15579_v46, 0  ;;  %v2934_v22 = vsel %vm10166_vm3, 1, %v14972_v36  ;;  %v15583_v34 = vld [vmem:[#allocation60_spill] sm:$0xff] }
 0x178   : > { %v15570_v20 = vsel %vm10184_vm0, 4294967295, %v15569_v20  ;;  %vm10190_vm14 = vmand %vm2777_vm13, %vm2809_vm12  ;;  %vm2775_vm13 = vcmp.ge.s32.totalorder %v7078_v52, 0  ;;  %vm2807_vm12 = vcmp.lt.s32.totalorder %v7078_v52, 16  ;;  %v826_v44 = vld [vmem:[#allocation2 + $0xcf] sm:$0xff] }
 0x179   : > { %15571 = vst [vmem:[#allocation118_spill] sm:$0xff] %v15570_v20  ;;  %v15574_v48 = vsel %vm10190_vm14, 4294967295, %v15573_v48  ;;  %vm10199_vm8 = vmand %vm2868_vm5, %vm15576_vm2  ;;  %v1306_v29 = vsel %vm1274_vm7, %v826_v44, 0.0  ;;  %vm1622_vm5 = vcmp.eq.s32.totalorder %v9578_v15, 1  ;;  %vm15584_vm2 = vcmp.ge.s32.totalorder %v15583_v34, 0  ;;  %v15597_v52 = vld [vmem:[#allocation71_spill] sm:$0xff] }
 0x17a   : > { %vm10213_vm4 = vmand %vm10184_vm0, %vm15580_vm1  ;;  %v1654_v15 = vsel %vm1622_vm5, %v1334_v38, 0.0  ;;  %v2932_v20 = vsel %vm10199_vm8, 1, %v14972_v36  ;;  %vm15594_vm5 = vcmp.lt.s32.totalorder %v15579_v46, 16  ;;  %v7079_v38 = vld [vmem:[%s14274_s2 + $0xf8] sm:$0xff]  ;;  %vm15598_vm8 = vcmp.lt.s32.totalorder %v15583_v34, 16  ;;  %15605 = vst [vmem:[#allocation71_spill] sm:$0xff] %v10279_v55  ;;  %v10294_v46 = vpop.permute.xlu0 %2355 }
 0x17b   : > { %vm10228_vm1 = vmand %vm10190_vm14, %vm15584_vm2  ;;  %3019 = vperm.xlu2 %7012, %v2934_v22   ;;  %3013 = vperm.xlu0 %7010, %v2932_v20   ;;  %v1335_v34 = vld [vmem:[#allocation2 + $0xa8] sm:$0xff]  ;;  %v7080_v20 = vld [vmem:[%s14274_s2 + $0xf0] sm:$0xff]  ;;  %vm1624_vm14 = vcmp.eq.s32.totalorder %v9223_v2, 1 }
 0x17c   : > { %vm15587_vm7 = vmmov %vm15575_vm6  ;;  %vm15588_vm6 = vcmp.eq.s32.totalorder %v10095_v26, 1  ;;  %v15618_v26 = vmov 0 }
 0x17d   : > { %6712 = vmatmul.msk.f32.gmra.mxu2 %vm15587_vm7, %v1306_v29  ;;  %v2449_v44 = vsel %vm15588_vm6, %v2097_v49, 0.0  ;;  %vm10236_vm15 = vmand %vm2775_vm13, %vm2807_vm12  ;;  %v613_v49 = vpop.f32.mrf.mxu0  ;;  %vm2779_vm13 = vcmp.ge.s32.totalorder %v7079_v38, 0  ;;  %vm2811_vm12 = vcmp.lt.s32.totalorder %v7079_v38, 16  ;;  %v10268_v29 = vpop.permute.xlu1 %2358  ;;  %v15606_v38 = vmov 0 }
 0x17e   : > { %v15590_v59 = vsel %vm10236_vm15, 4294967295, %v15589_v59  ;;  %vm15592_vm3 = vmmov %vm15587_vm7  ;;  %v614_v16 = vadd.f32 %v9420_v6, %v613_v49  ;;  %v6787_v49 = vld [vmem:[%s14278_s6 + $0x40] sm:$0xff] }
 0x17f   : > { %6674 = vmatmul.msk.f32.gmra.mxu1 %vm15592_vm3, %v1654_v15  ;;  %vm15593_vm0 = vmmov %vm15592_vm3  ;;  %v15601_v15 = vld [vmem:[#allocation64_spill] sm:$0xff]  ;;  %3746 = vmatpush.msrb.mxu2 %v6787_v49 }
 0x180   : > { %6730 = vmatmul.msk.f32.gmra.mxu3 %vm15593_vm0, %v2449_v44  ;;  %vm10251_vm2 = vmand %vm10213_vm4, %vm15594_vm5  ;;  %vm1251_vm0 = vcmp.eq.s32.totalorder %v15597_v52, 1  ;;  %vm15602_vm4 = vcmp.ge.s32.totalorder %v15601_v15, 0  ;;  %v659_v22 = vmax.f32 %v614_v16, 0.0  ;;  %v15608_v52 = vld [vmem:[#allocation56_spill] sm:$0xff] }
 0x181   : > { %vm10263_vm7 = vmand %vm10228_vm1, %vm15598_vm8  ;;  %v1283_v9 = vsel %vm1251_vm0, %v10240_v10, 0.0  ;;  %vm1275_vm5 = vcmp.eq.s32.totalorder %v15608_v52, 1  ;;  %v827_v16 = vld [vmem:[#allocation2 + $0xd7] sm:$0xff]  ;;  %vm1623_vm8 = vcmp.eq.s32.totalorder %v9537_v40, 1  ;;  %v2936_v55 = vsel %vm10251_vm2, 1, %v14972_v36  ;;  %v15610_v10 = vld [vmem:[#allocation66_spill] sm:$0xff] }
 0x182   : > { %vm10274_vm6 = vmand %vm10236_vm15, %vm15602_vm4  ;;  %6689 = vmatmul.msk.f32.gmra.mxu0 %vm15592_vm3, %v1283_v9  ;;  %730 = vst.msk [vmem:[#allocation2 + $0xe0] sm:$0xff] %vm15592_vm3, %v659_v22  ;;  %v1307_v9 = vsel %vm1275_vm5, %v827_v16, 0.0  ;;  %v2098_v52 = vld [vmem:[#allocation2 + $0x59] sm:$0xff]  ;;  %v2937_v49 = vsel %vm10263_vm7, 1, %v14972_v36  ;;  %vm15611_vm0 = vcmp.ge.s32.totalorder %v15610_v10, 0  ;;  %v1655_v40 = vsel %vm1623_vm8, %v1335_v34, 0.0  ;;  %3025 = vperm.xlu1 %7011, %v2936_v55  }
 0x183   : > { %vm10281_vm1 = vmand %vm2779_vm13, %vm2811_vm12  ;;  %vm15609_vm12 = vcmp.lt.s32.totalorder %v15601_v15, 16  ;;  %vm15615_vm5 = vcmp.eq.s32.totalorder %v9868_v14, 1  ;;  %vm15617_vm2 = vcmp.ge.s32.totalorder %v7080_v20, 0  ;;  %v15622_v15 = vld [vmem:[#allocation7_spill] sm:$0xff]  ;;  %vm15624_vm8 = vnez %v15307_v13  ;;  %3028 = vperm.xlu2 %7012, %v2937_v49   ;;  %v10354_v49 = vpop.permute.xlu2 %2397 }
 0x184   : > { %v15607_v38 = vsel %vm10281_vm1, 4294967295, %v15606_v38  ;;  %vm2903_vm4 = vmand %vm10274_vm6, %vm15609_vm12  ;;  %v2450_v22 = vsel %vm15615_vm5, %v2098_v52, 0.0  ;;  %vm15616_vm12 = vcmp.lt.s32.totalorder %v7080_v20, 16  ;;  %v6753_v34 = vld [vmem:[%s14278_s6 + $0x30] sm:$0xff]  ;;  %v15625_v20 = vld [vmem:[#allocation72_spill] sm:$0xff]  ;;  %15631 = vst [vmem:[#allocation56_spill] sm:$0xff] %v10354_v49 }
 0x185   : > { %vm10312_vm13 = vmand %vm10281_vm1, %vm15611_vm0  ;;  %v2935_v16 = vsel %vm2903_vm4, 1, %v14972_v36  ;;  %v616_v14 = vpop.f32.mrf.mxu0  ;;  %vm1252_vm5 = vcmp.eq.s32.totalorder %v15625_v20, 1  ;;  %3214 = vmatpush.msrb.mxu1 %v6753_v34  ;;  %v2099_v34 = vld [vmem:[#allocation2 + $0x61] sm:$0xff]  ;;  %v2101_v49 = vld [vmem:[#allocation2 + $0x71] sm:$0xff] }
 0x186   : > { %vm15614_vm6 = vmmov %vm15592_vm3  ;;  %v617_v52 = vadd.f32 %v9420_v6, %v616_v14  ;;  %v1284_v55 = vsel %vm1252_vm5, %v10325_v47, 0.0  ;;  %3022 = vperm.xlu0 %7010, %v2935_v16   ;;  %v1336_v14 = vld [vmem:[#allocation2 + $0xb0] sm:$0xff] }
 0x187   : > { %6713 = vmatmul.msk.f32.gmra.mxu2 %vm15614_vm6, %v1307_v9  ;;  %vm10321_vm3 = vmand %vm15617_vm2, %vm15616_vm12  ;;  %vm15626_vm12 = vcmp.lt.s32.totalorder %v15610_v10, 16  ;;  %v10361_v10 = vpop.permute.xlu0 %2364  ;;  %v15642_v9 = vld [vmem:[#allocation11_spill] sm:$0xff] }
 0x188   : > { %v15619_v26 = vsel %vm10321_vm3, 4294967295, %v15618_v26  ;;  %vm15620_vm7 = vmmov %vm15614_vm6  ;;  %v660_v44 = vmax.f32 %v617_v52, 0.0 }
 0x189   : > { %6675 = vmatmul.msk.f32.gmra.mxu1 %vm15620_vm7, %v1655_v40  ;;  %vm15621_vm0 = vmmov %vm15614_vm6  ;;  %vm15623_vm6 = vcmp.ge.s32.totalorder %v15622_v15, 0  ;;  %v10347_v40 = vpop.permute.xlu1 %2367  ;;  %v828_v20 = vld [vmem:[#allocation2 + $0xdf] sm:$0xff] }
 0x18a   : > { %6731 = vmatmul.msk.f32.gmra.mxu3 %vm15621_vm0, %v2450_v22  ;;  %vm3376_vm1 = vmand %vm15624_vm8, %vm15623_vm6  ;;  %v15629_v22 = vld [vmem:[#allocation68_spill] sm:$0xff]  ;;  %vm15633_vm6 = vcmask 130048   ;;  %vm2419_vm8 = vcmp.eq.s32.totalorder %v10206_v33, 1  ;;  %v15636_v33 = vld [vmem:[#allocation5_spill] sm:$0xff] }
 0x18b   : > { %vm10342_vm2 = vmand %vm10312_vm13, %vm15626_vm12  ;;  %vm15630_vm4 = vcmp.ge.s32.totalorder %v15629_v22, 0  ;;  %vm15632_vm13 = vcmp.lt.s32.totalorder %v15622_v15, 16  ;;  %6690 = vmatmul.msk.f32.gmra.mxu0 %vm15633_vm6, %v1284_v55  ;;  %vm1276_vm12 = vcmp.eq.s32.totalorder %v8813_v42, 1  ;;  %vm15634_vm5 = vcmp.lt.s32.totalorder %v15629_v22, 16  ;;  %v15645_v15 = vld [vmem:[#allocation69_spill] sm:$0xff] }
 0x18c   : > { %vm2874_vm7 = vmand %vm10321_vm3, %vm15630_vm4  ;;  %v1308_v16 = vsel %vm1276_vm12, %v828_v20, 0.0  ;;  %v2939_v52 = vsel %vm10342_vm2, 1, %v14972_v36  ;;  %v1656_v55 = vsel %vm1624_vm14, %v1336_v14, 0.0  ;;  %v2451_v22 = vsel %vm2419_vm8, %v2099_v34, 0.0  ;;  %v15649_v34 = vld [vmem:[#allocation13_spill] sm:$0xff]  ;;  %v15664_v14 = vld [vmem:[#allocation19_spill] sm:$0xff] }
 0x18d   : > { %vm3408_vm0 = vmand %vm3376_vm1, %vm15632_vm13  ;;  %vm15637_vm1 = vcmp.ge.s32.totalorder %v15636_v33, 0  ;;  %vm15638_vm13 = vnez %v15284_v18  ;;  %vm15643_vm2 = vcmp.ge.s32.totalorder %v15642_v9, 0  ;;  %v619_v20 = vpop.f32.mrf.mxu0  ;;  %3034 = vperm.xlu1 %7011, %v2939_v52   ;;  %vm15646_vm14 = vcmp.lt.s32.totalorder %v15636_v33, 16 }
 0x18e   : > { %vm2906_vm4 = vmand %vm2874_vm7, %vm15634_vm5  ;;  %v3440_v42 = vsel %vm3408_vm0, 1, %v14972_v36  ;;  %vm15644_vm0 = vnez %v15342_v0  ;;  %vm1253_vm5 = vcmp.eq.s32.totalorder %v15645_v15, 1  ;;  %vm15650_vm8 = vcmp.ge.s32.totalorder %v15649_v34, 0  ;;  %v10400_v15 = vpop.permute.xlu2 %2406 }
 0x18f   : > { %vm15635_vm3 = vmmov %vm15633_vm6  ;;  %v2938_v2 = vsel %vm2906_vm4, 1, %v14972_v36  ;;  %3473 = vperm.xlu2 %7012, %v3440_v42   ;;  %vm15651_vm4 = vnez %v15281_v8  ;;  %15652 = vst [vmem:[#allocation69_spill] sm:$0xff] %v10400_v15  ;;  %v1337_v42 = vld [vmem:[#allocation2 + $0xb8] sm:$0xff]  ;;  %v10409_v33 = vpop.permute.xlu0 %2373  ;;  %v1338_v15 = vld [vmem:[#allocation2 + $0xc0] sm:$0xff] }
 0x190   : > { %731 = vst.msk [vmem:[#allocation2 + $0xe8] sm:$0xff] %vm15635_vm3, %v660_v44  ;;  %vm3378_vm6 = vmand %vm15638_vm13, %vm15637_vm1  ;;  %v10376_v44 = vld [vmem:[#allocation2 + $0x27] sm:$0xff]  ;;  %3031 = vperm.xlu0 %7010, %v2938_v2  }
 0x191   : > { %vm15639_vm15 = vmmov %vm15635_vm3  ;;  %15640 = vst [vmem:[#allocation72_spill] sm:$0xff] %v10376_v44  ;;  %6676 = vmatmul.msk.f32.gmra.mxu1 %vm15635_vm3, %v1656_v55  ;;  %v1285_v55 = vsel %vm1253_vm5, %v10376_v44, 0.0  ;;  %vm15655_vm5 = vcmp.lt.s32.totalorder %v15649_v34, 16  ;;  %v15667_v34 = vld [vmem:[#allocation70_spill] sm:$0xff] }
 0x192   : > { %6714 = vmatmul.msk.f32.gmra.mxu2 %vm15639_vm15, %v1308_v16  ;;  %vm15641_vm7 = vmmov %vm15635_vm3  ;;  %v10393_v16 = vpop.permute.xlu1 %2376  ;;  %vm15653_vm3 = vcmp.lt.s32.totalorder %v15642_v9, 16 }
 0x193   : > { %6732 = vmatmul.msk.f32.gmra.mxu3 %vm15641_vm7, %v2451_v22  ;;  %vm3379_vm12 = vmand %vm15644_vm0, %vm15643_vm2  ;;  %v620_v22 = vadd.f32 %v9420_v6, %v619_v20  ;;  %6691 = vmatmul.msk.f32.gmra.mxu0 %vm15641_vm7, %v1285_v55  ;;  %vm1277_vm2 = vcmp.eq.s32.totalorder %v8783_v11, 1  ;;  %v10407_v6 = vpop.f32.mrf.mxu2  ;;  %v15657_v55 = vld [vmem:[#allocation8_spill] sm:$0xff] }
 0x194   : > { %vm10388_vm15 = vmand %vm3378_vm6, %vm15646_vm14  ;;  %vm2420_vm14 = vcmp.eq.s32.totalorder %v10180_v56, 1  ;;  %15654 = vst [vmem:[#allocation121_spill] sm:$0xff] %v10407_v6 }
 0x195   : > { %vm3377_vm1 = vmand %vm15651_vm4, %vm15650_vm8  ;;  %v661_v52 = vmax.f32 %v620_v22, 0.0  ;;  %v2100_v22 = vld [vmem:[#allocation2 + $0x69] sm:$0xff]  ;;  %v3442_v11 = vsel %vm10388_vm15, 1, %v14972_v36  ;;  %vm15665_vm15 = vcmp.ge.s32.totalorder %v15664_v14, 0 }
 0x196   : > { %vm3411_vm6 = vmand %vm3379_vm12, %vm15653_vm3  ;;  %vm1625_vm12 = vcmp.eq.s32.totalorder %v9673_v50, 1  ;;  %vm15658_vm3 = vcmp.ge.s32.totalorder %v15657_v55, 0  ;;  %v2452_v9 = vsel %vm2420_vm14, %v2100_v22, 0.0  ;;  %3479 = vperm.xlu1 %7011, %v3442_v11   ;;  %v15671_v22 = vld [vmem:[#allocation3_spill] sm:$0xff]  ;;  %v10453_v11 = vpop.permute.xlu2 %2947 }
 0x197   : > { %v829_v20 = vld [vmem:[#allocation2 + $0xe7] sm:$0xff]  ;;  %vm3409_vm8 = vmand %vm3377_vm1, %vm15655_vm5  ;;  %v3443_v56 = vsel %vm3411_vm6, 1, %v14972_v36  ;;  %v1657_v6 = vsel %vm1625_vm12, %v1337_v42, 0.0  ;;  %vm15666_vm6 = vnez %v15370_v30  ;;  %vm1254_vm5 = vcmp.eq.s32.totalorder %v15667_v34, 1  ;;  %15674 = vst [vmem:[#allocation70_spill] sm:$0xff] %v10453_v11  ;;  %v15683_v11 = vld [vmem:[#allocation15_spill] sm:$0xff] }
 0x198   : > { %vm15656_vm13 = vmmov %vm15641_vm7  ;;  %v1309_v2 = vsel %vm1277_vm2, %v829_v20, 0.0  ;;  %vm15659_vm7 = vnez %v15316_v53  ;;  %v3441_v50 = vsel %vm3409_vm8, 1, %v14972_v36  ;;  %v622_v20 = vpop.f32.mrf.mxu0  ;;  %3482 = vperm.xlu2 %7012, %v3443_v56   ;;  %vm15672_vm8 = vcmp.ge.s32.totalorder %v15671_v22, 0  ;;  %v15690_v56 = vld [vmem:[#allocation25_spill] sm:$0xff] }
 0x199   : > { %732 = vst.msk [vmem:[#allocation2 + $0xf0] sm:$0xff] %vm15656_vm13, %v661_v52  ;;  %vm3381_vm0 = vmand %vm15659_vm7, %vm15658_vm3  ;;  %v10424_v52 = vld [vmem:[#allocation2 + $0x2f] sm:$0xff]  ;;  %vm15673_vm12 = vnez %v15311_v57  ;;  %3476 = vperm.xlu0 %7010, %v3441_v50   ;;  %v10466_v50 = vpop.f32.mrf.mxu1  ;;  %vm15692_vm7 = vnez %v15401_v61 }
 0x19a   : > { %vm15660_vm4 = vmmov %vm15656_vm13  ;;  %15661 = vst [vmem:[#allocation122_spill] sm:$0xff] %v10424_v52  ;;  %v1286_v34 = vsel %vm1254_vm5, %v10424_v52, 0.0  ;;  %v10464_v52 = vpop.permute.xlu0 %2382  ;;  %vm15680_vm5 = vcmp.lt.s32.totalorder %v15671_v22, 16  ;;  %v15708_v22 = vld [vmem:[#allocation20_spill] sm:$0xff] }
 0x19b   : > { %6715 = vmatmul.msk.f32.gmra.mxu2 %vm15660_vm4, %v1309_v2  ;;  %vm15662_vm13 = vmmov %vm15660_vm4  ;;  %v10446_v2 = vpop.permute.xlu1 %2385 }
 0x19c   : > { %6677 = vmatmul.msk.f32.gmra.mxu1 %vm15662_vm13, %v1657_v6  ;;  %vm15663_vm1 = vmmov %vm15660_vm4  ;;  %vm15668_vm4 = vcmp.lt.s32.totalorder %v15657_v55, 16 }
 0x19d   : > { %6733 = vmatmul.msk.f32.gmra.mxu3 %vm15663_vm1, %v2452_v9  ;;  %vm3382_vm2 = vmand %vm15666_vm6, %vm15665_vm15  ;;  %v10443_v9 = vld [vmem:[%s14277_s5] ss:$0 sm:$0xff]  ;;  %6692 = vmatmul.msk.f32.gmra.mxu0 %vm15663_vm1, %v1286_v34 }
 0x19e   : > { %vm10436_vm14 = vmand %vm3381_vm0, %vm15668_vm4  ;;  %v623_v6 = vadd.f32 %v10443_v9, %v622_v20  ;;  %vm15675_vm0 = vcmp.lt.s32.totalorder %v15664_v14, 16  ;;  %v15678_v20 = vld [vmem:[#allocation76_spill] sm:$0xff]  ;;  %vm15685_vm4 = vnez %v15354_v35 }
 0x19f   : > { %vm3380_vm3 = vmand %vm15673_vm12, %vm15672_vm8  ;;  %vm1278_vm15 = vcmp.eq.s32.totalorder %v15678_v20, 1  ;;  %15679 = vst [vmem:[#allocation76_spill] sm:$0xff] %v10466_v50  ;;  %v3445_v34 = vsel %vm10436_vm14, 1, %v14972_v36  ;;  %v15693_v50 = vld [vmem:[#allocation73_spill] sm:$0xff] }
 0x1a0   : > { %vm10457_vm13 = vmand %vm3382_vm2, %vm15675_vm0  ;;  %v662_v55 = vmax.f32 %v623_v6, 0.0  ;;  %v830_v44 = vld [vmem:[#allocation2 + $0xef] sm:$0xff]  ;;  %vm1626_vm0 = vcmp.eq.s32.totalorder %v9638_v7, 1  ;;  %v10472_v6 = vpop.f32.mrf.mxu2  ;;  %3488 = vperm.xlu1 %7011, %v3445_v34  }
 0x1a1   : > { %vm3412_vm2 = vmand %vm3380_vm3, %vm15680_vm5  ;;  %v1310_v14 = vsel %vm1278_vm15, %v830_v44, 0.0  ;;  %15682 = vst [vmem:[#allocation123_spill] sm:$0xff] %v10472_v6  ;;  %v3446_v20 = vsel %vm10457_vm13, 1, %v14972_v36  ;;  %v1658_v44 = vsel %vm1626_vm0, %v1338_v15, 0.0  ;;  %vm15687_vm15 = vcmp.eq.s32.totalorder %v9946_v45, 1  ;;  %v625_v6 = vpop.f32.mrf.mxu0 }
 0x1a2   : > { %vm15681_vm8 = vmmov %vm15663_vm1  ;;  %vm15684_vm1 = vcmp.ge.s32.totalorder %v15683_v11, 0  ;;  %v2453_v7 = vsel %vm15687_vm15, %v2101_v49, 0.0  ;;  %v3444_v42 = vsel %vm3412_vm2, 1, %v14972_v36  ;;  %vm15691_vm13 = vcmp.ge.s32.totalorder %v15690_v56, 0  ;;  %3491 = vperm.xlu2 %7012, %v3446_v20  }
 0x1a3   : > { %733 = vst.msk [vmem:[#allocation2 + $0xf8] sm:$0xff] %vm15681_vm8, %v662_v55  ;;  %vm3384_vm3 = vmand %vm15685_vm4, %vm15684_vm1  ;;  %v10487_v55 = vld [vmem:[#allocation2 + $0x37] sm:$0xff]  ;;  %vm1255_vm1 = vcmp.eq.s32.totalorder %v15693_v50, 1  ;;  %vm15694_vm0 = vcmp.lt.s32.totalorder %v15683_v11, 16  ;;  %v626_v49 = vadd.f32 %v10443_v9, %v625_v6  ;;  %v10504_v15 = vpop.permute.xlu1 %2394  ;;  %vm15699_vm15 = vnez %v15350_v23  ;;  %3485 = vperm.xlu0 %7010, %v3444_v42   ;;  %v10511_v50 = vpop.permute.xlu2 %2956  ;;  %v1339_v6 = vld [vmem:[#allocation2 + $0xc8] sm:$0xff] }
 0x1a4   : > { %vm15686_vm5 = vmmov %vm15681_vm8  ;;  %15700 = vst [vmem:[#allocation73_spill] sm:$0xff] %v10511_v50  ;;  %v10520_v11 = vpop.f32.mrf.mxu1  ;;  %vm15710_vm4 = vnez %v15390_v63  ;;  %v15718_v50 = vld [vmem:[#allocation31_spill] sm:$0xff] }
 0x1a5   : > { %6716 = vmatmul.msk.f32.gmra.mxu2 %vm15686_vm5, %v1310_v14  ;;  %vm15688_vm8 = vmmov %vm15686_vm5  ;;  %v15697_v14 = vld [vmem:[#allocation17_spill] sm:$0xff]  ;;  %v663_v34 = vmax.f32 %v626_v49, 0.0  ;;  %15703 = vst [vmem:[#allocation124_spill] sm:$0xff] %v10520_v11 }
 0x1a6   : > { %6678 = vmatmul.msk.f32.gmra.mxu1 %vm15688_vm8, %v1658_v44  ;;  %vm15689_vm14 = vmmov %vm15686_vm5  ;;  %vm15698_vm2 = vcmp.ge.s32.totalorder %v15697_v14, 0  ;;  %v1287_v44 = vsel %vm1255_vm1, %v10487_v55, 0.0  ;;  %vm15704_vm1 = vcmp.lt.s32.totalorder %v15697_v14, 16 }
 0x1a7   : > { %6734 = vmatmul.msk.f32.gmra.mxu3 %vm15689_vm14, %v2453_v7  ;;  %vm3385_vm6 = vmand %vm15692_vm7, %vm15691_vm13  ;;  %vm15701_vm14 = vcmp.lt.s32.totalorder %v15690_v56, 16  ;;  %vm15702_vm13 = vcmask 130048   ;;  %v10518_v7 = vpop.permute.xlu0 %2391 }
 0x1a8   : > { %vm10499_vm5 = vmand %vm3384_vm3, %vm15694_vm0  ;;  %6693 = vmatmul.msk.f32.gmra.mxu0 %vm15702_vm13, %v1287_v44  ;;  %vm1279_vm0 = vcmp.eq.s32.totalorder %v8898_v5, 1  ;;  %v2102_v5 = vld [vmem:[#allocation2 + $0x79] sm:$0xff] }
 0x1a9   : > { %vm3383_vm8 = vmand %vm15699_vm15, %vm15698_vm2  ;;  %v3448_v44 = vsel %vm10499_vm5, 1, %v14972_v36 }
 0x1aa   : > { %vm3417_vm3 = vmand %vm3385_vm6, %vm15701_vm14  ;;  %v831_v20 = vld [vmem:[#allocation2 + $0xf7] sm:$0xff]  ;;  %vm1627_vm14 = vcmp.eq.s32.totalorder %v9330_v3, 1  ;;  %3497 = vperm.xlu1 %7011, %v3448_v44  }
 0x1ab   : > { %vm10524_vm2 = vmand %vm3383_vm8, %vm15704_vm1  ;;  %v1311_v49 = vsel %vm1279_vm0, %v831_v20, 0.0  ;;  %v3449_v56 = vsel %vm3417_vm3, 1, %v14972_v36  ;;  %vm2408_vm0 = vcmp.eq.s32.totalorder %v9866_v41, 1  ;;  %v1659_v3 = vsel %vm1627_vm14, %v1339_v6, 0.0  ;;  %v10546_v20 = vpop.f32.mrf.mxu2  ;;  %v628_v41 = vpop.f32.mrf.mxu0  ;;  %v1340_v44 = vld [vmem:[#allocation2 + $0xd0] sm:$0xff] }
 0x1ac   : > { %vm15707_vm6 = vmmov %vm15702_vm13  ;;  %vm15709_vm13 = vcmp.ge.s32.totalorder %v15708_v22, 0  ;;  %15715 = vst [vmem:[#allocation125_spill] sm:$0xff] %v10546_v20  ;;  %v3447_v14 = vsel %vm10524_vm2, 1, %v14972_v36  ;;  %3500 = vperm.xlu2 %7012, %v3449_v56   ;;  %vm15721_vm14 = vcmp.lt.s32.totalorder %v15708_v22, 16  ;;  %v629_v42 = vadd.f32 %v10443_v9, %v628_v41  ;;  %v10575_v56 = vpop.permute.xlu2 %2965  ;;  %v10584_v41 = vpop.f32.mrf.mxu1  ;;  %v15812_v22 = vld [vmem:[#allocation51_spill] sm:$0xff] }
 0x1ad   : > { %734 = vst.msk [vmem:[#allocation2 + $0x100] sm:$0xff] %vm15707_vm6, %v663_v34  ;;  %vm10538_vm8 = vmand %vm15710_vm4, %vm15709_vm13  ;;  %v2088_v34 = vld [vmem:[#allocation2 + $0x9] sm:$0xff]  ;;  %vm15719_vm13 = vcmp.ge.s32.totalorder %v15718_v50, 0  ;;  %3494 = vperm.xlu0 %7010, %v3447_v14  }
 0x1ae   : > { %vm15713_vm1 = vmmov %vm15707_vm6  ;;  %vm15714_vm6 = vcmp.eq.s32.totalorder %v10294_v46, 1  ;;  %v6822_v46 = vld [vmem:[%s14278_s6 + $0x58] sm:$0xff]  ;;  %v664_v11 = vmax.f32 %v629_v42, 0.0  ;;  %15729 = vst [vmem:[#allocation126_spill] sm:$0xff] %v10584_v41 }
 0x1af   : > { %6717 = vmatmul.msk.f32.gmra.mxu2 %vm15713_vm1, %v1311_v49  ;;  %v2454_v45 = vsel %vm15714_vm6, %v2102_v5, 0.0  ;;  %vm15716_vm5 = vmmov %vm15713_vm1  ;;  %v2440_v49 = vsel %vm2408_vm0, %v2088_v34, 0.0  ;;  %v10569_v5 = vpop.permute.xlu1 %2403  ;;  %4277 = vmatpush.msrb.mxu3 %v6822_v46  ;;  %v2103_v46 = vld [vmem:[#allocation2 + $0x81] sm:$0xff]  ;;  %v2089_v41 = vld [vmem:[#allocation2 + $0x11] sm:$0xff] }
 0x1b0   : > { %6679 = vmatmul.msk.f32.gmra.mxu1 %vm15716_vm5, %v1659_v3  ;;  %vm15717_vm3 = vmmov %vm15713_vm1  ;;  %vm15720_vm1 = vnez %v15432_v62  ;;  %v15724_v3 = vld [vmem:[#allocation23_spill] sm:$0xff]  ;;  %vm15726_vm5 = vnez %v15386_v31 }
 0x1b1   : > { %6735 = vmatmul.msk.f32.gmra.mxu3 %vm15717_vm3, %v2454_v45  ;;  %vm3388_vm4 = vmand %vm15720_vm1, %vm15719_vm13  ;;  %vm15725_vm2 = vcmp.ge.s32.totalorder %v15724_v3, 0  ;;  %vm15727_vm13 = vcmp.lt.s32.totalorder %v15718_v50, 16  ;;  %vm1280_vm1 = vcmp.eq.s32.totalorder %v8874_v17, 1  ;;  %v10582_v45 = vpop.permute.xlu0 %2400  ;;  %v15811_v50 = vld [vmem:[#allocation108_spill] sm:$0xff] }
 0x1b2   : > { %vm10564_vm6 = vmand %vm10538_vm8, %vm15721_vm14  ;;  %vm15728_vm14 = vcmask 130048  }
 0x1b3   : > { %vm3386_vm3 = vmand %vm15726_vm5, %vm15725_vm2  ;;  %6721 = vmatmul.msk.f32.vlgmr.msrb.gmra.mxu0 %vm15728_vm14, %v2440_v49  ;;  %vm15730_vm2 = vcmp.lt.s32.totalorder %v15724_v3, 16  ;;  %v3451_v17 = vsel %vm10564_vm6, 1, %v14972_v36  ;;  %v15732_v49 = vld [vmem:[#allocation27_spill] sm:$0xff]  ;;  %v631_v20 = vpop.f32.mrf.mxu0 }
 0x1b4   : > { %vm3420_vm8 = vmand %vm3388_vm4, %vm15727_vm13  ;;  %v832_v34 = vld [vmem:[#allocation2 + $0xff] sm:$0xff]  ;;  %vm1628_vm4 = vcmp.eq.s32.totalorder %v9745_v27, 1  ;;  %vm15733_vm13 = vcmp.ge.s32.totalorder %v15732_v49, 0  ;;  %3506 = vperm.xlu1 %7011, %v3451_v17   ;;  %v10624_v17 = vpop.permute.xlu2 %2974 }
 0x1b5   : > { %vm3418_vm5 = vmand %vm3386_vm3, %vm15730_vm2  ;;  %v1312_v14 = vsel %vm1280_vm1, %v832_v34, 0.0  ;;  %v3452_v42 = vsel %vm3420_vm8, 1, %v14972_v36  ;;  %vm2409_vm3 = vcmp.eq.s32.totalorder %v9640_v1, 1  ;;  %v15739_v34 = vld [vmem:[#allocation37_spill] sm:$0xff] }
 0x1b6   : > { %vm15731_vm7 = vmmov %vm15728_vm14  ;;  %vm15734_vm14 = vnez %v15419_v28  ;;  %v3450_v6 = vsel %vm3418_vm5, 1, %v14972_v36  ;;  %vm15740_vm6 = vcmp.ge.s32.totalorder %v15739_v34, 0  ;;  %3509 = vperm.xlu2 %7012, %v3452_v42   ;;  %v2090_v1 = vld [vmem:[#allocation2 + $0x19] sm:$0xff] }
 0x1b7   : > { %735 = vst.msk [vmem:[#allocation2 + $0x108] sm:$0xff] %vm15731_vm7, %v664_v11  ;;  %vm3390_vm0 = vmand %vm15734_vm14, %vm15733_vm13  ;;  %v1660_v11 = vsel %vm1628_vm4, %v1340_v44, 0.0  ;;  %v2441_v44 = vsel %vm2409_vm3, %v2089_v41, 0.0  ;;  %vm15747_vm13 = vnez %v15416_v37  ;;  %3503 = vperm.xlu0 %7010, %v3450_v6   ;;  %vm2424_vm3 = vcmp.eq.s32.totalorder %v10019_v60, 1  ;;  %v15752_v60 = vld [vmem:[#allocation33_spill] sm:$0xff] }
 0x1b8   : > { %vm15735_vm15 = vmmov %vm15731_vm7  ;;  %vm15736_vm7 = vcmp.eq.s32.totalorder %v10268_v29, 1  ;;  %v632_v29 = vadd.f32 %v10443_v9, %v631_v20  ;;  %v1341_v9 = vld [vmem:[#allocation2 + $0xd8] sm:$0xff]  ;;  %v2104_v20 = vld [vmem:[#allocation2 + $0x89] sm:$0xff]  ;;  %vm1629_vm14 = vcmp.eq.s32.totalorder %v9716_v32, 1 }
 0x1b9   : > { %6718 = vmatmul.msk.f32.gmra.mxu2 %vm15735_vm15, %v1312_v14  ;;  %v2455_v27 = vsel %vm15736_vm7, %v2103_v46, 0.0  ;;  %vm15737_vm1 = vmmov %vm15735_vm15  ;;  %vm15741_vm15 = vcmp.lt.s32.totalorder %v15732_v49, 16  ;;  %v10616_v14 = vpop.f32.mrf.mxu2  ;;  %v10618_v46 = vpop.permute.xlu1 %2944  ;;  %v15795_v49 = vld [vmem:[#allocation107_spill] sm:$0xff] }
 0x1ba   : > { %6680 = vmatmul.msk.f32.gmra.mxu1 %vm15737_vm1, %v1660_v11  ;;  %vm15738_vm2 = vmmov %vm15737_vm1  ;;  %15744 = vst [vmem:[#allocation127_spill] sm:$0xff] %v10616_v14  ;;  %v15745_v11 = vld [vmem:[#allocation29_spill] sm:$0xff]  ;;  %v665_v42 = vmax.f32 %v632_v29, 0.0  ;;  %v10630_v41 = vpop.permute.xlu0 %2941  ;;  %v2456_v14 = vsel %vm2424_vm3, %v2104_v20, 0.0  ;;  %vm15764_vm3 = vnez %v15449_v51 }
 0x1bb   : > { %6736 = vmatmul.msk.f32.gmra.mxu3 %vm15738_vm2, %v2455_v27  ;;  %vm3391_vm8 = vmand %vm9878_vm9, %vm15740_vm6  ;;  %vm15746_vm5 = vcmp.ge.s32.totalorder %v15745_v11, 0  ;;  %6722 = vmatmul.msk.f32.gmra.mxu0 %vm15738_vm2, %v2441_v44  ;;  %v10632_v27 = vpop.f32.mrf.mxu1  ;;  %vm15750_vm6 = vcmp.lt.s32.totalorder %v15745_v11, 16  ;;  %vm2410_vm9 = vcmp.eq.s32.totalorder %v9966_v54, 1  ;;  %v1661_v44 = vsel %vm1629_vm14, %v1341_v9, 0.0  ;;  %v2091_v54 = vld [vmem:[#allocation2 + $0x21] sm:$0xff] }
 0x1bc   : > { %vm10611_vm4 = vmand %vm3390_vm0, %vm15741_vm15  ;;  %vm15748_vm0 = vcmp.lt.s32.totalorder %v15739_v34, 16  ;;  %15749 = vst [vmem:[#allocation128_spill] sm:$0xff] %v10632_v27  ;;  %v2442_v9 = vsel %vm2410_vm9, %v2090_v1, 0.0  ;;  %v2105_v1 = vld [vmem:[#allocation2 + $0x91] sm:$0xff] }
 0x1bd   : > { %vm3389_vm7 = vmand %vm15747_vm13, %vm15746_vm5  ;;  %v3454_v6 = vsel %vm10611_vm4, 1, %v14972_v36  ;;  %v15793_v34 = vld [vmem:[#allocation112_spill] sm:$0xff] }
 0x1be   : > { %vm3423_vm1 = vmand %vm3391_vm8, %vm15748_vm0  ;;  %vm15753_vm8 = vcmp.ge.s32.totalorder %v15752_v60, 0  ;;  %vm15754_vm0 = vnez %v15452_v19  ;;  %3515 = vperm.xlu1 %7011, %v3454_v6  }
 0x1bf   : > { %vm3421_vm15 = vmand %vm3389_vm7, %vm15750_vm6  ;;  %v3455_v29 = vsel %vm3423_vm1, 1, %v14972_v36  ;;  %vm15759_vm1 = vcmp.lt.s32.totalorder %v15752_v60, 16 }
 0x1c0   : > { %vm15751_vm5 = vmmov %vm15738_vm2  ;;  %v3453_v32 = vsel %vm3421_vm15, 1, %v14972_v36  ;;  %3518 = vperm.xlu2 %7012, %v3455_v29   ;;  %v1342_v29 = vld [vmem:[#allocation2 + $0xe0] sm:$0xff] }
 0x1c1   : > { %736 = vst.msk [vmem:[#allocation2 + $0x110] sm:$0xff] %vm15751_vm5, %v665_v42  ;;  %vm3393_vm2 = vmand %vm15754_vm0, %vm15753_vm8  ;;  %v15757_v42 = vld [vmem:[#allocation43_spill] sm:$0xff]  ;;  %v10660_v20 = vpop.permute.xlu1 %2953  ;;  %3512 = vperm.xlu0 %7010, %v3453_v32   ;;  %v10672_v6 = vpop.f32.mrf.mxu2  ;;  %vm15773_vm0 = vcmask 130048  }
 0x1c2   : > { %vm15755_vm7 = vmmov %vm15751_vm5  ;;  %15768 = vst [vmem:[#allocation130_spill] sm:$0xff] %v10672_v6  ;;  %v10674_v27 = vpop.permute.xlu0 %2950 }
 0x1c3   : > { %6681 = vmatmul.msk.f32.gmra.mxu1 %vm15755_vm7, %v1661_v44  ;;  %vm15756_vm6 = vmmov %vm15751_vm5  ;;  %vm15758_vm5 = vcmp.ge.s32.totalorder %v15757_v42, 0  ;;  %v10666_v44 = vpop.permute.xlu2 %2983  ;;  %vm15766_vm7 = vcmp.lt.s32.totalorder %v15757_v42, 16  ;;  %v10676_v60 = vpop.f32.mrf.mxu1  ;;  %v15775_v42 = vld [vmem:[#allocation49_spill] sm:$0xff] }
 0x1c4   : > { %6737 = vmatmul.msk.f32.gmra.mxu3 %vm15756_vm6, %v2456_v14  ;;  %vm3394_vm4 = vmand %vm9962_vm10, %vm15758_vm5  ;;  %v15762_v14 = vld [vmem:[#allocation35_spill] sm:$0xff]  ;;  %15765 = vst [vmem:[#allocation129_spill] sm:$0xff] %v10666_v44  ;;  %vm15767_vm5 = vcmask 130048  }
 0x1c5   : > { %vm10656_vm8 = vmand %vm3393_vm2, %vm15759_vm1  ;;  %vm15763_vm14 = vcmp.ge.s32.totalorder %v15762_v14, 0  ;;  %6723 = vmatmul.msk.f32.gmra.mxu0 %vm15767_vm5, %v2442_v9  ;;  %vm2425_vm2 = vcmp.eq.s32.totalorder %v10361_v10, 1  ;;  %15769 = vst [vmem:[#allocation131_spill] sm:$0xff] %v10676_v60  ;;  %vm15770_vm9 = vcmp.lt.s32.totalorder %v15762_v14, 16  ;;  %v15771_v10 = vld [vmem:[#allocation39_spill] sm:$0xff]  ;;  %vm2411_vm5 = vcmp.eq.s32.totalorder %v9944_v24, 1 }
 0x1c6   : > { %vm3392_vm15 = vmand %vm15764_vm3, %vm15763_vm14  ;;  %vm1630_vm14 = vcmp.eq.s32.totalorder %v9428_v39, 1  ;;  %v3457_v32 = vsel %vm10656_vm8, 1, %v14972_v36  ;;  %v2457_v60 = vsel %vm2425_vm2, %v2105_v1, 0.0  ;;  %vm15777_vm8 = vnez %v15524_v4  ;;  %v15789_v14 = vld [vmem:[#allocation109_spill] sm:$0xff]  ;;  %v2092_v24 = vld [vmem:[#allocation2 + $0x29] sm:$0xff] }
 0x1c7   : > { %vm3426_vm6 = vmand %vm3394_vm4, %vm15766_vm7  ;;  %vm15772_vm4 = vcmp.ge.s32.totalorder %v15771_v10, 0  ;;  %v1662_v6 = vsel %vm1630_vm14, %v1342_v29, 0.0  ;;  %3524 = vperm.xlu1 %7011, %v3457_v32   ;;  %v2443_v29 = vsel %vm2411_vm5, %v2091_v54, 0.0  ;;  %vm15783_vm2 = vnez %v15478_v12  ;;  %v1343_v32 = vld [vmem:[#allocation2 + $0xe8] sm:$0xff] }
 0x1c8   : > { %vm3424_vm1 = vmand %vm3392_vm15, %vm15770_vm9  ;;  %v3458_v9 = vsel %vm3426_vm6, 1, %v14972_v36  ;;  %vm15776_vm9 = vcmp.ge.s32.totalorder %v15775_v42, 0  ;;  %vm15785_vm14 = vcmp.lt.s32.totalorder %v15775_v42, 16 }
 0x1c9   : > { %vm3396_vm7 = vmand %vm9930_vm11, %vm15772_vm4  ;;  %v3456_v39 = vsel %vm3424_vm1, 1, %v14972_v36  ;;  %3527 = vperm.xlu2 %7012, %v3458_v9   ;;  %vm15778_vm4 = vcmp.lt.s32.totalorder %v15771_v10, 16  ;;  %v2106_v9 = vld [vmem:[#allocation2 + $0x99] sm:$0xff] }
 0x1ca   : > { %vm15774_vm15 = vmmov %vm15773_vm0  ;;  %3521 = vperm.xlu0 %7010, %v3456_v39   ;;  %v10715_v54 = vpop.permute.xlu0 %2959  ;;  %v10722_v39 = vpop.f32.mrf.mxu2 }
 0x1cb   : > { %6682 = vmatmul.msk.f32.gmra.mxu1 %vm15773_vm0, %v1662_v6  ;;  %vm3397_vm6 = vmand %vm15777_vm8, %vm15776_vm9  ;;  %v10703_v6 = vpop.permute.xlu1 %2962  ;;  %v10709_v1 = vpop.permute.xlu2 %2992  ;;  %vm15786_vm9 = vcmask 130048   ;;  %15790 = vst [vmem:[#allocation109_spill] sm:$0xff] %v10722_v39  ;;  %vm2412_vm8 = vcmp.eq.s32.totalorder %v15795_v49, 1  ;;  %v15798_v39 = vld [vmem:[#allocation55_spill] sm:$0xff] }
 0x1cc   : > { %6738 = vmatmul.msk.f32.gmra.mxu3 %vm15774_vm15, %v2457_v60  ;;  %vm10699_vm11 = vmand %vm3396_vm7, %vm15778_vm4  ;;  %v15781_v60 = vld [vmem:[#allocation41_spill] sm:$0xff]  ;;  %15784 = vst [vmem:[#allocation132_spill] sm:$0xff] %v10709_v1  ;;  %vm2426_vm7 = vcmp.eq.s32.totalorder %v10347_v40, 1  ;;  %v10717_v10 = vpop.f32.mrf.mxu1  ;;  %v2444_v49 = vsel %vm2412_vm8, %v2092_v24, 0.0 }
 0x1cd   : > { %vm15782_vm0 = vcmp.ge.s32.totalorder %v15781_v60, 0  ;;  %vm3429_vm15 = vmand %vm3397_vm6, %vm15785_vm14  ;;  %6724 = vmatmul.msk.f32.gmra.mxu0 %vm15786_vm9, %v2443_v29  ;;  %15787 = vst [vmem:[#allocation133_spill] sm:$0xff] %v10717_v10  ;;  %vm15788_vm5 = vcmp.lt.s32.totalorder %v15781_v60, 16  ;;  %v3460_v42 = vsel %vm10699_vm11, 1, %v14972_v36  ;;  %v15791_v40 = vld [vmem:[#allocation45_spill] sm:$0xff]  ;;  %vm15794_vm14 = vnez %v15793_v34 }
 0x1ce   : > { %vm3395_vm1 = vmand %vm15783_vm2, %vm15782_vm0  ;;  %vm1631_vm0 = vcmp.eq.s32.totalorder %v15789_v14, 1  ;;  %v3461_v29 = vsel %vm3429_vm15, 1, %v14972_v36  ;;  %vm15792_vm6 = vcmp.ge.s32.totalorder %v15791_v40, 0  ;;  %v2458_v60 = vsel %vm2426_vm7, %v2106_v9, 0.0  ;;  %v15802_v9 = vld [vmem:[#allocation47_spill] sm:$0xff] }
 0x1cf   : > { %vm3427_vm4 = vmand %vm3395_vm1, %vm15788_vm5  ;;  %v1663_v10 = vsel %vm1631_vm0, %v1343_v32, 0.0  ;;  %vm15796_vm1 = vcmask 130048   ;;  %vm15799_vm2 = vcmp.ge.s32.totalorder %v15798_v39, 0  ;;  %vm15800_vm11 = vnez %v15557_v25  ;;  %3533 = vperm.xlu1 %7011, %v3460_v42   ;;  %v15808_v42 = vld [vmem:[#allocation116_spill] sm:$0xff] }
 0x1d0   : > { %vm3399_vm9 = vmand %vm15794_vm14, %vm15792_vm6  ;;  %v3459_v14 = vsel %vm3427_vm4, 1, %v14972_v36  ;;  %vm15801_vm6 = vcmp.lt.s32.totalorder %v15791_v40, 16  ;;  %vm15803_vm7 = vcmp.ge.s32.totalorder %v15802_v9, 0  ;;  %vm15807_vm4 = vcmp.lt.s32.totalorder %v15798_v39, 16  ;;  %v2107_v40 = vld [vmem:[#allocation2 + $0xa1] sm:$0xff] }
 0x1d1   : > { %vm15797_vm5 = vmmov %vm15796_vm1  ;;  %3536 = vperm.xlu2 %7012, %v3461_v29   ;;  %v1344_v29 = vld [vmem:[#allocation2 + $0xf0] sm:$0xff]  ;;  %vm15810_vm8 = vcmp.lt.s32.totalorder %v15802_v9, 16 }
 0x1d2   : > { %vm3400_vm15 = vmand %vm15800_vm11, %vm15799_vm2  ;;  %3530 = vperm.xlu0 %7010, %v3459_v14   ;;  %vm2427_vm11 = vcmp.eq.s32.totalorder %v15808_v42, 1  ;;  %v10754_v24 = vpop.permute.xlu0 %2968  ;;  %v15816_v42 = vld [vmem:[#allocation114_spill] sm:$0xff]  ;;  %v10768_v1 = vpop.f32.mrf.mxu2  ;;  %v2093_v9 = vld [vmem:[#allocation2 + $0x31] sm:$0xff] }
 0x1d3   : > { %6683 = vmatmul.msk.f32.gmra.mxu1 %vm15796_vm1, %v1663_v10  ;;  %vm3431_vm14 = vmand %vm3399_vm9, %vm15801_vm6  ;;  %v10742_v32 = vpop.permute.xlu1 %2971  ;;  %v15804_v10 = vld [vmem:[#allocation111_spill] sm:$0xff]  ;;  %vm1632_vm6 = vcmp.eq.s32.totalorder %v15811_v50, 1 }
 0x1d4   : > { %6739 = vmatmul.msk.f32.gmra.mxu3 %vm15797_vm5, %v2458_v60  ;;  %vm15805_vm0 = vnez %v15804_v10  ;;  %v10748_v60 = vpop.permute.xlu2 %3001  ;;  %vm3432_vm2 = vmand %vm3400_vm15, %vm15807_vm4  ;;  %v10756_v11 = vpop.f32.mrf.mxu1  ;;  %v3463_v14 = vsel %vm3431_vm14, 1, %v14972_v36  ;;  %vm15813_vm15 = vcmp.ge.s32.totalorder %v15812_v22, 0  ;;  %v1664_v3 = vsel %vm1632_vm6, %v1344_v29, 0.0  ;;  %15817 = vst [vmem:[#allocation111_spill] sm:$0xff] %v10768_v1 }
 0x1d5   : > { %vm3398_vm1 = vmand %vm15805_vm0, %vm15803_vm7  ;;  %15806 = vst [vmem:[#allocation112_spill] sm:$0xff] %v10748_v60  ;;  %6725 = vmatmul.msk.f32.gmra.mxu0 %vm15797_vm5, %v2444_v49  ;;  %v3464_v39 = vsel %vm3432_vm2, 1, %v14972_v36  ;;  %v15814_v49 = vld [vmem:[#allocation117_spill] sm:$0xff]  ;;  %vm2413_vm5 = vcmp.eq.s32.totalorder %v15816_v42, 1  ;;  %v2459_v60 = vsel %vm2427_vm11, %v2107_v40, 0.0  ;;  %vm15818_vm0 = vcmask 130048  }
 0x1d6   : > { %15809 = vst [vmem:[#allocation107_spill] sm:$0xff] %v10756_v11  ;;  %vm3430_vm9 = vmand %vm3398_vm1, %vm15810_vm8  ;;  %vm15815_vm7 = vnez %v15814_v49  ;;  %v15820_v11 = vld [vmem:[#allocation63_spill] sm:$0xff]  ;;  %vm15822_vm2 = vnez %v15590_v59  ;;  %v2445_v40 = vsel %vm2413_vm5, %v2093_v9, 0.0  ;;  %v15825_v42 = vld [vmem:[#allocation53_spill] sm:$0xff] }
 0x1d7   : > { %vm3402_vm4 = vmand %vm15815_vm7, %vm15813_vm15  ;;  %v3462_v50 = vsel %vm3430_vm9, 1, %v14972_v36  ;;  %vm15821_vm14 = vcmp.ge.s32.totalorder %v15820_v11, 0  ;;  %3542 = vperm.xlu1 %7011, %v3463_v14   ;;  %vm15823_vm15 = vcmp.lt.s32.totalorder %v15812_v22, 16  ;;  %vm15826_vm11 = vcmp.ge.s32.totalorder %v15825_v42, 0  ;;  %v2108_v14 = vld [vmem:[#allocation2 + $0xa9] sm:$0xff] }
 0x1d8   : > { %vm15819_vm1 = vmmov %vm15818_vm0  ;;  %vm15830_vm9 = vcmp.lt.s32.totalorder %v15820_v11, 16  ;;  %vm15831_vm7 = vcmask 130048   ;;  %v15835_v22 = vld [vmem:[#allocation106_spill] sm:$0xff] }
 0x1d9   : > { %vm3403_vm8 = vmand %vm15822_vm2, %vm15821_vm14  ;;  %3545 = vperm.xlu2 %7012, %v3464_v39   ;;  %vm2428_vm2 = vcmp.eq.s32.totalorder %v10409_v33, 1  ;;  %v1345_v39 = vld [vmem:[#allocation2 + $0xf8] sm:$0xff]  ;;  %v15839_v33 = vld [vmem:[#allocation113_spill] sm:$0xff] }
 0x1da   : > { %vm3434_vm6 = vmand %vm3402_vm4, %vm15823_vm15  ;;  %3539 = vperm.xlu0 %7010, %v3462_v50   ;;  %v10791_v9 = vpop.permute.xlu0 %2977  ;;  %vm15834_vm4 = vcmp.lt.s32.totalorder %v15825_v42, 16  ;;  %vm1633_vm15 = vcmp.eq.s32.totalorder %v15835_v22, 1  ;;  %v2460_v44 = vsel %vm2428_vm2, %v2108_v14, 0.0  ;;  %v15842_v22 = vld [vmem:[#allocation67_spill] sm:$0xff]  ;;  %v2094_v42 = vld [vmem:[#allocation2 + $0x39] sm:$0xff]  ;;  %v10818_v14 = vpop.f32.mrf.mxu2 }
 0x1db   : > { %6684 = vmatmul.msk.f32.gmra.mxu1 %vm15818_vm0, %v1664_v3  ;;  %v10779_v29 = vpop.permute.xlu1 %2980  ;;  %v15827_v3 = vld [vmem:[#allocation115_spill] sm:$0xff]  ;;  %vm3435_vm14 = vmand %vm3403_vm8, %vm15830_vm9  ;;  %15832 = vst [vmem:[#allocation117_spill] sm:$0xff] %v10791_v9  ;;  %v3466_v50 = vsel %vm3434_vm6, 1, %v14972_v36  ;;  %vm2414_vm9 = vcmp.eq.s32.totalorder %v15839_v33, 1  ;;  %vm15844_vm6 = vnez %v15619_v26  ;;  %v15869_v33 = vld [vmem:[#allocation65_spill] sm:$0xff] }
 0x1dc   : > { %6740 = vmatmul.msk.f32.gmra.mxu3 %vm15819_vm1, %v2459_v60  ;;  %15824 = vst [vmem:[#allocation116_spill] sm:$0xff] %v10779_v29  ;;  %vm15828_vm0 = vnez %v15827_v3  ;;  %v10785_v60 = vpop.permute.xlu2 %3010  ;;  %v10793_v1 = vpop.f32.mrf.mxu1  ;;  %v3467_v11 = vsel %vm3435_vm14, 1, %v14972_v36  ;;  %v15851_v29 = vld [vmem:[#allocation118_spill] sm:$0xff] }
 0x1dd   : > { %vm3401_vm1 = vmand %vm15828_vm0, %vm15826_vm11  ;;  %15829 = vst [vmem:[#allocation108_spill] sm:$0xff] %v10785_v60  ;;  %6726 = vmatmul.msk.f32.gmra.mxu0 %vm15831_vm7, %v2445_v40  ;;  %v15836_v60 = vld [vmem:[#allocation58_spill] sm:$0xff]  ;;  %vm15838_vm7 = vnez %v15574_v48  ;;  %v1665_v40 = vsel %vm1633_vm15, %v1345_v39, 0.0  ;;  %vm15840_vm0 = vcmask 130048   ;;  %v2446_v39 = vsel %vm2414_vm9, %v2094_v42, 0.0  ;;  %v2109_v42 = vld [vmem:[#allocation2 + $0xb1] sm:$0xff] }
 0x1de   : > { %15833 = vst [vmem:[#allocation114_spill] sm:$0xff] %v10793_v1  ;;  %vm3433_vm5 = vmand %vm3401_vm1, %vm15834_vm4  ;;  %vm15837_vm8 = vcmp.ge.s32.totalorder %v15836_v60, 0  ;;  %vm15843_vm1 = vcmp.ge.s32.totalorder %v15842_v22, 0  ;;  %vm15845_vm4 = vcmp.lt.s32.totalorder %v15836_v60, 16  ;;  %vm15852_vm2 = vnez %v15851_v29  ;;  %v15858_v60 = vld [vmem:[#allocation110_spill] sm:$0xff] }
 0x1df   : > { %vm3405_vm11 = vmand %vm15838_vm7, %vm15837_vm8  ;;  %v3465_v1 = vsel %vm3433_vm5, 1, %v14972_v36  ;;  %3551 = vperm.xlu1 %7011, %v3466_v50   ;;  %15848 = vst [vmem:[#allocation115_spill] sm:$0xff] %v10818_v14  ;;  %vm15854_vm5 = vcmp.lt.s32.totalorder %v15842_v22, 16  ;;  %vm15862_vm7 = vcmask 130048  }
 0x1e0   : > { %vm15841_vm10 = vmmov %vm15840_vm0 }
 0x1e1   : > { %vm3406_vm14 = vmand %vm15844_vm6, %vm15843_vm1  ;;  %3554 = vperm.xlu2 %7012, %v3467_v11   ;;  %vm2429_vm1 = vcmp.eq.s32.totalorder %v10393_v16, 1  ;;  %v1346_v11 = vld [vmem:[#allocation2 + $0x100] sm:$0xff] }
 0x1e2   : > { %vm10814_vm8 = vmand %vm3405_vm11, %vm15845_vm4  ;;  %3548 = vperm.xlu0 %7010, %v3465_v1   ;;  %vm15855_vm11 = vcmask 130048   ;;  %v10832_v50 = vpop.permute.xlu0 %2986 }
 0x1e3   : > { %6685 = vmatmul.msk.f32.gmra.mxu1 %vm15840_vm0, %v1665_v40  ;;  %v15849_v40 = vld [vmem:[#allocation61_spill] sm:$0xff]  ;;  %vm3438_vm15 = vmand %vm3406_vm14, %vm15854_vm5  ;;  %v3469_v1 = vsel %vm10814_vm8, 1, %v14972_v36  ;;  %vm15861_vm5 = vnez %v15307_v13 }
 0x1e4   : > { %6741 = vmatmul.msk.f32.gmra.mxu3 %vm15841_vm10, %v2460_v44  ;;  %v10820_v44 = vpop.permute.xlu1 %2989  ;;  %vm15850_vm10 = vcmp.ge.s32.totalorder %v15849_v40, 0  ;;  %v10826_v9 = vpop.permute.xlu2 %3019  ;;  %vm15857_vm9 = vcmp.lt.s32.totalorder %v15849_v40, 16  ;;  %v3470_v22 = vsel %vm3438_vm15, 1, %v14972_v36  ;;  %vm15863_vm6 = vmmov %vm15862_vm7  ;;  %v15878_v40 = vld [vmem:[#allocation75_spill] sm:$0xff] }
 0x1e5   : > { %vm3404_vm0 = vmand %vm15852_vm2, %vm15850_vm10  ;;  %15853 = vst [vmem:[#allocation106_spill] sm:$0xff] %v10826_v9  ;;  %6727 = vmatmul.msk.f32.gmra.mxu0 %vm15855_vm11, %v2446_v39  ;;  %v10834_v14 = vpop.f32.mrf.mxu1  ;;  %vm1634_vm10 = vcmp.eq.s32.totalorder %v15858_v60, 1  ;;  %v15859_v39 = vld [vmem:[#allocation59_spill] sm:$0xff]  ;;  %v2461_v9 = vsel %vm2429_vm1, %v2109_v42, 0.0  ;;  %v15864_v60 = vld [vmem:[#allocation74_spill] sm:$0xff]  ;;  %vm15870_vm1 = vcmp.ge.s32.totalorder %v15869_v33, 0 }
 0x1e6   : > { %15856 = vst [vmem:[#allocation113_spill] sm:$0xff] %v10834_v14  ;;  %vm3436_vm4 = vmand %vm3404_vm0, %vm15857_vm9  ;;  %vm15860_vm14 = vcmp.ge.s32.totalorder %v15859_v39, 0  ;;  %v1666_v16 = vsel %vm1634_vm10, %v1346_v11, 0.0  ;;  %vm15865_vm0 = vcmp.ge.s32.totalorder %v15864_v60, 0  ;;  %vm15866_vm9 = vnez %v15281_v8  ;;  %v15874_v8 = vld [vmem:[#allocation119_spill] sm:$0xff]  ;;  %v2110_v11 = vld [vmem:[#allocation2 + $0xb9] sm:$0xff] }
 0x1e7   : > { %vm3908_vm11 = vmand %vm15861_vm5, %vm15860_vm14  ;;  %v3468_v14 = vsel %vm3436_vm4, 1, %v14972_v36  ;;  %3560 = vperm.xlu1 %7011, %v3469_v1   ;;  %vm15867_vm15 = vcmp.lt.s32.totalorder %v15859_v39, 16  ;;  %vm2430_vm14 = vcmp.eq.s32.totalorder %v15874_v8, 1  ;;  %vm3036_vm5 = vcmp.eq.s32.totalorder %v10630_v41, 1  ;;  %v15881_v41 = vld [vmem:[#allocation120_spill] sm:$0xff] }
 0x1e8   : > { %vm3909_vm8 = vmand %vm15866_vm9, %vm15865_vm0  ;;  %vm15879_vm9 = vcmp.ge.s32.totalorder %v15878_v40, 0  ;;  %v3068_v8 = vsel %vm3036_vm5, %v15881_v41, 0.0  ;;  %v2111_v41 = vld [vmem:[#allocation2 + $0xc1] sm:$0xff] }
 0x1e9   : > { %3563 = vperm.xlu2 %7012, %v3470_v22   ;;  %vm3940_vm2 = vmand %vm3908_vm11, %vm15867_vm15  ;;  %v10868_v22 = vpop.f32.mrf.mxu2  ;;  %vm15877_vm11 = vcmp.lt.s32.totalorder %v15869_v33, 16  ;;  %v15884_v33 = vld [vmem:[#allocation77_spill] sm:$0xff] }
 0x1ea   : > { %3557 = vperm.xlu0 %7010, %v3468_v14   ;;  %15875 = vst [vmem:[#allocation59_spill] sm:$0xff] %v10868_v22  ;;  %v10870_v42 = vpop.permute.xlu0 %2995  ;;  %v3972_v14 = vsel %vm3940_vm2, 1, %v14972_v36  ;;  %v2462_v22 = vsel %vm2430_vm14, %v2110_v11, 0.0 }
 0x1eb   : > { %6686 = vmatmul.msk.f32.gmra.mxu1 %vm15862_vm7, %v1666_v16  ;;  %vm15871_vm7 = vnez %v15607_v38  ;;  %v16065_v38 = vld [vmem:[#allocation105_spill] sm:$0xff] }
 0x1ec   : > { %6742 = vmatmul.msk.f32.gmra.mxu3 %vm15863_vm6, %v2461_v9  ;;  %v10856_v13 = vpop.permute.xlu1 %2998  ;;  %vm3407_vm10 = vmand %vm15871_vm7, %vm15870_vm1  ;;  %v10862_v9 = vpop.permute.xlu2 %3028  ;;  %vm15873_vm6 = vcmp.lt.s32.totalorder %v15864_v60, 16  ;;  %vm15882_vm1 = vcmask 130048  }
 0x1ed   : > { %15868 = vst [vmem:[#allocation118_spill] sm:$0xff] %v10856_v13  ;;  %vm3941_vm4 = vmand %vm3909_vm8, %vm15873_vm6  ;;  %v10872_v1 = vpop.f32.mrf.mxu1  ;;  %vm15880_vm8 = vnez %v15342_v0  ;;  %v15900_v13 = vld [vmem:[#allocation79_spill] sm:$0xff] }
 0x1ee   : > { %15872 = vst [vmem:[#allocation110_spill] sm:$0xff] %v10862_v9  ;;  %vm3439_vm0 = vmand %vm3407_vm10, %vm15877_vm11  ;;  %v3973_v16 = vsel %vm3941_vm4, 1, %v14972_v36  ;;  %vm15885_vm10 = vcmp.ge.s32.totalorder %v15884_v33, 0  ;;  %v6924_v9 = vld [vmem:[%s14278_s6 + $0x88] sm:$0xff]  ;;  %vm15886_vm4 = vcmp.lt.s32.totalorder %v15878_v40, 16  ;;  %vm15891_vm11 = vnez %v15284_v18  ;;  %v6890_v18 = vld [vmem:[%s14278_s6 + $0x78] sm:$0xff] }
 0x1ef   : > { %15876 = vst [vmem:[#allocation74_spill] sm:$0xff] %v10872_v1  ;;  %vm3911_vm15 = vmand %vm15880_vm8, %vm15879_vm9  ;;  %v3471_v1 = vsel %vm3439_vm0, 1, %v14972_v36  ;;  %4005 = vperm.xlu1 %7011, %v3972_v14   ;;  %6001 = vmatpush.msra.mxu2 %v6924_v9  ;;  %vm2431_vm8 = vcmp.eq.s32.totalorder %v10464_v52, 1 }
 0x1f0   : > { %vm15883_vm6 = vmmov %vm15882_vm1  ;;  %5469 = vmatpush.msra.mxu1 %v6890_v18  ;;  %v2463_v18 = vsel %vm2431_vm8, %v2111_v41, 0.0  ;;  %v2112_v41 = vld [vmem:[#allocation2 + $0xc9] sm:$0xff] }
 0x1f1   : > { %vm3912_vm2 = vmand %vm15673_vm12, %vm15885_vm10  ;;  %4008 = vperm.xlu2 %7012, %v3973_v16   ;;  %vm15895_vm12 = vcmp.lt.s32.totalorder %v15884_v33, 16  ;;  %v3344_v16 = vld [vmem:[#allocation2 + $0x18] sm:$0xff] }
 0x1f2   : > { %vm10895_vm14 = vmand %vm3911_vm15, %vm15886_vm4  ;;  %3566 = vperm.xlu0 %7010, %v3471_v1   ;;  %vm3037_vm15 = vcmp.eq.s32.totalorder %v10618_v46, 1  ;;  %v10916_v9 = vpop.permute.xlu0 %3004  ;;  %vm15901_vm4 = vcmp.ge.s32.totalorder %v15900_v13, 0 }
 0x1f3   : > { %6755 = vmatmul.msk.f32.vlgmr.msrb.gmra.mxu1 %vm15883_vm6, %v3068_v8  ;;  %vm3944_vm9 = vmand %vm3912_vm2, %vm15895_vm12  ;;  %vm15899_vm2 = vcmask 130048   ;;  %v3069_v11 = vsel %vm3037_vm15, %v10325_v47, 0.0  ;;  %v15910_v47 = vld [vmem:[#allocation81_spill] sm:$0xff]  ;;  %vm15912_vm15 = vnez %v15316_v53 }
 0x1f4   : > { %6743 = vmatmul.msk.f32.gmra.mxu3 %vm15882_vm1, %v2462_v22  ;;  %v15889_v22 = vld [vmem:[#allocation78_spill] sm:$0xff]  ;;  %v10907_v57 = vpop.permute.xlu1 %3007  ;;  %v3474_v14 = vpop.permute.xlu2 %3473  ;;  %vm15911_vm8 = vcmp.ge.s32.totalorder %v15910_v47, 0 }
 0x1f5   : > { %vm15890_vm5 = vcmp.ge.s32.totalorder %v15889_v22, 0  ;;  %15894 = vst [vmem:[#allocation119_spill] sm:$0xff] %v10907_v57  ;;  %vm3568_vm1 = vcmp.eq.s32.totalorder %v3474_v14, 1  ;;  %v10918_v1 = vpop.f32.mrf.mxu1  ;;  %vm15897_vm6 = vcmp.lt.s32.totalorder %v15889_v22, 16  ;;  %v10924_v57 = vpop.f32.mrf.mxu2  ;;  %v3975_v14 = vsel %vm10895_vm14, 1, %v14972_v36 }
 0x1f6   : > { %vm10903_vm0 = vmand %vm15891_vm11, %vm15890_vm5  ;;  %v3600_v8 = vsel %vm3568_vm1, %v3344_v16, 0.0  ;;  %15896 = vst [vmem:[#allocation75_spill] sm:$0xff] %v10918_v1  ;;  %v3976_v16 = vsel %vm3944_vm9, 1, %v14972_v36  ;;  %vm15902_vm5 = vnez %v15370_v30  ;;  %vm15907_vm9 = vnez %v15350_v23  ;;  %v10949_v30 = vpop.f32.mrf.mxu3  ;;  %v15914_v23 = vld [vmem:[#allocation70_spill] sm:$0xff] }
 0x1f7   : > { %vm3942_vm10 = vmand %vm10903_vm0, %vm15897_vm6  ;;  %15898 = vst [vmem:[#allocation120_spill] sm:$0xff] %v10924_v57  ;;  %6789 = vmatmul.msk.f32.vlgmr.msrb.gmra.mxu2 %vm15899_vm2, %v3600_v8  ;;  %v15905_v8 = vld [vmem:[#allocation80_spill] sm:$0xff]  ;;  %4014 = vperm.xlu1 %7011, %v3975_v14   ;;  %vm15908_vm6 = vcmp.lt.s32.totalorder %v15900_v13, 16  ;;  %v15924_v57 = vld [vmem:[#allocation83_spill] sm:$0xff] }
 0x1f8   : > { %vm3914_vm11 = vmand %vm15902_vm5, %vm15901_vm4  ;;  %v3974_v0 = vsel %vm3942_vm10, 1, %v14972_v36  ;;  %vm15906_vm14 = vcmp.ge.s32.totalorder %v15905_v8, 0  ;;  %15909 = vst [vmem:[#allocation77_spill] sm:$0xff] %v10949_v30  ;;  %vm15913_vm10 = vcmp.lt.s32.totalorder %v15905_v8, 16  ;;  %v15944_v30 = vld [vmem:[#allocation86_spill] sm:$0xff] }
 0x1f9   : > { %vm15903_vm0 = vmmov %vm15899_vm2  ;;  %4017 = vperm.xlu2 %7012, %v3976_v16  }
 0x1fa   : > { %vm15904_vm12 = vmmov %vm15903_vm0  ;;  %4011 = vperm.xlu0 %7010, %v3974_v0   ;;  %v10963_v14 = vpop.permute.xlu0 %3013 }
 0x1fb   : > { %6756 = vmatmul.msk.f32.gmra.mxu1 %vm15904_vm12, %v3069_v11  ;;  %vm3915_vm1 = vmand %vm15907_vm9, %vm15906_vm14  ;;  %vm3038_vm12 = vcmp.eq.s32.totalorder %v15914_v23, 1 }
 0x1fc   : > { %6744 = vmatmul.msk.f32.gmra.mxu3 %vm15903_vm0, %v2463_v18  ;;  %vm3946_vm2 = vmand %vm3914_vm11, %vm15908_vm6  ;;  %v10955_v52 = vpop.permute.xlu1 %3016  ;;  %v10957_v46 = vpop.permute.xlu2 %3482  ;;  %vm2432_vm0 = vcmp.eq.s32.totalorder %v10446_v2, 1  ;;  %vm15916_vm11 = vcmp.lt.s32.totalorder %v15910_v47, 16  ;;  %v15917_v18 = vld [vmem:[#allocation82_spill] sm:$0xff]  ;;  %v15920_v2 = vld [vmem:[#allocation72_spill] sm:$0xff] }
 0x1fd   : > { %vm3913_vm4 = vmand %vm15912_vm15, %vm15911_vm8  ;;  %v10965_v16 = vpop.f32.mrf.mxu1  ;;  %v3978_v53 = vsel %vm3946_vm2, 1, %v14972_v36  ;;  %vm15918_vm9 = vcmp.ge.s32.totalorder %v15917_v18, 0  ;;  %v3070_v0 = vsel %vm3038_vm12, %v15920_v2, 0.0  ;;  %v2464_v23 = vsel %vm2432_vm0, %v2112_v41, 0.0  ;;  %v10976_v1 = vpop.f32.mrf.mxu2 }
 0x1fe   : > { %vm3947_vm5 = vmand %vm3915_vm1, %vm15913_vm10  ;;  %15915 = vst [vmem:[#allocation78_spill] sm:$0xff] %v10965_v16  ;;  %vm15919_vm1 = vnez %v15401_v61  ;;  %vm15922_vm8 = vcmask 130048   ;;  %vm15925_vm2 = vcmp.ge.s32.totalorder %v15924_v57, 0  ;;  %v15928_v61 = vld [vmem:[#allocation84_spill] sm:$0xff]  ;;  %vm15930_vm12 = vnez %v15354_v35  ;;  %v10991_v41 = vpop.f32.mrf.mxu3  ;;  %v15937_v35 = vld [vmem:[#allocation71_spill] sm:$0xff] }
 0x1ff   : > { %vm3945_vm14 = vmand %vm3913_vm4, %vm15916_vm11  ;;  %v3979_v11 = vsel %vm3947_vm5, 1, %v14972_v36  ;;  %15921 = vst [vmem:[#allocation79_spill] sm:$0xff] %v10976_v1  ;;  %vm15926_vm4 = vnez %v15386_v31  ;;  %4023 = vperm.xlu1 %7011, %v3978_v53   ;;  %vm15927_vm5 = vcmp.lt.s32.totalorder %v15917_v18, 16  ;;  %vm15929_vm0 = vcmp.ge.s32.totalorder %v15928_v61, 0  ;;  %v2113_v53 = vld [vmem:[#allocation2 + $0xd1] sm:$0xff]  ;;  %v15938_v1 = vld [vmem:[#allocation85_spill] sm:$0xff] }
 0x200   : > { %vm3917_vm6 = vmand %vm15919_vm1, %vm15918_vm9  ;;  %v3977_v16 = vsel %vm3945_vm14, 1, %v14972_v36  ;;  %15931 = vst [vmem:[#allocation80_spill] sm:$0xff] %v10991_v41  ;;  %vm15933_vm14 = vcmp.lt.s32.totalorder %v15924_v57, 16 }
 0x201   : > { %vm15923_vm15 = vmmov %vm15922_vm8  ;;  %4026 = vperm.xlu2 %7012, %v3979_v11  }
 0x202   : > { %vm3918_vm10 = vmand %vm15926_vm4, %vm15925_vm2  ;;  %4020 = vperm.xlu0 %7010, %v3977_v16   ;;  %v11000_v11 = vpop.permute.xlu0 %3022  ;;  %vm2433_vm2 = vcmp.eq.s32.totalorder %v15937_v35, 1  ;;  %vm15939_vm4 = vcmp.ge.s32.totalorder %v15938_v1, 0  ;;  %v15948_v35 = vld [vmem:[#allocation87_spill] sm:$0xff] }
 0x203   : > { %6757 = vmatmul.msk.f32.gmra.mxu1 %vm15923_vm15, %v3070_v0  ;;  %vm3949_vm11 = vmand %vm3917_vm6, %vm15927_vm5  ;;  %15934 = vst [vmem:[#allocation70_spill] sm:$0xff] %v11000_v11  ;;  %vm15936_vm6 = vcmp.lt.s32.totalorder %v15928_v61, 16  ;;  %v15975_v11 = vld [vmem:[#allocation91_spill] sm:$0xff] }
 0x204   : > { %6745 = vmatmul.msk.f32.gmra.mxu3 %vm15922_vm8, %v2464_v23  ;;  %vm3916_vm9 = vmand %vm15930_vm12, %vm15929_vm0  ;;  %v10993_v2 = vpop.permute.xlu1 %3025  ;;  %vm3039_vm8 = vcmp.eq.s32.totalorder %v10674_v27, 1  ;;  %v10998_v31 = vpop.permute.xlu2 %3491  ;;  %v3981_v16 = vsel %vm3949_vm11, 1, %v14972_v36  ;;  %v15941_v27 = vld [vmem:[#allocation122_spill] sm:$0xff]  ;;  %vm15942_vm0 = vcmask 130048  }
 0x205   : > { %15932 = vst [vmem:[#allocation81_spill] sm:$0xff] %v10993_v2  ;;  %vm3950_vm1 = vmand %vm3918_vm10, %vm15933_vm14  ;;  %v11002_v0 = vpop.f32.mrf.mxu1  ;;  %vm15940_vm10 = vnez %v15432_v62  ;;  %v3071_v41 = vsel %vm3039_vm8, %v15941_v27, 0.0  ;;  %v2465_v2 = vsel %vm2433_vm2, %v2113_v53, 0.0  ;;  %vm15946_vm14 = vcmp.lt.s32.totalorder %v15938_v1, 16  ;;  %v11023_v62 = vpop.f32.mrf.mxu2  ;;  %v2114_v53 = vld [vmem:[#allocation2 + $0xd9] sm:$0xff] }
 0x206   : > { %15935 = vst [vmem:[#allocation82_spill] sm:$0xff] %v11002_v0  ;;  %vm3948_vm15 = vmand %vm3916_vm9, %vm15936_vm6  ;;  %v3982_v23 = vsel %vm3950_vm1, 1, %v14972_v36  ;;  %vm15945_vm9 = vcmp.ge.s32.totalorder %v15944_v30, 0  ;;  %vm15949_vm8 = vcmp.ge.s32.totalorder %v15948_v35, 0  ;;  %vm15950_vm6 = vnez %v15390_v63 }
 0x207   : > { %vm3920_vm5 = vmand %vm15940_vm10, %vm15939_vm4  ;;  %v3980_v0 = vsel %vm3948_vm15, 1, %v14972_v36  ;;  %4032 = vperm.xlu1 %7011, %v3981_v16   ;;  %15947 = vst [vmem:[#allocation72_spill] sm:$0xff] %v11023_v62  ;;  %vm15953_vm15 = vcmp.lt.s32.totalorder %v15944_v30, 16  ;;  %vm2434_vm4 = vcmp.eq.s32.totalorder %v10518_v7, 1  ;;  %vm3040_vm10 = vcmp.eq.s32.totalorder %v10660_v20, 1  ;;  %v15958_v20 = vld [vmem:[#allocation88_spill] sm:$0xff] }
 0x208   : > { %vm15943_vm12 = vmmov %vm15942_vm0  ;;  %v3072_v27 = vsel %vm3040_vm10, %v10487_v55, 0.0  ;;  %v2466_v62 = vsel %vm2434_vm4, %v2114_v53, 0.0  ;;  %v15963_v55 = vld [vmem:[#allocation90_spill] sm:$0xff]  ;;  %vm15967_vm4 = vcmp.lt.s32.totalorder %v15958_v20, 16 }
 0x209   : > { %vm3921_vm11 = vmand %vm15747_vm13, %vm15945_vm9  ;;  %4035 = vperm.xlu2 %7012, %v3982_v23  }
 0x20a   : > { %vm3952_vm1 = vmand %vm3920_vm5, %vm15946_vm14  ;;  %4029 = vperm.xlu0 %7010, %v3980_v0   ;;  %v11039_v16 = vpop.permute.xlu0 %3031  ;;  %vm15956_vm5 = vcmp.lt.s32.totalorder %v15948_v35, 16  ;;  %vm15960_vm14 = vnez %v15464_v43  ;;  %v15968_v43 = vld [vmem:[#allocation73_spill] sm:$0xff] }
 0x20b   : > { %6758 = vmatmul.msk.f32.gmra.mxu1 %vm15943_vm12, %v3071_v41  ;;  %vm3919_vm2 = vmand %vm15950_vm6, %vm15949_vm8  ;;  %v11029_v41 = vpop.f32.mrf.mxu3  ;;  %15954 = vst [vmem:[#allocation71_spill] sm:$0xff] %v11039_v16  ;;  %v3984_v63 = vsel %vm3952_vm1, 1, %v14972_v36  ;;  %v6821_v16 = vld [vmem:[%s14278_s6 + $0x50] sm:$0xff] }
 0x20c   : > { %6746 = vmatmul.msk.f32.gmra.mxu3 %vm15942_vm0, %v2465_v2  ;;  %15951 = vst [vmem:[#allocation83_spill] sm:$0xff] %v11029_v41  ;;  %v11031_v2 = vpop.permute.xlu1 %3034  ;;  %vm3953_vm13 = vmand %vm3921_vm11, %vm15953_vm15  ;;  %v11037_v37 = vpop.permute.xlu2 %3500  ;;  %vm15959_vm11 = vcmp.ge.s32.totalorder %v15958_v20, 0  ;;  %vm15965_vm15 = vnez %v15419_v28 }
 0x20d   : > { %15952 = vst [vmem:[#allocation84_spill] sm:$0xff] %v11031_v2  ;;  %v11041_v23 = vpop.f32.mrf.mxu1  ;;  %vm3951_vm0 = vmand %vm3919_vm2, %vm15956_vm5  ;;  %v3985_v0 = vsel %vm3953_vm13, 1, %v14972_v36  ;;  %vm15964_vm2 = vcmp.ge.s32.totalorder %v15963_v55, 0  ;;  %vm2435_vm5 = vcmp.eq.s32.totalorder %v10504_v15, 1  ;;  %4278 = vmatpush.msrb.mxu3 %v6821_v16  ;;  %v15990_v16 = vld [vmem:[#allocation56_spill] sm:$0xff] }
 0x20e   : > { %15955 = vst [vmem:[#allocation85_spill] sm:$0xff] %v11041_v23  ;;  %vm15957_vm9 = vmmov %vm15943_vm12  ;;  %v3983_v7 = vsel %vm3951_vm0, 1, %v14972_v36  ;;  %v15961_v23 = vld [vmem:[#allocation89_spill] sm:$0xff]  ;;  %vm3041_vm0 = vcmp.eq.s32.totalorder %v15968_v43, 1 }
 0x20f   : > { %vm3923_vm8 = vmand %vm15960_vm14, %vm15959_vm11  ;;  %4041 = vperm.xlu1 %7011, %v3984_v63   ;;  %vm15962_vm1 = vcmp.ge.s32.totalorder %v15961_v23, 0  ;;  %v11069_v63 = vpop.f32.mrf.mxu2 }
 0x210   : > { %vm3924_vm6 = vmand %vm15764_vm3, %vm15962_vm1  ;;  %15969 = vst [vmem:[#allocation86_spill] sm:$0xff] %v11069_v63  ;;  %vm15970_vm3 = vcmp.lt.s32.totalorder %v15961_v23, 16 }
 0x211   : > { %4044 = vperm.xlu2 %7012, %v3985_v0   ;;  %vm3922_vm13 = vmand %vm15965_vm15, %vm15964_vm2  ;;  %v2115_v0 = vld [vmem:[#allocation2 + $0xe1] sm:$0xff]  ;;  %vm15977_vm2 = vnez %v15492_v58 }
 0x212   : > { %4038 = vperm.xlu0 %7010, %v3983_v7   ;;  %vm3955_vm10 = vmand %vm3923_vm8, %vm15967_vm4  ;;  %v3477_v28 = vpop.permute.xlu0 %3476  ;;  %v2721_v7 = vld [vmem:[#allocation2 + $0x3f] sm:$0xff]  ;;  %v2467_v63 = vsel %vm2435_vm5, %v2115_v0, 0.0  ;;  %vm15973_vm8 = vcmask 130048  }
 0x213   : > { %6759 = vmatmul.msk.f32.gmra.mxu1 %vm15957_vm9, %v3072_v27  ;;  %vm15972_vm9 = vcmp.lt.s32.totalorder %v15963_v55, 16  ;;  %vm3569_vm14 = vcmp.eq.s32.totalorder %v3477_v28, 1  ;;  %v3987_v15 = vsel %vm3955_vm10, 1, %v14972_v36  ;;  %v3073_v43 = vsel %vm3041_vm0, %v2721_v7, 0.0  ;;  %vm15974_vm1 = vmmov %vm15973_vm8  ;;  %v15982_v0 = vld [vmem:[#allocation93_spill] sm:$0xff] }
 0x214   : > { %6747 = vmatmul.msk.f32.gmra.mxu3 %vm15943_vm12, %v2466_v62  ;;  %v11063_v62 = vpop.f32.mrf.mxu3  ;;  %v3480_v53 = vpop.permute.xlu1 %3479  ;;  %vm3956_vm12 = vmand %vm3924_vm6, %vm15970_vm3  ;;  %vm15976_vm6 = vcmp.ge.s32.totalorder %v15975_v11, 0  ;;  %vm15981_vm10 = vnez %v15478_v12  ;;  %vm15983_vm0 = vcmp.ge.s32.totalorder %v15982_v0, 0  ;;  %vm15984_vm3 = vnez %v15452_v19  ;;  %v2116_v12 = vld [vmem:[#allocation2 + $0xe9] sm:$0xff] }
 0x215   : > { %15966 = vst [vmem:[#allocation122_spill] sm:$0xff] %v11063_v62  ;;  %v11071_v51 = vpop.permute.xlu2 %3509  ;;  %v11075_v27 = vpop.f32.mrf.mxu1  ;;  %vm3954_vm11 = vmand %vm3922_vm13, %vm15972_vm9  ;;  %v3345_v62 = vld [vmem:[#allocation2 + $0x20] sm:$0xff]  ;;  %v3988_v2 = vsel %vm3956_vm12, 1, %v14972_v36  ;;  %vm15986_vm9 = vcmp.lt.s32.totalorder %v15975_v11, 16 }
 0x216   : > { %15971 = vst [vmem:[#allocation87_spill] sm:$0xff] %v11075_v27  ;;  %v3601_v41 = vsel %vm3569_vm14, %v3345_v62, 0.0  ;;  %v3986_v27 = vsel %vm3954_vm11, 1, %v14972_v36  ;;  %vm3926_vm15 = vmand %vm15977_vm2, %vm15976_vm6  ;;  %v15979_v62 = vld [vmem:[#allocation92_spill] sm:$0xff]  ;;  %vm3042_vm14 = vcmp.eq.s32.totalorder %v10715_v54, 1  ;;  %vm3570_vm6 = vcmp.eq.s32.totalorder %v3480_v53, 1 }
 0x217   : > { %vm15978_vm13 = vmmov %vm15974_vm1  ;;  %4050 = vperm.xlu1 %7011, %v3987_v15   ;;  %vm15980_vm4 = vcmp.ge.s32.totalorder %v15979_v62, 0  ;;  %vm15989_vm2 = vcmp.lt.s32.totalorder %v15982_v0, 16  ;;  %v2722_v28 = vld [vmem:[#allocation2 + $0x47] sm:$0xff] }
 0x218   : > { %6790 = vmatmul.msk.f32.gmra.mxu2 %vm15978_vm13, %v3601_v41  ;;  %vm3927_vm5 = vmand %vm15981_vm10, %vm15980_vm4  ;;  %vm2436_vm4 = vcmp.eq.s32.totalorder %v15990_v16, 1  ;;  %v3074_v7 = vsel %vm3042_vm14, %v2722_v28, 0.0  ;;  %v3346_v15 = vld [vmem:[#allocation2 + $0x28] sm:$0xff]  ;;  %v15998_v16 = vld [vmem:[#allocation95_spill] sm:$0xff] }
 0x219   : > { %4053 = vperm.xlu2 %7012, %v3988_v2   ;;  %vm3925_vm12 = vmand %vm15984_vm3, %vm15983_vm0  ;;  %v3602_v53 = vsel %vm3570_vm6, %v3346_v15, 0.0  ;;  %vm15996_vm0 = vnez %v15524_v4  ;;  %v3347_v15 = vld [vmem:[#allocation2 + $0x30] sm:$0xff] }
 0x21a   : > { %4047 = vperm.xlu0 %7010, %v3986_v27   ;;  %vm3958_vm11 = vmand %vm3926_vm15, %vm15986_vm9  ;;  %v11111_v19 = vpop.permute.xlu0 %3485  ;;  %v11118_v27 = vpop.f32.mrf.mxu2  ;;  %vm15992_vm15 = vcmask 130048   ;;  %vm15999_vm9 = vcmp.ge.s32.totalorder %v15998_v16, 0 }
 0x21b   : > { %6760 = vmatmul.msk.f32.gmra.mxu1 %vm15974_vm1, %v3073_v43  ;;  %vm3957_vm13 = vmand %vm3925_vm12, %vm15989_vm2  ;;  %15991 = vst [vmem:[#allocation90_spill] sm:$0xff] %v11118_v27  ;;  %v3990_v54 = vsel %vm3958_vm11, 1, %v14972_v36  ;;  %v2468_v43 = vsel %vm2436_vm4, %v2116_v12, 0.0  ;;  %vm16000_vm11 = vnez %v15804_v10  ;;  %v16001_v12 = vld [vmem:[#allocation96_spill] sm:$0xff]  ;;  %vm3043_vm4 = vcmp.eq.s32.totalorder %v10703_v6, 1 }
 0x21c   : > { %6748 = vmatmul.msk.f32.gmra.mxu3 %vm15973_vm8, %v2467_v63  ;;  %v11100_v63 = vpop.f32.mrf.mxu3  ;;  %v11102_v58 = vpop.permute.xlu1 %3488  ;;  %vm15987_vm8 = vcmp.lt.s32.totalorder %v15979_v62, 16  ;;  %vm15993_vm10 = vmmov %vm15992_vm15  ;;  %v15994_v62 = vld [vmem:[#allocation94_spill] sm:$0xff]  ;;  %v2117_v10 = vld [vmem:[#allocation2 + $0xf1] sm:$0xff] }
 0x21d   : > { %15985 = vst [vmem:[#allocation88_spill] sm:$0xff] %v11100_v63  ;;  %v11107_v41 = vpop.permute.xlu2 %3518  ;;  %vm3959_vm1 = vmand %vm3927_vm5, %vm15987_vm8  ;;  %v11113_v2 = vpop.f32.mrf.mxu1  ;;  %vm15995_vm5 = vcmp.ge.s32.totalorder %v15994_v62, 0  ;;  %vm16002_vm8 = vcmp.ge.s32.totalorder %v16001_v12, 0  ;;  %vm16005_vm2 = vcmp.lt.s32.totalorder %v15994_v62, 16 }
 0x21e   : > { %15988 = vst [vmem:[#allocation89_spill] sm:$0xff] %v11113_v2  ;;  %v3991_v63 = vsel %vm3959_vm1, 1, %v14972_v36  ;;  %v3989_v2 = vsel %vm3957_vm13, 1, %v14972_v36  ;;  %vm3929_vm3 = vmand %vm15996_vm0, %vm15995_vm5  ;;  %vm16003_vm1 = vnez %v15481_v21  ;;  %vm3571_vm5 = vcmp.eq.s32.totalorder %v10957_v46, 1 }
 0x21f   : > { %vm15997_vm12 = vmmov %vm15993_vm10  ;;  %4059 = vperm.xlu1 %7011, %v3990_v54   ;;  %vm16008_vm0 = vcmp.lt.s32.totalorder %v16001_v12, 16  ;;  %v3603_v46 = vsel %vm3571_vm5, %v3347_v15, 0.0 }
 0x220   : > { %6791 = vmatmul.msk.f32.gmra.mxu2 %vm15997_vm12, %v3602_v53  ;;  %vm3930_vm14 = vmand %vm16000_vm11, %vm15999_vm9  ;;  %vm2437_vm9 = vcmp.eq.s32.totalorder %v10582_v45, 1  ;;  %v16016_v45 = vld [vmem:[#allocation98_spill] sm:$0xff] }
 0x221   : > { %4062 = vperm.xlu2 %7012, %v3991_v63   ;;  %vm3928_vm6 = vmand %vm16003_vm1, %vm16002_vm8  ;;  %vm16014_vm8 = vnez %v15557_v25 }
 0x222   : > { %4056 = vperm.xlu0 %7010, %v3989_v2   ;;  %vm3961_vm13 = vmand %vm3929_vm3, %vm16005_vm2  ;;  %v11150_v21 = vpop.permute.xlu0 %3494  ;;  %v2723_v2 = vld [vmem:[#allocation2 + $0x4f] sm:$0xff]  ;;  %v11159_v27 = vpop.f32.mrf.mxu2  ;;  %vm16010_vm3 = vcmask 130048   ;;  %vm16017_vm2 = vcmp.ge.s32.totalorder %v16016_v45, 0 }
 0x223   : > { %6761 = vmatmul.msk.f32.gmra.mxu1 %vm15993_vm10, %v3074_v7  ;;  %vm3960_vm12 = vmand %vm3928_vm6, %vm16008_vm0  ;;  %v3993_v6 = vsel %vm3961_vm13, 1, %v14972_v36  ;;  %v3075_v54 = vsel %vm3043_vm4, %v2723_v2, 0.0  ;;  %16009 = vst [vmem:[#allocation93_spill] sm:$0xff] %v11159_v27  ;;  %vm16018_vm13 = vnez %v15827_v3  ;;  %v2118_v3 = vld [vmem:[#allocation2 + $0xf9] sm:$0xff] }
 0x224   : > { %6749 = vmatmul.msk.f32.gmra.mxu3 %vm15992_vm15, %v2468_v43  ;;  %v11138_v28 = vpop.f32.mrf.mxu3  ;;  %v11140_v7 = vpop.permute.xlu1 %3497  ;;  %vm16006_vm15 = vcmp.lt.s32.totalorder %v15998_v16, 16  ;;  %v2469_v43 = vsel %vm2437_vm9, %v2117_v10, 0.0  ;;  %vm16011_vm11 = vmmov %vm16010_vm3  ;;  %v16019_v10 = vld [vmem:[#allocation99_spill] sm:$0xff]  ;;  %vm3044_vm9 = vcmp.eq.s32.totalorder %v10575_v56, 1  ;;  %v16027_v27 = vld [vmem:[#allocation100_spill] sm:$0xff] }
 0x225   : > { %16004 = vst [vmem:[#allocation73_spill] sm:$0xff] %v11138_v28  ;;  %v11145_v4 = vpop.permute.xlu2 %3527  ;;  %vm3962_vm10 = vmand %vm3930_vm14, %vm16006_vm15  ;;  %v11152_v63 = vpop.f32.mrf.mxu1  ;;  %v16012_v28 = vld [vmem:[#allocation97_spill] sm:$0xff]  ;;  %vm16020_vm15 = vcmp.ge.s32.totalorder %v16019_v10, 0  ;;  %v2724_v56 = vld [vmem:[#allocation2 + $0x57] sm:$0xff] }
 0x226   : > { %16007 = vst [vmem:[#allocation91_spill] sm:$0xff] %v11152_v63  ;;  %v3994_v53 = vsel %vm3962_vm10, 1, %v14972_v36  ;;  %v3992_v63 = vsel %vm3960_vm12, 1, %v14972_v36  ;;  %vm16013_vm14 = vcmp.ge.s32.totalorder %v16012_v28, 0  ;;  %vm16015_vm6 = vmmov %vm16010_vm3  ;;  %vm16021_vm10 = vnez %v15793_v34  ;;  %v16057_v16 = vld [vmem:[#allocation104_spill] sm:$0xff] }
 0x227   : > { %vm3932_vm1 = vmand %vm16014_vm8, %vm16013_vm14  ;;  %4068 = vperm.xlu1 %7011, %v3993_v6   ;;  %vm16022_vm0 = vcmp.lt.s32.totalorder %v16012_v28, 16  ;;  %vm3572_vm14 = vcmp.eq.s32.totalorder %v11111_v19, 1  ;;  %vm16026_vm8 = vcmp.lt.s32.totalorder %v16019_v10, 16  ;;  %v3076_v15 = vsel %vm3044_vm9, %v2724_v56, 0.0  ;;  %v3349_v28 = vld [vmem:[#allocation2 + $0x40] sm:$0xff] }
 0x228   : > { %6792 = vmatmul.msk.f32.gmra.mxu2 %vm16015_vm6, %v3603_v46  ;;  %vm3933_vm4 = vmand %vm16018_vm13, %vm16017_vm2  ;;  %vm16028_vm2 = vcmp.ge.s32.totalorder %v16027_v27, 0  ;;  %vm16029_vm13 = vnez %v15590_v59 }
 0x229   : > { %4071 = vperm.xlu2 %7012, %v3994_v53   ;;  %vm3931_vm5 = vmand %vm16021_vm10, %vm16020_vm15  ;;  %vm16030_vm15 = vcmask 130048  }
 0x22a   : > { %4065 = vperm.xlu0 %7010, %v3992_v63   ;;  %vm3964_vm12 = vmand %vm3932_vm1, %vm16022_vm0  ;;  %v11189_v34 = vpop.permute.xlu0 %3503  ;;  %vm2438_vm1 = vcmp.eq.s32.totalorder %v10569_v5, 1  ;;  %vm16034_vm0 = vnez %v15851_v29  ;;  %v11214_v59 = vpop.f32.mrf.mxu2 }
 0x22b   : > { %6762 = vmatmul.msk.f32.gmra.mxu1 %vm16011_vm11, %v3075_v54  ;;  %vm3963_vm6 = vmand %vm3931_vm5, %vm16026_vm8  ;;  %v3996_v54 = vsel %vm3964_vm12, 1, %v14972_v36  ;;  %v2470_v53 = vsel %vm2438_vm1, %v2118_v3, 0.0  ;;  %v16036_v3 = vld [vmem:[#allocation102_spill] sm:$0xff]  ;;  %16039 = vst [vmem:[#allocation96_spill] sm:$0xff] %v11214_v59  ;;  %v16050_v59 = vld [vmem:[#allocation103_spill] sm:$0xff] }
 0x22c   : > { %6750 = vmatmul.msk.f32.gmra.mxu3 %vm16010_vm3, %v2469_v43  ;;  %v11177_v2 = vpop.permute.xlu1 %3506  ;;  %v11182_v25 = vpop.f32.mrf.mxu3  ;;  %vm16024_vm3 = vcmp.lt.s32.totalorder %v16016_v45, 16  ;;  %v3348_v43 = vld [vmem:[#allocation2 + $0x38] sm:$0xff]  ;;  %vm16031_vm10 = vmmov %vm16030_vm15  ;;  %v3995_v5 = vsel %vm3963_vm6, 1, %v14972_v36 }
 0x22d   : > { %16023 = vst [vmem:[#allocation56_spill] sm:$0xff] %v11182_v25  ;;  %v11184_v6 = vpop.permute.xlu2 %3536  ;;  %vm3965_vm11 = vmand %vm3933_vm4, %vm16024_vm3  ;;  %v11191_v63 = vpop.f32.mrf.mxu1  ;;  %v3604_v19 = vsel %vm3572_vm14, %v3348_v43, 0.0  ;;  %vm16037_vm3 = vcmp.ge.s32.totalorder %v16036_v3, 0  ;;  %vm16040_vm14 = vcmp.lt.s32.totalorder %v16027_v27, 16  ;;  %v2725_v27 = vld [vmem:[#allocation2 + $0x5f] sm:$0xff]  ;;  %v2726_v43 = vld [vmem:[#allocation2 + $0x67] sm:$0xff] }
 0x22e   : > { %16025 = vst [vmem:[#allocation94_spill] sm:$0xff] %v11191_v63  ;;  %v3997_v46 = vsel %vm3965_vm11, 1, %v14972_v36  ;;  %vm3935_vm4 = vmand %vm16029_vm13, %vm16028_vm2  ;;  %v16032_v63 = vld [vmem:[#allocation101_spill] sm:$0xff]  ;;  %vm16038_vm11 = vnez %v15814_v49  ;;  %vm3045_vm13 = vcmp.eq.s32.totalorder %v10754_v24, 1 }
 0x22f   : > { %vm16033_vm5 = vcmp.ge.s32.totalorder %v16032_v63, 0  ;;  %vm16035_vm9 = vmmov %vm16031_vm10  ;;  %4077 = vperm.xlu1 %7011, %v3996_v54   ;;  %vm16043_vm6 = vcmp.lt.s32.totalorder %v16032_v63, 16  ;;  %v16055_v63 = vld [vmem:[#allocation69_spill] sm:$0xff] }
 0x230   : > { %vm3936_vm12 = vmand %vm16034_vm0, %vm16033_vm5  ;;  %6793 = vmatmul.msk.f32.gmra.mxu2 %vm16035_vm9, %v3604_v19  ;;  %vm16051_vm5 = vcmp.ge.s32.totalorder %v16050_v59, 0  ;;  %vm16052_vm0 = vnez %v15619_v26  ;;  %vm2439_vm9 = vcmp.eq.s32.totalorder %v16055_v63, 1  ;;  %v3077_v26 = vsel %vm3045_vm13, %v2725_v27, 0.0  ;;  %v16087_v27 = vld [vmem:[#allocation9_spill] sm:$0xff] }
 0x231   : > { %vm3934_vm8 = vmand %vm16038_vm11, %vm16037_vm3  ;;  %4080 = vperm.xlu2 %7012, %v3997_v46   ;;  %vm16058_vm3 = vcmp.ge.s32.totalorder %v16057_v16, 0 }
 0x232   : > { %vm11218_vm1 = vmand %vm3935_vm4, %vm16040_vm14  ;;  %4074 = vperm.xlu0 %7010, %v3995_v5  }
 0x233   : > { %6763 = vmatmul.msk.f32.gmra.mxu1 %vm16031_vm10, %v3076_v15  ;;  %vm11226_vm2 = vmand %vm3936_vm12, %vm16043_vm6  ;;  %v2119_v15 = vld [vmem:[#allocation2 + $0x101] sm:$0xff]  ;;  %vm3573_vm10 = vcmp.eq.s32.totalorder %v11102_v58, 1  ;;  %v11243_v19 = vpop.permute.xlu0 %3512  ;;  %v7084_v58 = vld [vmem:[%s14274_s2 + $0x10] sm:$0xff] }
 0x234   : > { %6751 = vmatmul.msk.f32.gmra.mxu3 %vm16030_vm15, %v2470_v53  ;;  %v11222_v29 = vpop.permute.xlu1 %3515  ;;  %vm16046_vm15 = vcmp.lt.s32.totalorder %v16036_v3, 16  ;;  %v7082_v53 = vld [vmem:[%s14274_s2 + $0x8] sm:$0xff]  ;;  %vm11251_vm12 = vmand %vm16052_vm0, %vm16051_vm5  ;;  %v11256_v3 = vpop.f32.mrf.mxu3  ;;  %v2471_v10 = vsel %vm2439_vm9, %v2119_v15, 0.0  ;;  %v4000_v63 = vsel %vm11226_vm2, 1, %v14972_v36  ;;  %v3605_v56 = vsel %vm3573_vm10, %v3349_v28, 0.0 }
 0x235   : > { %v11231_v49 = vpop.permute.xlu2 %3545  ;;  %vm11235_vm4 = vmand %vm3934_vm8, %vm16046_vm15  ;;  %v4441_v46 = vadd.s32 1, %v7082_v53  ;;  %16056 = vst [vmem:[#allocation69_spill] sm:$0xff] %v11256_v3  ;;  %v3999_v53 = vsel %vm11218_vm1, 1, %v14972_v36  ;;  %vm16059_vm8 = vcmask 130048   ;;  %vm16061_vm1 = vcmp.lt.s32.totalorder %v16050_v59, 16  ;;  %v16135_v3 = vld [vmem:[#allocation11_spill] sm:$0xff] }
 0x236   : > { %vm3939_vm11 = vmand %vm15871_vm7, %vm16058_vm3  ;;  %v3998_v24 = vsel %vm11235_vm4, 1, %v14972_v36  ;;  %vm16066_vm15 = vcmp.ge.s32.totalorder %v16065_v38, 0  ;;  %vm16067_vm10 = vnez %v15574_v48  ;;  %vm16068_vm4 = vcmp.lt.s32.totalorder %v16057_v16, 16  ;;  %v11306_v48 = vpop.f32.mrf.mxu2  ;;  %v3354_v16 = vld [vmem:[#allocation2 + $0x68] sm:$0xff] }
 0x237   : > { %v11245_v5 = vpop.f32.mrf.mxu1  ;;  %vm16060_vm14 = vmmov %vm16059_vm8  ;;  %vm4473_vm7 = vcmp.ge.s32.totalorder %v4441_v46, 0  ;;  %vm4505_vm2 = vcmp.lt.s32.totalorder %v4441_v46, 16  ;;  %4086 = vperm.xlu1 %7011, %v3999_v53   ;;  %16073 = vst [vmem:[#allocation135_spill] sm:$0xff] %v11306_v48  ;;  %v16078_v46 = vld [vmem:[#allocation14_spill] sm:$0xff] }
 0x238   : > { %16049 = vst [vmem:[#allocation134_spill] sm:$0xff] %v11245_v5  ;;  %v7083_v5 = vld [vmem:[%s14274_s2] sm:$0xff]  ;;  %vm11284_vm6 = vmand %vm11251_vm12, %vm16061_vm1  ;;  %vm3574_vm1 = vcmp.eq.s32.totalorder %v10998_v31, 1  ;;  %v3350_v31 = vld [vmem:[#allocation2 + $0x48] sm:$0xff] }
 0x239   : > { %v4440_v45 = vadd.s32 1, %v7083_v5  ;;  %vm16064_vm13 = vmmov %vm16059_vm8  ;;  %4089 = vperm.xlu2 %7012, %v4000_v63  }
 0x23a   : > { %6794 = vmatmul.msk.f32.gmra.mxu2 %vm16064_vm13, %v3605_v56  ;;  %vm3937_vm5 = vmand %vm16067_vm10, %vm16066_vm15  ;;  %4083 = vperm.xlu0 %7010, %v3998_v24   ;;  %vm16081_vm15 = vcmask 130048  }
 0x23b   : > { %6764 = vmatmul.msk.f32.gmra.mxu1 %vm16060_vm14, %v3077_v26  ;;  %vm11295_vm0 = vmand %vm3939_vm11, %vm16068_vm4  ;;  %vm4472_vm12 = vcmp.ge.s32.totalorder %v4440_v45, 0  ;;  %vm4504_vm9 = vcmp.lt.s32.totalorder %v4440_v45, 16  ;;  %vm16074_vm11 = vcmp.lt.s32.totalorder %v16065_v38, 16  ;;  %v3606_v26 = vsel %vm3574_vm1, %v3350_v31, 0.0 }
 0x23c   : > { %6752 = vmatmul.msk.f32.gmra.mxu3 %vm16059_vm8, %v2471_v10  ;;  %v11299_v28 = vpop.permute.xlu1 %3524  ;;  %vm11301_vm3 = vmand %vm4473_vm7, %vm4505_vm2  ;;  %vm3046_vm8 = vcmp.eq.s32.totalorder %v10742_v32, 1  ;;  %v11313_v54 = vpop.permute.xlu0 %3521  ;;  %v4002_v32 = vsel %vm11284_vm6, 1, %v14972_v36  ;;  %vm16079_vm7 = vcmp.ge.s32.totalorder %v16078_v46, 0  ;;  %v4003_v53 = vsel %vm11295_vm0, 1, %v14972_v36  ;;  %v7085_v10 = vld [vmem:[%s14274_s2 + $0x18] sm:$0xff] }
 0x23d   : > { %v11308_v25 = vpop.permute.xlu2 %3554  ;;  %vm3969_vm14 = vmand %vm3937_vm5, %vm16074_vm11  ;;  %v3078_v5 = vsel %vm3046_vm8, %v2726_v43, 0.0  ;;  %vm16082_vm6 = vcmp.ge.s32.totalorder %v15859_v39, 0  ;;  %vm16084_vm4 = vcmp.lt.s32.totalorder %v16078_v46, 16  ;;  %vm16088_vm0 = vcmp.ge.s32.totalorder %v16087_v27, 0 }
 0x23e   : > { %vm11317_vm13 = vmand %vm4472_vm12, %vm4504_vm9  ;;  %v11331_v63 = vpop.f32.mrf.mxu3  ;;  %v4001_v56 = vsel %vm3969_vm14, 1, %v14972_v36  ;;  %v4442_v43 = vadd.s32 1, %v7084_v58  ;;  %vm16089_vm8 = vcmp.lt.s32.totalorder %v15859_v39, 16  ;;  %vm3047_vm14 = vcmp.eq.s32.totalorder %v10624_v17, 1  ;;  %v2727_v39 = vld [vmem:[#allocation2 + $0x6f] sm:$0xff] }
 0x23f   : > { %vm4569_vm2 = vmand %vm11301_vm3, %vm16079_vm7  ;;  %16080 = vst [vmem:[#allocation14_spill] sm:$0xff] %v11331_v63  ;;  %4095 = vperm.xlu1 %7011, %v4002_v32   ;;  %vm16090_vm1 = vcmp.ge.s32.totalorder %v15864_v60, 0 }
 0x240   : > { %v11315_v45 = vpop.f32.mrf.mxu1  ;;  %vm5632_vm10 = vmand %vm11317_vm13, %vm16082_vm6 }
 0x241   : > { %16075 = vst [vmem:[#allocation136_spill] sm:$0xff] %v11315_v45  ;;  %vm16083_vm5 = vmmov %vm16081_vm15  ;;  %4098 = vperm.xlu2 %7012, %v4003_v53   ;;  %v11371_v53 = vpop.f32.mrf.mxu2  ;;  %v16099_v45 = vld [vmem:[#allocation13_spill] sm:$0xff] }
 0x242   : > { %6795 = vmatmul.msk.f32.gmra.mxu2 %vm16083_vm5, %v3606_v26  ;;  %vm11342_vm12 = vmand %vm4569_vm2, %vm16084_vm4  ;;  %4092 = vperm.xlu0 %7010, %v4001_v56   ;;  %vm3575_vm2 = vcmp.eq.s32.totalorder %v11150_v21, 1  ;;  %16093 = vst [vmem:[#allocation137_spill] sm:$0xff] %v11371_v53  ;;  %vm4506_vm5 = vcmp.lt.s32.totalorder %v4442_v43, 16  ;;  %v3079_v26 = vsel %vm3047_vm14, %v2727_v39, 0.0  ;;  %v3351_v56 = vld [vmem:[#allocation2 + $0x50] sm:$0xff]  ;;  %vm16094_vm4 = vcmp.lt.s32.totalorder %v15864_v60, 16 }
 0x243   : > { %6765 = vmatmul.msk.f32.gmra.mxu1 %vm16081_vm15, %v3078_v5  ;;  %vm4568_vm9 = vmand %vm11317_vm13, %vm16088_vm0  ;;  %vm16092_vm15 = vcmp.lt.s32.totalorder %v16087_v27, 16  ;;  %v4633_v17 = vsel %vm11342_vm12, 1, %v14972_v36  ;;  %v11383_v27 = vpop.f32.mrf.mxu0  ;;  %vm16100_vm12 = vcmp.ge.s32.totalorder %v16099_v45, 0  ;;  %v16105_v39 = vld [vmem:[#allocation7_spill] sm:$0xff]  ;;  %v3352_v53 = vld [vmem:[#allocation2 + $0x58] sm:$0xff] }
 0x244   : > { %v11353_v5 = vpop.permute.xlu1 %3533  ;;  %vm5664_vm11 = vmand %vm5632_vm10, %vm16089_vm8  ;;  %v11365_v46 = vpop.permute.xlu0 %3530  ;;  %vm4474_vm10 = vcmp.ge.s32.totalorder %v4442_v43, 0  ;;  %16097 = vst [vmem:[#allocation138_spill] sm:$0xff] %v11383_v27 }
 0x245   : > { %v11358_v32 = vpop.permute.xlu2 %3563  ;;  %vm5633_vm7 = vmand %vm11301_vm3, %vm16090_vm1  ;;  %v5696_v21 = vsel %vm5664_vm11, 1, %v14972_v36  ;;  %vm16106_vm1 = vcmp.ge.s32.totalorder %v16105_v39, 0 }
 0x246   : > { %vm4600_vm6 = vmand %vm4568_vm9, %vm16092_vm15  ;;  %vm16098_vm9 = vcmask 130048  }
 0x247   : > { %vm11379_vm0 = vmand %vm5633_vm7, %vm16094_vm4  ;;  %v4632_v24 = vsel %vm4600_vm6, 1, %v14972_v36  ;;  %4668 = vperm.xlu1 %7011, %v4633_v17   ;;  %v11396_v43 = vpop.f32.mrf.mxu3  ;;  %v16108_v17 = vld [vmem:[#allocation117_spill] sm:$0xff] }
 0x248   : > { %v11367_v31 = vpop.f32.mrf.mxu1  ;;  %vm5101_vm8 = vmand %vm11301_vm3, %vm16100_vm12  ;;  %16104 = vst [vmem:[#allocation13_spill] sm:$0xff] %v11396_v43  ;;  %vm16107_vm3 = vcmp.lt.s32.totalorder %v16099_v45, 16  ;;  %vm3048_vm15 = vcmp.eq.s32.totalorder %v16108_v17, 1  ;;  %v2728_v45 = vld [vmem:[#allocation2 + $0x77] sm:$0xff]  ;;  %v16118_v43 = vld [vmem:[#allocation5_spill] sm:$0xff] }
 0x249   : > { %16091 = vst [vmem:[#allocation9_spill] sm:$0xff] %v11367_v31  ;;  %v3607_v31 = vsel %vm3575_vm2, %v3351_v56, 0.0  ;;  %vm16101_vm14 = vmmov %vm16098_vm9  ;;  %5729 = vperm.xlu2 %7012, %v5696_v21   ;;  %v16109_v21 = vld [vmem:[#allocation6_spill] sm:$0xff]  ;;  %v3080_v17 = vsel %vm3048_vm15, %v2728_v45, 0.0  ;;  %vm16123_vm15 = vcmp.ge.s32.totalorder %v15889_v22, 0 }
 0x24a   : > { %6796 = vmatmul.msk.f32.gmra.mxu2 %vm16101_vm14, %v3607_v31  ;;  %vm11392_vm11 = vmand %vm4474_vm10, %vm4506_vm5  ;;  %4665 = vperm.xlu0 %7010, %v4632_v24   ;;  %vm16110_vm6 = vcmp.ge.s32.totalorder %v16109_v21, 0  ;;  %vm3576_vm10 = vcmp.eq.s32.totalorder %v11140_v7, 1  ;;  %vm16112_vm5 = vcmp.lt.s32.totalorder %v16105_v39, 16  ;;  %v5697_v24 = vsel %vm11379_vm0, 1, %v14972_v36 }
 0x24b   : > { %6766 = vmatmul.msk.f32.gmra.mxu1 %vm16098_vm9, %v3079_v26  ;;  %vm5100_vm7 = vmand %vm11317_vm13, %vm16106_vm1  ;;  %v4443_v26 = vadd.s32 1, %v7085_v10  ;;  %v3608_v39 = vsel %vm3576_vm10, %v3352_v53, 0.0  ;;  %vm16117_vm1 = vcmask 130048   ;;  %vm16119_vm0 = vcmp.ge.s32.totalorder %v16118_v43, 0  ;;  %v7086_v53 = vld [vmem:[%s14274_s2 + $0x20] sm:$0xff] }
 0x24c   : > { %v11405_v31 = vpop.permute.xlu1 %3542  ;;  %vm5133_vm2 = vmand %vm5101_vm8, %vm16107_vm3  ;;  %v11417_v15 = vpop.permute.xlu0 %3539  ;;  %vm16113_vm8 = vcmp.lt.s32.totalorder %v16109_v21, 16  ;;  %v4444_v45 = vadd.s32 1, %v7086_v53 }
 0x24d   : > { %v11410_v56 = vpop.permute.xlu2 %4008  ;;  %vm4570_vm13 = vmand %vm11392_vm11, %vm16110_vm6  ;;  %vm4475_vm9 = vcmp.ge.s32.totalorder %v4443_v26, 0  ;;  %vm4507_vm12 = vcmp.lt.s32.totalorder %v4443_v26, 16  ;;  %v5165_v48 = vsel %vm5133_vm2, 1, %v14972_v36  ;;  %v11446_v21 = vpop.f32.mrf.mxu0 }
 0x24e   : > { %vm5132_vm4 = vmand %vm5100_vm7, %vm16112_vm5 }
 0x24f   : > { %vm11429_vm14 = vmand %vm4570_vm13, %vm16113_vm8  ;;  %v5164_v58 = vsel %vm5132_vm4, 1, %v14972_v36  ;;  %5732 = vperm.xlu1 %7011, %v5697_v24   ;;  %vm16124_vm13 = vcmp.lt.s32.totalorder %v16118_v43, 16  ;;  %v16125_v24 = vld [vmem:[#allocation116_spill] sm:$0xff] }
 0x250   : > { %v11419_v10 = vpop.f32.mrf.mxu1  ;;  %vm5102_vm7 = vmand %vm11392_vm11, %vm16119_vm0  ;;  %vm3049_vm5 = vcmp.eq.s32.totalorder %v16125_v24, 1  ;;  %v2729_v43 = vld [vmem:[#allocation2 + $0x7f] sm:$0xff]  ;;  %v4634_v53 = vsel %vm11429_vm14, 1, %v14972_v36  ;;  %vm4508_vm0 = vcmp.lt.s32.totalorder %v4444_v45, 16 }
 0x251   : > { %16111 = vst [vmem:[#allocation7_spill] sm:$0xff] %v11419_v10  ;;  %v11433_v10 = vpop.f32.mrf.mxu2  ;;  %vm16120_vm3 = vmmov %vm16117_vm1  ;;  %5200 = vperm.xlu2 %7012, %v5165_v48   ;;  %v3081_v24 = vsel %vm3049_vm5, %v2729_v43, 0.0  ;;  %vm16141_vm5 = vcmp.ge.s32.totalorder %v15878_v40, 0 }
 0x252   : > { %16116 = vst [vmem:[#allocation117_spill] sm:$0xff] %v11433_v10  ;;  %6797 = vmatmul.msk.f32.gmra.mxu2 %vm16120_vm3, %v3608_v39  ;;  %vm11442_vm2 = vmand %vm4475_vm9, %vm4507_vm12  ;;  %5197 = vperm.xlu0 %7010, %v5164_v58   ;;  %v11460_v39 = vpop.f32.mrf.mxu3  ;;  %v16127_v10 = vld [vmem:[#allocation12_spill] sm:$0xff]  ;;  %vm3577_vm9 = vcmp.eq.s32.totalorder %v11037_v37, 1  ;;  %vm16130_vm12 = vcmp.lt.s32.totalorder %v15889_v22, 16 }
 0x253   : > { %6767 = vmatmul.msk.f32.gmra.mxu1 %vm16117_vm1, %v3080_v17  ;;  %vm5634_vm6 = vmand %vm11392_vm11, %vm16123_vm15  ;;  %16126 = vst [vmem:[#allocation6_spill] sm:$0xff] %v11460_v39  ;;  %vm16128_vm4 = vcmp.ge.s32.totalorder %v16127_v10, 0  ;;  %vm4476_vm1 = vcmp.ge.s32.totalorder %v4444_v45, 0  ;;  %v3353_v39 = vld [vmem:[#allocation2 + $0x60] sm:$0xff]  ;;  %vm16134_vm15 = vcmask 130048   ;;  %v7087_v45 = vld [vmem:[%s14274_s2 + $0x28] sm:$0xff] }
 0x254   : > { %v11455_v17 = vpop.permute.xlu1 %3551  ;;  %vm5134_vm10 = vmand %vm5102_vm7, %vm16124_vm13  ;;  %v11469_v60 = vpop.permute.xlu0 %3548  ;;  %vm16131_vm7 = vcmp.lt.s32.totalorder %v16127_v10, 16 }
 0x255   : > { %v11462_v48 = vpop.permute.xlu2 %4017  ;;  %vm4571_vm11 = vmand %vm11442_vm2, %vm16128_vm4  ;;  %v5166_v63 = vsel %vm5134_vm10, 1, %v14972_v36 }
 0x256   : > { %vm5666_vm8 = vmand %vm5634_vm6, %vm16130_vm12  ;;  %vm16136_vm6 = vcmp.ge.s32.totalorder %v16135_v3, 0 }
 0x257   : > { %vm11481_vm3 = vmand %vm4571_vm11, %vm16131_vm7  ;;  %v5698_v22 = vsel %vm5666_vm8, 1, %v14972_v36  ;;  %4671 = vperm.xlu1 %7011, %v4634_v53   ;;  %vm16142_vm11 = vcmp.lt.s32.totalorder %v16135_v3, 16  ;;  %v11514_v53 = vpop.f32.mrf.mxu0 }
 0x258   : > { %v11471_v58 = vpop.f32.mrf.mxu1  ;;  %vm5103_vm14 = vmand %vm11442_vm2, %vm16136_vm6 }
 0x259   : > { %16129 = vst [vmem:[#allocation5_spill] sm:$0xff] %v11471_v58  ;;  %v3609_v58 = vsel %vm3577_vm9, %v3353_v39, 0.0  ;;  %vm16137_vm13 = vmmov %vm16134_vm15  ;;  %v11496_v10 = vpop.f32.mrf.mxu2  ;;  %5203 = vperm.xlu2 %7012, %v5166_v63   ;;  %v4445_v39 = vadd.s32 1, %v7087_v45  ;;  %v16145_v63 = vld [vmem:[#allocation129_spill] sm:$0xff] }
 0x25a   : > { %6798 = vmatmul.msk.f32.gmra.mxu2 %vm16137_vm13, %v3609_v58  ;;  %vm11492_vm10 = vmand %vm4476_vm1, %vm4508_vm0  ;;  %16140 = vst [vmem:[#allocation116_spill] sm:$0xff] %v11496_v10  ;;  %5735 = vperm.xlu0 %7010, %v5698_v22   ;;  %vm3050_vm12 = vcmp.eq.s32.totalorder %v16145_v63, 1  ;;  %vm3578_vm1 = vcmp.eq.s32.totalorder %v11189_v34, 1  ;;  %vm16149_vm0 = vcmp.lt.s32.totalorder %v15878_v40, 16  ;;  %v2730_v45 = vld [vmem:[#allocation2 + $0x87] sm:$0xff]  ;;  %v11529_v63 = vpop.f32.mrf.mxu3  ;;  %v4635_v10 = vsel %vm11481_vm3, 1, %v14972_v36 }
 0x25b   : > { %6768 = vmatmul.msk.f32.gmra.mxu1 %vm16134_vm15, %v3081_v24  ;;  %vm5635_vm4 = vmand %vm11442_vm2, %vm16141_vm5  ;;  %v16146_v24 = vld [vmem:[#allocation4_spill] sm:$0xff]  ;;  %16150 = vst [vmem:[#allocation11_spill] sm:$0xff] %v11529_v63  ;;  %vm4477_vm15 = vcmp.ge.s32.totalorder %v4445_v39, 0  ;;  %vm4509_vm6 = vcmp.lt.s32.totalorder %v4445_v39, 16  ;;  %v3082_v27 = vsel %vm3050_vm12, %v2730_v45, 0.0  ;;  %vm16154_vm5 = vcmask 130048  }
 0x25c   : > { %v11505_v58 = vpop.permute.xlu1 %3560  ;;  %vm11509_vm9 = vmand %vm5103_vm14, %vm16142_vm11  ;;  %vm16147_vm2 = vcmp.ge.s32.totalorder %v16146_v24, 0  ;;  %v11523_v22 = vpop.permute.xlu0 %3557  ;;  %vm16151_vm14 = vcmp.lt.s32.totalorder %v16146_v24, 16  ;;  %v16155_v63 = vld [vmem:[#allocation3_spill] sm:$0xff]  ;;  %vm16160_vm12 = vcmp.ge.s32.totalorder %v15884_v33, 0  ;;  %v16189_v39 = vld [vmem:[#allocation21_spill] sm:$0xff] }
 0x25d   : > { %v11516_v26 = vpop.permute.xlu2 %4026  ;;  %vm4572_vm8 = vmand %vm11492_vm10, %vm16147_vm2  ;;  %v5167_v34 = vsel %vm11509_vm9, 1, %v14972_v36  ;;  %vm16156_vm3 = vcmp.ge.s32.totalorder %v16155_v63, 0  ;;  %v16214_v24 = vld [vmem:[#allocation132_spill] sm:$0xff] }
 0x25e   : > { %vm5667_vm7 = vmand %vm5635_vm4, %vm16149_vm0  ;;  %vm3051_vm0 = vcmp.eq.s32.totalorder %v10832_v50, 1 }
 0x25f   : > { %vm11539_vm13 = vmand %vm4572_vm8, %vm16151_vm14  ;;  %v5699_v37 = vsel %vm5667_vm7, 1, %v14972_v36  ;;  %4674 = vperm.xlu1 %7011, %v4635_v10   ;;  %vm16163_vm8 = vcmp.lt.s32.totalorder %v16155_v63, 16  ;;  %vm16173_vm14 = vcmp.lt.s32.totalorder %v15884_v33, 16 }
 0x260   : > { %v11525_v3 = vpop.f32.mrf.mxu1  ;;  %vm5104_vm4 = vmand %vm11492_vm10, %vm16156_vm3  ;;  %v4636_v38 = vsel %vm11539_vm13, 1, %v14972_v36 }
 0x261   : > { %16148 = vst [vmem:[#allocation12_spill] sm:$0xff] %v11525_v3  ;;  %v3610_v3 = vsel %vm3578_vm1, %v3354_v16, 0.0  ;;  %vm16157_vm11 = vmmov %vm16154_vm5  ;;  %5206 = vperm.xlu2 %7012, %v5167_v34   ;;  %v11572_v7 = vpop.f32.mrf.mxu2  ;;  %v16167_v34 = vld [vmem:[#allocation10_spill] sm:$0xff] }
 0x262   : > { %6799 = vmatmul.msk.f32.gmra.mxu2 %vm16157_vm11, %v3610_v3  ;;  %vm11550_vm9 = vmand %vm4477_vm15, %vm4509_vm6  ;;  %5738 = vperm.xlu0 %7010, %v5699_v37   ;;  %16166 = vst [vmem:[#allocation129_spill] sm:$0xff] %v11572_v7  ;;  %v3876_v3 = vld [vmem:[#allocation2 + $0x19] sm:$0xff]  ;;  %vm16168_vm7 = vcmp.ge.s32.totalorder %v16167_v34, 0  ;;  %vm3579_vm6 = vcmp.eq.s32.totalorder %v11177_v2, 1  ;;  %v11593_v7 = vpop.f32.mrf.mxu0 }
 0x263   : > { %6769 = vmatmul.msk.f32.gmra.mxu1 %vm16154_vm5, %v3082_v27  ;;  %vm11558_vm2 = vmand %vm11492_vm10, %vm16160_vm12  ;;  %v7088_v27 = vld [vmem:[%s14274_s2 + $0x30] sm:$0xff]  ;;  %vm16175_vm12 = vcmp.lt.s32.totalorder %v16167_v34, 16  ;;  %v7089_v2 = vld [vmem:[%s14274_s2 + $0x38] sm:$0xff] }
 0x264   : > { %v4446_v43 = vadd.s32 1, %v7088_v27  ;;  %v4006_v10 = vpop.permute.xlu1 %4005  ;;  %vm11567_vm1 = vmand %vm5104_vm4, %vm16163_vm8  ;;  %v11585_v27 = vpop.permute.xlu0 %3566 }
 0x265   : > { %vm4100_vm10 = vcmp.eq.s32.totalorder %v4006_v10, 1  ;;  %v11574_v45 = vpop.permute.xlu2 %4035  ;;  %vm11580_vm15 = vmand %vm11550_vm9, %vm16168_vm7  ;;  %16171 = vst [vmem:[#allocation4_spill] sm:$0xff] %v11585_v27  ;;  %v2731_v10 = vld [vmem:[#allocation2 + $0x8f] sm:$0xff]  ;;  %v5168_v33 = vsel %vm11567_vm1, 1, %v14972_v36  ;;  %vm4101_vm7 = vcmp.eq.s32.totalorder %v11410_v56, 1  ;;  %v3877_v56 = vld [vmem:[#allocation2 + $0x21] sm:$0xff] }
 0x266   : > { %v4132_v63 = vsel %vm4100_vm10, %v3876_v3, 0.0  ;;  %vm5668_vm5 = vmand %vm11558_vm2, %vm16173_vm14  ;;  %vm4478_vm4 = vcmp.ge.s32.totalorder %v4446_v43, 0  ;;  %v3083_v3 = vsel %vm3051_vm0, %v2731_v10, 0.0  ;;  %v7090_v10 = vld [vmem:[%s14274_s2 + $0x40] sm:$0xff] }
 0x267   : > { %vm16174_vm3 = vmmov %vm16157_vm11  ;;  %vm4510_vm11 = vcmp.lt.s32.totalorder %v4446_v43, 16  ;;  %v11614_v43 = vpop.f32.mrf.mxu3  ;;  %v5700_v50 = vsel %vm5668_vm5, 1, %v14972_v36  ;;  %4677 = vperm.xlu1 %7011, %v4636_v38  }
 0x268   : > { %v11587_v59 = vpop.f32.mrf.mxu1  ;;  %6823 = vmatmul.msk.f32.vlgmr.msrb.gmra.mxu3 %vm16174_vm3, %v4132_v63  ;;  %vm11608_vm2 = vmand %vm11580_vm15, %vm16175_vm12  ;;  %16178 = vst [vmem:[#allocation10_spill] sm:$0xff] %v11614_v43  ;;  %v16180_v63 = vld [vmem:[#allocation8_spill] sm:$0xff]  ;;  %vm16185_vm15 = vcmp.ge.s32.totalorder %v15910_v47, 0  ;;  %vm16194_vm12 = vcmp.lt.s32.totalorder %v15910_v47, 16 }
 0x269   : > { %16172 = vst [vmem:[#allocation3_spill] sm:$0xff] %v11587_v59  ;;  %v3355_v59 = vld [vmem:[#allocation2 + $0x70] sm:$0xff]  ;;  %vm16179_vm13 = vmmov %vm16174_vm3  ;;  %vm16181_vm8 = vcmp.ge.s32.totalorder %v16180_v63, 0  ;;  %5209 = vperm.xlu2 %7012, %v5168_v33   ;;  %vm16186_vm14 = vcmp.lt.s32.totalorder %v16180_v63, 16  ;;  %v4637_v63 = vsel %vm11608_vm2, 1, %v14972_v36  ;;  %v3356_v43 = vld [vmem:[#allocation2 + $0x78] sm:$0xff] }
 0x26a   : > { %v3611_v40 = vsel %vm3579_vm6, %v3355_v59, 0.0  ;;  %vm5105_vm1 = vmand %vm11550_vm9, %vm16181_vm8  ;;  %v4447_v59 = vadd.s32 1, %v7089_v2  ;;  %5741 = vperm.xlu0 %7010, %v5700_v50   ;;  %v11659_v50 = vpop.f32.mrf.mxu2 }
 0x26b   : > { %6770 = vmatmul.msk.f32.gmra.mxu1 %vm16179_vm13, %v3083_v3  ;;  %vm16182_vm0 = vmmov %vm16174_vm3  ;;  %vm3052_vm3 = vcmp.eq.s32.totalorder %v10820_v44, 1  ;;  %v4133_v3 = vsel %vm4101_vm7, %v3877_v56, 0.0  ;;  %v2732_v44 = vld [vmem:[#allocation2 + $0x97] sm:$0xff]  ;;  %16195 = vst [vmem:[#allocation21_spill] sm:$0xff] %v11659_v50  ;;  %vm16197_vm7 = vcmp.lt.s32.totalorder %v16189_v39, 16  ;;  %v16215_v50 = vld [vmem:[#allocation18_spill] sm:$0xff] }
 0x26c   : > { %6800 = vmatmul.msk.f32.gmra.mxu2 %vm16182_vm0, %v3611_v40  ;;  %vm11623_vm10 = vmand %vm4478_vm4, %vm4510_vm11  ;;  %v11635_v34 = vpop.permute.xlu1 %4014  ;;  %vm3580_vm11 = vcmp.eq.s32.totalorder %v11071_v51, 1  ;;  %v4012_v33 = vpop.permute.xlu0 %4011  ;;  %v3084_v2 = vsel %vm3052_vm3, %v2732_v44, 0.0  ;;  %v16202_v44 = vld [vmem:[#allocation19_spill] sm:$0xff]  ;;  %v6923_v51 = vld [vmem:[%s14278_s6 + $0x80] sm:$0xff] }
 0x26d   : > { %vm5637_vm6 = vmand %vm11550_vm9, %vm16185_vm15  ;;  %v11644_v37 = vpop.permute.xlu2 %4044  ;;  %vm16190_vm9 = vcmp.ge.s32.totalorder %v16189_v39, 0  ;;  %v3612_v16 = vsel %vm3580_vm11, %v3356_v43, 0.0  ;;  %6002 = vmatpush.msra.mxu2 %v6923_v51 }
 0x26e   : > { %vm11639_vm5 = vmand %vm5105_vm1, %vm16186_vm14  ;;  %vm4479_vm1 = vcmp.ge.s32.totalorder %v4447_v59, 0 }
 0x26f   : > { %vm11650_vm4 = vmand %vm11623_vm10, %vm16190_vm9  ;;  %v5169_v56 = vsel %vm11639_vm5, 1, %v14972_v36  ;;  %4680 = vperm.xlu1 %7011, %v4637_v63   ;;  %v11694_v43 = vpop.f32.mrf.mxu3  ;;  %vm4102_vm9 = vcmp.eq.s32.totalorder %v4012_v33, 1  ;;  %v4448_v63 = vadd.s32 1, %v7090_v10 }
 0x270   : > { %v11655_v40 = vpop.f32.mrf.mxu1  ;;  %vm5669_vm13 = vmand %vm5637_vm6, %vm16194_vm12  ;;  %vm16203_vm6 = vcmp.ge.s32.totalorder %v16202_v44, 0  ;;  %16207 = vst [vmem:[#allocation19_spill] sm:$0xff] %v11694_v43  ;;  %vm16211_vm12 = vcmp.lt.s32.totalorder %v16202_v44, 16 }
 0x271   : > { %16193 = vst [vmem:[#allocation8_spill] sm:$0xff] %v11655_v40  ;;  %vm16196_vm8 = vmmov %vm16182_vm0  ;;  %vm4511_vm0 = vcmp.lt.s32.totalorder %v4447_v59, 16  ;;  %v5701_v59 = vsel %vm5669_vm13, 1, %v14972_v36  ;;  %5212 = vperm.xlu2 %7012, %v5169_v56   ;;  %v3878_v56 = vld [vmem:[#allocation2 + $0x29] sm:$0xff]  ;;  %v2733_v40 = vld [vmem:[#allocation2 + $0x9f] sm:$0xff] }
 0x272   : > { %6824 = vmatmul.msk.f32.gmra.mxu3 %vm16196_vm8, %v4133_v3  ;;  %vm11672_vm15 = vmand %vm11650_vm4, %vm16197_vm7  ;;  %v11676_v3 = vpop.f32.mrf.mxu0  ;;  %vm16208_vm4 = vcmp.ge.s32.totalorder %v15900_v13, 0  ;;  %5744 = vperm.xlu0 %7010, %v5701_v59   ;;  %v6889_v59 = vld [vmem:[%s14278_s6 + $0x70] sm:$0xff]  ;;  %v4134_v44 = vsel %vm4102_vm9, %v3878_v56, 0.0  ;;  %vm16219_vm7 = vcmp.lt.s32.totalorder %v15900_v13, 16  ;;  %vm16221_vm9 = vcmp.lt.s32.totalorder %v16215_v50, 16 }
 0x273   : > { %16200 = vst [vmem:[#allocation139_spill] sm:$0xff] %v11676_v3  ;;  %vm16201_vm2 = vmmov %vm16196_vm8  ;;  %vm16216_vm8 = vcmp.ge.s32.totalorder %v16215_v50, 0  ;;  %5470 = vmatpush.msra.mxu1 %v6889_v59  ;;  %v4638_v27 = vsel %vm11672_vm15, 1, %v14972_v36  ;;  %v3357_v3 = vld [vmem:[#allocation2 + $0x80] sm:$0xff] }
 0x274   : > { %6771 = vmatmul.msk.f32.gmra.mxu1 %vm16201_vm2, %v3084_v2  ;;  %vm5106_vm14 = vmand %vm11623_vm10, %vm16203_vm6  ;;  %v11707_v2 = vpop.permute.xlu1 %4023  ;;  %v11730_v10 = vpop.permute.xlu0 %4020 }
 0x275   : > { %vm16204_vm5 = vmmov %vm16201_vm2 }
 0x276   : > { %6801 = vmatmul.msk.f32.gmra.mxu2 %vm16204_vm5, %v3612_v16  ;;  %vm11687_vm3 = vmand %vm4479_vm1, %vm4511_vm0  ;;  %v11716_v16 = vpop.permute.xlu2 %4053  ;;  %vm3581_vm0 = vcmp.eq.s32.totalorder %v11243_v19, 1  ;;  %v6201_v19 = vld [vmem:[%s14280_s8 + $0x8] sm:$0xff] }
 0x277   : > { %vm11700_vm11 = vmand %vm11623_vm10, %vm16208_vm4  ;;  %vm3053_vm10 = vcmp.eq.s32.totalorder %v16214_v24, 1  ;;  %v3613_v47 = vsel %vm3581_vm0, %v3357_v3, 0.0  ;;  %v16226_v24 = vld [vmem:[#allocation17_spill] sm:$0xff]  ;;  %4683 = vperm.xlu1 %7011, %v4638_v27   ;;  %v7091_v27 = vld [vmem:[%s14274_s2 + $0x48] sm:$0xff]  ;;  %6316 = vmatpush.msra.mxu3 %v6201_v19  ;;  %v11796_v38 = vpop.f32.mrf.mxu3 }
 0x278   : > { %vm11711_vm13 = vmand %vm5106_vm14, %vm16211_vm12  ;;  %v11732_v43 = vpop.f32.mrf.mxu1  ;;  %vm4480_vm14 = vcmp.ge.s32.totalorder %v4448_v63, 0  ;;  %v3085_v56 = vsel %vm3053_vm10, %v2733_v40, 0.0  ;;  %v4449_v51 = vadd.s32 1, %v7091_v27  ;;  %16238 = vst [vmem:[#allocation17_spill] sm:$0xff] %v11796_v38  ;;  %v3358_v27 = vld [vmem:[#allocation2 + $0x88] sm:$0xff] }
 0x279   : > { %vm11722_vm1 = vmand %vm11687_vm3, %vm16216_vm8  ;;  %v5170_v13 = vsel %vm11711_vm13, 1, %v14972_v36  ;;  %vm4103_vm8 = vcmp.eq.s32.totalorder %v11635_v34, 1  ;;  %v2735_v38 = vld [vmem:[#allocation2 + $0xaf] sm:$0xff] }
 0x27a   : > { %vm5670_vm2 = vmand %vm11700_vm11, %vm16219_vm7  ;;  %vm16227_vm11 = vcmp.ge.s32.totalorder %v16226_v24, 0  ;;  %v11773_v3 = vpop.f32.mrf.mxu0  ;;  %5215 = vperm.xlu2 %7012, %v5170_v13   ;;  %vm16235_vm7 = vcmp.lt.s32.totalorder %v16226_v24, 16  ;;  %v16239_v13 = vld [vmem:[#allocation16_spill] sm:$0xff] }
 0x27b   : > { %vm16220_vm6 = vmmov %vm16204_vm5  ;;  %vm4512_vm5 = vcmp.lt.s32.totalorder %v4448_v63, 16  ;;  %v11757_v63 = vpop.f32.mrf.mxu2  ;;  %v5702_v40 = vsel %vm5670_vm2, 1, %v14972_v36  ;;  %16231 = vst [vmem:[#allocation18_spill] sm:$0xff] %v11773_v3  ;;  %v3359_v3 = vld [vmem:[#allocation2 + $0x90] sm:$0xff] }
 0x27c   : > { %6825 = vmatmul.msk.f32.gmra.mxu3 %vm16220_vm6, %v4134_v44  ;;  %vm11751_vm4 = vmand %vm11722_vm1, %vm16221_vm9  ;;  %16224 = vst [vmem:[#allocation132_spill] sm:$0xff] %v11757_v63  ;;  %vm16232_vm1 = vcmp.ge.s32.totalorder %v15905_v8, 0  ;;  %5747 = vperm.xlu0 %7010, %v5702_v40   ;;  %v11787_v59 = vpop.permute.xlu1 %4032  ;;  %v3879_v44 = vld [vmem:[#allocation2 + $0x31] sm:$0xff]  ;;  %v11805_v40 = vpop.permute.xlu0 %4029  ;;  %vm16241_vm9 = vcmp.lt.s32.totalorder %v15905_v8, 16 }
 0x27d   : > { %vm16225_vm15 = vmmov %vm16220_vm6  ;;  %v4639_v19 = vsel %vm11751_vm4, 1, %v14972_v36 }
 0x27e   : > { %6772 = vmatmul.msk.f32.gmra.mxu1 %vm16225_vm15, %v3085_v56  ;;  %vm5107_vm12 = vmand %vm11687_vm3, %vm16227_vm11  ;;  %v11798_v56 = vpop.permute.xlu2 %4062 }
 0x27f   : > { %vm16228_vm13 = vmmov %vm16220_vm6  ;;  %vm16240_vm6 = vcmp.ge.s32.totalorder %v16239_v13, 0  ;;  %4686 = vperm.xlu1 %7011, %v4639_v19  }
 0x280   : > { %6802 = vmatmul.msk.f32.gmra.mxu2 %vm16228_vm13, %v3613_v47  ;;  %vm11766_vm10 = vmand %vm4480_vm14, %vm4512_vm5  ;;  %vm3582_vm5 = vcmp.eq.s32.totalorder %v11222_v29, 1  ;;  %v4135_v47 = vsel %vm4103_vm8, %v3879_v44, 0.0  ;;  %v11807_v24 = vpop.f32.mrf.mxu1  ;;  %vm16243_vm8 = vcmp.lt.s32.totalorder %v16239_v13, 16 }
 0x281   : > { %vm11780_vm0 = vmand %vm11687_vm3, %vm16232_vm1  ;;  %vm3054_vm3 = vcmp.eq.s32.totalorder %v10870_v42, 1  ;;  %v2734_v42 = vld [vmem:[#allocation2 + $0xa7] sm:$0xff]  ;;  %v3614_v33 = vsel %vm3582_vm5, %v3358_v27, 0.0 }
 0x282   : > { %vm11791_vm2 = vmand %vm5107_vm12, %vm16235_vm7  ;;  %vm4481_vm12 = vcmp.ge.s32.totalorder %v4449_v51, 0  ;;  %v3086_v29 = vsel %vm3054_vm3, %v2734_v42, 0.0  ;;  %v7092_v42 = vld [vmem:[%s14274_s2 + $0x50] sm:$0xff]  ;;  %v16259_v27 = vld [vmem:[#allocation118_spill] sm:$0xff]  ;;  %v11860_v50 = vpop.f32.mrf.mxu0 }
 0x283   : > { %vm4576_vm14 = vmand %vm11766_vm10, %vm16240_vm6  ;;  %v5171_v44 = vsel %vm11791_vm2, 1, %v14972_v36  ;;  %v11837_v34 = vpop.f32.mrf.mxu2  ;;  %vm4104_vm6 = vcmp.eq.s32.totalorder %v11462_v48, 1  ;;  %v4450_v19 = vadd.s32 1, %v7092_v42 }
 0x284   : > { %vm5671_vm15 = vmand %vm11780_vm0, %vm16241_vm9  ;;  %16252 = vst [vmem:[#allocation16_spill] sm:$0xff] %v11837_v34  ;;  %5218 = vperm.xlu2 %7012, %v5171_v44   ;;  %v3880_v44 = vld [vmem:[#allocation2 + $0x39] sm:$0xff]  ;;  %v16262_v34 = vld [vmem:[#allocation26_spill] sm:$0xff]  ;;  %v11873_v42 = vpop.permute.xlu0 %4038 }
 0x285   : > { %vm16242_vm11 = vmmov %vm16228_vm13  ;;  %vm4513_vm13 = vcmp.lt.s32.totalorder %v4449_v51, 16  ;;  %v5703_v39 = vsel %vm5671_vm15, 1, %v14972_v36 }
 0x286   : > { %6826 = vmatmul.msk.f32.gmra.mxu3 %vm16242_vm11, %v4135_v47  ;;  %vm11822_vm1 = vmand %vm4576_vm14, %vm16243_vm8  ;;  %v16247_v47 = vld [vmem:[#allocation15_spill] sm:$0xff]  ;;  %vm16253_vm14 = vcmp.ge.s32.totalorder %v15928_v61, 0  ;;  %5750 = vperm.xlu0 %7010, %v5703_v39   ;;  %vm16266_vm8 = vcmp.lt.s32.totalorder %v15928_v61, 16  ;;  %v3881_v39 = vld [vmem:[#allocation2 + $0x41] sm:$0xff] }
 0x287   : > { %vm16246_vm0 = vmmov %vm16242_vm11  ;;  %vm16248_vm4 = vcmp.ge.s32.totalorder %v16247_v47, 0  ;;  %vm16256_vm9 = vcmp.lt.s32.totalorder %v16247_v47, 16  ;;  %vm3055_vm11 = vcmp.eq.s32.totalorder %v16259_v27, 1  ;;  %16260 = vst [vmem:[#allocation15_spill] sm:$0xff] %v11860_v50  ;;  %v4136_v47 = vsel %vm4104_vm6, %v3880_v44, 0.0 }
 0x288   : > { %6773 = vmatmul.msk.f32.gmra.mxu1 %vm16246_vm0, %v3086_v29  ;;  %vm5108_vm7 = vmand %vm11766_vm10, %vm16248_vm4  ;;  %v11851_v29 = vpop.permute.xlu1 %4041  ;;  %v11875_v63 = vpop.f32.mrf.mxu1  ;;  %v4640_v50 = vsel %vm11822_vm1, 1, %v14972_v36  ;;  %v3087_v44 = vsel %vm3055_vm11, %v2735_v38, 0.0  ;;  %vm16269_vm6 = vcmp.lt.s32.totalorder %v16262_v34, 16 }
 0x289   : > { %vm16249_vm3 = vmmov %vm16246_vm0  ;;  %4689 = vperm.xlu1 %7011, %v4640_v50   ;;  %v16284_v50 = vld [vmem:[#allocation112_spill] sm:$0xff] }
 0x28a   : > { %6803 = vmatmul.msk.f32.gmra.mxu2 %vm16249_vm3, %v3614_v33  ;;  %vm11833_vm2 = vmand %vm4481_vm12, %vm4513_vm13  ;;  %v11862_v33 = vpop.permute.xlu2 %4071  ;;  %vm3583_vm13 = vcmp.eq.s32.totalorder %v11107_v41, 1 }
 0x28b   : > { %vm11844_vm5 = vmand %vm11766_vm10, %vm16253_vm14  ;;  %16261 = vst [vmem:[#allocation118_spill] sm:$0xff] %v11862_v33  ;;  %vm16263_vm10 = vcmp.ge.s32.totalorder %v16262_v34, 0  ;;  %v11881_v33 = vpop.f32.mrf.mxu3  ;;  %v3615_v8 = vsel %vm3583_vm13, %v3359_v3, 0.0  ;;  %v7093_v3 = vld [vmem:[%s14274_s2 + $0x58] sm:$0xff]  ;;  %v11934_v51 = vpop.f32.mrf.mxu2  ;;  %v16309_v34 = vld [vmem:[#allocation22_spill] sm:$0xff] }
 0x28c   : > { %vm11855_vm15 = vmand %vm5108_vm7, %vm16256_vm9  ;;  %16267 = vst [vmem:[#allocation26_spill] sm:$0xff] %v11881_v33  ;;  %vm4482_vm7 = vcmp.ge.s32.totalorder %v4450_v19, 0  ;;  %v4451_v48 = vadd.s32 1, %v7093_v3  ;;  %v11955_v3 = vpop.f32.mrf.mxu0 }
 0x28d   : > { %vm11868_vm12 = vmand %vm11833_vm2, %vm16263_vm10  ;;  %v5172_v61 = vsel %vm11855_vm15, 1, %v14972_v36  ;;  %vm4105_vm10 = vcmp.eq.s32.totalorder %v11730_v10, 1  ;;  %v16331_v10 = vld [vmem:[#allocation32_spill] sm:$0xff] }
 0x28e   : > { %vm5672_vm0 = vmand %vm11844_vm5, %vm16266_vm8  ;;  %5221 = vperm.xlu2 %7012, %v5172_v61  }
 0x28f   : > { %vm16268_vm4 = vmmov %vm16249_vm3  ;;  %vm4514_vm3 = vcmp.lt.s32.totalorder %v4450_v19, 16  ;;  %v5704_v38 = vsel %vm5672_vm0, 1, %v14972_v36  ;;  %v16273_v19 = vld [vmem:[#allocation25_spill] sm:$0xff] }
 0x290   : > { %6827 = vmatmul.msk.f32.gmra.mxu3 %vm16268_vm4, %v4136_v47  ;;  %vm11896_vm14 = vmand %vm11868_vm12, %vm16269_vm6  ;;  %vm16274_vm5 = vcmp.ge.s32.totalorder %v16273_v19, 0  ;;  %vm16278_vm12 = vcmp.ge.s32.totalorder %v15917_v18, 0  ;;  %5753 = vperm.xlu0 %7010, %v5704_v38   ;;  %v11925_v27 = vpop.permute.xlu1 %4050  ;;  %vm16281_vm8 = vcmp.lt.s32.totalorder %v16273_v19, 16  ;;  %16285 = vst [vmem:[#allocation25_spill] sm:$0xff] %v11934_v51  ;;  %v11947_v38 = vpop.permute.xlu0 %4047  ;;  %vm16291_vm6 = vcmp.lt.s32.totalorder %v15917_v18, 16 }
 0x291   : > { %vm16272_vm1 = vmmov %vm16268_vm4  ;;  %vm3056_vm4 = vcmp.eq.s32.totalorder %v16284_v50, 1  ;;  %v11949_v19 = vpop.f32.mrf.mxu1  ;;  %v4641_v51 = vsel %vm11896_vm14, 1, %v14972_v36 }
 0x292   : > { %6774 = vmatmul.msk.f32.gmra.mxu1 %vm16272_vm1, %v3087_v44  ;;  %vm5109_vm9 = vmand %vm11833_vm2, %vm16274_vm5  ;;  %v11936_v47 = vpop.permute.xlu2 %4080  ;;  %v16287_v44 = vld [vmem:[#allocation24_spill] sm:$0xff]  ;;  %4692 = vperm.xlu1 %7011, %v4641_v51  }
 0x293   : > { %vm16275_vm15 = vmmov %vm16272_vm1  ;;  %16286 = vst [vmem:[#allocation112_spill] sm:$0xff] %v11936_v47  ;;  %v3360_v47 = vld [vmem:[#allocation2 + $0x98] sm:$0xff] }
 0x294   : > { %6804 = vmatmul.msk.f32.gmra.mxu2 %vm16275_vm15, %v3615_v8  ;;  %vm11909_vm11 = vmand %vm4482_vm7, %vm4514_vm3  ;;  %vm3584_vm3 = vcmp.eq.s32.totalorder %v11313_v54, 1  ;;  %v4137_v8 = vsel %vm4105_vm10, %v3881_v39, 0.0  ;;  %16292 = vst [vmem:[#allocation24_spill] sm:$0xff] %v11955_v3  ;;  %v7094_v39 = vld [vmem:[#allocation2 + $0xb7] sm:$0xff]  ;;  %vm16294_vm10 = vcmp.lt.s32.totalorder %v16287_v44, 16  ;;  %v7095_v54 = vld [vmem:[%s14274_s2 + $0x60] sm:$0xff] }
 0x295   : > { %vm11918_vm13 = vmand %vm11833_vm2, %vm16278_vm12  ;;  %vm16288_vm2 = vcmp.ge.s32.totalorder %v16287_v44, 0  ;;  %v3088_v33 = vsel %vm3056_vm4, %v7094_v39, 0.0  ;;  %v3616_v13 = vsel %vm3584_vm3, %v3360_v47, 0.0  ;;  %v12006_v44 = vpop.f32.mrf.mxu2  ;;  %v7097_v3 = vld [vmem:[#allocation2 + $0xc7] sm:$0xff]  ;;  %v3884_v51 = vld [vmem:[#allocation2 + $0x59] sm:$0xff] }
 0x296   : > { %vm11929_vm0 = vmand %vm5109_vm9, %vm16281_vm8  ;;  %vm4483_vm9 = vcmp.ge.s32.totalorder %v4451_v48, 0 }
 0x297   : > { %vm11942_vm7 = vmand %vm11909_vm11, %vm16288_vm2  ;;  %v5173_v18 = vsel %vm11929_vm0, 1, %v14972_v36  ;;  %vm4106_vm2 = vcmp.eq.s32.totalorder %v11707_v2, 1  ;;  %v3882_v2 = vld [vmem:[#allocation2 + $0x49] sm:$0xff] }
 0x298   : > { %vm5673_vm1 = vmand %vm11918_vm13, %vm16291_vm6  ;;  %5224 = vperm.xlu2 %7012, %v5173_v18   ;;  %v11997_v47 = vpop.permute.xlu1 %4059  ;;  %v4138_v39 = vsel %vm4106_vm2, %v3882_v2, 0.0  ;;  %v12017_v18 = vpop.permute.xlu0 %4056  ;;  %v3361_v2 = vld [vmem:[#allocation2 + $0xa0] sm:$0xff]  ;;  %vm16316_vm2 = vcmp.lt.s32.totalorder %v16309_v34, 16 }
 0x299   : > { %vm16293_vm5 = vmmov %vm16275_vm15  ;;  %vm4515_vm15 = vcmp.lt.s32.totalorder %v4451_v48, 16  ;;  %v11976_v48 = vpop.f32.mrf.mxu3  ;;  %v5705_v50 = vsel %vm5673_vm1, 1, %v14972_v36 }
 0x29a   : > { %6828 = vmatmul.msk.f32.gmra.mxu3 %vm16293_vm5, %v4137_v8  ;;  %vm11970_vm12 = vmand %vm11942_vm7, %vm16294_vm10  ;;  %16297 = vst [vmem:[#allocation140_spill] sm:$0xff] %v11976_v48  ;;  %v16299_v8 = vld [vmem:[#allocation23_spill] sm:$0xff]  ;;  %vm16304_vm7 = vcmp.ge.s32.totalorder %v15924_v57, 0  ;;  %5756 = vperm.xlu0 %7010, %v5705_v50   ;;  %vm16313_vm10 = vcmp.lt.s32.totalorder %v15924_v57, 16  ;;  %v12023_v50 = vpop.permute.xlu2 %4089 }
 0x29b   : > { %vm16298_vm14 = vmmov %vm16293_vm5  ;;  %vm16300_vm13 = vcmp.ge.s32.totalorder %v16299_v8, 0  ;;  %vm16305_vm6 = vcmp.lt.s32.totalorder %v16299_v8, 16  ;;  %16308 = vst [vmem:[#allocation23_spill] sm:$0xff] %v12006_v44  ;;  %v4642_v8 = vsel %vm11970_vm12, 1, %v14972_v36  ;;  %v6856_v44 = vld [vmem:[%s14278_s6 + $0x68] sm:$0xff] }
 0x29c   : > { %6775 = vmatmul.msk.f32.gmra.mxu1 %vm16298_vm14, %v3088_v33  ;;  %vm5110_vm8 = vmand %vm11909_vm11, %vm16300_vm13  ;;  %v4452_v33 = vadd.s32 1, %v7095_v54  ;;  %16314 = vst [vmem:[#allocation22_spill] sm:$0xff] %v12023_v50  ;;  %4695 = vperm.xlu1 %7011, %v4642_v8   ;;  %v3362_v50 = vld [vmem:[#allocation2 + $0xa8] sm:$0xff] }
 0x29d   : > { %vm16301_vm0 = vmmov %vm16293_vm5  ;;  %vm3057_vm5 = vcmp.eq.s32.totalorder %v10916_v9, 1  ;;  %v2737_v9 = vld [vmem:[#allocation2 + $0xbf] sm:$0xff]  ;;  %4937 = vmatpush.msra.mxu0 %v6856_v44 }
 0x29e   : > { %6805 = vmatmul.msk.f32.gmra.mxu2 %vm16301_vm0, %v3616_v13  ;;  %vm11985_vm4 = vmand %vm4483_vm9, %vm4515_vm15  ;;  %vm3585_vm15 = vcmp.eq.s32.totalorder %v11299_v28, 1  ;;  %v12019_v13 = vpop.f32.mrf.mxu1  ;;  %v3089_v54 = vsel %vm3057_vm5, %v2737_v9, 0.0  ;;  %v16320_v9 = vld [vmem:[#allocation20_spill] sm:$0xff]  ;;  %v6855_v44 = vld [vmem:[%s14278_s6 + $0x60] sm:$0xff] }
 0x29f   : > { %vm5642_vm3 = vmand %vm11909_vm11, %vm16304_vm7  ;;  %vm16310_vm11 = vcmp.ge.s32.totalorder %v16309_v34, 0  ;;  %v3617_v41 = vsel %vm3585_vm15, %v3361_v2, 0.0  ;;  %v7096_v34 = vld [vmem:[%s14274_s2 + $0x68] sm:$0xff]  ;;  %v12074_v2 = vpop.f32.mrf.mxu2  ;;  %4938 = vmatpush.msra.mxu0 %v6855_v44 }
 0x2a0   : > { %vm12001_vm1 = vmand %vm5110_vm8, %vm16305_vm6  ;;  %vm4484_vm8 = vcmp.ge.s32.totalorder %v4452_v33, 0  ;;  %v4453_v61 = vadd.s32 1, %v7096_v34  ;;  %v12065_v8 = vpop.permute.xlu1 %4068  ;;  %v16359_v44 = vld [vmem:[#allocation30_spill] sm:$0xff] }
 0x2a1   : > { %vm12012_vm9 = vmand %vm11985_vm4, %vm16310_vm11  ;;  %v5174_v48 = vsel %vm12001_vm1, 1, %v14972_v36  ;;  %vm4107_vm11 = vcmp.eq.s32.totalorder %v11516_v26, 1  ;;  %v12056_v28 = vpop.f32.mrf.mxu3 }
 0x2a2   : > { %vm5674_vm14 = vmand %vm5642_vm3, %vm16313_vm10  ;;  %vm16321_vm3 = vcmp.ge.s32.totalorder %v16320_v9, 0  ;;  %16325 = vst [vmem:[#allocation20_spill] sm:$0xff] %v12056_v28  ;;  %5227 = vperm.xlu2 %7012, %v5174_v48   ;;  %vm16327_vm10 = vcmp.lt.s32.totalorder %v16320_v9, 16  ;;  %v16330_v48 = vld [vmem:[#allocation119_spill] sm:$0xff]  ;;  %v12085_v9 = vpop.permute.xlu0 %4065  ;;  %v12120_v57 = vpop.permute.xlu2 %4098 }
 0x2a3   : > { %vm16315_vm13 = vmmov %vm16301_vm0  ;;  %vm4516_vm0 = vcmp.lt.s32.totalorder %v4452_v33, 16  ;;  %v5706_v33 = vsel %vm5674_vm14, 1, %v14972_v36  ;;  %16343 = vst [vmem:[#allocation32_spill] sm:$0xff] %v12120_v57 }
 0x2a4   : > { %6829 = vmatmul.msk.f32.gmra.mxu3 %vm16315_vm13, %v4138_v39  ;;  %vm12036_vm7 = vmand %vm12012_vm9, %vm16316_vm2  ;;  %v12040_v39 = vpop.f32.mrf.mxu0  ;;  %vm16326_vm9 = vcmp.ge.s32.totalorder %v15948_v35, 0  ;;  %5759 = vperm.xlu0 %7010, %v5706_v33   ;;  %vm16336_vm2 = vcmp.lt.s32.totalorder %v15948_v35, 16 }
 0x2a5   : > { %vm16319_vm12 = vmmov %vm16315_vm13  ;;  %vm3058_vm13 = vcmp.eq.s32.totalorder %v16330_v48, 1  ;;  %v16345_v48 = vld [vmem:[#allocation31_spill] sm:$0xff] }
 0x2a6   : > { %6776 = vmatmul.msk.f32.gmra.mxu1 %vm16319_vm12, %v3089_v54  ;;  %vm5111_vm6 = vmand %vm11985_vm4, %vm16321_vm3  ;;  %v3883_v54 = vld [vmem:[#allocation2 + $0x51] sm:$0xff]  ;;  %v12087_v34 = vpop.f32.mrf.mxu1  ;;  %v3090_v35 = vsel %vm3058_vm13, %v7097_v3, 0.0 }
 0x2a7   : > { %vm16322_vm1 = vmmov %vm16319_vm12  ;;  %v4139_v33 = vsel %vm4107_vm11, %v3883_v54, 0.0  ;;  %16335 = vst [vmem:[#allocation119_spill] sm:$0xff] %v12087_v34  ;;  %v4643_v54 = vsel %vm12036_vm7, 1, %v14972_v36  ;;  %vm16340_vm11 = vcmp.lt.s32.totalorder %v16331_v10, 16 }
 0x2a8   : > { %6806 = vmatmul.msk.f32.gmra.mxu2 %vm16322_vm1, %v3617_v41  ;;  %vm12051_vm5 = vmand %vm4484_vm8, %vm4516_vm0  ;;  %vm3586_vm0 = vcmp.eq.s32.totalorder %v11145_v4, 1  ;;  %4698 = vperm.xlu1 %7011, %v4643_v54   ;;  %v12151_v41 = vpop.permute.xlu1 %4077 }
 0x2a9   : > { %vm5643_vm15 = vmand %vm11985_vm4, %vm16326_vm9  ;;  %vm16332_vm4 = vcmp.ge.s32.totalorder %v16331_v10, 0  ;;  %v3618_v3 = vsel %vm3586_vm0, %v3362_v50, 0.0  ;;  %16353 = vst [vmem:[#allocation31_spill] sm:$0xff] %v12151_v41  ;;  %v12160_v54 = vpop.f32.mrf.mxu3 }
 0x2aa   : > { %vm12069_vm14 = vmand %vm5111_vm6, %vm16327_vm10  ;;  %vm4485_vm6 = vcmp.ge.s32.totalorder %v4453_v61, 0 }
 0x2ab   : > { %vm12080_vm8 = vmand %vm12051_vm5, %vm16332_vm4  ;;  %v5175_v34 = vsel %vm12069_vm14, 1, %v14972_v36  ;;  %vm4108_vm4 = vcmp.eq.s32.totalorder %v11805_v40, 1  ;;  %v12202_v40 = vpop.permute.xlu2 %5729 }
 0x2ac   : > { %vm12091_vm12 = vmand %vm5643_vm15, %vm16336_vm2  ;;  %vm16346_vm15 = vcmp.ge.s32.totalorder %v16345_v48, 0  ;;  %v12137_v50 = vpop.f32.mrf.mxu0  ;;  %5230 = vperm.xlu2 %7012, %v5175_v34   ;;  %vm16354_vm2 = vcmp.lt.s32.totalorder %v16345_v48, 16  ;;  %v16357_v34 = vld [vmem:[#allocation108_spill] sm:$0xff] }
 0x2ad   : > { %vm16339_vm3 = vmmov %vm16322_vm1  ;;  %vm4517_vm1 = vcmp.lt.s32.totalorder %v4453_v61, 16  ;;  %v5707_v26 = vsel %vm12091_vm12, 1, %v14972_v36  ;;  %v7098_v61 = vld [vmem:[%s14274_s2 + $0x70] sm:$0xff]  ;;  %16358 = vst [vmem:[#allocation108_spill] sm:$0xff] %v12160_v54 }
 0x2ae   : > { %6830 = vmatmul.msk.f32.gmra.mxu3 %vm16339_vm3, %v4139_v33  ;;  %vm12111_vm9 = vmand %vm12080_vm8, %vm16340_vm11  ;;  %vm16350_vm8 = vcmp.ge.s32.totalorder %v15938_v1, 0  ;;  %v4454_v10 = vadd.s32 1, %v7098_v61  ;;  %5762 = vperm.xlu0 %7010, %v5707_v26   ;;  %v12169_v26 = vpop.permute.xlu0 %4074  ;;  %v12171_v48 = vpop.f32.mrf.mxu1  ;;  %vm16362_vm11 = vcmp.lt.s32.totalorder %v15938_v1, 16 }
 0x2af   : > { %vm16344_vm7 = vmmov %vm16339_vm3  ;;  %16361 = vst [vmem:[#allocation30_spill] sm:$0xff] %v12169_v26  ;;  %v4644_v61 = vsel %vm12111_vm9, 1, %v14972_v36 }
 0x2b0   : > { %6777 = vmatmul.msk.f32.gmra.mxu1 %vm16344_vm7, %v3090_v35  ;;  %vm5112_vm10 = vmand %vm12051_vm5, %vm16346_vm15  ;;  %v12162_v35 = vpop.f32.mrf.mxu2  ;;  %4701 = vperm.xlu1 %7011, %v4644_v61   ;;  %v7100_v61 = vld [vmem:[%s14274_s2 + $0x78] sm:$0xff] }
 0x2b1   : > { %vm16347_vm14 = vmmov %vm16339_vm3  ;;  %vm3059_vm3 = vcmp.eq.s32.totalorder %v16357_v34, 1  ;;  %v7099_v34 = vld [vmem:[#allocation2 + $0xcf] sm:$0xff]  ;;  %v12249_v26 = vpop.f32.mrf.mxu3 }
 0x2b2   : > { %6807 = vmatmul.msk.f32.gmra.mxu2 %vm16347_vm14, %v3618_v3  ;;  %vm12133_vm13 = vmand %vm4485_vm6, %vm4517_vm1  ;;  %vm3587_vm1 = vcmp.eq.s32.totalorder %v11365_v46, 1  ;;  %v4140_v3 = vsel %vm4108_vm4, %v3884_v51, 0.0  ;;  %v3091_v46 = vsel %vm3059_vm3, %v7099_v34, 0.0  ;;  %v3363_v51 = vld [vmem:[#allocation2 + $0xb0] sm:$0xff]  ;;  %vm16364_vm4 = vcmp.lt.s32.totalorder %v16359_v44, 16  ;;  %16388 = vst [vmem:[#allocation142_spill] sm:$0xff] %v12249_v26 }
 0x2b3   : > { %vm12144_vm0 = vmand %vm12051_vm5, %vm16350_vm8  ;;  %vm16360_vm5 = vcmp.ge.s32.totalorder %v16359_v44, 0  ;;  %v3619_v28 = vsel %vm3587_vm1, %v3363_v51, 0.0  ;;  %v4455_v34 = vadd.s32 1, %v7100_v61 }
 0x2b4   : > { %vm12155_vm12 = vmand %vm5112_vm10, %vm16354_vm2  ;;  %vm4486_vm10 = vcmp.ge.s32.totalorder %v4454_v10, 0  ;;  %v12224_v4 = vpop.f32.mrf.mxu0 }
 0x2b5   : > { %vm4581_vm6 = vmand %vm12133_vm13, %vm16360_vm5  ;;  %v5176_v54 = vsel %vm12155_vm12, 1, %v14972_v36  ;;  %vm4109_vm5 = vcmp.eq.s32.totalorder %v11787_v59, 1  ;;  %v16428_v59 = vld [vmem:[#allocation36_spill] sm:$0xff] }
 0x2b6   : > { %vm5676_vm7 = vmand %vm12144_vm0, %vm16362_vm11  ;;  %5233 = vperm.xlu2 %7012, %v5176_v54   ;;  %v3885_v54 = vld [vmem:[#allocation2 + $0x61] sm:$0xff]  ;;  %v12237_v61 = vpop.permute.xlu0 %4083  ;;  %v12239_v57 = vpop.f32.mrf.mxu1 }
 0x2b7   : > { %vm16363_vm15 = vmmov %vm16347_vm14  ;;  %vm4518_vm14 = vcmp.lt.s32.totalorder %v4454_v10, 16  ;;  %v5708_v33 = vsel %vm5676_vm7, 1, %v14972_v36  ;;  %16385 = vst [vmem:[#allocation141_spill] sm:$0xff] %v12239_v57  ;;  %v3886_v10 = vld [vmem:[#allocation2 + $0x69] sm:$0xff] }
 0x2b8   : > { %6831 = vmatmul.msk.f32.gmra.mxu3 %vm16363_vm15, %v4140_v3  ;;  %vm12186_vm8 = vmand %vm4581_vm6, %vm16364_vm4  ;;  %v16368_v3 = vld [vmem:[#allocation29_spill] sm:$0xff]  ;;  %vm16373_vm6 = vcmp.ge.s32.totalorder %v15944_v30, 0  ;;  %5765 = vperm.xlu0 %7010, %v5708_v33   ;;  %v12226_v51 = vpop.f32.mrf.mxu2  ;;  %vm16386_vm4 = vcmp.lt.s32.totalorder %v15944_v30, 16 }
 0x2b9   : > { %vm16367_vm0 = vmmov %vm16363_vm15  ;;  %vm16369_vm9 = vcmp.ge.s32.totalorder %v16368_v3, 0  ;;  %vm16377_vm11 = vcmp.lt.s32.totalorder %v16368_v3, 16  ;;  %vm3060_vm15 = vcmp.eq.s32.totalorder %v10963_v14, 1  ;;  %v4141_v3 = vsel %vm4109_vm5, %v3885_v54, 0.0  ;;  %v3364_v54 = vld [vmem:[#allocation2 + $0xb8] sm:$0xff] }
 0x2ba   : > { %6778 = vmatmul.msk.f32.gmra.mxu1 %vm16367_vm0, %v3091_v46  ;;  %vm5113_vm2 = vmand %vm12133_vm13, %vm16369_vm9  ;;  %v12215_v46 = vpop.permute.xlu1 %4086  ;;  %v4645_v14 = vsel %vm12186_vm8, 1, %v14972_v36 }
 0x2bb   : > { %vm16370_vm3 = vmmov %vm16367_vm0  ;;  %16376 = vst [vmem:[#allocation29_spill] sm:$0xff] %v12215_v46  ;;  %v7101_v46 = vld [vmem:[#allocation2 + $0xd7] sm:$0xff]  ;;  %4704 = vperm.xlu1 %7011, %v4645_v14  }
 0x2bc   : > { %6808 = vmatmul.msk.f32.gmra.mxu2 %vm16370_vm3, %v3619_v28  ;;  %vm12197_vm12 = vmand %vm4486_vm10, %vm4518_vm14  ;;  %v16380_v28 = vld [vmem:[#allocation28_spill] sm:$0xff]  ;;  %vm3588_vm14 = vcmp.eq.s32.totalorder %v11353_v5, 1  ;;  %v3092_v41 = vsel %vm3060_vm15, %v7101_v46, 0.0  ;;  %v16393_v46 = vld [vmem:[#allocation27_spill] sm:$0xff] }
 0x2bd   : > { %vm12208_vm1 = vmand %vm12133_vm13, %vm16373_vm6  ;;  %vm16381_vm13 = vcmp.ge.s32.totalorder %v16380_v28, 0  ;;  %16384 = vst [vmem:[#allocation28_spill] sm:$0xff] %v12237_v61  ;;  %vm16389_vm5 = vcmp.lt.s32.totalorder %v16380_v28, 16  ;;  %v3620_v1 = vsel %vm3588_vm14, %v3364_v54, 0.0  ;;  %v16405_v54 = vld [vmem:[#allocation38_spill] sm:$0xff] }
 0x2be   : > { %vm12219_vm7 = vmand %vm5113_vm2, %vm16377_vm11  ;;  %vm4487_vm2 = vcmp.ge.s32.totalorder %v4455_v34, 0  ;;  %v7107_v61 = vld [vmem:[#allocation2 + $0xef] sm:$0xff] }
 0x2bf   : > { %vm12232_vm10 = vmand %vm12197_vm12, %vm16381_vm13  ;;  %v5177_v30 = vsel %vm12219_vm7, 1, %v14972_v36  ;;  %vm4110_vm13 = vcmp.eq.s32.totalorder %v11574_v45, 1  ;;  %v12344_v45 = vpop.f32.mrf.mxu3 }
 0x2c0   : > { %vm5677_vm0 = vmand %vm12208_vm1, %vm16386_vm4  ;;  %vm16394_vm1 = vcmp.ge.s32.totalorder %v16393_v46, 0  ;;  %5236 = vperm.xlu2 %7012, %v5177_v30   ;;  %vm16402_vm4 = vcmp.lt.s32.totalorder %v16393_v46, 16  ;;  %v12298_v14 = vpop.f32.mrf.mxu2  ;;  %v12311_v46 = vpop.f32.mrf.mxu1 }
 0x2c1   : > { %vm16387_vm9 = vmmov %vm16370_vm3  ;;  %vm4519_vm3 = vcmp.lt.s32.totalorder %v4455_v34, 16  ;;  %v5709_v34 = vsel %vm5677_vm0, 1, %v14972_v36  ;;  %16410 = vst [vmem:[#allocation143_spill] sm:$0xff] %v12311_v46  ;;  %v3365_v46 = vld [vmem:[#allocation2 + $0xc0] sm:$0xff] }
 0x2c2   : > { %6832 = vmatmul.msk.f32.gmra.mxu3 %vm16387_vm9, %v4141_v3  ;;  %vm12258_vm6 = vmand %vm12232_vm10, %vm16389_vm5  ;;  %vm16398_vm10 = vcmp.ge.s32.totalorder %v15963_v55, 0  ;;  %5768 = vperm.xlu0 %7010, %v5709_v34   ;;  %v12287_v33 = vpop.permute.xlu1 %4095  ;;  %v12296_v3 = vpop.permute.xlu2 %5200  ;;  %vm16411_vm5 = vcmp.lt.s32.totalorder %v15963_v55, 16 }
 0x2c3   : > { %vm16392_vm8 = vmmov %vm16387_vm9  ;;  %16401 = vst [vmem:[#allocation27_spill] sm:$0xff] %v12287_v33  ;;  %vm3061_vm9 = vcmp.eq.s32.totalorder %v10955_v52, 1  ;;  %v12309_v34 = vpop.permute.xlu0 %4092  ;;  %v4646_v26 = vsel %vm12258_vm6, 1, %v14972_v36  ;;  %v3366_v33 = vld [vmem:[#allocation2 + $0xc8] sm:$0xff] }
 0x2c4   : > { %6779 = vmatmul.msk.f32.gmra.mxu1 %vm16392_vm8, %v3092_v41  ;;  %vm5114_vm11 = vmand %vm12197_vm12, %vm16394_vm1  ;;  %v7102_v41 = vld [vmem:[%s14274_s2 + $0x80] sm:$0xff]  ;;  %16409 = vst [vmem:[#allocation38_spill] sm:$0xff] %v12309_v34  ;;  %4707 = vperm.xlu1 %7011, %v4646_v26  }
 0x2c5   : > { %vm16395_vm7 = vmmov %vm16392_vm8  ;;  %v4456_v28 = vadd.s32 1, %v7102_v41  ;;  %v12317_v41 = vpop.f32.mrf.mxu0 }
 0x2c6   : > { %6809 = vmatmul.msk.f32.gmra.mxu2 %vm16395_vm7, %v3620_v1  ;;  %vm12271_vm15 = vmand %vm4487_vm2, %vm4519_vm3  ;;  %vm3589_vm3 = vcmp.eq.s32.totalorder %v11184_v6, 1  ;;  %v4142_v1 = vsel %vm4110_vm13, %v3886_v10, 0.0  ;;  %v7103_v10 = vld [vmem:[#allocation2 + $0xdf] sm:$0xff]  ;;  %vm16413_vm13 = vcmp.lt.s32.totalorder %v16405_v54, 16  ;;  %v7104_v6 = vld [vmem:[%s14274_s2 + $0x88] sm:$0xff] }
 0x2c7   : > { %vm12280_vm14 = vmand %vm12197_vm12, %vm16398_vm10  ;;  %vm16406_vm12 = vcmp.ge.s32.totalorder %v16405_v54, 0  ;;  %v3093_v57 = vsel %vm3061_vm9, %v7103_v10, 0.0  ;;  %v3621_v44 = vsel %vm3589_vm3, %v3365_v46, 0.0  ;;  %v16454_v54 = vld [vmem:[#allocation70_spill] sm:$0xff] }
 0x2c8   : > { %vm12291_vm0 = vmand %vm5114_vm11, %vm16402_vm4  ;;  %vm4488_vm11 = vcmp.ge.s32.totalorder %v4456_v28, 0  ;;  %v12366_v46 = vpop.f32.mrf.mxu2 }
 0x2c9   : > { %vm12304_vm2 = vmand %vm12271_vm15, %vm16406_vm12  ;;  %v5178_v55 = vsel %vm12291_vm0, 1, %v14972_v36  ;;  %vm4111_vm12 = vcmp.eq.s32.totalorder %v11873_v42, 1  ;;  %v16427_v42 = vld [vmem:[#allocation106_spill] sm:$0xff] }
 0x2ca   : > { %vm5678_vm8 = vmand %vm12280_vm14, %vm16411_vm5  ;;  %5239 = vperm.xlu2 %7012, %v5178_v55   ;;  %v4669_v30 = vpop.permute.xlu1 %4668 }
 0x2cb   : > { %vm16412_vm1 = vmmov %vm16395_vm7  ;;  %vm4520_vm7 = vcmp.lt.s32.totalorder %v4456_v28, 16  ;;  %v5710_v52 = vsel %vm5678_vm8, 1, %v14972_v36  ;;  %v16417_v28 = vld [vmem:[#allocation37_spill] sm:$0xff] }
 0x2cc   : > { %6833 = vmatmul.msk.f32.gmra.mxu3 %vm16412_vm1, %v4142_v1  ;;  %vm12332_vm10 = vmand %vm12304_vm2, %vm16413_vm13  ;;  %vm16418_vm14 = vcmp.ge.s32.totalorder %v16417_v28, 0  ;;  %16419 = vst [vmem:[#allocation37_spill] sm:$0xff] %v12344_v45  ;;  %vm16423_vm2 = vcmp.ge.s32.totalorder %v15958_v20, 0  ;;  %5771 = vperm.xlu0 %7010, %v5710_v52   ;;  %vm16424_vm5 = vcmp.lt.s32.totalorder %v16417_v28, 16  ;;  %v3887_v1 = vld [vmem:[#allocation2 + $0x71] sm:$0xff]  ;;  %v12377_v52 = vpop.f32.mrf.mxu1  ;;  %vm16433_vm13 = vcmp.lt.s32.totalorder %v15958_v20, 16  ;;  %v12391_v20 = vpop.permute.xlu2 %5203 }
 0x2cd   : > { %vm16416_vm6 = vmmov %vm16412_vm1  ;;  %v4143_v55 = vsel %vm4111_vm12, %v3887_v1, 0.0  ;;  %16432 = vst [vmem:[#allocation106_spill] sm:$0xff] %v12377_v52  ;;  %v4647_v45 = vsel %vm12332_vm10, 1, %v14972_v36  ;;  %v7105_v1 = vld [vmem:[#allocation2 + $0xe7] sm:$0xff]  ;;  %vm16437_vm12 = vcmp.lt.s32.totalorder %v16428_v59, 16 }
 0x2ce   : > { %6780 = vmatmul.msk.f32.gmra.mxu1 %vm16416_vm6, %v3093_v57  ;;  %vm5115_vm4 = vmand %vm12271_vm15, %vm16418_vm14  ;;  %v4457_v57 = vadd.s32 1, %v7104_v6  ;;  %v4408_v6 = vld [vmem:[#allocation2 + $0x27] sm:$0xff]  ;;  %4710 = vperm.xlu1 %7011, %v4647_v45  }
 0x2cf   : > { %vm16420_vm0 = vmmov %vm16412_vm1  ;;  %vm3062_vm1 = vcmp.eq.s32.totalorder %v16427_v42, 1 }
 0x2d0   : > { %6810 = vmatmul.msk.f32.gmra.mxu2 %vm16420_vm0, %v3621_v44  ;;  %vm12347_vm9 = vmand %vm4488_vm11, %vm4520_vm7  ;;  %vm3590_vm7 = vcmp.eq.s32.totalorder %v11417_v15, 1  ;;  %v4666_v44 = vpop.permute.xlu0 %4665  ;;  %v3094_v52 = vsel %vm3062_vm1, %v7105_v1, 0.0  ;;  %v12447_v28 = vpop.f32.mrf.mxu2  ;;  %v16486_v15 = vld [vmem:[#allocation81_spill] sm:$0xff] }
 0x2d1   : > { %vm5647_vm3 = vmand %vm12271_vm15, %vm16423_vm2  ;;  %vm16429_vm15 = vcmp.ge.s32.totalorder %v16428_v59, 0  ;;  %vm4760_vm14 = vcmp.eq.s32.totalorder %v4666_v44, 1  ;;  %vm4521_vm2 = vcmp.lt.s32.totalorder %v4457_v57, 16  ;;  %v3622_v42 = vsel %vm3590_vm7, %v3366_v33, 0.0  ;;  %v16442_v59 = vld [vmem:[#allocation35_spill] sm:$0xff] }
 0x2d2   : > { %vm12361_vm8 = vmand %vm5115_vm4, %vm16424_vm5  ;;  %v4792_v34 = vsel %vm4760_vm14, %v4408_v6, 0.0  ;;  %vm4112_vm7 = vcmp.eq.s32.totalorder %v11851_v29, 1  ;;  %v12438_v10 = vpop.permute.xlu1 %5732  ;;  %vm16451_vm14 = vcmp.lt.s32.totalorder %v16442_v59, 16  ;;  %16455 = vst [vmem:[#allocation35_spill] sm:$0xff] %v12447_v28  ;;  %v16456_v6 = vld [vmem:[#allocation34_spill] sm:$0xff]  ;;  %v3367_v33 = vld [vmem:[#allocation2 + $0xd0] sm:$0xff] }
 0x2d3   : > { %vm12372_vm11 = vmand %vm12347_vm9, %vm16429_vm15  ;;  %v5179_v44 = vsel %vm12361_vm8, 1, %v14972_v36  ;;  %vm16443_vm8 = vcmp.ge.s32.totalorder %v16442_v59, 0  ;;  %v4409_v59 = vld [vmem:[#allocation2 + $0x2f] sm:$0xff] }
 0x2d4   : > { %vm12381_vm6 = vmand %vm5647_vm3, %vm16433_vm13  ;;  %5242 = vperm.xlu2 %7012, %v5179_v44   ;;  %vm16447_vm13 = vcmp.ge.s32.totalorder %v15961_v23, 0 }
 0x2d5   : > { %vm16436_vm4 = vmmov %vm16420_vm0  ;;  %vm4489_vm0 = vcmp.ge.s32.totalorder %v4457_v57, 0  ;;  %v5711_v26 = vsel %vm12381_vm6, 1, %v14972_v36  ;;  %v12436_v57 = vpop.f32.mrf.mxu3 }
 0x2d6   : > { %6834 = vmatmul.msk.f32.gmra.mxu3 %vm16436_vm4, %v4143_v55  ;;  %vm12400_vm3 = vmand %vm12372_vm11, %vm16437_vm12  ;;  %v12404_v55 = vpop.f32.mrf.mxu0  ;;  %16450 = vst [vmem:[#allocation36_spill] sm:$0xff] %v12436_v57  ;;  %5774 = vperm.xlu0 %7010, %v5711_v26   ;;  %v16466_v57 = vld [vmem:[#allocation121_spill] sm:$0xff] }
 0x2d7   : > { %vm16440_vm10 = vmmov %vm16436_vm4 }
 0x2d8   : > { %6781 = vmatmul.msk.f32.gmra.mxu1 %vm16440_vm10, %v3094_v52  ;;  %vm16441_vm5 = vmmov %vm16436_vm4  ;;  %v3888_v52 = vld [vmem:[#allocation2 + $0x79] sm:$0xff]  ;;  %vm3591_vm10 = vcmp.eq.s32.totalorder %v11405_v31, 1  ;;  %v12504_v31 = vpop.permute.xlu2 %5206 }
 0x2d9   : > { %6857 = vmatmul.msk.f32.vlgmr.msra.gmra.mxu0 %vm16441_vm5, %v4792_v34  ;;  %vm5116_vm1 = vmand %vm12347_vm9, %vm16443_vm8  ;;  %v7106_v34 = vld [vmem:[%s14274_s2 + $0x90] sm:$0xff]  ;;  %v4144_v44 = vsel %vm4112_vm7, %v3888_v52, 0.0  ;;  %vm16461_vm5 = vcmp.lt.s32.totalorder %v15961_v23, 16  ;;  %v16465_v52 = vld [vmem:[#allocation76_spill] sm:$0xff]  ;;  %vm16467_vm7 = vcmp.lt.s32.totalorder %v16456_v6, 16 }
 0x2da   : > { %vm16444_vm15 = vmmov %vm16436_vm4  ;;  %v4458_v45 = vadd.s32 1, %v7106_v34  ;;  %v4648_v34 = vsel %vm12400_vm3, 1, %v14972_v36 }
 0x2db   : > { %6811 = vmatmul.msk.f32.gmra.mxu2 %vm16444_vm15, %v3622_v42  ;;  %vm12420_vm11 = vmand %vm4489_vm0, %vm4521_vm2  ;;  %vm4761_vm0 = vcmp.eq.s32.totalorder %v4669_v30, 1  ;;  %vm16457_vm2 = vcmp.ge.s32.totalorder %v16456_v6, 0  ;;  %v12458_v42 = vpop.f32.mrf.mxu1  ;;  %v16472_v30 = vld [vmem:[#allocation33_spill] sm:$0xff]  ;;  %4713 = vperm.xlu1 %7011, %v4648_v34   ;;  %v4672_v34 = vpop.permute.xlu1 %4671 }
 0x2dc   : > { %vm12429_vm6 = vmand %vm12347_vm9, %vm16447_vm13  ;;  %vm3063_vm9 = vcmp.eq.s32.totalorder %v16454_v54, 1  ;;  %16460 = vst [vmem:[#allocation70_spill] sm:$0xff] %v12458_v42  ;;  %vm4522_vm13 = vcmp.lt.s32.totalorder %v4458_v45, 16  ;;  %v2014_v42 = vadd.f32 %v16466_v57, %v16465_v52  ;;  %v4793_v28 = vsel %vm4761_vm0, %v4409_v59, 0.0  ;;  %v16476_v54 = vld [vmem:[#allocation77_spill] sm:$0xff]  ;;  %v3891_v52 = vld [vmem:[#allocation2 + $0x91] sm:$0xff] }
 0x2dd   : > { %vm12442_vm4 = vmand %vm5116_vm1, %vm16451_vm14  ;;  %v3095_v23 = vsel %vm3063_vm9, %v7107_v61, 0.0  ;;  %v3623_v57 = vsel %vm3591_vm10, %v3367_v33, 0.0  ;;  %vm16480_vm10 = vcmp.ge.s32.totalorder %v15982_v0, 0  ;;  %v3769_v33 = vpop.f32.mrf.mxu2 }
 0x2de   : > { %vm12453_vm12 = vmand %vm12420_vm11, %vm16457_vm2  ;;  %v2691_v6 = vadd.f32 %v16476_v54, %v2014_v42  ;;  %v12513_v1 = vpop.f32.mrf.mxu0 }
 0x2df   : > { %vm12464_vm8 = vmand %vm12429_vm6, %vm16461_vm5 }
 0x2e0   : > { %vm16464_vm1 = vmmov %vm16444_vm15  ;;  %vm4490_vm15 = vcmp.ge.s32.totalorder %v4458_v45, 0  ;;  %v5712_v61 = vsel %vm12464_vm8, 1, %v14972_v36  ;;  %v7108_v45 = vld [vmem:[%s14274_s2 + $0x98] sm:$0xff]  ;;  %v3319_v59 = vadd.f32 %v12171_v48, %v2691_v6  ;;  %vm16483_vm8 = vcmp.lt.s32.totalorder %v16472_v30, 16 }
 0x2e1   : > { %6835 = vmatmul.msk.f32.gmra.mxu3 %vm16464_vm1, %v4144_v44  ;;  %v5180_v44 = vsel %vm12442_vm4, 1, %v14972_v36  ;;  %vm12484_vm3 = vmand %vm12453_vm12, %vm16467_vm7  ;;  %vm16473_vm4 = vcmp.ge.s32.totalorder %v16472_v30, 0  ;;  %vm4113_vm12 = vcmp.eq.s32.totalorder %v11644_v37, 1  ;;  %v4459_v26 = vadd.s32 1, %v7108_v45  ;;  %5777 = vperm.xlu0 %7010, %v5712_v61   ;;  %v12548_v30 = vpop.f32.mrf.mxu3  ;;  %v7109_v37 = vld [vmem:[#allocation2 + $0xf7] sm:$0xff] }
 0x2e2   : > { %vm16470_vm6 = vmmov %vm16464_vm1  ;;  %5245 = vperm.xlu2 %7012, %v5180_v44   ;;  %v4410_v44 = vld [vmem:[#allocation2 + $0x37] sm:$0xff]  ;;  %16491 = vst [vmem:[#allocation34_spill] sm:$0xff] %v12548_v30  ;;  %v12550_v29 = vadd.f32 %v3769_v33, %v3319_v59  ;;  %v4649_v45 = vsel %vm12484_vm3, 1, %v14972_v36 }
 0x2e3   : > { %6782 = vmatmul.msk.f32.gmra.mxu1 %vm16470_vm6, %v3095_v23  ;;  %vm16471_vm14 = vmmov %vm16464_vm1  ;;  %v3889_v23 = vld [vmem:[#allocation2 + $0x81] sm:$0xff]  ;;  %vm3592_vm6 = vcmp.eq.s32.totalorder %v11231_v49, 1  ;;  %v12552_v6 = vpop.f32.mrf.mxu1  ;;  %4716 = vperm.xlu1 %7011, %v4649_v45   ;;  %v16560_v48 = vld [vmem:[#allocation84_spill] sm:$0xff] }
 0x2e4   : > { %6858 = vmatmul.msk.f32.gmra.mxu0 %vm16471_vm14, %v4793_v28  ;;  %vm12499_vm9 = vmand %vm12420_vm11, %vm16473_vm4  ;;  %v4145_v61 = vsel %vm4113_vm12, %v3889_v23, 0.0  ;;  %vm16492_vm14 = vcmp.lt.s32.totalorder %v15982_v0, 16  ;;  %vm4523_vm12 = vcmp.lt.s32.totalorder %v4459_v26, 16  ;;  %v7110_v23 = vld [vmem:[%s14274_s2 + $0xa0] sm:$0xff]  ;;  %v16510_v28 = vld [vmem:[#allocation110_spill] sm:$0xff] }
 0x2e5   : > { %vm16477_vm0 = vmmov %vm16464_vm1  ;;  %v4460_v33 = vadd.s32 1, %v7110_v23  ;;  %v12612_v45 = vpop.f32.mrf.mxu2 }
 0x2e6   : > { %6812 = vmatmul.msk.f32.gmra.mxu2 %vm16477_vm0, %v3623_v57  ;;  %vm12509_vm2 = vmand %vm4490_vm15, %vm4522_vm13  ;;  %vm4762_vm15 = vcmp.eq.s32.totalorder %v4672_v34, 1  ;;  %v16487_v57 = vld [vmem:[#allocation44_spill] sm:$0xff] }
 0x2e7   : > { %vm12520_vm5 = vmand %vm12420_vm11, %vm16480_vm10  ;;  %vm3064_vm11 = vcmp.eq.s32.totalorder %v16486_v15, 1  ;;  %vm16488_vm13 = vcmp.ge.s32.totalorder %v16487_v57, 0  ;;  %v4794_v54 = vsel %vm4762_vm15, %v4410_v44, 0.0  ;;  %v3368_v34 = vld [vmem:[#allocation2 + $0xd8] sm:$0xff]  ;;  %vm16494_vm10 = vcmp.lt.s32.totalorder %v16487_v57, 16  ;;  %v16499_v15 = vld [vmem:[#allocation43_spill] sm:$0xff]  ;;  %v12601_v44 = vpop.permute.xlu2 %5209  ;;  %v4675_v57 = vpop.permute.xlu1 %4674 }
 0x2e8   : > { %vm12532_vm1 = vmand %vm12499_vm9, %vm16483_vm8  ;;  %v3096_v59 = vsel %vm3064_vm11, %v7109_v37, 0.0  ;;  %v3624_v5 = vsel %vm3592_vm6, %v3368_v34, 0.0  ;;  %vm16500_vm11 = vcmp.ge.s32.totalorder %v16499_v15, 0  ;;  %vm16504_vm6 = vcmp.ge.s32.totalorder %v15975_v11, 0  ;;  %v4411_v37 = vld [vmem:[#allocation2 + $0x3f] sm:$0xff]  ;;  %v7112_v34 = vld [vmem:[%s14274_s2 + $0xa8] sm:$0xff] }
 0x2e9   : > { %vm12541_vm7 = vmand %vm12509_vm2, %vm16488_vm13  ;;  %v5181_v0 = vsel %vm12532_vm1, 1, %v14972_v36 }
 0x2ea   : > { %vm5681_vm4 = vmand %vm12520_vm5, %vm16492_vm14  ;;  %5248 = vperm.xlu2 %7012, %v5181_v0  }
 0x2eb   : > { %vm16493_vm9 = vmmov %vm16477_vm0  ;;  %vm4491_vm0 = vcmp.ge.s32.totalorder %v4459_v26, 0  ;;  %v5713_v26 = vsel %vm5681_vm4, 1, %v14972_v36  ;;  %vm16507_vm4 = vcmp.lt.s32.totalorder %v16499_v15, 16  ;;  %v12627_v15 = vpop.f32.mrf.mxu1 }
 0x2ec   : > { %6836 = vmatmul.msk.f32.gmra.mxu3 %vm16493_vm9, %v4145_v61  ;;  %vm12571_vm5 = vmand %vm12541_vm7, %vm16494_vm10  ;;  %vm4114_vm7 = vcmp.eq.s32.totalorder %v11947_v38, 1  ;;  %5780 = vperm.xlu0 %7010, %v5713_v26   ;;  %v12610_v61 = vpop.f32.mrf.mxu0  ;;  %v7111_v38 = vld [vmem:[#allocation2 + $0xff] sm:$0xff] }
 0x2ed   : > { %vm16497_vm3 = vmmov %vm16493_vm9  ;;  %v4650_v23 = vsel %vm12571_vm5, 1, %v14972_v36 }
 0x2ee   : > { %6783 = vmatmul.msk.f32.gmra.mxu1 %vm16497_vm3, %v3096_v59  ;;  %vm16498_vm8 = vmmov %vm16497_vm3  ;;  %v16511_v59 = vld [vmem:[#allocation42_spill] sm:$0xff]  ;;  %4719 = vperm.xlu1 %7011, %v4650_v23   ;;  %v16535_v23 = vld [vmem:[#allocation71_spill] sm:$0xff] }
 0x2ef   : > { %6859 = vmatmul.msk.f32.gmra.mxu0 %vm16498_vm8, %v4794_v54  ;;  %vm5118_vm1 = vmand %vm12509_vm2, %vm16500_vm11  ;;  %v3890_v54 = vld [vmem:[#allocation2 + $0x89] sm:$0xff]  ;;  %vm16515_vm8 = vcmp.lt.s32.totalorder %v15975_v11, 16 }
 0x2f0   : > { %vm16501_vm15 = vmmov %vm16497_vm3  ;;  %vm3593_vm3 = vcmp.eq.s32.totalorder %v11469_v60, 1  ;;  %v4146_v0 = vsel %vm4114_vm7, %v3890_v54, 0.0  ;;  %v3369_v54 = vld [vmem:[#allocation2 + $0xe0] sm:$0xff]  ;;  %vm16518_vm7 = vcmp.lt.s32.totalorder %v16511_v59, 16  ;;  %v16528_v60 = vld [vmem:[#allocation92_spill] sm:$0xff] }
 0x2f1   : > { %6813 = vmatmul.msk.f32.gmra.mxu2 %vm16501_vm15, %v3624_v5  ;;  %vm12585_vm13 = vmand %vm4491_vm0, %vm4523_vm12  ;;  %vm4763_vm0 = vcmp.eq.s32.totalorder %v4675_v57, 1  ;;  %vm16512_vm12 = vcmp.ge.s32.totalorder %v16511_v59, 0  ;;  %v12625_v5 = vpop.permute.xlu0 %5197  ;;  %v3625_v49 = vsel %vm3593_vm3, %v3369_v54, 0.0  ;;  %vm16529_vm3 = vcmp.ge.s32.totalorder %v16528_v60, 0  ;;  %v16536_v54 = vld [vmem:[#allocation40_spill] sm:$0xff] }
 0x2f2   : > { %vm12594_vm14 = vmand %vm12509_vm2, %vm16504_vm6  ;;  %vm3065_vm2 = vcmp.eq.s32.totalorder %v16510_v28, 1  ;;  %v4795_v26 = vsel %vm4763_vm0, %v4411_v37, 0.0  ;;  %vm4524_vm6 = vcmp.lt.s32.totalorder %v4460_v33, 16  ;;  %v12639_v37 = vpop.f32.mrf.mxu3 }
 0x2f3   : > { %vm12605_vm9 = vmand %vm5118_vm1, %vm16507_vm4  ;;  %v3097_v57 = vsel %vm3065_vm2, %v7111_v38, 0.0  ;;  %16517 = vst [vmem:[#allocation76_spill] sm:$0xff] %v12639_v37  ;;  %v12686_v38 = vpop.f32.mrf.mxu2 }
 0x2f4   : > { %vm12618_vm10 = vmand %vm12585_vm13, %vm16512_vm12  ;;  %v5182_v11 = vsel %vm12605_vm9, 1, %v14972_v36  ;;  %v12705_v37 = vpop.f32.mrf.mxu0 }
 0x2f5   : > { %vm5682_vm11 = vmand %vm12594_vm14, %vm16515_vm8  ;;  %5251 = vperm.xlu2 %7012, %v5182_v11  }
 0x2f6   : > { %vm16516_vm1 = vmmov %vm16501_vm15  ;;  %vm4492_vm15 = vcmp.ge.s32.totalorder %v4460_v33, 0  ;;  %v5714_v28 = vsel %vm5682_vm11, 1, %v14972_v36  ;;  %v4461_v33 = vadd.s32 1, %v7112_v34  ;;  %v12699_v34 = vpop.f32.mrf.mxu1 }
 0x2f7   : > { %6837 = vmatmul.msk.f32.gmra.mxu3 %vm16516_vm1, %v4146_v0  ;;  %vm12648_vm14 = vmand %vm12618_vm10, %vm16518_vm7  ;;  %v16523_v0 = vld [vmem:[#allocation41_spill] sm:$0xff]  ;;  %vm4115_vm10 = vcmp.eq.s32.totalorder %v11925_v27, 1  ;;  %5783 = vperm.xlu0 %7010, %v5714_v28   ;;  %v12697_v28 = vpop.permute.xlu2 %5212  ;;  %16540 = vst [vmem:[#allocation121_spill] sm:$0xff] %v12699_v34 }
 0x2f8   : > { %vm16521_vm5 = vmmov %vm16516_vm1  ;;  %vm16524_vm2 = vcmp.ge.s32.totalorder %v16523_v0, 0  ;;  %vm16532_vm11 = vcmp.lt.s32.totalorder %v16523_v0, 16  ;;  %v4651_v30 = vsel %vm12648_vm14, 1, %v14972_v36 }
 0x2f9   : > { %6784 = vmatmul.msk.f32.gmra.mxu1 %vm16521_vm5, %v3097_v57  ;;  %vm16522_vm4 = vmmov %vm16516_vm1  ;;  %v4412_v57 = vld [vmem:[#allocation2 + $0x47] sm:$0xff]  ;;  %vm3594_vm5 = vcmp.eq.s32.totalorder %v11455_v17, 1  ;;  %v12713_v34 = vpop.permute.xlu0 %5735  ;;  %4722 = vperm.xlu1 %7011, %v4651_v30   ;;  %v7113_v30 = vld [vmem:[%s14274_s2 + $0xb0] sm:$0xff] }
 0x2fa   : > { %6860 = vmatmul.msk.f32.gmra.mxu0 %vm16522_vm4, %v4795_v26  ;;  %vm5119_vm9 = vmand %vm12585_vm13, %vm16524_vm2  ;;  %v4678_v26 = vpop.permute.xlu1 %4677  ;;  %vm16541_vm4 = vcmp.lt.s32.totalorder %v16528_v60, 16  ;;  %v12735_v27 = vpop.f32.mrf.mxu3  ;;  %v3893_v17 = vld [vmem:[#allocation2 + $0xa1] sm:$0xff] }
 0x2fb   : > { %vm16525_vm0 = vmmov %vm16516_vm1  ;;  %16550 = vst [vmem:[#allocation33_spill] sm:$0xff] %v12735_v27  ;;  %v16582_v27 = vld [vmem:[#allocation48_spill] sm:$0xff] }
 0x2fc   : > { %6814 = vmatmul.msk.f32.gmra.mxu2 %vm16525_vm0, %v3625_v49  ;;  %vm12663_vm12 = vmand %vm4492_vm15, %vm4524_vm6  ;;  %vm3066_vm15 = vcmp.eq.s32.totalorder %v16535_v23, 1  ;;  %vm16537_vm6 = vcmp.ge.s32.totalorder %v16536_v54, 0  ;;  %v4147_v49 = vsel %vm4115_vm10, %v3891_v52, 0.0  ;;  %vm4525_vm10 = vcmp.lt.s32.totalorder %v4461_v33, 16 }
 0x2fd   : > { %vm12672_vm8 = vmand %vm12585_vm13, %vm16529_vm3  ;;  %vm4764_vm13 = vcmp.eq.s32.totalorder %v4678_v26, 1  ;;  %v2746_v26 = vld [vmem:[#allocation2 + $0x107] sm:$0xff]  ;;  %vm16543_vm3 = vcmp.lt.s32.totalorder %v16536_v54, 16  ;;  %v7114_v54 = vld [vmem:[#allocation2 + $0xf0] sm:$0xff] }
 0x2fe   : > { %vm12681_vm1 = vmand %vm5119_vm9, %vm16532_vm11  ;;  %v4796_v0 = vsel %vm4764_vm13, %v4412_v57, 0.0  ;;  %v3098_v52 = vsel %vm3066_vm15, %v2746_v26, 0.0  ;;  %v3370_v57 = vld [vmem:[#allocation2 + $0xe8] sm:$0xff] }
 0x2ff   : > { %vm12692_vm7 = vmand %vm12663_vm12, %vm16537_vm6  ;;  %v5183_v60 = vsel %vm12681_vm1, 1, %v14972_v36  ;;  %v3626_v42 = vsel %vm3594_vm5, %v3370_v57, 0.0  ;;  %vm16554_vm5 = vcmp.ge.s32.totalorder %v16001_v12, 0  ;;  %v3892_v57 = vld [vmem:[#allocation2 + $0x99] sm:$0xff] }
 0x300   : > { %vm5683_vm2 = vmand %vm12672_vm8, %vm16541_vm4  ;;  %5254 = vperm.xlu2 %7012, %v5183_v60   ;;  %v12762_v60 = vpop.f32.mrf.mxu2 }
 0x301   : > { %vm16542_vm9 = vmmov %vm16525_vm0  ;;  %vm4493_vm0 = vcmp.ge.s32.totalorder %v4461_v33, 0  ;;  %v5715_v23 = vsel %vm5683_vm2, 1, %v14972_v36  ;;  %v4462_v33 = vadd.s32 1, %v7113_v30  ;;  %v12771_v30 = vpop.f32.mrf.mxu1  ;;  %v12801_v26 = vpop.permute.xlu0 %5738 }
 0x302   : > { %6838 = vmatmul.msk.f32.gmra.mxu3 %vm16542_vm9, %v4147_v49  ;;  %vm12722_vm8 = vmand %vm12692_vm7, %vm16543_vm3  ;;  %v16548_v49 = vld [vmem:[#allocation39_spill] sm:$0xff]  ;;  %vm4116_vm7 = vcmp.eq.s32.totalorder %v11716_v16, 1  ;;  %5786 = vperm.xlu0 %7010, %v5715_v23   ;;  %v4681_v11 = vpop.permute.xlu1 %4680  ;;  %16563 = vst [vmem:[#allocation77_spill] sm:$0xff] %v12771_v30 }
 0x303   : > { %vm16546_vm14 = vmmov %vm16542_vm9  ;;  %vm16549_vm15 = vcmp.ge.s32.totalorder %v16548_v49, 0  ;;  %vm16557_vm2 = vcmp.lt.s32.totalorder %v16548_v49, 16  ;;  %v4148_v23 = vsel %vm4116_vm7, %v3892_v57, 0.0  ;;  %v12792_v57 = vpop.f32.mrf.mxu0 }
 0x304   : > { %6785 = vmatmul.msk.f32.gmra.mxu1 %vm16546_vm14, %v3098_v52  ;;  %vm16547_vm11 = vmmov %vm16542_vm9  ;;  %v2747_v52 = vld [vmem:[#allocation2 + $0x10f] sm:$0xff]  ;;  %vm3595_vm14 = vcmp.eq.s32.totalorder %v11308_v25, 1 }
 0x305   : > { %6861 = vmatmul.msk.f32.gmra.mxu0 %vm16547_vm11, %v4796_v0  ;;  %vm5120_vm1 = vmand %vm12663_vm12, %vm16549_vm15  ;;  %v4413_v0 = vld [vmem:[#allocation2 + $0x4f] sm:$0xff]  ;;  %vm16564_vm11 = vcmp.lt.s32.totalorder %v16001_v12, 16 }
 0x306   : > { %vm16551_vm13 = vmmov %vm16542_vm9 }
 0x307   : > { %6815 = vmatmul.msk.f32.gmra.mxu2 %vm16551_vm13, %v3626_v42  ;;  %vm12739_vm6 = vmand %vm4493_vm0, %vm4525_vm10  ;;  %vm4765_vm0 = vcmp.eq.s32.totalorder %v4681_v11, 1  ;;  %v16561_v42 = vld [vmem:[#allocation50_spill] sm:$0xff]  ;;  %v4652_v11 = vsel %vm12722_vm8, 1, %v14972_v36 }
 0x308   : > { %vm12748_vm4 = vmand %vm12663_vm12, %vm16554_vm5  ;;  %vm3067_vm12 = vcmp.eq.s32.totalorder %v16560_v48, 1  ;;  %vm16562_vm10 = vcmp.ge.s32.totalorder %v16561_v42, 0  ;;  %v4797_v49 = vsel %vm4765_vm0, %v4413_v0, 0.0  ;;  %vm4526_vm5 = vcmp.lt.s32.totalorder %v4462_v33, 16  ;;  %v12781_v48 = vpop.permute.xlu2 %5215  ;;  %4725 = vperm.xlu1 %7011, %v4652_v11  }
 0x309   : > { %vm12757_vm9 = vmand %vm5120_vm1, %vm16557_vm2  ;;  %v3099_v25 = vsel %vm3067_vm12, %v2747_v52, 0.0  ;;  %vm16566_vm7 = vcmp.lt.s32.totalorder %v16561_v42, 16  ;;  %v3627_v0 = vsel %vm3595_vm14, %v7114_v54, 0.0  ;;  %v16571_v52 = vld [vmem:[#allocation49_spill] sm:$0xff]  ;;  %v12804_v42 = vpop.f32.mrf.mxu3  ;;  %vm16576_vm14 = vcmp.ge.s32.totalorder %v15994_v62, 0 }
 0x30a   : > { %vm4589_vm3 = vmand %vm12739_vm6, %vm16562_vm10  ;;  %v5184_v16 = vsel %vm12757_vm9, 1, %v14972_v36  ;;  %vm16572_vm12 = vcmp.ge.s32.totalorder %v16571_v52, 0  ;;  %v4684_v54 = vpop.permute.xlu1 %4683 }
 0x30b   : > { %vm5684_vm15 = vmand %vm12748_vm4, %vm16564_vm11  ;;  %5257 = vperm.xlu2 %7012, %v5184_v16   ;;  %v12834_v16 = vpop.f32.mrf.mxu2 }
 0x30c   : > { %vm16565_vm1 = vmmov %vm16551_vm13  ;;  %vm4494_vm13 = vcmp.ge.s32.totalorder %v4462_v33, 0  ;;  %v5716_v59 = vsel %vm5684_vm15, 1, %v14972_v36  ;;  %v7115_v33 = vld [vmem:[%s14274_s2 + $0xb8] sm:$0xff]  ;;  %vm16579_vm15 = vcmp.lt.s32.totalorder %v16571_v52, 16 }
 0x30d   : > { %6839 = vmatmul.msk.f32.gmra.mxu3 %vm16565_vm1, %v4148_v23  ;;  %vm12788_vm2 = vmand %vm4589_vm3, %vm16566_vm7  ;;  %vm4117_vm3 = vcmp.eq.s32.totalorder %v12017_v18, 1  ;;  %5789 = vperm.xlu0 %7010, %v5716_v59   ;;  %v3372_v18 = vld [vmem:[#allocation2 + $0xf8] sm:$0xff]  ;;  %v2597_v59 = vpop.f32.mrf.mxu0 }
 0x30e   : > { %vm16569_vm8 = vmmov %vm16565_vm1  ;;  %v4653_v30 = vsel %vm12788_vm2, 1, %v14972_v36 }
 0x30f   : > { %6786 = vmatmul.msk.f32.gmra.mxu1 %vm16569_vm8, %v3099_v25  ;;  %vm16570_vm4 = vmmov %vm16565_vm1  ;;  %v4463_v25 = vadd.s32 1, %v7115_v33  ;;  %vm3596_vm8 = vcmp.eq.s32.totalorder %v11523_v22, 1 }
 0x310   : > { %6862 = vmatmul.msk.f32.gmra.mxu0 %vm16570_vm4, %v4797_v49  ;;  %vm5121_vm9 = vmand %vm12739_vm6, %vm16572_vm12  ;;  %v1996_v49 = vadd.f32 %v12040_v39, %v11446_v21  ;;  %vm16586_vm4 = vcmp.lt.s32.totalorder %v15994_v62, 16  ;;  %v3628_v12 = vsel %vm3596_vm8, %v3372_v18, 0.0  ;;  %v16593_v21 = vld [vmem:[#allocation47_spill] sm:$0xff]  ;;  %4728 = vperm.xlu1 %7011, %v4653_v30  }
 0x311   : > { %vm16573_vm0 = vmmov %vm16565_vm1  ;;  %v4283_v22 = vpop.f32.mrf.mxu3  ;;  %v3894_v18 = vld [vmem:[#allocation2 + $0xa9] sm:$0xff] }
 0x312   : > { %6816 = vmatmul.msk.f32.gmra.mxu2 %vm16573_vm0, %v3627_v0  ;;  %vm12808_vm10 = vmand %vm4494_vm13, %vm4526_vm5  ;;  %v2685_v39 = vadd.f32 %v12705_v37, %v1996_v49  ;;  %v4414_v0 = vld [vmem:[#allocation2 + $0x57] sm:$0xff]  ;;  %vm4766_vm13 = vcmp.eq.s32.totalorder %v4684_v54, 1  ;;  %vm16583_vm5 = vcmp.ge.s32.totalorder %v16582_v27, 0  ;;  %v4149_v37 = vsel %vm4117_vm3, %v3893_v17, 0.0  ;;  %v12847_v49 = vpop.f32.mrf.mxu1  ;;  %v5068_v54 = vld [vmem:[#allocation2 + $0x28] sm:$0xff] }
 0x313   : > { %vm12819_vm11 = vmand %vm12739_vm6, %vm16576_vm14  ;;  %vm5292_vm6 = vcmp.eq.s32.totalorder %v12625_v5, 1  ;;  %v4798_v52 = vsel %vm4766_vm13, %v4414_v0, 0.0  ;;  %vm4527_vm14 = vcmp.lt.s32.totalorder %v4463_v25, 16  ;;  %vm16588_vm3 = vcmp.lt.s32.totalorder %v16582_v27, 16 }
 0x314   : > { %vm12828_vm1 = vmand %vm5121_vm9, %vm16579_vm15  ;;  %v3313_v33 = vadd.f32 %v11732_v43, %v2685_v39  ;;  %v5324_v17 = vsel %vm5292_vm6, %v5068_v54, 0.0  ;;  %v12885_v39 = vpop.permute.xlu2 %5218  ;;  %v1999_v0 = vadd.f32 %v12137_v50, %v11514_v53  ;;  %v12910_v53 = vpop.permute.xlu0 %5741 }
 0x315   : > { %vm12840_vm7 = vmand %vm12808_vm10, %vm16583_vm5  ;;  %v5185_v62 = vsel %vm12828_vm1, 1, %v14972_v36  ;;  %vm16594_vm1 = vcmp.ge.s32.totalorder %v16593_v21, 0  ;;  %v4687_v50 = vpop.permute.xlu1 %4686 }
 0x316   : > { %vm5685_vm12 = vmand %vm12819_vm11, %vm16586_vm4  ;;  %v3845_v11 = vadd.f32 %v12074_v2, %v3313_v33  ;;  %5260 = vperm.xlu2 %7012, %v5185_v62   ;;  %v2686_v23 = vadd.f32 %v12792_v57, %v1999_v0  ;;  %v4415_v62 = vld [vmem:[#allocation2 + $0x5f] sm:$0xff] }
 0x317   : > { %vm16587_vm9 = vmmov %vm16573_vm0  ;;  %vm4495_vm0 = vcmp.ge.s32.totalorder %v4463_v25, 0  ;;  %v5717_v5 = vsel %vm5685_vm12, 1, %v14972_v36  ;;  %v7116_v25 = vld [vmem:[%s14274_s2 + $0xc0] sm:$0xff]  ;;  %vm16604_vm12 = vcmp.lt.s32.totalorder %v16593_v21, 16 }
 0x318   : > { %6840 = vmatmul.msk.f32.gmra.mxu3 %vm16587_vm9, %v4149_v37  ;;  %vm12867_vm11 = vmand %vm12840_vm7, %vm16588_vm3  ;;  %vm4118_vm7 = vcmp.eq.s32.totalorder %v11997_v47, 1  ;;  %v12897_v37 = vadd.f32 %v4283_v22, %v3845_v11  ;;  %v4464_v33 = vadd.s32 1, %v7116_v25  ;;  %5792 = vperm.xlu0 %7010, %v5717_v5   ;;  %v3314_v27 = vadd.f32 %v11807_v24, %v2686_v23  ;;  %v5069_v22 = vld [vmem:[#allocation2 + $0x30] sm:$0xff]  ;;  %v3373_v47 = vld [vmem:[#allocation2 + $0x100] sm:$0xff] }
 0x319   : > { %vm16591_vm2 = vmmov %vm16587_vm9  ;;  %v4150_v57 = vsel %vm4118_vm7, %v3894_v18, 0.0  ;;  %v4654_v0 = vsel %vm12867_vm11, 1, %v14972_v36  ;;  %v6200_v23 = vld [vmem:[%s14280_s8] sm:$0xff]  ;;  %v2002_v18 = vadd.f32 %v12224_v4, %v11593_v7  ;;  %v7117_v11 = vld [vmem:[%s14274_s2 + $0xc8] sm:$0xff] }
 0x31a   : > { %6863 = vmatmul.msk.f32.gmra.mxu0 %vm16591_vm2, %v4798_v52  ;;  %vm16592_vm15 = vmmov %vm16591_vm2  ;;  %v16600_v52 = vld [vmem:[#allocation95_spill] sm:$0xff]  ;;  %v12935_v21 = vpop.f32.mrf.mxu1  ;;  %v3846_v30 = vadd.f32 %v12162_v35, %v3314_v27  ;;  %4731 = vperm.xlu1 %7011, %v4654_v0   ;;  %v2600_v27 = vpop.f32.mrf.mxu0  ;;  %v16649_v2 = vld [vmem:[#allocation97_spill] sm:$0xff] }
 0x31b   : > { %6891 = vmatmul.msk.f32.vlgmr.msra.gmra.mxu1 %vm16592_vm15, %v5324_v17  ;;  %vm12881_vm6 = vmand %vm12808_vm10, %vm16594_vm1  ;;  %vm16601_vm8 = vcmp.ge.s32.totalorder %v16600_v52, 0  ;;  %v12922_v17 = vpop.f32.mrf.mxu2  ;;  %vm16611_vm15 = vcmp.lt.s32.totalorder %v16600_v52, 16  ;;  %6317 = vmatpush.msra.mxu3 %v6200_v23 }
 0x31c   : > { %vm16597_vm13 = vmmov %vm16591_vm2  ;;  %vm3597_vm2 = vcmp.eq.s32.totalorder %v11505_v58, 1  ;;  %v4286_v58 = vpop.f32.mrf.mxu3  ;;  %v12998_v7 = vpop.permute.xlu2 %5221 }
 0x31d   : > { %6817 = vmatmul.msk.f32.gmra.mxu2 %vm16597_vm13, %v3628_v12  ;;  %vm12890_vm5 = vmand %vm4495_vm0, %vm4527_vm14  ;;  %vm4767_vm0 = vcmp.eq.s32.totalorder %v4687_v50, 1  ;;  %v16607_v12 = vld [vmem:[#allocation46_spill] sm:$0xff]  ;;  %v3629_v43 = vsel %vm3597_vm2, %v3373_v47, 0.0  ;;  %v16618_v50 = vld [vmem:[#allocation45_spill] sm:$0xff]  ;;  %v4690_v4 = vpop.permute.xlu1 %4689 }
 0x31e   : > { %vm12903_vm4 = vmand %vm12808_vm10, %vm16601_vm8  ;;  %vm5293_vm10 = vcmp.eq.s32.totalorder %v12296_v3, 1  ;;  %vm16608_vm14 = vcmp.ge.s32.totalorder %v16607_v12, 0  ;;  %v4799_v5 = vsel %vm4767_vm0, %v4415_v62, 0.0  ;;  %vm4528_vm8 = vcmp.lt.s32.totalorder %v4464_v33, 16  ;;  %v4416_v47 = vld [vmem:[#allocation2 + $0x67] sm:$0xff] }
 0x31f   : > { %vm12916_vm9 = vmand %vm12881_vm6, %vm16604_vm12  ;;  %v5325_v25 = vsel %vm5293_vm10, %v5069_v22, 0.0  ;;  %vm16613_vm7 = vcmp.lt.s32.totalorder %v16607_v12, 16  ;;  %v12985_v62 = vadd.f32 %v4286_v58, %v3846_v30  ;;  %v16625_v12 = vld [vmem:[#allocation99_spill] sm:$0xff]  ;;  %v13022_v30 = vpop.permute.xlu0 %5744  ;;  %v5070_v58 = vld [vmem:[#allocation2 + $0x38] sm:$0xff] }
 0x320   : > { %vm12928_vm3 = vmand %vm12890_vm5, %vm16608_vm14  ;;  %v5186_v52 = vsel %vm12916_vm9, 1, %v14972_v36  ;;  %vm16619_vm9 = vcmp.ge.s32.totalorder %v16618_v50, 0  ;;  %vm16626_vm2 = vcmp.ge.s32.totalorder %v16625_v12, 0  ;;  %v3895_v22 = vld [vmem:[#allocation2 + $0xb1] sm:$0xff] }
 0x321   : > { %vm5686_vm1 = vmand %vm12903_vm4, %vm16611_vm15  ;;  %5263 = vperm.xlu2 %7012, %v5186_v52  }
 0x322   : > { %vm16612_vm6 = vmmov %vm16597_vm13  ;;  %vm4496_vm13 = vcmp.ge.s32.totalorder %v4464_v33, 0  ;;  %v5718_v3 = vsel %vm5686_vm1, 1, %v14972_v36  ;;  %vm16629_vm1 = vcmp.lt.s32.totalorder %v16618_v50, 16  ;;  %v13024_v50 = vpop.f32.mrf.mxu1  ;;  %v16643_v33 = vld [vmem:[#allocation55_spill] sm:$0xff] }
 0x323   : > { %6841 = vmatmul.msk.f32.gmra.mxu3 %vm16612_vm6, %v4150_v57  ;;  %vm12955_vm4 = vmand %vm12928_vm3, %vm16613_vm7  ;;  %vm4119_vm3 = vcmp.eq.s32.totalorder %v11798_v56, 1  ;;  %v4465_v57 = vadd.s32 1, %v7117_v11  ;;  %5795 = vperm.xlu0 %7010, %v5718_v3   ;;  %v13009_v0 = vpop.f32.mrf.mxu2 }
 0x324   : > { %vm16616_vm11 = vmmov %vm16612_vm6  ;;  %v4655_v56 = vsel %vm12955_vm4, 1, %v14972_v36  ;;  %v4289_v11 = vpop.f32.mrf.mxu3 }
 0x325   : > { %6864 = vmatmul.msk.f32.gmra.mxu0 %vm16616_vm11, %v4799_v5  ;;  %vm16617_vm12 = vmmov %vm16612_vm6  ;;  %v2687_v5 = vadd.f32 %v2597_v59, %v2002_v18  ;;  %vm3598_vm11 = vcmp.eq.s32.totalorder %v11358_v32, 1  ;;  %v4151_v59 = vsel %vm4119_vm3, %v3895_v22, 0.0  ;;  %vm4529_vm3 = vcmp.lt.s32.totalorder %v4465_v57, 16  ;;  %4734 = vperm.xlu1 %7011, %v4655_v56   ;;  %v7118_v22 = vld [vmem:[%s14274_s2 + $0xd0] sm:$0xff]  ;;  %v16660_v56 = vld [vmem:[#allocation4_spill] sm:$0xff] }
 0x326   : > { %6892 = vmatmul.msk.f32.gmra.mxu1 %vm16617_vm12, %v5325_v25  ;;  %vm12969_vm10 = vmand %vm12890_vm5, %vm16619_vm9  ;;  %v16632_v25 = vld [vmem:[#allocation57_spill] sm:$0xff]  ;;  %vm16636_vm12 = vcmp.lt.s32.totalorder %v16625_v12, 16 }
 0x327   : > { %vm16622_vm0 = vmmov %vm16612_vm6  ;;  %v3315_v54 = vadd.f32 %v11875_v63, %v2687_v5 }
 0x328   : > { %6818 = vmatmul.msk.f32.gmra.mxu2 %vm16622_vm0, %v3629_v43  ;;  %vm12975_vm14 = vmand %vm4496_vm13, %vm4528_vm8  ;;  %vm4768_vm13 = vcmp.eq.s32.totalorder %v4690_v4, 1  ;;  %vm16633_vm8 = vcmp.ge.s32.totalorder %v16632_v25, 0  ;;  %v3374_v43 = vld [vmem:[#allocation2 + $0x108] sm:$0xff] }
 0x329   : > { %vm12991_vm15 = vmand %vm12890_vm5, %vm16626_vm2  ;;  %vm5294_vm5 = vcmp.eq.s32.totalorder %v12391_v20, 1  ;;  %v4800_v3 = vsel %vm4768_vm13, %v4416_v47, 0.0  ;;  %vm16638_vm2 = vcmp.lt.s32.totalorder %v16632_v25, 16  ;;  %v3630_v24 = vsel %vm3598_vm11, %v3374_v43, 0.0  ;;  %v3896_v43 = vld [vmem:[#allocation2 + $0xb9] sm:$0xff]  ;;  %v16676_v25 = vld [vmem:[#allocation18_spill] sm:$0xff] }
 0x32a   : > { %vm13004_vm6 = vmand %vm12969_vm10, %vm16629_vm1  ;;  %v5326_v23 = vsel %vm5294_vm5, %v5070_v58, 0.0  ;;  %v3847_v12 = vadd.f32 %v12226_v51, %v3315_v54  ;;  %v16648_v51 = vld [vmem:[#allocation139_spill] sm:$0xff]  ;;  %vm16650_vm11 = vcmp.ge.s32.totalorder %v16649_v2, 0  ;;  %v4466_v47 = vadd.s32 1, %v7118_v22  ;;  %v16671_v22 = vld [vmem:[#allocation53_spill] sm:$0xff] }
 0x32b   : > { %vm13015_vm7 = vmand %vm12975_vm14, %vm16633_vm8  ;;  %v5187_v18 = vsel %vm13004_vm6, 1, %v14972_v36  ;;  %vm16644_vm6 = vcmp.ge.s32.totalorder %v16643_v33, 0  ;;  %v13086_v35 = vpop.f32.mrf.mxu2  ;;  %v3375_v58 = vld [vmem:[#allocation2 + $0x110] sm:$0xff] }
 0x32c   : > { %vm5687_vm9 = vmand %vm12991_vm15, %vm16636_vm12  ;;  %5266 = vperm.xlu2 %7012, %v5187_v18   ;;  %v13066_v4 = vadd.f32 %v4289_v11, %v3847_v12  ;;  %v5071_v11 = vld [vmem:[#allocation2 + $0x40] sm:$0xff]  ;;  %v16684_v12 = vld [vmem:[#allocation52_spill] sm:$0xff] }
 0x32d   : > { %vm16637_vm10 = vmmov %vm16622_vm0  ;;  %vm4497_vm0 = vcmp.ge.s32.totalorder %v4465_v57, 0  ;;  %v5719_v20 = vsel %vm5687_vm9, 1, %v14972_v36  ;;  %v2005_v57 = vadd.f32 %v12317_v41, %v16648_v51  ;;  %v4693_v41 = vpop.permute.xlu1 %4692  ;;  %vm16653_vm9 = vcmp.lt.s32.totalorder %v16643_v33, 16 }
 0x32e   : > { %6842 = vmatmul.msk.f32.gmra.mxu3 %vm16637_vm10, %v4151_v59  ;;  %vm13044_vm15 = vmand %vm13015_vm7, %vm16638_vm2  ;;  %vm4120_vm7 = vcmp.eq.s32.totalorder %v12085_v9, 1  ;;  %5798 = vperm.xlu0 %7010, %v5719_v20   ;;  %v4417_v59 = vld [vmem:[#allocation2 + $0x6f] sm:$0xff]  ;;  %v2603_v20 = vpop.f32.mrf.mxu0 }
 0x32f   : > { %vm16641_vm4 = vmmov %vm16637_vm10  ;;  %v2688_v52 = vadd.f32 %v2600_v27, %v2005_v57  ;;  %v4152_v27 = vsel %vm4120_vm7, %v3896_v43, 0.0  ;;  %v4656_v9 = vsel %vm13044_vm15, 1, %v14972_v36  ;;  %vm4530_vm7 = vcmp.lt.s32.totalorder %v4466_v47, 16  ;;  %v13118_v57 = vpop.permute.xlu0 %5747 }
 0x330   : > { %6865 = vmatmul.msk.f32.gmra.mxu0 %vm16641_vm4, %v4800_v3  ;;  %vm16642_vm1 = vmmov %vm16641_vm4  ;;  %v16656_v3 = vld [vmem:[#allocation54_spill] sm:$0xff]  ;;  %vm3599_vm4 = vcmp.eq.s32.totalorder %v16660_v56, 1  ;;  %4737 = vperm.xlu1 %7011, %v4656_v9  }
 0x331   : > { %6893 = vmatmul.msk.f32.gmra.mxu1 %vm16642_vm1, %v5326_v23  ;;  %vm5124_vm5 = vmand %vm12975_vm14, %vm16644_vm6  ;;  %v13099_v23 = vpop.permute.xlu2 %5224  ;;  %v3316_v33 = vadd.f32 %v11949_v19, %v2688_v52  ;;  %v3631_v63 = vsel %vm3599_vm4, %v3375_v58, 0.0  ;;  %v2008_v52 = vadd.f32 %v12404_v55, %v16676_v25  ;;  %v16704_v58 = vld [vmem:[#allocation118_spill] sm:$0xff] }
 0x332   : > { %vm16645_vm13 = vmmov %vm16642_vm1  ;;  %vm16662_vm1 = vcmp.lt.s32.totalorder %v16649_v2, 16 }
 0x333   : > { %6819 = vmatmul.msk.f32.gmra.mxu2 %vm16645_vm13, %v3630_v24  ;;  %vm13059_vm8 = vmand %vm4497_vm0, %vm4529_vm3  ;;  %vm4769_vm0 = vcmp.eq.s32.totalorder %v4693_v41, 1  ;;  %vm16657_vm3 = vcmp.ge.s32.totalorder %v16656_v3, 0  ;;  %v13101_v24 = vpop.f32.mrf.mxu1  ;;  %v4292_v41 = vpop.f32.mrf.mxu3  ;;  %v2689_v56 = vadd.f32 %v2603_v20, %v2008_v52 }
 0x334   : > { %vm13072_vm12 = vmand %vm12975_vm14, %vm16650_vm11  ;;  %vm5295_vm14 = vcmp.eq.s32.totalorder %v12504_v31, 1  ;;  %v4801_v18 = vsel %vm4769_vm0, %v4417_v59, 0.0  ;;  %16661 = vst [vmem:[#allocation81_spill] sm:$0xff] %v13101_v24  ;;  %vm16666_vm11 = vcmp.lt.s32.totalorder %v16656_v3, 16  ;;  %v3848_v31 = vadd.f32 %v12298_v14, %v3316_v33  ;;  %v16677_v59 = vld [vmem:[#allocation98_spill] sm:$0xff]  ;;  %v13172_v32 = vpop.f32.mrf.mxu2 }
 0x335   : > { %vm13081_vm10 = vmand %vm5124_vm5, %vm16653_vm9  ;;  %v5327_v51 = vsel %vm5295_vm14, %v5071_v11, 0.0  ;;  %vm16678_vm4 = vcmp.ge.s32.totalorder %v16677_v59, 0  ;;  %v4696_v55 = vpop.permute.xlu1 %4695 }
 0x336   : > { %vm13092_vm2 = vmand %vm13059_vm8, %vm16657_vm3  ;;  %v5188_v2 = vsel %vm13081_vm10, 1, %v14972_v36  ;;  %vm16672_vm10 = vcmp.ge.s32.totalorder %v16671_v22, 0  ;;  %v13152_v43 = vadd.f32 %v4292_v41, %v3848_v31  ;;  %v2606_v19 = vpop.f32.mrf.mxu0  ;;  %v7120_v41 = vld [vmem:[#allocation2 + $0x29] sm:$0xff] }
 0x337   : > { %vm13107_vm6 = vmand %vm13072_vm12, %vm16662_vm1  ;;  %5269 = vperm.xlu2 %7012, %v5188_v2   ;;  %v3317_v2 = vadd.f32 %v12019_v13, %v2689_v56  ;;  %v13227_v3 = vpop.permute.xlu0 %5750 }
 0x338   : > { %vm16665_vm5 = vmmov %vm16645_vm13  ;;  %vm4498_vm13 = vcmp.ge.s32.totalorder %v4466_v47, 0  ;;  %v5720_v5 = vsel %vm13107_vm6, 1, %v14972_v36  ;;  %v7119_v47 = vld [vmem:[%s14274_s2 + $0xd8] sm:$0xff]  ;;  %vm16681_vm6 = vcmp.lt.s32.totalorder %v16671_v22, 16 }
 0x339   : > { %6843 = vmatmul.msk.f32.gmra.mxu3 %vm16665_vm5, %v4152_v27  ;;  %vm13127_vm12 = vmand %vm13092_vm2, %vm16666_vm11  ;;  %vm4121_vm2 = vcmp.eq.s32.totalorder %v12065_v8, 1  ;;  %v4467_v54 = vadd.s32 1, %v7119_v47  ;;  %5801 = vperm.xlu0 %7010, %v5720_v5   ;;  %v3897_v27 = vld [vmem:[#allocation2 + $0xc1] sm:$0xff]  ;;  %v13202_v5 = vpop.permute.xlu2 %5227  ;;  %v3849_v25 = vadd.f32 %v12366_v46, %v3317_v2  ;;  %v16703_v47 = vld [vmem:[#allocation15_spill] sm:$0xff] }
 0x33a   : > { %vm16669_vm15 = vmmov %vm16665_vm5  ;;  %v4153_v11 = vsel %vm4121_vm2, %v3897_v27, 0.0  ;;  %v4657_v8 = vsel %vm13127_vm12, 1, %v14972_v36  ;;  %v16705_v27 = vld [vmem:[#allocation102_spill] sm:$0xff]  ;;  %v16712_v2 = vld [vmem:[#allocation64_spill] sm:$0xff] }
 0x33b   : > { %6866 = vmatmul.msk.f32.gmra.mxu0 %vm16669_vm15, %v4801_v18  ;;  %vm16670_vm9 = vmmov %vm16665_vm5  ;;  %v4418_v18 = vld [vmem:[#allocation2 + $0x77] sm:$0xff]  ;;  %vm5824_vm15 = vcmp.eq.s32.totalorder %v12202_v40, 1  ;;  %v13185_v9 = vpop.f32.mrf.mxu1  ;;  %vm4531_vm2 = vcmp.lt.s32.totalorder %v4467_v54, 16  ;;  %4740 = vperm.xlu1 %7011, %v4657_v8   ;;  %v4295_v40 = vpop.f32.mrf.mxu3 }
 0x33c   : > { %6894 = vmatmul.msk.f32.gmra.mxu1 %vm16670_vm9, %v5327_v51  ;;  %vm5125_vm14 = vmand %vm13059_vm8, %vm16672_vm10  ;;  %16688 = vst [vmem:[#allocation44_spill] sm:$0xff] %v13185_v9  ;;  %vm16689_vm9 = vcmp.lt.s32.totalorder %v16677_v59, 16  ;;  %v16698_v59 = vld [vmem:[#allocation51_spill] sm:$0xff]  ;;  %v13239_v56 = vadd.f32 %v4295_v40, %v3849_v25  ;;  %v13259_v14 = vpop.f32.mrf.mxu2  ;;  %v4419_v51 = vld [vmem:[#allocation2 + $0x7f] sm:$0xff] }
 0x33d   : > { %vm16673_vm0 = vmmov %vm16665_vm5  ;;  %v7122_v40 = vld [vmem:[#allocation2 + $0x31] sm:$0xff]  ;;  %v16765_v25 = vld [vmem:[#allocation58_spill] sm:$0xff] }
 0x33e   : > { %6820 = vmatmul.msk.f32.gmra.mxu2 %vm16673_vm0, %v3631_v63  ;;  %vm13145_vm3 = vmand %vm4498_vm13, %vm4530_vm7  ;;  %vm4770_vm13 = vcmp.eq.s32.totalorder %v4696_v55, 1  ;;  %vm16685_vm7 = vcmp.ge.s32.totalorder %v16684_v12, 0  ;;  %v5072_v63 = vld [vmem:[#allocation2 + $0x48] sm:$0xff]  ;;  %v2011_v55 = vadd.f32 %v12513_v1, %v16703_v47  ;;  %v7121_v1 = vld [vmem:[%s14274_s2 + $0xe0] sm:$0xff] }
 0x33f   : > { %vm13158_vm1 = vmand %vm13059_vm8, %vm16678_vm4  ;;  %vm5296_vm8 = vcmp.eq.s32.totalorder %v12601_v44, 1  ;;  %v4802_v20 = vsel %vm4770_vm13, %v4418_v18, 0.0  ;;  %vm16693_vm4 = vcmp.lt.s32.totalorder %v16684_v12, 16  ;;  %v5856_v44 = vsel %vm5824_vm15, %v7120_v41, 0.0  ;;  %v16727_v18 = vld [vmem:[#allocation100_spill] sm:$0xff] }
 0x340   : > { %vm13167_vm5 = vmand %vm5125_vm14, %vm16681_vm6  ;;  %v5328_v31 = vsel %vm5296_vm8, %v5072_v63, 0.0  ;;  %vm16706_vm15 = vcmp.ge.s32.totalorder %v16705_v27, 0  ;;  %v4468_v33 = vadd.s32 1, %v7121_v1 }
 0x341   : > { %vm13178_vm11 = vmand %vm13145_vm3, %vm16685_vm7  ;;  %v5189_v22 = vsel %vm13167_vm5, 1, %v14972_v36  ;;  %vm16699_vm5 = vcmp.ge.s32.totalorder %v16698_v59, 0 }
 0x342   : > { %vm13191_vm10 = vmand %vm13158_vm1, %vm16689_vm9  ;;  %5272 = vperm.xlu2 %7012, %v5189_v22  }
 0x343   : > { %vm16692_vm14 = vmmov %vm16673_vm0  ;;  %vm4499_vm0 = vcmp.ge.s32.totalorder %v4467_v54, 0  ;;  %v5721_v52 = vsel %vm13191_vm10, 1, %v14972_v36  ;;  %v4699_v54 = vpop.permute.xlu1 %4698  ;;  %vm16709_vm10 = vcmp.lt.s32.totalorder %v16698_v59, 16 }
 0x344   : > { %6844 = vmatmul.msk.f32.gmra.mxu3 %vm16692_vm14, %v4153_v11  ;;  %vm13211_vm1 = vmand %vm13178_vm11, %vm16693_vm4  ;;  %vm4122_vm11 = vcmp.eq.s32.totalorder %v16704_v58, 1  ;;  %5804 = vperm.xlu0 %7010, %v5721_v52   ;;  %v2690_v11 = vadd.f32 %v2606_v19, %v2011_v55  ;;  %v5073_v19 = vld [vmem:[#allocation2 + $0x50] sm:$0xff]  ;;  %v13296_v58 = vpop.permute.xlu2 %5230 }
 0x345   : > { %vm16696_vm12 = vmmov %vm16692_vm14  ;;  %v4658_v41 = vsel %vm13211_vm1, 1, %v14972_v36  ;;  %v16721_v52 = vld [vmem:[#allocation35_spill] sm:$0xff] }
 0x346   : > { %6867 = vmatmul.msk.f32.gmra.mxu0 %vm16696_vm12, %v4802_v20  ;;  %vm16697_vm6 = vmmov %vm16696_vm12  ;;  %v3898_v20 = vld [vmem:[#allocation2 + $0xc9] sm:$0xff]  ;;  %vm5825_vm12 = vcmp.eq.s32.totalorder %v12438_v10, 1  ;;  %4743 = vperm.xlu1 %7011, %v4658_v41  }
 0x347   : > { %6895 = vmatmul.msk.f32.gmra.mxu1 %vm16697_vm6, %v5328_v31  ;;  %vm5126_vm8 = vmand %vm13145_vm3, %vm16699_vm5  ;;  %v4154_v63 = vsel %vm4122_vm11, %v3898_v20, 0.0  ;;  %v13268_v31 = vpop.f32.mrf.mxu1  ;;  %v5857_v47 = vsel %vm5825_vm12, %v7122_v40, 0.0  ;;  %v16724_v55 = vld [vmem:[#allocation63_spill] sm:$0xff] }
 0x348   : > { %vm16700_vm13 = vmmov %vm16697_vm6  ;;  %16714 = vst [vmem:[#allocation43_spill] sm:$0xff] %v13268_v31  ;;  %vm16715_vm6 = vcmp.lt.s32.totalorder %v16705_v27, 16  ;;  %v4298_v27 = vpop.f32.mrf.mxu3  ;;  %v16869_v31 = vld [vmem:[#allocation24_spill] sm:$0xff] }
 0x349   : > { %6925 = vmatmul.msk.f32.vlgmr.msra.gmra.mxu2 %vm16700_vm13, %v5856_v44  ;;  %vm13232_vm7 = vmand %vm4499_vm0, %vm4531_vm2  ;;  %vm4771_vm0 = vcmp.eq.s32.totalorder %v4699_v54, 1  ;;  %vm16713_vm2 = vcmp.ge.s32.totalorder %v16712_v2, 0  ;;  %v16729_v54 = vld [vmem:[#allocation30_spill] sm:$0xff] }
 0x34a   : > { %vm13245_vm9 = vmand %vm13145_vm3, %vm16706_vm15  ;;  %vm5297_vm3 = vcmp.eq.s32.totalorder %v12697_v28, 1  ;;  %v4803_v8 = vsel %vm4771_vm0, %v4419_v51, 0.0  ;;  %v16716_v28 = vld [vmem:[#allocation119_spill] sm:$0xff]  ;;  %vm4500_vm15 = vcmp.ge.s32.totalorder %v4468_v33, 0  ;;  %vm4123_vm12 = vcmp.eq.s32.totalorder %v16729_v54, 1  ;;  %v16750_v54 = vld [vmem:[#allocation101_spill] sm:$0xff] }
 0x34b   : > { %vm13251_vm14 = vmand %vm5126_vm8, %vm16709_vm10  ;;  %v3318_v22 = vadd.f32 %v16716_v28, %v2690_v11  ;;  %v5329_v44 = vsel %vm5297_vm3, %v5073_v19, 0.0  ;;  %v13312_v11 = vpop.permute.xlu0 %5753  ;;  %v4702_v20 = vpop.permute.xlu1 %4701  ;;  %v3899_v51 = vld [vmem:[#allocation2 + $0xd1] sm:$0xff] }
 0x34c   : > { %vm4595_vm4 = vmand %vm13232_vm7, %vm16713_vm2  ;;  %v5190_v10 = vsel %vm13251_vm14, 1, %v14972_v36  ;;  %vm16725_vm14 = vcmp.ge.s32.totalorder %v16724_v55, 0  ;;  %vm16728_vm2 = vcmp.ge.s32.totalorder %v16727_v18, 0  ;;  %v13378_v46 = vpop.permute.xlu2 %5233 }
 0x34d   : > { %vm5690_vm5 = vmand %vm13245_vm9, %vm16715_vm6  ;;  %vm4532_vm9 = vcmp.lt.s32.totalorder %v4468_v33, 16  ;;  %v3850_v59 = vadd.f32 %v16721_v52, %v3318_v22  ;;  %5275 = vperm.xlu2 %7012, %v5190_v10   ;;  %v4420_v33 = vld [vmem:[#allocation2 + $0x87] sm:$0xff]  ;;  %v4155_v22 = vsel %vm4123_vm12, %v3899_v51, 0.0  ;;  %v5074_v10 = vld [vmem:[#allocation2 + $0x58] sm:$0xff] }
 0x34e   : > { %vm16717_vm8 = vmmov %vm16700_vm13  ;;  %vm16718_vm13 = vcmp.lt.s32.totalorder %v16712_v2, 16  ;;  %v5722_v13 = vsel %vm5690_vm5, 1, %v14972_v36  ;;  %vm16732_vm5 = vcmp.lt.s32.totalorder %v16724_v55, 16  ;;  %v13321_v2 = vpop.f32.mrf.mxu2  ;;  %v16747_v55 = vld [vmem:[#allocation61_spill] sm:$0xff] }
 0x34f   : > { %6845 = vmatmul.msk.f32.gmra.mxu3 %vm16717_vm8, %v4154_v63  ;;  %vm13284_vm11 = vmand %vm4595_vm4, %vm16718_vm13  ;;  %v13304_v12 = vadd.f32 %v4298_v27, %v3850_v59  ;;  %5807 = vperm.xlu0 %7010, %v5722_v13   ;;  %vm4772_vm13 = vcmp.eq.s32.totalorder %v4702_v20, 1  ;;  %v13335_v41 = vpop.f32.mrf.mxu1  ;;  %v5602_v59 = vld [vmem:[#allocation2 + $0x39] sm:$0xff]  ;;  %v16749_v27 = vld [vmem:[#allocation31_spill] sm:$0xff] }
 0x350   : > { %vm16722_vm10 = vmmov %vm16717_vm8  ;;  %v4804_v19 = vsel %vm4772_vm13, %v4420_v33, 0.0  ;;  %16738 = vst [vmem:[#allocation110_spill] sm:$0xff] %v13335_v41  ;;  %v4659_v52 = vsel %vm13284_vm11, 1, %v14972_v36  ;;  %v3900_v63 = vld [vmem:[#allocation2 + $0xd9] sm:$0xff]  ;;  %v3902_v33 = vld [vmem:[#allocation2 + $0xe9] sm:$0xff] }
 0x351   : > { %6868 = vmatmul.msk.f32.gmra.mxu0 %vm16722_vm10, %v4803_v8  ;;  %vm16723_vm1 = vmmov %vm16717_vm8  ;;  %v7123_v8 = vld [vmem:[%s14274_s2 + $0xe8] sm:$0xff]  ;;  %vm5826_vm10 = vcmp.eq.s32.totalorder %v12713_v34, 1  ;;  %4746 = vperm.xlu1 %7011, %v4659_v52   ;;  %v5075_v52 = vld [vmem:[#allocation2 + $0x60] sm:$0xff] }
 0x352   : > { %6896 = vmatmul.msk.f32.gmra.mxu1 %vm16723_vm1, %v5329_v44  ;;  %vm5127_vm3 = vmand %vm13232_vm7, %vm16725_vm14  ;;  %v4469_v28 = vadd.s32 1, %v7123_v8  ;;  %v16739_v44 = vld [vmem:[#allocation62_spill] sm:$0xff] }
 0x353   : > { %vm16726_vm0 = vmmov %vm16723_vm1  ;;  %vm16740_vm1 = vcmp.ge.s32.totalorder %v16739_v44, 0  ;;  %v4705_v51 = vpop.permute.xlu1 %4704  ;;  %v4421_v8 = vld [vmem:[#allocation2 + $0x8f] sm:$0xff] }
 0x354   : > { %6926 = vmatmul.msk.f32.gmra.mxu2 %vm16726_vm0, %v5857_v47  ;;  %vm5659_vm4 = vmand %vm13232_vm7, %vm16728_vm2  ;;  %vm5298_vm7 = vcmp.eq.s32.totalorder %v12781_v48, 1  ;;  %v5858_v47 = vsel %vm5826_vm10, %v5602_v59, 0.0  ;;  %vm4501_vm12 = vcmp.ge.s32.totalorder %v4469_v28, 0  ;;  %v4301_v48 = vpop.f32.mrf.mxu3  ;;  %v16761_v59 = vld [vmem:[#allocation60_spill] sm:$0xff] }
 0x355   : > { %vm13308_vm6 = vmand %vm4500_vm15, %vm4532_vm9  ;;  %vm16735_vm15 = vcmp.lt.s32.totalorder %v16727_v18, 16  ;;  %v5330_v40 = vsel %vm5298_vm7, %v5074_v10, 0.0  ;;  %v13368_v18 = vadd.f32 %v4301_v48, %v12550_v29 }
 0x356   : > { %vm13316_vm8 = vmand %vm5127_vm3, %vm16732_vm5  ;;  %vm4533_vm5 = vcmp.lt.s32.totalorder %v4469_v28, 16  ;;  %v13385_v29 = vpop.f32.mrf.mxu2  ;;  %v13390_v28 = vpop.permute.xlu0 %5756 }
 0x357   : > { %vm13325_vm9 = vmand %vm5659_vm4, %vm16735_vm15  ;;  %v5191_v34 = vsel %vm13316_vm8, 1, %v14972_v36  ;;  %vm16743_vm4 = vcmp.lt.s32.totalorder %v16739_v44, 16  ;;  %vm16748_vm8 = vcmp.ge.s32.totalorder %v16747_v55, 0  ;;  %vm4124_vm15 = vcmp.eq.s32.totalorder %v16749_v27, 1  ;;  %16756 = vst [vmem:[#allocation42_spill] sm:$0xff] %v13385_v29  ;;  %v7124_v44 = vld [vmem:[%s14274_s2 + $0xf0] sm:$0xff] }
 0x358   : > { %vm4596_vm14 = vmand %vm13308_vm6, %vm16740_vm1  ;;  %v5723_v13 = vsel %vm13325_vm9, 1, %v14972_v36  ;;  %5278 = vperm.xlu2 %7012, %v5191_v34   ;;  %vm16751_vm9 = vcmp.ge.s32.totalorder %v16750_v54, 0  ;;  %v4156_v1 = vsel %vm4124_vm15, %v3900_v63, 0.0  ;;  %v4470_v10 = vadd.s32 1, %v7124_v44  ;;  %v16772_v27 = vld [vmem:[#allocation105_spill] sm:$0xff]  ;;  %v13449_v44 = vpop.permute.xlu2 %5236 }
 0x359   : > { %vm16741_vm3 = vmmov %vm16726_vm0  ;;  %6869 = vmatmul.msk.f32.gmra.mxu0 %vm16726_vm0, %v4804_v19  ;;  %5810 = vperm.xlu0 %7010, %v5723_v13   ;;  %v13392_v19 = vpop.f32.mrf.mxu1  ;;  %v3901_v63 = vld [vmem:[#allocation2 + $0xe1] sm:$0xff] }
 0x35a   : > { %6846 = vmatmul.msk.f32.gmra.mxu3 %vm16741_vm3, %v4155_v22  ;;  %vm16742_vm2 = vmmov %vm16726_vm0  ;;  %vm4773_vm3 = vcmp.eq.s32.totalorder %v4705_v51, 1  ;;  %16758 = vst [vmem:[#allocation41_spill] sm:$0xff] %v13392_v19  ;;  %v16812_v51 = vld [vmem:[#allocation65_spill] sm:$0xff] }
 0x35b   : > { %6897 = vmatmul.msk.f32.gmra.mxu1 %vm16742_vm2, %v5330_v40  ;;  %vm13357_vm11 = vmand %vm4596_vm14, %vm16743_vm4  ;;  %vm5299_vm14 = vcmp.eq.s32.totalorder %v12885_v39, 1  ;;  %vm5827_vm2 = vcmp.eq.s32.totalorder %v12801_v26, 1  ;;  %v4805_v22 = vsel %vm4773_vm3, %v4421_v8, 0.0  ;;  %vm16759_vm4 = vcmp.lt.s32.totalorder %v16750_v54, 16  ;;  %v4708_v20 = vpop.permute.xlu1 %4707  ;;  %v16791_v54 = vld [vmem:[#allocation103_spill] sm:$0xff] }
 0x35c   : > { %vm16746_vm7 = vmmov %vm16726_vm0  ;;  %v4660_v26 = vsel %vm13357_vm11, 1, %v14972_v36  ;;  %v5331_v40 = vsel %vm5299_vm14, %v5075_v52, 0.0  ;;  %vm16766_vm11 = vcmp.ge.s32.totalorder %v16765_v25, 0  ;;  %vm16768_vm14 = vcmp.lt.s32.totalorder %v16761_v59, 16 }
 0x35d   : > { %6927 = vmatmul.msk.f32.gmra.mxu2 %vm16746_vm7, %v5858_v47  ;;  %vm5128_vm13 = vmand %vm13308_vm6, %vm16748_vm8  ;;  %v7125_v47 = vld [vmem:[#allocation2 + $0x41] sm:$0xff]  ;;  %4749 = vperm.xlu1 %7011, %v4660_v26  }
 0x35e   : > { %vm13374_vm10 = vmand %vm13308_vm6, %vm16751_vm9  ;;  %vm16757_vm6 = vcmp.lt.s32.totalorder %v16747_v55, 16  ;;  %v5859_v13 = vsel %vm5827_vm2, %v7125_v47, 0.0  ;;  %v16771_v55 = vld [vmem:[#allocation112_spill] sm:$0xff]  ;;  %v13442_v8 = vpop.f32.mrf.mxu2  ;;  %v5076_v26 = vld [vmem:[#allocation2 + $0x68] sm:$0xff]  ;;  %v13466_v47 = vpop.permute.xlu0 %5759 }
 0x35f   : > { %vm13380_vm1 = vmand %vm4501_vm12, %vm4533_vm5  ;;  %vm4125_vm2 = vcmp.eq.s32.totalorder %v16771_v55, 1  ;;  %16779 = vst [vmem:[#allocation92_spill] sm:$0xff] %v13442_v8  ;;  %v13475_v55 = vpop.f32.mrf.mxu3 }
 0x360   : > { %vm5160_vm0 = vmand %vm5128_vm13, %vm16757_vm6  ;;  %vm4502_vm6 = vcmp.ge.s32.totalorder %v4470_v10, 0 }
 0x361   : > { %vm5692_vm12 = vmand %vm13374_vm10, %vm16759_vm4  ;;  %v5192_v34 = vsel %vm5160_vm0, 1, %v14972_v36  ;;  %vm4534_vm0 = vcmp.lt.s32.totalorder %v4470_v10, 16  ;;  %vm16773_vm4 = vcmp.ge.s32.totalorder %v16772_v27, 0  ;;  %v13451_v52 = vpop.f32.mrf.mxu1 }
 0x362   : > { %vm16760_vm5 = vmmov %vm16746_vm7  ;;  %vm16762_vm7 = vcmp.ge.s32.totalorder %v16761_v59, 0  ;;  %v5724_v48 = vsel %vm5692_vm12, 1, %v14972_v36  ;;  %5281 = vperm.xlu2 %7012, %v5192_v34   ;;  %16782 = vst [vmem:[#allocation71_spill] sm:$0xff] %v13451_v52 }
 0x363   : > { %6847 = vmatmul.msk.f32.gmra.mxu3 %vm16760_vm5, %v4156_v1  ;;  %vm4597_vm8 = vmand %vm13380_vm1, %vm16762_vm7  ;;  %5813 = vperm.xlu0 %7010, %v5724_v48   ;;  %v4422_v1 = vld [vmem:[#allocation2 + $0x97] sm:$0xff] }
 0x364   : > { %vm16763_vm13 = vmmov %vm16760_vm5  ;;  %v16784_v48 = vld [vmem:[#allocation68_spill] sm:$0xff] }
 0x365   : > { %6870 = vmatmul.msk.f32.gmra.mxu0 %vm16763_vm13, %v4805_v22  ;;  %vm16764_vm15 = vmmov %vm16760_vm5  ;;  %vm4774_vm13 = vcmp.eq.s32.totalorder %v4708_v20, 1  ;;  %v4157_v22 = vsel %vm4125_vm2, %v3901_v63, 0.0  ;;  %v16793_v20 = vld [vmem:[#allocation28_spill] sm:$0xff]  ;;  %v4711_v63 = vpop.permute.xlu1 %4710 }
 0x366   : > { %6898 = vmatmul.msk.f32.gmra.mxu1 %vm16764_vm15, %v5331_v40  ;;  %vm5129_vm9 = vmand %vm13380_vm1, %vm16766_vm11  ;;  %v4806_v10 = vsel %vm4774_vm13, %v4422_v1, 0.0  ;;  %vm16783_vm11 = vcmp.lt.s32.totalorder %v16772_v27, 16  ;;  %v16788_v27 = vld [vmem:[#allocation67_spill] sm:$0xff]  ;;  %vm16794_vm13 = vcmp.lt.s32.totalorder %v16784_v48, 16 }
 0x367   : > { %vm16767_vm10 = vmmov %vm16760_vm5  ;;  %vm16776_vm5 = vcmp.lt.s32.totalorder %v16765_v25, 16  ;;  %v7127_v25 = vld [vmem:[#allocation2 + $0x49] sm:$0xff]  ;;  %vm16789_vm2 = vcmp.ge.s32.totalorder %v16788_v27, 0  ;;  %v13545_v1 = vpop.f32.mrf.mxu3 }
 0x368   : > { %6928 = vmatmul.msk.f32.gmra.mxu2 %vm16767_vm10, %v5859_v13  ;;  %vm13422_vm3 = vmand %vm4597_vm8, %vm16768_vm14  ;;  %vm5300_vm8 = vcmp.eq.s32.totalorder %v12998_v7, 1  ;;  %vm16785_vm14 = vcmp.ge.s32.totalorder %v16784_v48, 0 }
 0x369   : > { %vm13431_vm12 = vmand %vm13380_vm1, %vm16773_vm4  ;;  %vm5828_vm1 = vcmp.eq.s32.totalorder %v12910_v53, 1  ;;  %v4661_v59 = vsel %vm13422_vm3, 1, %v14972_v36  ;;  %v7126_v53 = vld [vmem:[%s14274_s2 + $0xf8] sm:$0xff]  ;;  %v5332_v34 = vsel %vm5300_vm8, %v5076_v26, 0.0  ;;  %vm4126_vm8 = vcmp.eq.s32.totalorder %v16793_v20, 1  ;;  %v13537_v20 = vpop.permute.xlu0 %5762 }
 0x36a   : > { %vm13437_vm7 = vmand %vm5129_vm9, %vm16776_vm5  ;;  %v4471_v40 = vadd.s32 1, %v7126_v53  ;;  %v5860_v39 = vsel %vm5828_vm1, %v7127_v25, 0.0  ;;  %4752 = vperm.xlu1 %7011, %v4661_v59   ;;  %vm16792_vm5 = vcmp.ge.s32.totalorder %v16791_v54, 0  ;;  %v4158_v59 = vsel %vm4126_vm8, %v3902_v33, 0.0  ;;  %v5605_v25 = vld [vmem:[#allocation2 + $0x51] sm:$0xff] }
 0x36b   : > { %vm13444_vm15 = vmand %vm4502_vm6, %vm4534_vm0  ;;  %6848 = vmatmul.msk.f32.gmra.mxu3 %vm16767_vm10, %v4157_v22  ;;  %v5193_v13 = vsel %vm13437_vm7, 1, %v14972_v36  ;;  %v13503_v22 = vpop.f32.mrf.mxu2  ;;  %v16815_v33 = vld [vmem:[#allocation104_spill] sm:$0xff] }
 0x36c   : > { %vm5693_vm9 = vmand %vm13431_vm12, %vm16783_vm11  ;;  %5284 = vperm.xlu2 %7012, %v5193_v13   ;;  %vm4503_vm11 = vcmp.ge.s32.totalorder %v4471_v40, 0  ;;  %16800 = vst [vmem:[#allocation40_spill] sm:$0xff] %v13503_v22  ;;  %v3903_v26 = vld [vmem:[#allocation2 + $0xf1] sm:$0xff]  ;;  %v5615_v22 = vld [vmem:[#allocation2 + $0xa1] sm:$0xff] }
 0x36d   : > { %vm4598_vm6 = vmand %vm13444_vm15, %vm16785_vm14  ;;  %v5725_v7 = vsel %vm5693_vm9, 1, %v14972_v36  ;;  %vm4535_vm9 = vcmp.lt.s32.totalorder %v4471_v40, 16 }
 0x36e   : > { %vm16786_vm3 = vmmov %vm16767_vm10  ;;  %5816 = vperm.xlu0 %7010, %v5725_v7   ;;  %vm16797_vm10 = vcmp.lt.s32.totalorder %v16788_v27, 16  ;;  %v13523_v7 = vpop.permute.xlu2 %5239 }
 0x36f   : > { %6871 = vmatmul.msk.f32.gmra.mxu0 %vm16786_vm3, %v4806_v10  ;;  %vm16787_vm0 = vmmov %vm16786_vm3  ;;  %v4423_v10 = vld [vmem:[#allocation2 + $0x9f] sm:$0xff]  ;;  %vm16801_vm3 = vcmp.lt.s32.totalorder %v16791_v54, 16  ;;  %v16809_v54 = vld [vmem:[#allocation66_spill] sm:$0xff] }
 0x370   : > { %6899 = vmatmul.msk.f32.gmra.mxu1 %vm16787_vm0, %v5332_v34  ;;  %vm5130_vm4 = vmand %vm13444_vm15, %vm16789_vm2  ;;  %vm5829_vm2 = vcmp.eq.s32.totalorder %v13022_v30, 1  ;;  %v13512_v34 = vpop.f32.mrf.mxu1  ;;  %vm16810_vm8 = vcmp.ge.s32.totalorder %v16809_v54, 0 }
 0x371   : > { %vm16790_vm12 = vmmov %vm16787_vm0  ;;  %16804 = vst [vmem:[#allocation39_spill] sm:$0xff] %v13512_v34  ;;  %v5861_v40 = vsel %vm5829_vm2, %v5605_v25, 0.0  ;;  %v5078_v25 = vld [vmem:[#allocation2 + $0x78] sm:$0xff] }
 0x372   : > { %6929 = vmatmul.msk.f32.gmra.mxu2 %vm16790_vm12, %v5860_v39  ;;  %vm5662_vm7 = vmand %vm13444_vm15, %vm16792_vm5  ;;  %vm5301_vm15 = vcmp.eq.s32.totalorder %v13099_v23, 1  ;;  %v5077_v23 = vld [vmem:[#allocation2 + $0x70] sm:$0xff] }
 0x373   : > { %vm13492_vm1 = vmand %vm4598_vm6, %vm16794_vm13  ;;  %vm4775_vm6 = vcmp.eq.s32.totalorder %v4711_v63, 1  ;;  %6849 = vmatmul.msk.f32.gmra.mxu3 %vm16790_vm12, %v4158_v59  ;;  %v5333_v39 = vsel %vm5301_vm15, %v5077_v23, 0.0  ;;  %v16814_v63 = vld [vmem:[#allocation29_spill] sm:$0xff]  ;;  %v13554_v59 = vpop.f32.mrf.mxu2 }
 0x374   : > { %vm13498_vm14 = vmand %vm5130_vm4, %vm16797_vm10  ;;  %v4807_v53 = vsel %vm4775_vm6, %v4423_v10, 0.0  ;;  %v4662_v48 = vsel %vm13492_vm1, 1, %v14972_v36  ;;  %vm4127_vm10 = vcmp.eq.s32.totalorder %v16814_v63, 1  ;;  %v4714_v10 = vpop.permute.xlu1 %4713  ;;  %vm16817_vm6 = vcmp.lt.s32.totalorder %v16809_v54, 16  ;;  %16818 = vst [vmem:[#allocation84_spill] sm:$0xff] %v13554_v59  ;;  %v13573_v63 = vpop.permute.xlu0 %5765 }
 0x375   : > { %vm13507_vm0 = vmand %vm5662_vm7, %vm16801_vm3  ;;  %v5194_v30 = vsel %vm13498_vm14, 1, %v14972_v36  ;;  %4755 = vperm.xlu1 %7011, %v4662_v48   ;;  %vm16816_vm14 = vcmp.ge.s32.totalorder %v16815_v33, 0  ;;  %vm4776_vm2 = vcmp.eq.s32.totalorder %v4714_v10, 1  ;;  %v4159_v23 = vsel %vm4127_vm10, %v3903_v26, 0.0  ;;  %v13576_v10 = vpop.f32.mrf.mxu3 }
 0x376   : > { %vm13515_vm4 = vmand %vm4503_vm11, %vm4535_vm9  ;;  %v5726_v27 = vsel %vm13507_vm0, 1, %v14972_v36  ;;  %vm16813_vm11 = vcmp.ge.s32.totalorder %v16812_v51, 0  ;;  %5287 = vperm.xlu2 %7012, %v5194_v30   ;;  %vm5302_vm0 = vcmp.eq.s32.totalorder %v13202_v5, 1  ;;  %v13569_v54 = vpop.permute.xlu2 %5242 }
 0x377   : > { %vm16807_vm5 = vmmov %vm16790_vm12  ;;  %5819 = vperm.xlu0 %7010, %v5726_v27   ;;  %vm16819_vm12 = vcmp.lt.s32.totalorder %v16812_v51, 16  ;;  %v5334_v30 = vsel %vm5302_vm0, %v5078_v25, 0.0  ;;  %v16825_v51 = vld [vmem:[#allocation22_spill] sm:$0xff] }
 0x378   : > { %6872 = vmatmul.msk.f32.gmra.mxu0 %vm16807_vm5, %v4807_v53  ;;  %vm16808_vm7 = vmmov %vm16807_vm5  ;;  %v4424_v53 = vld [vmem:[#allocation2 + $0xa7] sm:$0xff]  ;;  %v13559_v48 = vpop.f32.mrf.mxu1  ;;  %vm4128_vm10 = vcmp.eq.s32.totalorder %v16825_v51, 1 }
 0x379   : > { %6900 = vmatmul.msk.f32.gmra.mxu1 %vm16808_vm7, %v5333_v39  ;;  %vm4599_vm13 = vmand %vm13515_vm4, %vm16810_vm8  ;;  %vm5830_vm7 = vcmp.eq.s32.totalorder %v13118_v57, 1  ;;  %v4808_v13 = vsel %vm4776_vm2, %v4424_v53, 0.0  ;;  %16820 = vst [vmem:[#allocation50_spill] sm:$0xff] %v13559_v48  ;;  %v5606_v39 = vld [vmem:[#allocation2 + $0x59] sm:$0xff]  ;;  %v4425_v53 = vld [vmem:[#allocation2 + $0xaf] sm:$0xff] }
 0x37a   : > { %vm16811_vm1 = vmmov %vm16807_vm5  ;;  %v5862_v27 = vsel %vm5830_vm7, %v5606_v39, 0.0  ;;  %v5607_v39 = vld [vmem:[#allocation2 + $0x61] sm:$0xff]  ;;  %vm5304_vm7 = vcmp.eq.s32.totalorder %v13378_v46, 1 }
 0x37b   : > { %6930 = vmatmul.msk.f32.gmra.mxu2 %vm16811_vm1, %v5861_v40  ;;  %vm5131_vm9 = vmand %vm13515_vm4, %vm16813_vm11  ;;  %v13578_v26 = vpop.f32.mrf.mxu2 }
 0x37c   : > { %vm5663_vm15 = vmand %vm13515_vm4, %vm16816_vm14  ;;  %vm16821_vm4 = vcmp.lt.s32.totalorder %v16815_v33, 16  ;;  %v4717_v33 = vpop.permute.xlu1 %4716  ;;  %vm5303_vm14 = vcmp.eq.s32.totalorder %v13296_v58, 1  ;;  %16826 = vst [vmem:[#allocation49_spill] sm:$0xff] %v13578_v26  ;;  %v16832_v58 = vld [vmem:[#allocation38_spill] sm:$0xff] }
 0x37d   : > { %vm4631_vm3 = vmand %vm4599_vm13, %vm16817_vm6  ;;  %vm5831_vm6 = vcmp.eq.s32.totalorder %v13227_v3, 1 }
 0x37e   : > { %vm5163_vm5 = vmand %vm5131_vm9, %vm16819_vm12  ;;  %v4663_v5 = vsel %vm4631_vm3, 1, %v14972_v36 }
 0x37f   : > { %vm5695_vm8 = vmand %vm5663_vm15, %vm16821_vm4  ;;  %v5195_v40 = vsel %vm5163_vm5, 1, %v14972_v36  ;;  %4758 = vperm.xlu1 %7011, %v4663_v5   ;;  %vm4777_vm15 = vcmp.eq.s32.totalorder %v4717_v33, 1  ;;  %v5079_v5 = vld [vmem:[#allocation2 + $0x80] sm:$0xff]  ;;  %vm4129_vm5 = vcmp.eq.s32.totalorder %v16832_v58, 1  ;;  %v4426_v33 = vld [vmem:[#allocation2 + $0xb7] sm:$0xff]  ;;  %v13601_v58 = vpop.f32.mrf.mxu0 }
 0x380   : > { %vm16822_vm13 = vmmov %vm16811_vm1  ;;  %6873 = vmatmul.msk.f32.gmra.mxu0 %vm16811_vm1, %v4808_v13  ;;  %v5727_v57 = vsel %vm5695_vm8, 1, %v14972_v36  ;;  %5290 = vperm.xlu2 %7012, %v5195_v40   ;;  %v7128_v36 = vld [vmem:[#allocation2 + $0xf9] sm:$0xff]  ;;  %v4809_v13 = vsel %vm4777_vm15, %v4425_v53, 0.0  ;;  %v13581_v25 = vpop.f32.mrf.mxu1  ;;  %v5863_v40 = vsel %vm5831_vm6, %v5607_v39, 0.0  ;;  %vm5832_vm8 = vcmp.eq.s32.totalorder %v13312_v11, 1  ;;  %v13598_v39 = vpop.f32.mrf.mxu3  ;;  %v16839_v11 = vld [vmem:[#allocation27_spill] sm:$0xff] }
 0x381   : > { %6850 = vmatmul.msk.f32.gmra.mxu3 %vm16822_vm13, %v4159_v23  ;;  %vm16823_vm11 = vmmov %vm16811_vm1  ;;  %5822 = vperm.xlu0 %7010, %v5727_v57   ;;  %v4160_v23 = vsel %vm4128_vm10, %v7128_v36, 0.0  ;;  %16827 = vst [vmem:[#allocation48_spill] sm:$0xff] %v13581_v25  ;;  %v3905_v57 = vld [vmem:[#allocation2 + $0x101] sm:$0xff]  ;;  %v13594_v36 = vpop.permute.xlu0 %5768  ;;  %vm4130_vm10 = vcmp.eq.s32.totalorder %v16839_v11, 1  ;;  %vm5833_vm6 = vcmp.eq.s32.totalorder %v13390_v28, 1  ;;  %v3907_v28 = vld [vmem:[#allocation2 + $0x111] sm:$0xff] }
 0x382   : > { %6901 = vmatmul.msk.f32.gmra.mxu1 %vm16823_vm11, %v5334_v30  ;;  %vm16824_vm9 = vmmov %vm16811_vm1  ;;  %v5335_v30 = vsel %vm5303_vm14, %v5079_v5, 0.0  ;;  %v4161_v53 = vsel %vm4129_vm5, %v3905_v57, 0.0  ;;  %v5080_v5 = vld [vmem:[#allocation2 + $0x88] sm:$0xff]  ;;  %vm5305_vm14 = vcmp.eq.s32.totalorder %v13449_v44, 1 }
 0x383   : > { %6931 = vmatmul.msk.f32.gmra.mxu2 %vm16824_vm9, %v5862_v27  ;;  %vm16828_vm3 = vmmov %vm16811_vm1  ;;  %v13588_v27 = vpop.permute.xlu2 %5245  ;;  %v13591_v51 = vpop.f32.mrf.mxu2  ;;  %v3906_v57 = vld [vmem:[#allocation2 + $0x109] sm:$0xff] }
 0x384   : > { %vm16829_vm0 = vmmov %vm16811_vm1  ;;  %v4720_v3 = vpop.permute.xlu1 %4719  ;;  %16833 = vst [vmem:[#allocation47_spill] sm:$0xff] %v13591_v51 }
 0x385   : > { %vm16830_vm2 = vmmov %vm16829_vm0  ;;  %vm4778_vm4 = vcmp.eq.s32.totalorder %v4720_v3, 1 }
 0x386   : > { %vm16831_vm12 = vmmov %vm16829_vm0 }
 0x387   : > { %vm16835_vm13 = vmmov %vm16829_vm0 }
 0x388   : > { %6874 = vmatmul.msk.f32.gmra.mxu0 %vm16829_vm0, %v4809_v13  ;;  %v13596_v13 = vpop.f32.mrf.mxu1  ;;  %vm16836_vm1 = vmmov %vm16829_vm0  ;;  %v13618_v48 = vpop.f32.mrf.mxu3 }
 0x389   : > { %6851 = vmatmul.msk.f32.gmra.mxu3 %vm16828_vm3, %v4160_v23  ;;  %v4810_v23 = vsel %vm4778_vm4, %v4426_v33, 0.0  ;;  %16834 = vst [vmem:[#allocation95_spill] sm:$0xff] %v13596_v13  ;;  %vm16837_vm11 = vmmov %vm16829_vm0  ;;  %v13616_v25 = vpop.permute.xlu0 %5771 }
 0x38a   : > { %6902 = vmatmul.msk.f32.gmra.mxu1 %vm16830_vm2, %v5335_v30  ;;  %v5608_v30 = vld [vmem:[#allocation2 + $0x69] sm:$0xff]  ;;  %vm16838_vm9 = vmmov %vm16829_vm0 }
 0x38b   : > { %6932 = vmatmul.msk.f32.gmra.mxu2 %vm16831_vm12, %v5863_v40  ;;  %v5336_v40 = vsel %vm5304_vm7, %v5080_v5, 0.0  ;;  %v5864_v46 = vsel %vm5832_vm8, %v5608_v30, 0.0  ;;  %v13608_v33 = vpop.f32.mrf.mxu2  ;;  %v4162_v5 = vsel %vm4130_vm10, %v3906_v57, 0.0  ;;  %v13611_v30 = vpop.permute.xlu2 %5248  ;;  %vm16842_vm3 = vmmov %vm16829_vm0  ;;  %vm5306_vm7 = vcmp.eq.s32.totalorder %v13523_v7, 1 }
 0x38c   : > { %v4723_v3 = vpop.permute.xlu1 %4722  ;;  %16840 = vst [vmem:[#allocation46_spill] sm:$0xff] %v13608_v33  ;;  %vm16843_vm2 = vmmov %vm16829_vm0  ;;  %v13624_v57 = vpop.f32.mrf.mxu0  ;;  %vm5834_vm8 = vcmp.eq.s32.totalorder %v13466_v47, 1  ;;  %vm5307_vm10 = vcmp.eq.s32.totalorder %v13569_v54, 1 }
 0x38d   : > { %vm4779_vm15 = vcmp.eq.s32.totalorder %v4723_v3, 1  ;;  %vm16844_vm12 = vmmov %vm16829_vm0  ;;  %v16845_v3 = vld [vmem:[#allocation32_spill] sm:$0xff] }
 0x38e   : > { %vm4131_vm5 = vcmp.eq.s32.totalorder %v16845_v3, 1 }
 0x390   : > { %6875 = vmatmul.msk.f32.gmra.mxu0 %vm16836_vm1, %v4810_v23  ;;  %v13613_v13 = vpop.f32.mrf.mxu1  ;;  %vm16849_vm1 = vmmov %vm16829_vm0  ;;  %v13640_v47 = vpop.f32.mrf.mxu3 }
 0x391   : > { %6852 = vmatmul.msk.f32.gmra.mxu3 %vm16835_vm13, %v4161_v53  ;;  %v4427_v53 = vld [vmem:[#allocation2 + $0xbf] sm:$0xff]  ;;  %16841 = vst [vmem:[#allocation45_spill] sm:$0xff] %v13613_v13  ;;  %vm16848_vm13 = vmmov %vm16829_vm0  ;;  %v13637_v7 = vpop.permute.xlu0 %5774 }
 0x392   : > { %6903 = vmatmul.msk.f32.gmra.mxu1 %vm16837_vm11, %v5336_v40  ;;  %v4811_v23 = vsel %vm4779_vm15, %v4427_v53, 0.0  ;;  %v5081_v40 = vld [vmem:[#allocation2 + $0x90] sm:$0xff]  ;;  %vm16850_vm11 = vmmov %vm16829_vm0  ;;  %vm5835_vm15 = vcmp.eq.s32.totalorder %v13537_v20, 1 }
 0x393   : > { %6933 = vmatmul.msk.f32.gmra.mxu2 %vm16838_vm9, %v5864_v46  ;;  %v5609_v46 = vld [vmem:[#allocation2 + $0x71] sm:$0xff]  ;;  %v5337_v11 = vsel %vm5305_vm14, %v5081_v40, 0.0  ;;  %v4428_v40 = vld [vmem:[#allocation2 + $0xc7] sm:$0xff]  ;;  %v13633_v34 = vpop.permute.xlu2 %5251  ;;  %vm16851_vm9 = vmmov %vm16829_vm0 }
 0x394   : > { %v5865_v44 = vsel %vm5833_vm6, %v5609_v46, 0.0  ;;  %v4726_v53 = vpop.permute.xlu1 %4725  ;;  %v4163_v46 = vsel %vm4131_vm5, %v3907_v28, 0.0  ;;  %vm16854_vm6 = vmmov %vm16829_vm0  ;;  %vm5836_vm5 = vcmp.eq.s32.totalorder %v13573_v63, 1 }
 0x395   : > { %vm4780_vm4 = vcmp.eq.s32.totalorder %v4726_v53, 1  ;;  %v13643_v53 = vpop.f32.mrf.mxu0 }
 0x398   : > { %6876 = vmatmul.msk.f32.gmra.mxu0 %vm16829_vm0, %v4811_v23  ;;  %v4812_v23 = vsel %vm4780_vm4, %v4428_v40, 0.0  ;;  %v13630_v13 = vpop.f32.mrf.mxu1  ;;  %v13658_v20 = vpop.f32.mrf.mxu3  ;;  %vm16858_vm4 = vmmov %vm16829_vm0 }
 0x399   : > { %6853 = vmatmul.msk.f32.gmra.mxu3 %vm16842_vm3, %v4162_v5  ;;  %v13627_v5 = vpop.f32.mrf.mxu2  ;;  %16847 = vst [vmem:[#allocation57_spill] sm:$0xff] %v13630_v13  ;;  %vm16855_vm3 = vmmov %vm16829_vm0 }
 0x39a   : > { %6904 = vmatmul.msk.f32.gmra.mxu1 %vm16843_vm2, %v5337_v11  ;;  %16846 = vst [vmem:[#allocation99_spill] sm:$0xff] %v13627_v5  ;;  %v5082_v11 = vld [vmem:[#allocation2 + $0x98] sm:$0xff]  ;;  %vm5308_vm2 = vcmp.eq.s32.totalorder %v13588_v27, 1 }
 0x39b   : > { %6934 = vmatmul.msk.f32.gmra.mxu2 %vm16844_vm12, %v5865_v44  ;;  %v5610_v44 = vld [vmem:[#allocation2 + $0x79] sm:$0xff]  ;;  %v5338_v3 = vsel %vm5306_vm7, %v5082_v11, 0.0  ;;  %v13652_v54 = vpop.permute.xlu2 %5254  ;;  %vm16857_vm7 = vmmov %vm16829_vm0 }
 0x39c   : > { %v5866_v33 = vsel %vm5834_vm8, %v5610_v44, 0.0  ;;  %v4729_v28 = vpop.permute.xlu1 %4728  ;;  %v5083_v44 = vld [vmem:[#allocation2 + $0xa0] sm:$0xff]  ;;  %vm16859_vm8 = vmmov %vm16829_vm0 }
 0x39d   : > { %vm4781_vm14 = vcmp.eq.s32.totalorder %v4729_v28, 1  ;;  %v5339_v13 = vsel %vm5307_vm10, %v5083_v44, 0.0  ;;  %vm16862_vm10 = vmmov %vm16829_vm0 }
 0x3a0   : > { %6877 = vmatmul.msk.f32.gmra.mxu0 %vm16849_vm1, %v4812_v23  ;;  %v13648_v11 = vpop.f32.mrf.mxu1 }
 0x3a1   : > { %6854 = vmatmul.msk.f32.gmra.mxu3 %vm16848_vm13, %v4163_v46  ;;  %v13645_v40 = vpop.f32.mrf.mxu2  ;;  %v4429_v46 = vld [vmem:[#allocation2 + $0xcf] sm:$0xff]  ;;  %16853 = vst [vmem:[#allocation139_spill] sm:$0xff] %v13648_v11  ;;  %v4430_v11 = vld [vmem:[#allocation2 + $0xd7] sm:$0xff]  ;;  %vm5309_vm13 = vcmp.eq.s32.totalorder %v13611_v30, 1 }
 0x3a2   : > { %6905 = vmatmul.msk.f32.gmra.mxu1 %vm16850_vm11, %v5338_v3  ;;  %16852 = vst [vmem:[#allocation55_spill] sm:$0xff] %v13645_v40  ;;  %v4813_v23 = vsel %vm4781_vm14, %v4429_v46, 0.0  ;;  %v5611_v3 = vld [vmem:[#allocation2 + $0x81] sm:$0xff]  ;;  %v13655_v40 = vpop.permute.xlu0 %5777  ;;  %vm5837_vm11 = vcmp.eq.s32.totalorder %v13594_v36, 1  ;;  %vm16863_vm14 = vmmov %vm16829_vm0 }
 0x3a3   : > { %6935 = vmatmul.msk.f32.gmra.mxu2 %vm16851_vm9, %v5866_v33  ;;  %v5867_v33 = vsel %vm5835_vm15, %v5611_v3, 0.0  ;;  %v13665_v3 = vpop.f32.mrf.mxu0  ;;  %v13670_v27 = vpop.permute.xlu2 %5257  ;;  %vm16861_vm9 = vmmov %vm16829_vm0  ;;  %vm5310_vm15 = vcmp.eq.s32.totalorder %v13633_v34, 1 }
 0x3a4   : > { %v4732_v28 = vpop.permute.xlu1 %4731 }
 0x3a5   : > { %vm4782_vm12 = vcmp.eq.s32.totalorder %v4732_v28, 1 }
 0x3a8   : > { %6878 = vmatmul.msk.f32.gmra.mxu0 %vm16854_vm6, %v4813_v23  ;;  %v4814_v23 = vsel %vm4782_vm12, %v4430_v11, 0.0  ;;  %v13663_v44 = vpop.f32.mrf.mxu1  ;;  %v4431_v11 = vld [vmem:[#allocation2 + $0xdf] sm:$0xff]  ;;  %vm16866_vm12 = vmmov %vm16829_vm0 }
 0x3a9   : > { %v13660_v46 = vpop.f32.mrf.mxu2 }
 0x3aa   : > { %6906 = vmatmul.msk.f32.gmra.mxu1 %vm16855_vm3, %v5339_v13  ;;  %16856 = vst [vmem:[#allocation97_spill] sm:$0xff] %v13660_v46  ;;  %v5084_v13 = vld [vmem:[#allocation2 + $0xa8] sm:$0xff]  ;;  %v13676_v46 = vpop.permute.xlu0 %5780  ;;  %vm5838_vm3 = vcmp.eq.s32.totalorder %v13616_v25, 1 }
 0x3ab   : > { %6936 = vmatmul.msk.f32.gmra.mxu2 %vm16829_vm0, %v5867_v33  ;;  %v5612_v33 = vld [vmem:[#allocation2 + $0x89] sm:$0xff]  ;;  %v5340_v5 = vsel %vm5308_vm2, %v5084_v13, 0.0  ;;  %v13682_v26 = vpop.f32.mrf.mxu0  ;;  %vm16865_vm2 = vmmov %vm16829_vm0 }
 0x3ac   : > { %v5868_v52 = vsel %vm5836_vm5, %v5612_v33, 0.0  ;;  %v4735_v28 = vpop.permute.xlu1 %4734  ;;  %vm5311_vm5 = vcmp.eq.s32.totalorder %v13652_v54, 1 }
 0x3ad   : > { %vm4783_vm1 = vcmp.eq.s32.totalorder %v4735_v28, 1  ;;  %v4432_v28 = vld [vmem:[#allocation2 + $0xe7] sm:$0xff] }
 0x3ae   : > { %v4815_v13 = vsel %vm4783_vm1, %v4431_v11, 0.0  ;;  %v13691_v11 = vpop.permute.xlu2 %5260  ;;  %vm16872_vm1 = vmmov %vm16829_vm0 }
 0x3b0   : > { %6879 = vmatmul.msk.f32.gmra.mxu0 %vm16857_vm7, %v4814_v23  ;;  %v13678_v33 = vpop.f32.mrf.mxu1  ;;  %v5085_v23 = vld [vmem:[#allocation2 + $0xb0] sm:$0xff] }
 0x3b1   : > { %v13673_v63 = vpop.f32.mrf.mxu2  ;;  %v5341_v51 = vsel %vm5309_vm13, %v5085_v23, 0.0  ;;  %vm16871_vm13 = vmmov %vm16829_vm0 }
 0x3b2   : > { %6907 = vmatmul.msk.f32.gmra.mxu1 %vm16858_vm4, %v5340_v5  ;;  %16860 = vst [vmem:[#allocation54_spill] sm:$0xff] %v13673_v63  ;;  %v13680_v5 = vpop.f32.mrf.mxu3  ;;  %v5086_v63 = vld [vmem:[#allocation2 + $0xb8] sm:$0xff]  ;;  %vm5839_vm4 = vcmp.eq.s32.totalorder %v13637_v7, 1 }
 0x3b3   : > { %6937 = vmatmul.msk.f32.gmra.mxu2 %vm16859_vm8, %v5868_v52  ;;  %v5613_v52 = vld [vmem:[#allocation2 + $0x91] sm:$0xff]  ;;  %v5342_v41 = vsel %vm5310_vm15, %v5086_v63, 0.0  ;;  %v13702_v34 = vpop.f32.mrf.mxu0  ;;  %v5871_v8 = vsel %vm5839_vm4, %v5615_v22, 0.0  ;;  %vm16870_vm8 = vmmov %vm16829_vm0 }
 0x3b4   : > { %v5869_v19 = vsel %vm5837_vm11, %v5613_v52, 0.0  ;;  %v4738_v36 = vpop.permute.xlu1 %4737  ;;  %vm5312_vm11 = vcmp.eq.s32.totalorder %v13670_v27, 1  ;;  %vm16877_vm15 = vmmov %vm16829_vm0 }
 0x3b5   : > { %vm4784_vm6 = vcmp.eq.s32.totalorder %v4738_v36, 1  ;;  %vm16882_vm4 = vmmov %vm16872_vm1 }
 0x3b6   : > { %v4816_v23 = vsel %vm4784_vm6, %v4432_v28, 0.0  ;;  %v4433_v28 = vld [vmem:[#allocation2 + $0xef] sm:$0xff]  ;;  %v13712_v9 = vpop.permute.xlu2 %5263  ;;  %vm16878_vm6 = vmmov %vm16829_vm0 }
 0x3b8   : > { %6880 = vmatmul.msk.f32.gmra.mxu0 %vm16861_vm9, %v4815_v13  ;;  %v13693_v52 = vpop.f32.mrf.mxu1  ;;  %v5614_v13 = vld [vmem:[#allocation2 + $0x99] sm:$0xff] }
 0x3b9   : > { %v13688_v30 = vpop.f32.mrf.mxu2 }
 0x3ba   : > { %6908 = vmatmul.msk.f32.gmra.mxu1 %vm16862_vm10, %v5341_v51  ;;  %16864 = vst [vmem:[#allocation4_spill] sm:$0xff] %v13688_v30  ;;  %v13695_v51 = vpop.permute.xlu0 %5783  ;;  %v13697_v59 = vpop.f32.mrf.mxu3  ;;  %v5087_v30 = vld [vmem:[#allocation2 + $0xc0] sm:$0xff]  ;;  %vm5840_vm10 = vcmp.eq.s32.totalorder %v13655_v40, 1 }
 0x3bb   : > { %6938 = vmatmul.msk.f32.gmra.mxu2 %vm16863_vm14, %v5869_v19  ;;  %v5870_v19 = vsel %vm5838_vm3, %v5614_v13, 0.0  ;;  %vm16876_vm14 = vmmov %vm16829_vm0  ;;  %vm5313_vm3 = vcmp.eq.s32.totalorder %v13691_v11, 1  ;;  %v5037_v11 = vadd.f32 %v13624_v57, %v12897_v37 }
 0x3bc   : > { %v4741_v25 = vpop.permute.xlu1 %4740 }
 0x3bd   : > { %vm4785_vm7 = vcmp.eq.s32.totalorder %v4741_v25, 1 }
 0x3be   : > { %v4817_v63 = vsel %vm4785_vm7, %v4433_v28, 0.0  ;;  %v16873_v28 = vld [vmem:[#allocation8_spill] sm:$0xff]  ;;  %vm16881_vm7 = vmmov %vm16872_vm1 }
 0x3c0   : > { %6881 = vmatmul.msk.f32.gmra.mxu0 %vm16829_vm0, %v4816_v23  ;;  %v13708_v13 = vpop.f32.mrf.mxu1  ;;  %v16868_v23 = vld [vmem:[#allocation138_spill] sm:$0xff] }
 0x3c1   : > { %v13705_v36 = vpop.f32.mrf.mxu2 }
 0x3c2   : > { %6909 = vmatmul.msk.f32.gmra.mxu1 %vm16865_vm2, %v5342_v41  ;;  %16867 = vst [vmem:[#allocation53_spill] sm:$0xff] %v13705_v36  ;;  %v1993_v41 = vadd.f32 %v16869_v31, %v16868_v23  ;;  %v13717_v25 = vpop.permute.xlu0 %5786  ;;  %v13720_v7 = vpop.f32.mrf.mxu3  ;;  %v16875_v23 = vld [vmem:[#allocation23_spill] sm:$0xff]  ;;  %vm5841_vm2 = vcmp.eq.s32.totalorder %v13676_v46, 1 }
 0x3c3   : > { %6939 = vmatmul.msk.f32.gmra.mxu2 %vm16866_vm12, %v5870_v19  ;;  %v5343_v19 = vsel %vm5311_vm5, %v5087_v30, 0.0  ;;  %v13724_v30 = vpop.f32.mrf.mxu0  ;;  %vm16879_vm12 = vmmov %vm16872_vm1 }
 0x3c4   : > { %v2684_v54 = vadd.f32 %v12610_v61, %v1993_v41  ;;  %v4744_v31 = vpop.permute.xlu1 %4743  ;;  %vm16880_vm5 = vmmov %vm16872_vm1 }
 0x3c5   : > { %vm4786_vm9 = vcmp.eq.s32.totalorder %v4744_v31, 1  ;;  %v13736_v31 = vpop.permute.xlu2 %5266 }
 0x3c6   : > { %v3312_v36 = vadd.f32 %v16873_v28, %v2684_v54  ;;  %v5616_v54 = vld [vmem:[#allocation2 + $0xa9] sm:$0xff] }
 0x3c7   : > { %v5872_v29 = vsel %vm5840_vm10, %v5616_v54, 0.0  ;;  %v5617_v54 = vld [vmem:[#allocation2 + $0xb1] sm:$0xff]  ;;  %vm16885_vm10 = vmmov %vm16882_vm4 }
 0x3c8   : > { %6882 = vmatmul.msk.f32.gmra.mxu0 %vm16870_vm8, %v4817_v63  ;;  %v4434_v63 = vld [vmem:[#allocation2 + $0xf7] sm:$0xff]  ;;  %v13730_v41 = vpop.f32.mrf.mxu1  ;;  %vm5314_vm8 = vcmp.eq.s32.totalorder %v13712_v9, 1 }
 0x3c9   : > { %v13726_v22 = vpop.f32.mrf.mxu2  ;;  %v4818_v61 = vsel %vm4786_vm9, %v4434_v63, 0.0  ;;  %vm16884_vm9 = vmmov %vm16882_vm4 }
 0x3ca   : > { %6910 = vmatmul.msk.f32.gmra.mxu1 %vm16871_vm13, %v5343_v19  ;;  %16874 = vst [vmem:[#allocation18_spill] sm:$0xff] %v13726_v22  ;;  %v3844_v19 = vadd.f32 %v16875_v23, %v3312_v36  ;;  %v13739_v40 = vpop.permute.xlu0 %5789  ;;  %v13748_v23 = vpop.f32.mrf.mxu3  ;;  %v5873_v22 = vsel %vm5841_vm2, %v5617_v54, 0.0 }
 0x3cb   : > { %6940 = vmatmul.msk.f32.gmra.mxu2 %vm16872_vm1, %v5871_v8  ;;  %v5088_v8 = vld [vmem:[#allocation2 + $0xc8] sm:$0xff]  ;;  %vm5842_vm1 = vcmp.eq.s32.totalorder %v13695_v51, 1  ;;  %v5038_v51 = vadd.f32 %v13643_v53, %v12985_v62  ;;  %v5091_v62 = vld [vmem:[#allocation2 + $0xe0] sm:$0xff] }
 0x3cc   : > { %v4376_v24 = vadd.f32 %v12804_v42, %v3844_v19  ;;  %v5344_v28 = vsel %vm5312_vm11, %v5088_v8, 0.0  ;;  %v13745_v42 = vld [vmem:[%s14279_s7] ss:$0 sm:$0xff]  ;;  %v4747_v63 = vpop.permute.xlu1 %4746  ;;  %v13753_v8 = vpop.f32.mrf.mxu0  ;;  %vm16883_vm11 = vmmov %vm16882_vm4  ;;  %v5619_v53 = vld [vmem:[#allocation2 + $0xc1] sm:$0xff] }
 0x3cd   : > { %vm4787_vm0 = vcmp.eq.s32.totalorder %v4747_v63, 1  ;;  %v5569_v63 = vadd.f32 %v13678_v33, %v5037_v11  ;;  %v5618_v33 = vld [vmem:[#allocation2 + $0xb9] sm:$0xff] }
 0x3ce   : > { %v5036_v27 = vadd.f32 %v13601_v58, %v4376_v24  ;;  %v4435_v24 = vld [vmem:[#allocation2 + $0xff] sm:$0xff]  ;;  %v5874_v11 = vsel %vm5842_vm1, %v5618_v33, 0.0 }
 0x3cf   : > { %v4819_v58 = vsel %vm4787_vm0, %v4435_v24, 0.0  ;;  %vm16887_vm0 = vmmov %vm16882_vm4 }
 0x3d0   : > { %6883 = vmatmul.msk.f32.gmra.mxu0 %vm16876_vm14, %v4818_v61  ;;  %v5568_v36 = vadd.f32 %v13663_v44, %v5036_v27  ;;  %v13751_v61 = vpop.f32.mrf.mxu1  ;;  %v5089_v44 = vld [vmem:[#allocation2 + $0xd0] sm:$0xff]  ;;  %vm16886_vm14 = vmmov %vm16882_vm4 }
 0x3d1   : > { %v6004_v19 = vpop.f32.mrf.mxu2  ;;  %vm16888_vm2 = vmmov %vm16887_vm0 }
 0x3d2   : > { %6911 = vmatmul.msk.f32.gmra.mxu1 %vm16877_vm15, %v5344_v28  ;;  %v5345_v28 = vsel %vm5313_vm3, %v5089_v44, 0.0  ;;  %v13771_v54 = vpop.f32.mrf.mxu3  ;;  %vm5315_vm15 = vcmp.eq.s32.totalorder %v13736_v31, 1  ;;  %vm5843_vm3 = vcmp.eq.s32.totalorder %v13717_v25, 1  ;;  %v5039_v25 = vadd.f32 %v13665_v3, %v13066_v4  ;;  %v5092_v3 = vld [vmem:[#allocation2 + $0xe8] sm:$0xff]  ;;  %vm16892_vm1 = vmmov %vm16887_vm0 }
 0x3d3   : > { %6941 = vmatmul.msk.f32.gmra.mxu2 %vm16878_vm6, %v5872_v29  ;;  %v6100_v29 = vadd.f32 %v6004_v19, %v5568_v36  ;;  %v13761_v36 = vpop.permute.xlu2 %5269 }
 0x3d4   : > { %v4750_v19 = vpop.permute.xlu1 %4749  ;;  %v13774_v9 = vpop.f32.mrf.mxu0 }
 0x3d5   : > { %v6136_v27 = vadd.f32 %v13745_v42, %v6100_v29  ;;  %v4436_v29 = vld [vmem:[#allocation2 + $0x107] sm:$0xff]  ;;  %vm4788_vm13 = vcmp.eq.s32.totalorder %v4750_v19, 1 }
 0x3d6   : > { %v4820_v57 = vsel %vm4788_vm13, %v4436_v29, 0.0  ;;  %v4437_v29 = vld [vmem:[#allocation2 + $0x10f] sm:$0xff]  ;;  %vm16891_vm13 = vmmov %vm16887_vm0 }
 0x3d7   : > { %v6168_v46 = vmax.f32 %v6136_v27, 0.0 }
 0x3d8   : > { %6884 = vmatmul.msk.f32.gmra.mxu0 %vm16879_vm12, %v4819_v58  ;;  %v13767_v58 = vpop.permute.xlu0 %5792  ;;  %v13769_v44 = vpop.f32.mrf.mxu1  ;;  %vm16889_vm12 = vmmov %vm16887_vm0 }
 0x3d9   : > { %6957 = vmatmul.msk.f32.vlgmr.msra.gmra.mxu3 %vm16882_vm4, %v6168_v46  ;;  %v6007_v24 = vpop.f32.mrf.mxu2 }
 0x3da   : > { %6912 = vmatmul.msk.f32.gmra.mxu1 %vm16880_vm5, %v5345_v28  ;;  %v6101_v37 = vadd.f32 %v6007_v24, %v5569_v63  ;;  %v5570_v63 = vadd.f32 %v13693_v52, %v5038_v51  ;;  %v13790_v51 = vpop.f32.mrf.mxu3  ;;  %vm16890_vm5 = vmmov %vm16887_vm0 }
 0x3db   : > { %6942 = vmatmul.msk.f32.gmra.mxu2 %vm16881_vm7, %v5873_v22  ;;  %v5090_v22 = vld [vmem:[#allocation2 + $0xd8] sm:$0xff]  ;;  %vm5316_vm7 = vcmp.eq.s32.totalorder %v13761_v36, 1  ;;  %v5040_v36 = vadd.f32 %v13682_v26, %v13152_v43 }
 0x3dc   : > { %v5346_v28 = vsel %vm5314_vm8, %v5090_v22, 0.0  ;;  %v6137_v27 = vadd.f32 %v13745_v42, %v6101_v37  ;;  %v4753_v19 = vpop.permute.xlu1 %4752  ;;  %v5273_v37 = vpop.permute.xlu2 %5272  ;;  %vm5844_vm8 = vcmp.eq.s32.totalorder %v13739_v40, 1 }
 0x3dd   : > { %vm4789_vm6 = vcmp.eq.s32.totalorder %v4753_v19, 1 }
 0x3de   : > { %v6169_v46 = vmax.f32 %v6137_v27, 0.0  ;;  %v4821_v22 = vsel %vm4789_vm6, %v4437_v29, 0.0  ;;  %v4438_v29 = vld [vmem:[#allocation2 + $0x117] sm:$0xff]  ;;  %vm16895_vm6 = vmmov %vm16887_vm0 }
 0x3e0   : > { %6885 = vmatmul.msk.f32.gmra.mxu0 %vm16883_vm11, %v4820_v57  ;;  %v13787_v27 = vpop.permute.xlu0 %5795  ;;  %vm16893_vm11 = vmmov %vm16887_vm0 }
 0x3e1   : > { %6958 = vmatmul.msk.f32.gmra.mxu3 %vm16886_vm14, %v6169_v46  ;;  %v6010_v24 = vpop.f32.mrf.mxu2  ;;  %v13797_v46 = vpop.f32.mrf.mxu0 }
 0x3e2   : > { %6913 = vmatmul.msk.f32.gmra.mxu1 %vm16884_vm9, %v5346_v28  ;;  %v6102_v57 = vadd.f32 %v6010_v24, %v5570_v63  ;;  %v5347_v28 = vsel %vm5315_vm15, %v5091_v62, 0.0  ;;  %v5571_v63 = vadd.f32 %v13708_v13, %v5039_v25  ;;  %v5620_v62 = vld [vmem:[#allocation2 + $0xc9] sm:$0xff]  ;;  %v13811_v25 = vpop.f32.mrf.mxu3  ;;  %vm16894_vm9 = vmmov %vm16887_vm0  ;;  %vm5845_vm15 = vcmp.eq.s32.totalorder %v13767_v58, 1 }
 0x3e3   : > { %6943 = vmatmul.msk.f32.gmra.mxu2 %vm16885_vm10, %v5874_v11  ;;  %v13785_v33 = vpop.f32.mrf.mxu1  ;;  %v5875_v11 = vsel %vm5843_vm3, %v5619_v53, 0.0  ;;  %v5348_v53 = vsel %vm5316_vm7, %v5092_v3, 0.0  ;;  %vm5317_vm10 = vcmp.eq.s32.totalorder %v5273_v37, 1  ;;  %v5621_v3 = vld [vmem:[#allocation2 + $0xd1] sm:$0xff]  ;;  %vm16896_vm3 = vmmov %vm16887_vm0  ;;  %v5041_v37 = vadd.f32 %v13702_v34, %v13239_v56  ;;  %v5622_v34 = vld [vmem:[#allocation2 + $0xd9] sm:$0xff] }
 0x3e4   : > { %v6138_v52 = vadd.f32 %v13745_v42, %v6102_v57  ;;  %vm16898_vm7 = vmmov %vm16887_vm0 }
 0x3e6   : > { %v6170_v31 = vmax.f32 %v6138_v52, 0.0  ;;  %v5876_v52 = vsel %vm5844_vm8, %v5620_v62, 0.0  ;;  %vm16900_vm8 = vmmov %vm16887_vm0 }
 0x3e7   : > { %v4756_v19 = vpop.permute.xlu1 %4755 }
 0x3e8   : > { %6886 = vmatmul.msk.f32.gmra.mxu0 %vm16887_vm0, %v4821_v22  ;;  %vm4790_vm4 = vcmp.eq.s32.totalorder %v4756_v19, 1 }
 0x3e9   : > { %6959 = vmatmul.msk.f32.gmra.mxu3 %vm16890_vm5, %v6170_v31  ;;  %v4822_v22 = vsel %vm4790_vm4, %v4438_v29, 0.0  ;;  %v4439_v31 = vld [vmem:[#allocation2 + $0x11f] sm:$0xff]  ;;  %vm5846_vm5 = vcmp.eq.s32.totalorder %v13787_v27, 1  ;;  %vm16899_vm4 = vmmov %vm16887_vm0 }
 0x3ea   : > { %6914 = vmatmul.msk.f32.gmra.mxu1 %vm16888_vm2, %v5347_v28  ;;  %v5276_v28 = vpop.permute.xlu2 %5275  ;;  %vm16897_vm2 = vmmov %vm16887_vm0 }
 0x3eb   : > { %6944 = vmatmul.msk.f32.gmra.mxu2 %vm16889_vm12, %v5875_v11  ;;  %v6013_v24 = vpop.f32.mrf.mxu2  ;;  %v5799_v11 = vpop.permute.xlu0 %5798  ;;  %vm5318_vm12 = vcmp.eq.s32.totalorder %v5276_v28, 1 }
 0x3ec   : > { %v6103_v57 = vadd.f32 %v6013_v24, %v5571_v63  ;;  %v5572_v63 = vadd.f32 %v13730_v41, %v5040_v36  ;;  %v13815_v24 = vpop.f32.mrf.mxu0  ;;  %v5877_v41 = vsel %vm5845_vm15, %v5621_v3, 0.0  ;;  %v5573_v36 = vadd.f32 %v13751_v61, %v5041_v37 }
 0x3ed   : > { %v13803_v4 = vpop.f32.mrf.mxu1  ;;  %v5042_v61 = vadd.f32 %v13724_v30, %v13304_v12  ;;  %v16902_v12 = vld [vmem:[#allocation123_spill] sm:$0xff] }
 0x3ee   : > { %v6139_v13 = vadd.f32 %v13745_v42, %v6103_v57 }
 0x3ef   : > { %v5574_v3 = vadd.f32 %v13769_v44, %v5042_v61  ;;  %v16906_v61 = vld [vmem:[#allocation141_spill] sm:$0xff] }
 0x3f0   : > { %6887 = vmatmul.msk.f32.gmra.mxu0 %vm16891_vm13, %v4822_v22  ;;  %v6171_v40 = vmax.f32 %v6139_v13, 0.0  ;;  %v5093_v22 = vld [vmem:[#allocation2 + $0xf0] sm:$0xff] }
 0x3f1   : > { %v4759_v19 = vpop.permute.xlu1 %4758  ;;  %v5349_v62 = vsel %vm5317_vm10, %v5093_v22, 0.0  ;;  %v5878_v22 = vsel %vm5846_vm5, %v5622_v34, 0.0  ;;  %vm16907_vm10 = vmmov %vm16887_vm0 }
 0x3f2   : > { %6915 = vmatmul.msk.f32.gmra.mxu1 %vm16892_vm1, %v5348_v53  ;;  %6960 = vmatmul.msk.f32.gmra.mxu3 %vm16894_vm9, %v6171_v40  ;;  %vm4791_vm14 = vcmp.eq.s32.totalorder %v4759_v19, 1  ;;  %v5279_v13 = vpop.permute.xlu2 %5278  ;;  %v13828_v40 = vpop.f32.mrf.mxu3  ;;  %vm5847_vm1 = vcmp.eq.s32.totalorder %v5799_v11, 1  ;;  %v16904_v11 = vld [vmem:[#allocation80_spill] sm:$0xff]  ;;  %vm16905_vm9 = vmmov %vm16887_vm0 }
 0x3f3   : > { %6945 = vmatmul.msk.f32.gmra.mxu2 %vm16893_vm11, %v5876_v52  ;;  %v4823_v26 = vsel %vm4791_vm14, %v4439_v31, 0.0  ;;  %v5802_v58 = vpop.permute.xlu0 %5801  ;;  %vm5319_vm13 = vcmp.eq.s32.totalorder %v5279_v13, 1  ;;  %vm16903_vm11 = vmmov %vm16887_vm0 }
 0x3f4   : > { %v13833_v56 = vpop.f32.mrf.mxu0  ;;  %vm5848_vm15 = vcmp.eq.s32.totalorder %v5802_v58, 1  ;;  %vm16916_vm5 = vmmov %vm16887_vm0 }
 0x3f5   : > { %v6016_v29 = vpop.f32.mrf.mxu2 }
 0x3f6   : > { %v6104_v43 = vadd.f32 %v6016_v29, %v5572_v63  ;;  %v13818_v57 = vpop.f32.mrf.mxu1  ;;  %v5094_v29 = vld [vmem:[#allocation2 + $0xf8] sm:$0xff] }
 0x3f8   : > { %v6140_v53 = vadd.f32 %v13745_v42, %v6104_v43  ;;  %6888 = vmatmul.msk.f32.gmra.mxu0 %vm16895_vm6, %v4823_v26  ;;  %v5350_v43 = vsel %vm5318_vm12, %v5094_v29, 0.0  ;;  %vm16910_vm6 = vmmov %vm16887_vm0 }
 0x3fa   : > { %6916 = vmatmul.msk.f32.gmra.mxu1 %vm16896_vm3, %v5349_v62  ;;  %v6172_v52 = vmax.f32 %v6140_v53, 0.0  ;;  %v5282_v27 = vpop.permute.xlu2 %5281  ;;  %vm16912_vm3 = vmmov %vm16887_vm0 }
 0x3fb   : > { %6946 = vmatmul.msk.f32.gmra.mxu2 %vm16887_vm0, %v5877_v41  ;;  %v5805_v53 = vpop.permute.xlu0 %5804  ;;  %vm5320_vm14 = vcmp.eq.s32.totalorder %v5282_v27, 1 }
 0x3fc   : > { %6961 = vmatmul.msk.f32.gmra.mxu3 %vm16897_vm2, %v6172_v52  ;;  %v5095_v52 = vld [vmem:[#allocation2 + $0x100] sm:$0xff]  ;;  %vm5849_vm12 = vcmp.eq.s32.totalorder %v5805_v53, 1 }
 0x3fd   : > { %v5351_v29 = vsel %vm5319_vm13, %v5095_v52, 0.0 }
 0x3fe   : > { %v6019_v31 = vpop.f32.mrf.mxu2 }
 0x3ff   : > { %v6105_v63 = vadd.f32 %v6019_v31, %v5573_v36  ;;  %v13831_v19 = vpop.f32.mrf.mxu1  ;;  %v13844_v36 = vpop.f32.mrf.mxu3  ;;  %v16901_v31 = vld [vmem:[#allocation124_spill] sm:$0xff] }
 0x400   : > { %v2017_v30 = vadd.f32 %v16902_v12, %v16901_v31 }
 0x401   : > { %v6141_v26 = vadd.f32 %v13745_v42, %v6105_v63  ;;  %v5623_v63 = vld [vmem:[#allocation2 + $0xe1] sm:$0xff] }
 0x402   : > { %6917 = vmatmul.msk.f32.gmra.mxu1 %vm16898_vm7, %v5350_v43  ;;  %v5879_v44 = vsel %vm5847_vm1, %v5623_v63, 0.0  ;;  %v13849_v43 = vpop.f32.mrf.mxu0  ;;  %v2692_v13 = vadd.f32 %v16904_v11, %v2017_v30  ;;  %v5285_v52 = vpop.permute.xlu2 %5284  ;;  %v5096_v30 = vld [vmem:[#allocation2 + $0x108] sm:$0xff]  ;;  %vm16918_vm7 = vmmov %vm16887_vm0 }
 0x403   : > { %v6173_v28 = vmax.f32 %v6141_v26, 0.0  ;;  %6947 = vmatmul.msk.f32.gmra.mxu2 %vm16899_vm4, %v5878_v22  ;;  %v5043_v26 = vadd.f32 %v13753_v8, %v13368_v18  ;;  %v16908_v18 = vld [vmem:[#allocation126_spill] sm:$0xff]  ;;  %v16909_v8 = vld [vmem:[#allocation125_spill] sm:$0xff]  ;;  %vm5321_vm2 = vcmp.eq.s32.totalorder %v5285_v52, 1  ;;  %vm16920_vm4 = vmmov %vm16887_vm0 }
 0x404   : > { %v2020_v63 = vadd.f32 %v16909_v8, %v16908_v18  ;;  %v16914_v18 = vld [vmem:[#allocation128_spill] sm:$0xff]  ;;  %v16915_v8 = vld [vmem:[#allocation127_spill] sm:$0xff]  ;;  %v16917_v52 = vld [vmem:[#allocation122_spill] sm:$0xff] }
 0x405   : > { %6962 = vmatmul.msk.f32.gmra.mxu3 %vm16900_vm8, %v6173_v28  ;;  %v3320_v28 = vadd.f32 %v16906_v61, %v2692_v13  ;;  %vm16923_vm1 = vmmov %vm16887_vm0 }
 0x406   : > { %v6022_v62 = vpop.f32.mrf.mxu2 }
 0x407   : > { %v6106_v41 = vadd.f32 %v6022_v62, %v5574_v3  ;;  %v13842_v37 = vpop.f32.mrf.mxu1  ;;  %v5575_v3 = vadd.f32 %v13785_v33, %v5043_v26  ;;  %v5808_v33 = vpop.permute.xlu0 %5807 }
 0x408   : > { %v13866_v13 = vpop.f32.mrf.mxu3  ;;  %vm5850_vm13 = vcmp.eq.s32.totalorder %v5808_v33, 1 }
 0x409   : > { %v6142_v34 = vadd.f32 %v13745_v42, %v6106_v41  ;;  %v3852_v41 = vadd.f32 %v12612_v45, %v3320_v28  ;;  %v16911_v45 = vld [vmem:[#allocation83_spill] sm:$0xff] }
 0x40a   : > { %6918 = vmatmul.msk.f32.gmra.mxu1 %vm16903_vm11, %v5351_v29  ;;  %v2693_v58 = vadd.f32 %v16911_v45, %v2020_v63  ;;  %v13872_v61 = vpop.f32.mrf.mxu0  ;;  %v2023_v63 = vadd.f32 %v16915_v8, %v16914_v18  ;;  %v16922_v18 = vld [vmem:[#allocation130_spill] sm:$0xff]  ;;  %vm16925_vm11 = vmmov %vm16887_vm0 }
 0x40b   : > { %v6174_v22 = vmax.f32 %v6142_v34, 0.0  ;;  %6948 = vmatmul.msk.f32.gmra.mxu2 %vm16905_vm9, %v5879_v44  ;;  %v4384_v29 = vadd.f32 %v13475_v55, %v3852_v41  ;;  %v5624_v34 = vld [vmem:[#allocation2 + $0xe9] sm:$0xff]  ;;  %v5352_v44 = vsel %vm5320_vm14, %v5096_v30, 0.0  ;;  %vm16927_vm9 = vmmov %vm16887_vm0 }
 0x40c   : > { %v5880_v27 = vsel %vm5848_vm15, %v5624_v34, 0.0  ;;  %v16913_v55 = vld [vmem:[#allocation143_spill] sm:$0xff]  ;;  %vm16930_vm15 = vmmov %vm16887_vm0 }
 0x40d   : > { %6963 = vmatmul.msk.f32.gmra.mxu3 %vm16907_vm10, %v6174_v22  ;;  %v5044_v26 = vadd.f32 %v13774_v9, %v4384_v29  ;;  %v3321_v28 = vadd.f32 %v16913_v55, %v2693_v58  ;;  %v5097_v9 = vld [vmem:[#allocation2 + $0x110] sm:$0xff] }
 0x40e   : > { %v6025_v62 = vpop.f32.mrf.mxu2  ;;  %v5625_v34 = vld [vmem:[#allocation2 + $0xf1] sm:$0xff] }
 0x40f   : > { %v6107_v31 = vadd.f32 %v6025_v62, %v5575_v3  ;;  %v13860_v12 = vpop.f32.mrf.mxu1  ;;  %v5576_v3 = vadd.f32 %v13803_v4, %v5044_v26  ;;  %v3853_v41 = vadd.f32 %v12686_v38, %v3321_v28  ;;  %v2694_v38 = vadd.f32 %v16917_v52, %v2023_v63  ;;  %v5811_v45 = vpop.permute.xlu0 %5810  ;;  %v5098_v28 = vld [vmem:[#allocation2 + $0x118] sm:$0xff]  ;;  %v16926_v52 = vld [vmem:[#allocation70_spill] sm:$0xff] }
 0x410   : > { %v13888_v26 = vpop.f32.mrf.mxu3  ;;  %vm5851_vm14 = vcmp.eq.s32.totalorder %v5811_v45, 1 }
 0x411   : > { %v6143_v11 = vadd.f32 %v13745_v42, %v6107_v31  ;;  %v4385_v29 = vadd.f32 %v13545_v1, %v3853_v41 }
 0x412   : > { %6919 = vmatmul.msk.f32.gmra.mxu1 %vm16910_vm6, %v5352_v44  ;;  %v5353_v44 = vsel %vm5321_vm2, %v5097_v9, 0.0  ;;  %v16921_v9 = vld [vmem:[#allocation131_spill] sm:$0xff]  ;;  %vm16932_vm6 = vmmov %vm16887_vm0 }
 0x413   : > { %v6175_v22 = vmax.f32 %v6143_v11, 0.0  ;;  %6949 = vmatmul.msk.f32.gmra.mxu2 %vm16912_vm3, %v5880_v27  ;;  %v5288_v11 = vpop.permute.xlu2 %5287  ;;  %v5881_v27 = vsel %vm5849_vm12, %v5625_v34, 0.0  ;;  %v5045_v53 = vadd.f32 %v13797_v46, %v4385_v29  ;;  %v2026_v8 = vadd.f32 %v16922_v18, %v16921_v9  ;;  %v5626_v29 = vld [vmem:[#allocation2 + $0xf9] sm:$0xff]  ;;  %v5627_v18 = vld [vmem:[#allocation2 + $0x101] sm:$0xff]  ;;  %vm16933_vm3 = vmmov %vm16887_vm0 }
 0x414   : > { %vm5322_vm8 = vcmp.eq.s32.totalorder %v5288_v11, 1  ;;  %v16924_v11 = vld [vmem:[#allocation88_spill] sm:$0xff]  ;;  %vm16937_vm2 = vmmov %vm16923_vm1 }
 0x415   : > { %6964 = vmatmul.msk.f32.gmra.mxu3 %vm16887_vm0, %v6175_v22  ;;  %v16919_v22 = vld [vmem:[#allocation106_spill] sm:$0xff]  ;;  %v5577_v55 = vadd.f32 %v13818_v57, %v5045_v53  ;;  %v5354_v57 = vsel %vm5322_vm8, %v5098_v28, 0.0  ;;  %vm16938_vm12 = vmmov %vm16923_vm1 }
 0x416   : > { %v6028_v62 = vpop.f32.mrf.mxu2  ;;  %v3322_v1 = vadd.f32 %v16919_v22, %v2694_v38 }
 0x417   : > { %v6108_v31 = vadd.f32 %v6028_v62, %v5576_v3  ;;  %v13878_v30 = vpop.f32.mrf.mxu1  ;;  %v13893_v3 = vpop.f32.mrf.mxu0 }
 0x418   : > { %v3854_v41 = vadd.f32 %v12762_v60, %v3322_v1  ;;  %v5814_v53 = vpop.permute.xlu0 %5813  ;;  %v13909_v22 = vpop.f32.mrf.mxu3 }
 0x419   : > { %v6144_v4 = vadd.f32 %v13745_v42, %v6108_v31  ;;  %vm5852_vm0 = vcmp.eq.s32.totalorder %v5814_v53, 1 }
 0x41a   : > { %6920 = vmatmul.msk.f32.gmra.mxu1 %vm16916_vm5, %v5353_v44  ;;  %v4386_v63 = vadd.f32 %v13576_v10, %v3854_v41  ;;  %v5882_v44 = vsel %vm5850_vm13, %v5626_v29, 0.0  ;;  %v16929_v41 = vld [vmem:[#allocation109_spill] sm:$0xff]  ;;  %vm16948_vm13 = vmmov %vm16923_vm1 }
 0x41b   : > { %v6176_v58 = vmax.f32 %v6144_v4, 0.0  ;;  %6950 = vmatmul.msk.f32.gmra.mxu2 %vm16918_vm7, %v5881_v27  ;;  %v2695_v4 = vadd.f32 %v16924_v11, %v2026_v8  ;;  %v5291_v33 = vpop.permute.xlu2 %5290  ;;  %vm16942_vm7 = vmmov %vm16923_vm1 }
 0x41c   : > { %v5046_v60 = vadd.f32 %v13815_v24, %v4386_v63  ;;  %vm5323_vm10 = vcmp.eq.s32.totalorder %v5291_v33, 1  ;;  %v5883_v63 = vsel %vm5851_vm14, %v5627_v18, 0.0  ;;  %vm16958_vm14 = vmmov %vm16923_vm1 }
 0x41d   : > { %6965 = vmatmul.msk.f32.gmra.mxu3 %vm16920_vm4, %v6176_v58  ;;  %v3323_v38 = vadd.f32 %v16926_v52, %v2695_v4  ;;  %v5099_v58 = vld [vmem:[#allocation2 + $0x120] sm:$0xff]  ;;  %v16934_v52 = vld [vmem:[#allocation107_spill] sm:$0xff]  ;;  %vm16944_vm4 = vmmov %vm16923_vm1 }
 0x41e   : > { %v6031_v62 = vpop.f32.mrf.mxu2  ;;  %v5578_v10 = vadd.f32 %v13831_v19, %v5046_v60  ;;  %v5355_v19 = vsel %vm5323_vm10, %v5099_v58, 0.0  ;;  %v5628_v58 = vld [vmem:[#allocation2 + $0x109] sm:$0xff]  ;;  %vm16954_vm10 = vmmov %vm16923_vm1 }
 0x41f   : > { %v6109_v46 = vadd.f32 %v6031_v62, %v5577_v55  ;;  %v13896_v31 = vpop.f32.mrf.mxu1  ;;  %v3855_v55 = vadd.f32 %v12834_v16, %v3323_v38  ;;  %v13912_v28 = vpop.f32.mrf.mxu0  ;;  %v16928_v62 = vld [vmem:[#allocation133_spill] sm:$0xff]  ;;  %v16935_v38 = vld [vmem:[#allocation111_spill] sm:$0xff] }
 0x420   : > { %v5817_v33 = vpop.permute.xlu0 %5816 }
 0x421   : > { %v6145_v34 = vadd.f32 %v13745_v42, %v6109_v46  ;;  %v2029_v46 = vadd.f32 %v16929_v41, %v16928_v62  ;;  %v4387_v9 = vadd.f32 %v13598_v39, %v3855_v55  ;;  %v16936_v55 = vld [vmem:[#allocation56_spill] sm:$0xff]  ;;  %vm5853_vm5 = vcmp.eq.s32.totalorder %v5817_v33, 1 }
 0x422   : > { %6921 = vmatmul.msk.f32.gmra.mxu1 %vm16923_vm1, %v5354_v57  ;;  %v16931_v57 = vld [vmem:[#allocation73_spill] sm:$0xff] }
 0x423   : > { %v6177_v27 = vmax.f32 %v6145_v34, 0.0  ;;  %6951 = vmatmul.msk.f32.gmra.mxu2 %vm16925_vm11, %v5882_v44  ;;  %v2696_v16 = vadd.f32 %v16931_v57, %v2029_v46  ;;  %v5047_v45 = vadd.f32 %v13833_v56, %v4387_v9  ;;  %v2032_v56 = vadd.f32 %v16935_v38, %v16934_v52  ;;  %v5629_v57 = vld [vmem:[#allocation2 + $0x111] sm:$0xff] }
 0x425   : > { %6966 = vmatmul.msk.f32.gmra.mxu3 %vm16927_vm9, %v6177_v27  ;;  %v3324_v44 = vadd.f32 %v12552_v6, %v2696_v16  ;;  %v5579_v39 = vadd.f32 %v13842_v37, %v5047_v45  ;;  %v13928_v27 = vpop.f32.mrf.mxu3  ;;  %v5885_v45 = vsel %vm5853_vm5, %v5629_v57, 0.0  ;;  %v16950_v57 = vld [vmem:[#allocation74_spill] sm:$0xff]  ;;  %vm16953_vm9 = vmmov %vm16923_vm1 }
 0x426   : > { %v6034_v1 = vpop.f32.mrf.mxu2 }
 0x427   : > { %v6110_v24 = vadd.f32 %v6034_v1, %v5578_v10  ;;  %v13918_v29 = vpop.f32.mrf.mxu1  ;;  %v3856_v4 = vadd.f32 %v12922_v17, %v3324_v44  ;;  %v5884_v1 = vsel %vm5852_vm0, %v5628_v58, 0.0  ;;  %v13934_v37 = vpop.f32.mrf.mxu0  ;;  %v16946_v58 = vld [vmem:[#allocation59_spill] sm:$0xff]  ;;  %vm16975_vm0 = vmmov %vm16923_vm1 }
 0x429   : > { %v6146_v8 = vadd.f32 %v13745_v42, %v6110_v24  ;;  %v4388_v10 = vadd.f32 %v13618_v48, %v3856_v4  ;;  %v2697_v24 = vadd.f32 %v16936_v55, %v2032_v56  ;;  %v16943_v4 = vld [vmem:[#allocation121_spill] sm:$0xff] }
 0x42a   : > { %6922 = vmatmul.msk.f32.gmra.mxu1 %vm16930_vm15, %v5355_v19  ;;  %v16939_v19 = vld [vmem:[#allocation114_spill] sm:$0xff]  ;;  %v5630_v56 = vld [vmem:[#allocation2 + $0x119] sm:$0xff]  ;;  %vm16962_vm15 = vmmov %vm16923_vm1 }
 0x42b   : > { %v6178_v34 = vmax.f32 %v6146_v8, 0.0  ;;  %6952 = vmatmul.msk.f32.gmra.mxu2 %vm16932_vm6, %v5883_v63  ;;  %v5048_v17 = vadd.f32 %v13849_v43, %v4388_v10  ;;  %v3325_v41 = vadd.f32 %v12627_v15, %v2697_v24  ;;  %v16940_v8 = vld [vmem:[#allocation115_spill] sm:$0xff]  ;;  %vm16968_vm6 = vmmov %vm16923_vm1 }
 0x42c   : > { %v2035_v63 = vadd.f32 %v16940_v8, %v16939_v19 }
 0x42d   : > { %6967 = vmatmul.msk.f32.gmra.mxu3 %vm16933_vm3, %v6178_v34  ;;  %v5580_v46 = vadd.f32 %v13860_v12, %v5048_v17  ;;  %v3857_v9 = vadd.f32 %v13009_v0, %v3325_v41  ;;  %v5820_v34 = vpop.permute.xlu0 %5819  ;;  %v13949_v15 = vpop.f32.mrf.mxu3  ;;  %v16941_v12 = vld [vmem:[#allocation69_spill] sm:$0xff]  ;;  %v16947_v17 = vld [vmem:[#allocation14_spill] sm:$0xff]  ;;  %vm16970_vm3 = vcmask 523264  }
 0x42e   : > { %v6037_v11 = vpop.f32.mrf.mxu2  ;;  %v2698_v44 = vadd.f32 %v16941_v12, %v2035_v63  ;;  %vm5854_vm8 = vcmp.eq.s32.totalorder %v5820_v34, 1  ;;  %v5631_v63 = vld [vmem:[#allocation2 + $0x121] sm:$0xff] }
 0x42f   : > { %v6111_v60 = vadd.f32 %v6037_v11, %v5579_v39  ;;  %v13939_v62 = vpop.f32.mrf.mxu1  ;;  %v4389_v43 = vadd.f32 %v13640_v47, %v3857_v9  ;;  %v13954_v0 = vpop.f32.mrf.mxu0  ;;  %v5886_v24 = vsel %vm5854_vm8, %v5630_v56, 0.0  ;;  %vm16996_vm8 = vmmov %vm16975_vm0 }
 0x431   : > { %v6147_v6 = vadd.f32 %v13745_v42, %v6111_v60  ;;  %v5049_v39 = vadd.f32 %v13872_v61, %v4389_v43  ;;  %v3326_v60 = vadd.f32 %v16943_v4, %v2698_v44  ;;  %v16945_v61 = vld [vmem:[#allocation113_spill] sm:$0xff] }
 0x433   : > { %v6179_v53 = vmax.f32 %v6147_v6, 0.0  ;;  %6953 = vmatmul.msk.f32.gmra.mxu2 %vm16937_vm2, %v5884_v1  ;;  %v5581_v47 = vadd.f32 %v13878_v30, %v5049_v39  ;;  %v3858_v38 = vadd.f32 %v13086_v35, %v3326_v60  ;;  %v2038_v6 = vadd.f32 %v16946_v58, %v16945_v61  ;;  %v16952_v39 = vld [vmem:[#allocation13_spill] sm:$0xff]  ;;  %v16956_v61 = vld [vmem:[#allocation79_spill] sm:$0xff]  ;;  %vm16977_vm2 = vmmov %vm16970_vm3 }
 0x434   : > { %vm16984_vm5 = vmmov %vm16977_vm2 }
 0x435   : > { %6968 = vmatmul.msk.f32.gmra.mxu3 %vm16938_vm12, %v6179_v53  ;;  %v4390_v1 = vadd.f32 %v13658_v20, %v3858_v38  ;;  %v2699_v30 = vadd.f32 %v16947_v17, %v2038_v6  ;;  %v13969_v35 = vpop.f32.mrf.mxu3  ;;  %vm16982_vm12 = vmmov %vm16975_vm0 }
 0x436   : > { %v6040_v48 = vpop.f32.mrf.mxu2 }
 0x437   : > { %v6112_v18 = vadd.f32 %v6040_v48, %v5580_v46  ;;  %v13959_v33 = vpop.f32.mrf.mxu1  ;;  %v5050_v53 = vadd.f32 %v13893_v3, %v4390_v1  ;;  %v5823_v46 = vpop.permute.xlu0 %5822  ;;  %v16949_v48 = vld [vmem:[#allocation77_spill] sm:$0xff] }
 0x438   : > { %v3327_v9 = vadd.f32 %v16949_v48, %v2699_v30  ;;  %v4994_v20 = vpop.f32.mrf.mxu0  ;;  %vm5855_vm11 = vcmp.eq.s32.totalorder %v5823_v46, 1  ;;  %v16959_v46 = vld [vmem:[#allocation78_spill] sm:$0xff]  ;;  %v16960_v48 = vld [vmem:[#allocation72_spill] sm:$0xff] }
 0x439   : > { %v6148_v16 = vadd.f32 %v13745_v42, %v6112_v18  ;;  %v5582_v18 = vadd.f32 %v13896_v31, %v5050_v53  ;;  %v5887_v44 = vsel %vm5855_vm11, %v5631_v63, 0.0  ;;  %vm17005_vm11 = vmmov %vm16977_vm2 }
 0x43a   : > { %v3859_v8 = vadd.f32 %v13172_v32, %v3327_v9  ;;  %v2047_v9 = vadd.f32 %v16960_v48, %v16959_v46  ;;  %v16973_v48 = vld [vmem:[#allocation19_spill] sm:$0xff] }
 0x43b   : > { %v6180_v11 = vmax.f32 %v6148_v16, 0.0  ;;  %6954 = vmatmul.msk.f32.gmra.mxu2 %vm16942_vm7, %v5885_v45  ;;  %v16951_v16 = vld [vmem:[#allocation120_spill] sm:$0xff]  ;;  %vm16989_vm7 = vmmov %vm16975_vm0 }
 0x43c   : > { %v2041_v45 = vadd.f32 %v16951_v16, %v16950_v57  ;;  %v4391_v34 = vadd.f32 %v13680_v5, %v3859_v8  ;;  %v16963_v16 = vld [vmem:[#allocation42_spill] sm:$0xff] }
 0x43d   : > { %6969 = vmatmul.msk.f32.gmra.mxu3 %vm16944_vm4, %v6180_v11  ;;  %vm16991_vm4 = vmmov %vm16977_vm2 }
 0x43e   : > { %v6043_v52 = vpop.f32.mrf.mxu2  ;;  %v2700_v31 = vadd.f32 %v16952_v39, %v2041_v45  ;;  %v5051_v11 = vadd.f32 %v13912_v28, %v4391_v34 }
 0x43f   : > { %v6113_v10 = vadd.f32 %v6043_v52, %v5581_v47  ;;  %v5526_v3 = vpop.f32.mrf.mxu1  ;;  %v13985_v47 = vpop.f32.mrf.mxu3 }
 0x440   : > { %v3328_v32 = vadd.f32 %v12847_v49, %v2700_v31  ;;  %v5583_v60 = vadd.f32 %v13918_v29, %v5051_v11  ;;  %v4997_v56 = vpop.f32.mrf.mxu0  ;;  %v16957_v49 = vld [vmem:[#allocation6_spill] sm:$0xff] }
 0x441   : > { %v6149_v55 = vadd.f32 %v13745_v42, %v6113_v10  ;;  %v16955_v10 = vld [vmem:[#allocation75_spill] sm:$0xff] }
 0x442   : > { %v3860_v5 = vadd.f32 %v13259_v14, %v3328_v32  ;;  %v2044_v58 = vadd.f32 %v16956_v61, %v16955_v10  ;;  %v16966_v32 = vld [vmem:[#allocation10_spill] sm:$0xff]  ;;  %v16967_v61 = vld [vmem:[#allocation81_spill] sm:$0xff] }
 0x443   : > { %v6181_v41 = vmax.f32 %v6149_v55, 0.0  ;;  %6955 = vmatmul.msk.f32.gmra.mxu2 %vm16948_vm13, %v5886_v24  ;;  %vm16998_vm13 = vmmov %vm16977_vm2 }
 0x444   : > { %v4392_v28 = vadd.f32 %v13697_v59, %v3860_v5  ;;  %v2701_v55 = vadd.f32 %v16957_v49, %v2044_v58 }
 0x445   : > { %6970 = vmatmul.msk.f32.gmra.mxu3 %vm16923_vm1, %v6181_v41  ;;  %vm17003_vm1 = vmmov %vm16975_vm0 }
 0x446   : > { %v6046_v19 = vpop.f32.mrf.mxu2  ;;  %v5052_v29 = vadd.f32 %v13934_v37, %v4392_v28  ;;  %v3329_v17 = vadd.f32 %v12935_v21, %v2701_v55  ;;  %v16961_v21 = vld [vmem:[#allocation11_spill] sm:$0xff]  ;;  %v16969_v55 = vld [vmem:[#allocation92_spill] sm:$0xff] }
 0x447   : > { %v6114_v43 = vadd.f32 %v6046_v19, %v5582_v18  ;;  %v5529_v1 = vpop.f32.mrf.mxu1  ;;  %v13998_v59 = vpop.f32.mrf.mxu3  ;;  %v2702_v8 = vadd.f32 %v16961_v21, %v2047_v9 }
 0x448   : > { %v5584_v30 = vadd.f32 %v13939_v62, %v5052_v29  ;;  %v3861_v53 = vadd.f32 %v13321_v2, %v3329_v17  ;;  %v5000_v19 = vpop.f32.mrf.mxu0  ;;  %v6416_v17 = vld [vmem:[%s14013_s20 + $0x8] sm:$0xff] }
 0x449   : > { %v6150_v12 = vadd.f32 %v13745_v42, %v6114_v43  ;;  %v3330_v57 = vadd.f32 %v13024_v50, %v2702_v8  ;;  %v16974_v8 = vld [vmem:[#allocation44_spill] sm:$0xff] }
 0x44a   : > { %v4393_v18 = vadd.f32 %v13720_v7, %v3861_v53  ;;  %v14018_v7 = vld [vmem:[%s14281_s9] ss:$0 sm:$0xff] }
 0x44b   : > { %v6182_v4 = vmax.f32 %v6150_v12, 0.0  ;;  %6956 = vmatmul.msk.f32.gmra.mxu2 %vm16953_vm9, %v5887_v44  ;;  %v3862_v45 = vadd.f32 %v16963_v16, %v3330_v57  ;;  %v16964_v12 = vld [vmem:[#allocation82_spill] sm:$0xff]  ;;  %v16976_v16 = vld [vmem:[#allocation40_spill] sm:$0xff]  ;;  %vm17010_vm9 = vmmov %vm16975_vm0 }
 0x44c   : > { %v5053_v62 = vadd.f32 %v13954_v0, %v4393_v18  ;;  %v16965_v44 = vld [vmem:[#allocation86_spill] sm:$0xff] }
 0x44d   : > { %6971 = vmatmul.msk.f32.gmra.mxu3 %vm16954_vm10, %v6182_v4  ;;  %v2050_v39 = vadd.f32 %v16965_v44, %v16964_v12  ;;  %v4394_v31 = vadd.f32 %v13748_v23, %v3862_v45  ;;  %v16979_v12 = vld [vmem:[#allocation93_spill] sm:$0xff]  ;;  %vm17012_vm10 = vmmov %vm16977_vm2 }
 0x44e   : > { %v6049_v52 = vpop.f32.mrf.mxu2  ;;  %v5585_v2 = vadd.f32 %v13959_v33, %v5053_v62  ;;  %v6415_v33 = vld [vmem:[%s14013_s20] sm:$0xff] }
 0x44f   : > { %v6115_v38 = vadd.f32 %v6049_v52, %v5583_v60  ;;  %v5532_v43 = vpop.f32.mrf.mxu1  ;;  %v2703_v60 = vadd.f32 %v16966_v32, %v2050_v39  ;;  %v5054_v52 = vadd.f32 %v4994_v20, %v4394_v31 }
 0x450   : > { %v5003_v10 = vpop.f32.mrf.mxu0 }
 0x451   : > { %v6151_v6 = vadd.f32 %v13745_v42, %v6115_v38  ;;  %v3331_v58 = vadd.f32 %v16967_v61, %v2703_v60  ;;  %v5586_v23 = vadd.f32 %v5526_v3, %v5054_v52 }
 0x453   : > { %v6183_v24 = vmax.f32 %v6151_v6, 0.0  ;;  %v3863_v29 = vadd.f32 %v16969_v55, %v3331_v58 }
 0x455   : > { %6972 = vmatmul.msk.f32.gmra.mxu3 %vm16958_vm14, %v6183_v24  ;;  %vm17017_vm14 = vmmov %vm16975_vm0 }
 0x456   : > { %v6052_v14 = vpop.f32.mrf.mxu2 }
 0x457   : > { %v6116_v41 = vadd.f32 %v6052_v14, %v5584_v30  ;;  %v5535_v6 = vpop.f32.mrf.mxu1  ;;  %v16971_v30 = vld [vmem:[#allocation85_spill] sm:$0xff]  ;;  %v16972_v14 = vld [vmem:[#allocation90_spill] sm:$0xff] }
 0x458   : > { %v2053_v53 = vadd.f32 %v16972_v14, %v16971_v30 }
 0x459   : > { %v6152_v37 = vadd.f32 %v13745_v42, %v6116_v41  ;;  %v4395_v41 = vadd.f32 %v13771_v54, %v3863_v29 }
 0x45a   : > { %v2704_v9 = vadd.f32 %v16973_v48, %v2053_v53 }
 0x45b   : > { %v6184_v63 = vmax.f32 %v6152_v37, 0.0  ;;  %v5055_v18 = vadd.f32 %v4997_v56, %v4395_v41  ;;  %v16978_v56 = vld [vmem:[#allocation87_spill] sm:$0xff]  ;;  %v16987_v41 = vld [vmem:[#allocation26_spill] sm:$0xff] }
 0x45c   : > { %v6319_v34 = vpop.f32.mrf.mxu3  ;;  %v3332_v62 = vadd.f32 %v16974_v8, %v2704_v9  ;;  %v2056_v44 = vadd.f32 %v16979_v12, %v16978_v56  ;;  %v16994_v12 = vld [vmem:[#allocation140_spill] sm:$0xff] }
 0x45d   : > { %6973 = vmatmul.msk.f32.gmra.mxu3 %vm16962_vm15, %v6184_v63  ;;  %v6320_v4 = vadd.f32 %v14018_v7, %v6319_v34  ;;  %v5587_v63 = vadd.f32 %v5529_v1, %v5055_v18  ;;  %v16988_v18 = vld [vmem:[#allocation110_spill] sm:$0xff]  ;;  %vm17019_vm15 = vmmov %vm16977_vm2 }
 0x45e   : > { %v6055_v0 = vpop.f32.mrf.mxu2  ;;  %v3864_v54 = vadd.f32 %v16976_v16, %v3332_v62  ;;  %v6419_v16 = vld [vmem:[%s14013_s20 + $0x20] sm:$0xff] }
 0x45f   : > { %v6117_v50 = vadd.f32 %v6055_v0, %v5585_v2  ;;  %v6447_v38 = vadd.f32 %v6415_v33, %v6320_v4  ;;  %v5006_v2 = vpop.f32.mrf.mxu0  ;;  %v6417_v33 = vld [vmem:[%s14013_s20 + $0x10] sm:$0xff] }
 0x460   : > { %v4396_v39 = vadd.f32 %v13790_v51, %v3864_v54  ;;  %v16992_v54 = vld [vmem:[#allocation91_spill] sm:$0xff] }
 0x461   : > { %v6153_v11 = vadd.f32 %v13745_v42, %v6117_v50  ;;  %v6479_v28 = vmax.f32 %v6447_v38, 0.0  ;;  %v5538_v50 = vpop.f32.mrf.mxu1 }
 0x462   : > { %v5056_v32 = vadd.f32 %v5000_v19, %v4396_v39 }
 0x463   : > { %v6185_v5 = vmax.f32 %v6153_v11, 0.0  ;;  %6511 = vst.msk [vmem:[%s14032_s25] sm:$0xff] %vm16970_vm3, %v6479_v28  ;;  %v16980_v11 = vld [vmem:[#allocation17_spill] sm:$0xff]  ;;  %v16983_v28 = vld [vmem:[#allocation84_spill] sm:$0xff]  ;;  %vm17026_vm3 = vmmov %vm16977_vm2 }
 0x464   : > { %v6322_v24 = vpop.f32.mrf.mxu3  ;;  %v2705_v4 = vadd.f32 %v16980_v11, %v2056_v44  ;;  %v5588_v61 = vadd.f32 %v5532_v43, %v5056_v32 }
 0x465   : > { %6974 = vmatmul.msk.f32.gmra.mxu3 %vm16968_vm6, %v6185_v5  ;;  %v6323_v46 = vadd.f32 %v14018_v7, %v6322_v24  ;;  %v16981_v5 = vld [vmem:[#allocation43_spill] sm:$0xff]  ;;  %v16985_v24 = vld [vmem:[#allocation89_spill] sm:$0xff]  ;;  %vm17024_vm6 = vmmov %vm16975_vm0 }
 0x466   : > { %v6058_v49 = vpop.f32.mrf.mxu2  ;;  %v3333_v38 = vadd.f32 %v16981_v5, %v2705_v4  ;;  %v16995_v4 = vld [vmem:[#allocation41_spill] sm:$0xff] }
 0x467   : > { %v6118_v20 = vadd.f32 %v6058_v49, %v5586_v23  ;;  %v6448_v21 = vadd.f32 %v6416_v17, %v6323_v46  ;;  %v5009_v55 = vpop.f32.mrf.mxu0  ;;  %v16986_v17 = vld [vmem:[#allocation96_spill] sm:$0xff] }
 0x468   : > { %v3865_v49 = vadd.f32 %v16983_v28, %v3333_v38  ;;  %v2059_v19 = vadd.f32 %v16986_v17, %v16985_v24  ;;  %v16999_v28 = vld [vmem:[#allocation94_spill] sm:$0xff] }
 0x469   : > { %v6154_v3 = vadd.f32 %v13745_v42, %v6118_v20  ;;  %v6480_v57 = vmax.f32 %v6448_v21, 0.0  ;;  %v6418_v20 = vld [vmem:[%s14013_s20 + $0x18] sm:$0xff]  ;;  %v5541_v53 = vpop.f32.mrf.mxu1 }
 0x46a   : > { %v4397_v30 = vadd.f32 %v13811_v25, %v3865_v49  ;;  %v17000_v49 = vld [vmem:[#allocation137_spill] sm:$0xff] }
 0x46b   : > { %v6186_v37 = vmax.f32 %v6154_v3, 0.0  ;;  %6512 = vst.msk [vmem:[%s14032_s25 + $0x8] sm:$0xff] %vm16977_vm2, %v6480_v57  ;;  %v2706_v3 = vadd.f32 %v16987_v41, %v2059_v19 }
 0x46c   : > { %v6325_v34 = vpop.f32.mrf.mxu3  ;;  %v5057_v46 = vadd.f32 %v5003_v10, %v4397_v30 }
 0x46d   : > { %6975 = vmatmul.msk.f32.gmra.mxu3 %vm16975_vm0, %v6186_v37  ;;  %v6326_v31 = vadd.f32 %v14018_v7, %v6325_v34  ;;  %v3334_v37 = vadd.f32 %v16988_v18, %v2706_v3 }
 0x46e   : > { %v6061_v0 = vpop.f32.mrf.mxu2  ;;  %v5589_v21 = vadd.f32 %v5535_v6, %v5057_v46 }
 0x46f   : > { %v6119_v45 = vadd.f32 %v6061_v0, %v5587_v63  ;;  %v6449_v52 = vadd.f32 %v6417_v33, %v6326_v31  ;;  %v16990_v63 = vld [vmem:[#allocation49_spill] sm:$0xff]  ;;  %v5012_v56 = vpop.f32.mrf.mxu0 }
 0x470   : > { %v3866_v25 = vadd.f32 %v16990_v63, %v3334_v37 }
 0x471   : > { %v6155_v1 = vadd.f32 %v13745_v42, %v6119_v45  ;;  %v6481_v58 = vmax.f32 %v6449_v52, 0.0  ;;  %v16993_v45 = vld [vmem:[#allocation135_spill] sm:$0xff]  ;;  %v5544_v11 = vpop.f32.mrf.mxu1 }
 0x472   : > { %v2062_v34 = vadd.f32 %v16993_v45, %v16992_v54  ;;  %v4398_v10 = vadd.f32 %v13828_v40, %v3866_v25  ;;  %v16997_v40 = vld [vmem:[#allocation47_spill] sm:$0xff] }
 0x473   : > { %v6187_v60 = vmax.f32 %v6155_v1, 0.0  ;;  %6513 = vst.msk [vmem:[%s14032_s25 + $0x10] sm:$0xff] %vm16984_vm5, %v6481_v58  ;;  %vm17038_vm5 = vmmov %vm16977_vm2 }
 0x474   : > { %v2707_v44 = vadd.f32 %v16994_v12, %v2062_v34  ;;  %v5058_v39 = vadd.f32 %v5006_v2, %v4398_v10  ;;  %v2065_v2 = vadd.f32 %v17000_v49, %v16999_v28  ;;  %v17009_v10 = vld [vmem:[#allocation39_spill] sm:$0xff] }
 0x475   : > { %6976 = vmatmul.msk.f32.gmra.mxu3 %vm16982_vm12, %v6187_v60  ;;  %v6328_v29 = vpop.f32.mrf.mxu3  ;;  %vm17036_vm12 = vmmov %vm16975_vm0 }
 0x476   : > { %v6064_v23 = vpop.f32.mrf.mxu2  ;;  %v6329_v14 = vadd.f32 %v14018_v7, %v6328_v29  ;;  %v3335_v32 = vadd.f32 %v16995_v4, %v2707_v44  ;;  %v5590_v60 = vadd.f32 %v5538_v50, %v5058_v39 }
 0x477   : > { %v6120_v51 = vadd.f32 %v6064_v23, %v5588_v61  ;;  %v6420_v23 = vld [vmem:[%s14013_s20 + $0x28] sm:$0xff] }
 0x478   : > { %v6450_v9 = vadd.f32 %v6418_v20, %v6329_v14  ;;  %v3867_v38 = vadd.f32 %v16997_v40, %v3335_v32  ;;  %v17001_v20 = vld [vmem:[#allocation20_spill] sm:$0xff]  ;;  %v17002_v14 = vld [vmem:[#allocation71_spill] sm:$0xff] }
 0x479   : > { %v6156_v43 = vadd.f32 %v13745_v42, %v6120_v51  ;;  %v2708_v24 = vadd.f32 %v17001_v20, %v2065_v2  ;;  %v6422_v32 = vld [vmem:[%s14013_s20 + $0x38] sm:$0xff]  ;;  %v17016_v2 = vld [vmem:[#allocation50_spill] sm:$0xff]  ;;  %v17018_v20 = vld [vmem:[#allocation55_spill] sm:$0xff] }
 0x47a   : > { %v6482_v8 = vmax.f32 %v6450_v9, 0.0  ;;  %v4399_v51 = vadd.f32 %v13844_v36, %v3867_v38  ;;  %v17004_v36 = vld [vmem:[#allocation46_spill] sm:$0xff] }
 0x47b   : > { %v6188_v48 = vmax.f32 %v6156_v43, 0.0  ;;  %v5015_v43 = vpop.f32.mrf.mxu0  ;;  %v3336_v41 = vadd.f32 %v17002_v14, %v2708_v24  ;;  %v6423_v14 = vld [vmem:[%s14013_s20 + $0x40] sm:$0xff] }
 0x47c   : > { %6514 = vst.msk [vmem:[%s14032_s25 + $0x18] sm:$0xff] %vm16991_vm4, %v6482_v8  ;;  %v5059_v17 = vadd.f32 %v5009_v55, %v4399_v51  ;;  %v6421_v8 = vld [vmem:[%s14013_s20 + $0x30] sm:$0xff]  ;;  %v17007_v55 = vld [vmem:[#allocation117_spill] sm:$0xff]  ;;  %vm17045_vm4 = vmmov %vm16977_vm2 }
 0x47d   : > { %6977 = vmatmul.msk.f32.gmra.mxu3 %vm16989_vm7, %v6188_v48  ;;  %v5547_v48 = vpop.f32.mrf.mxu1  ;;  %v3868_v18 = vadd.f32 %v17004_v36, %v3336_v41  ;;  %v17020_v41 = vld [vmem:[#allocation9_spill] sm:$0xff]  ;;  %vm17043_vm7 = vmmov %vm16975_vm0 }
 0x47e   : > { %v6067_v62 = vpop.f32.mrf.mxu2  ;;  %v5591_v3 = vadd.f32 %v5541_v53, %v5059_v17 }
 0x47f   : > { %v6121_v57 = vadd.f32 %v6067_v62, %v5589_v21  ;;  %v6331_v0 = vpop.f32.mrf.mxu3  ;;  %v17006_v62 = vld [vmem:[#allocation134_spill] sm:$0xff]  ;;  %v4400_v25 = vadd.f32 %v13866_v13, %v3868_v18  ;;  %v17022_v18 = vld [vmem:[#allocation37_spill] sm:$0xff] }
 0x480   : > { %v6332_v6 = vadd.f32 %v14018_v7, %v6331_v0  ;;  %v2068_v63 = vadd.f32 %v17007_v55, %v17006_v62  ;;  %v17008_v0 = vld [vmem:[#allocation108_spill] sm:$0xff] }
 0x481   : > { %v6157_v33 = vadd.f32 %v13745_v42, %v6121_v57  ;;  %v5060_v54 = vadd.f32 %v5012_v56, %v4400_v25  ;;  %v17014_v56 = vld [vmem:[#allocation116_spill] sm:$0xff] }
 0x482   : > { %v6451_v31 = vadd.f32 %v6419_v16, %v6332_v6  ;;  %v2709_v16 = vadd.f32 %v17008_v0, %v2068_v63  ;;  %v17023_v55 = vld [vmem:[#allocation48_spill] sm:$0xff]  ;;  %v17025_v0 = vld [vmem:[#allocation97_spill] sm:$0xff] }
 0x483   : > { %v6189_v1 = vmax.f32 %v6157_v33, 0.0  ;;  %v5592_v6 = vadd.f32 %v5544_v11, %v5060_v54  ;;  %v5018_v44 = vpop.f32.mrf.mxu0  ;;  %v14118_v11 = vld [vmem:[%s14279_s7] ss:$0 sm:$0xff] }
 0x484   : > { %v6483_v52 = vmax.f32 %v6451_v31, 0.0  ;;  %v3337_v33 = vadd.f32 %v17009_v10, %v2709_v16  ;;  %v17028_v10 = vld [vmem:[#allocation21_spill] sm:$0xff] }
 0x485   : > { %6978 = vmatmul.msk.f32.gmra.mxu3 %vm16996_vm8, %v6189_v1  ;;  %v17011_v1 = vld [vmem:[#allocation99_spill] sm:$0xff]  ;;  %v5550_v31 = vpop.f32.mrf.mxu1  ;;  %vm17050_vm8 = vmmov %vm16975_vm0 }
 0x486   : > { %v6070_v5 = vpop.f32.mrf.mxu2  ;;  %6515 = vst.msk [vmem:[%s14032_s25 + $0x20] sm:$0xff] %vm16998_vm13, %v6483_v52  ;;  %v3869_v13 = vadd.f32 %v17011_v1, %v3337_v33  ;;  %v17029_v1 = vld [vmem:[#allocation36_spill] sm:$0xff]  ;;  %vm17052_vm13 = vmmov %vm16977_vm2 }
 0x487   : > { %v6122_v61 = vadd.f32 %v6070_v5, %v5590_v60  ;;  %v17013_v60 = vld [vmem:[#allocation136_spill] sm:$0xff] }
 0x488   : > { %v6334_v58 = vpop.f32.mrf.mxu3  ;;  %v2071_v52 = vadd.f32 %v17014_v56, %v17013_v60  ;;  %v4401_v5 = vadd.f32 %v13888_v26, %v3869_v13  ;;  %v17030_v60 = vld [vmem:[#allocation95_spill] sm:$0xff] }
 0x489   : > { %v6158_v29 = vadd.f32 %v13745_v42, %v6122_v61  ;;  %v6335_v50 = vadd.f32 %v14018_v7, %v6334_v58  ;;  %v17015_v61 = vld [vmem:[#allocation142_spill] sm:$0xff] }
 0x48a   : > { %v2710_v58 = vadd.f32 %v17015_v61, %v2071_v52 }
 0x48b   : > { %v6190_v19 = vmax.f32 %v6158_v29, 0.0  ;;  %v6452_v30 = vadd.f32 %v6420_v23, %v6335_v50  ;;  %v5061_v23 = vadd.f32 %v5015_v43, %v4401_v5 }
 0x48c   : > { %v3338_v51 = vadd.f32 %v17016_v2, %v2710_v58 }
 0x48d   : > { %v6484_v46 = vmax.f32 %v6452_v30, 0.0  ;;  %6979 = vmatmul.msk.f32.gmra.mxu3 %vm17003_vm1, %v6190_v19  ;;  %v5593_v29 = vadd.f32 %v5547_v48, %v5061_v23  ;;  %v5021_v19 = vpop.f32.mrf.mxu0  ;;  %v5553_v36 = vpop.f32.mrf.mxu1  ;;  %v6425_v23 = vld [vmem:[%s14013_s20 + $0x50] sm:$0xff]  ;;  %vm17053_vm1 = vmmov %vm16975_vm0 }
 0x48e   : > { %v6073_v9 = vpop.f32.mrf.mxu2  ;;  %v3870_v24 = vadd.f32 %v17018_v20, %v3338_v51 }
 0x48f   : > { %6516 = vst.msk [vmem:[%s14032_s25 + $0x28] sm:$0xff] %vm17005_vm11, %v6484_v46  ;;  %v6123_v37 = vadd.f32 %v6073_v9, %v5591_v3  ;;  %v17021_v3 = vld [vmem:[#allocation129_spill] sm:$0xff]  ;;  %vm17054_vm11 = vmmov %vm16977_vm2 }
 0x490   : > { %v6337_v21 = vpop.f32.mrf.mxu3  ;;  %v2074_v43 = vadd.f32 %v17021_v3, %v17020_v41  ;;  %v4402_v46 = vadd.f32 %v13909_v22, %v3870_v24 }
 0x491   : > { %v6159_v53 = vadd.f32 %v13745_v42, %v6123_v37  ;;  %v6338_v57 = vadd.f32 %v14018_v7, %v6337_v21 }
 0x492   : > { %v2711_v37 = vadd.f32 %v17022_v18, %v2074_v43  ;;  %v5062_v21 = vadd.f32 %v5018_v44, %v4402_v46 }
 0x493   : > { %v6191_v45 = vmax.f32 %v6159_v53, 0.0  ;;  %v6453_v34 = vadd.f32 %v6421_v8, %v6338_v57 }
 0x494   : > { %v3339_v63 = vadd.f32 %v17023_v55, %v2711_v37  ;;  %v5594_v25 = vadd.f32 %v5550_v31, %v5062_v21  ;;  %v6426_v37 = vld [vmem:[%s14013_s20 + $0x58] sm:$0xff] }
 0x495   : > { %v6485_v12 = vmax.f32 %v6453_v34, 0.0  ;;  %6980 = vmatmul.msk.f32.gmra.mxu3 %vm17010_vm9, %v6191_v45  ;;  %v6424_v45 = vld [vmem:[%s14013_s20 + $0x48] sm:$0xff]  ;;  %v17027_v34 = vld [vmem:[#allocation7_spill] sm:$0xff]  ;;  %v17039_v21 = vld [vmem:[#allocation12_spill] sm:$0xff] }
 0x496   : > { %v6076_v39 = vpop.f32.mrf.mxu2  ;;  %v3871_v22 = vadd.f32 %v17025_v0, %v3339_v63  ;;  %v2077_v33 = vadd.f32 %v17028_v10, %v17027_v34  ;;  %vm17055_vm9 = vmmov %vm16975_vm0 }
 0x497   : > { %6517 = vst.msk [vmem:[%s14032_s25 + $0x30] sm:$0xff] %vm17012_vm10, %v6485_v12  ;;  %v6124_v42 = vadd.f32 %v6076_v39, %v5592_v6  ;;  %v5024_v39 = vpop.f32.mrf.mxu0  ;;  %vm17056_vm10 = vmmov %vm16977_vm2 }
 0x498   : > { %v6340_v4 = vpop.f32.mrf.mxu3  ;;  %v4403_v6 = vadd.f32 %v13928_v27, %v3871_v22  ;;  %v2712_v13 = vadd.f32 %v17029_v1, %v2077_v33  ;;  %v17031_v27 = vld [vmem:[#allocation54_spill] sm:$0xff] }
 0x499   : > { %v6160_v40 = vadd.f32 %v14118_v11, %v6124_v42  ;;  %v6341_v38 = vadd.f32 %v14018_v7, %v6340_v4 }
 0x49a   : > { %v5063_v42 = vadd.f32 %v5021_v19, %v4403_v6  ;;  %v3340_v56 = vadd.f32 %v17030_v60, %v2712_v13  ;;  %v6427_v13 = vld [vmem:[%s14013_s20 + $0x60] sm:$0xff] }
 0x49b   : > { %v6192_v28 = vmax.f32 %v6160_v40, 0.0  ;;  %v6454_v49 = vadd.f32 %v6422_v32, %v6341_v38  ;;  %v5556_v32 = vpop.f32.mrf.mxu1 }
 0x49c   : > { %v5595_v52 = vadd.f32 %v5553_v36, %v5063_v42  ;;  %v3872_v38 = vadd.f32 %v17031_v27, %v3340_v56  ;;  %v17046_v42 = vld [vmem:[#allocation3_spill] sm:$0xff] }
 0x49d   : > { %v6486_v50 = vmax.f32 %v6454_v49, 0.0  ;;  %6981 = vmatmul.msk.f32.gmra.mxu3 %vm17017_vm14, %v6192_v28  ;;  %v17032_v28 = vld [vmem:[#allocation5_spill] sm:$0xff]  ;;  %v17033_v49 = vld [vmem:[#allocation132_spill] sm:$0xff]  ;;  %vm17057_vm14 = vmmov %vm16977_vm2 }
 0x49e   : > { %v6079_v26 = vpop.f32.mrf.mxu2  ;;  %v2080_v2 = vadd.f32 %v17033_v49, %v17032_v28  ;;  %v4404_v51 = vadd.f32 %v13949_v15, %v3872_v38  ;;  %v17037_v15 = vld [vmem:[#allocation4_spill] sm:$0xff] }
 0x49f   : > { %6518 = vst.msk [vmem:[%s14032_s25 + $0x38] sm:$0xff] %vm17019_vm15, %v6486_v50  ;;  %v6125_v17 = vadd.f32 %v6079_v26, %v5593_v29  ;;  %v17034_v26 = vld [vmem:[#allocation34_spill] sm:$0xff]  ;;  %vm17058_vm15 = vmmov %vm16977_vm2 }
 0x4a0   : > { %v6343_v30 = vpop.f32.mrf.mxu3  ;;  %v2713_v20 = vadd.f32 %v17034_v26, %v2080_v2  ;;  %v5064_v24 = vadd.f32 %v5024_v39, %v4404_v51  ;;  %v17051_v2 = vld [vmem:[#allocation18_spill] sm:$0xff] }
 0x4a1   : > { %v6161_v48 = vadd.f32 %v14118_v11, %v6125_v17  ;;  %v6344_v9 = vadd.f32 %v14018_v7, %v6343_v30  ;;  %v5027_v30 = vpop.f32.mrf.mxu0  ;;  %v6428_v26 = vld [vmem:[%s14013_s20 + $0x68] sm:$0xff] }
 0x4a2   : > { %v5596_v3 = vadd.f32 %v5556_v32, %v5064_v24 }
 0x4a3   : > { %v6193_v8 = vmax.f32 %v6161_v48, 0.0  ;;  %v6455_v62 = vadd.f32 %v6423_v14, %v6344_v9  ;;  %v17035_v14 = vld [vmem:[#allocation45_spill] sm:$0xff]  ;;  %v5559_v46 = vpop.f32.mrf.mxu1 }
 0x4a4   : > { %v3341_v41 = vadd.f32 %v17035_v14, %v2713_v20 }
 0x4a5   : > { %v6487_v53 = vmax.f32 %v6455_v62, 0.0  ;;  %6982 = vmatmul.msk.f32.gmra.mxu3 %vm17024_vm6, %v6193_v8  ;;  %v17040_v8 = vld [vmem:[#allocation16_spill] sm:$0xff]  ;;  %vm17059_vm6 = vmmov %vm16977_vm2 }
 0x4a6   : > { %v6082_v57 = vpop.f32.mrf.mxu2  ;;  %v3873_v9 = vadd.f32 %v17037_v15, %v3341_v41  ;;  %v2083_v62 = vadd.f32 %v17040_v8, %v17039_v21  ;;  %v6429_v15 = vld [vmem:[%s14013_s20 + $0x70] sm:$0xff] }
 0x4a7   : > { %6519 = vst.msk [vmem:[%s14032_s25 + $0x40] sm:$0xff] %vm17026_vm3, %v6487_v53  ;;  %v6126_v16 = vadd.f32 %v6082_v57, %v5594_v25  ;;  %v17041_v53 = vld [vmem:[#allocation76_spill] sm:$0xff]  ;;  %vm17060_vm3 = vmmov %vm16977_vm2 }
 0x4a8   : > { %v6346_v54 = vpop.f32.mrf.mxu3  ;;  %v4405_v55 = vadd.f32 %v13969_v35, %v3873_v9  ;;  %v2714_v57 = vadd.f32 %v17041_v53, %v2083_v62  ;;  %v6430_v62 = vld [vmem:[%s14013_s20 + $0x78] sm:$0xff]  ;;  %v6431_v53 = vld [vmem:[%s14013_s20 + $0x80] sm:$0xff] }
 0x4a9   : > { %v6162_v12 = vadd.f32 %v14118_v11, %v6126_v16  ;;  %v6347_v44 = vadd.f32 %v14018_v7, %v6346_v54  ;;  %v17042_v54 = vld [vmem:[#allocation57_spill] sm:$0xff]  ;;  %v5030_v33 = vpop.f32.mrf.mxu0 }
 0x4aa   : > { %v5065_v0 = vadd.f32 %v5027_v30, %v4405_v55 }
 0x4ab   : > { %v6194_v31 = vmax.f32 %v6162_v12, 0.0  ;;  %v6456_v4 = vadd.f32 %v6424_v45, %v6347_v44  ;;  %v3342_v45 = vadd.f32 %v17042_v54, %v2714_v57  ;;  %v17044_v12 = vld [vmem:[#allocation53_spill] sm:$0xff]  ;;  %v5562_v39 = vpop.f32.mrf.mxu1  ;;  %v6432_v54 = vld [vmem:[%s14013_s20 + $0x88] sm:$0xff] }
 0x4ac   : > { %v5597_v34 = vadd.f32 %v5559_v46, %v5065_v0 }
 0x4ad   : > { %v6488_v5 = vmax.f32 %v6456_v4, 0.0  ;;  %6983 = vmatmul.msk.f32.gmra.mxu3 %vm16975_vm0, %v6194_v31  ;;  %v3874_v35 = vadd.f32 %v17044_v12, %v3342_v45  ;;  %v17047_v31 = vld [vmem:[#allocation25_spill] sm:$0xff]  ;;  %vm17061_vm0 = vmmov %vm16977_vm2 }
 0x4ae   : > { %v6085_v40 = vpop.f32.mrf.mxu2  ;;  %v2086_v4 = vadd.f32 %v17047_v31, %v17046_v42 }
 0x4af   : > { %6520 = vst.msk [vmem:[%s14032_s25 + $0x48] sm:$0xff] %vm16977_vm2, %v6488_v5  ;;  %v6127_v61 = vadd.f32 %v6085_v40, %v5595_v52  ;;  %v4406_v32 = vadd.f32 %v13985_v47, %v3874_v35  ;;  %v17048_v52 = vld [vmem:[#allocation33_spill] sm:$0xff]  ;;  %vm17062_vm2 = vmmov %vm17061_vm0 }
 0x4b0   : > { %v6349_v58 = vpop.f32.mrf.mxu3  ;;  %v2715_v5 = vadd.f32 %v17048_v52, %v2086_v4 }
 0x4b1   : > { %v6163_v29 = vadd.f32 %v14118_v11, %v6127_v61  ;;  %v6350_v50 = vadd.f32 %v14018_v7, %v6349_v58  ;;  %v5066_v40 = vadd.f32 %v5030_v33, %v4406_v32  ;;  %v17049_v61 = vld [vmem:[#allocation139_spill] sm:$0xff]  ;;  %v6435_v32 = vld [vmem:[%s14013_s20 + $0xa0] sm:$0xff] }
 0x4b2   : > { %v3343_v58 = vadd.f32 %v17049_v61, %v2715_v5 }
 0x4b3   : > { %v6195_v17 = vmax.f32 %v6163_v29, 0.0  ;;  %v6457_v19 = vadd.f32 %v6425_v23, %v6350_v50  ;;  %v5598_v23 = vadd.f32 %v5562_v39, %v5066_v40  ;;  %v5033_v29 = vpop.f32.mrf.mxu0  ;;  %v6436_v40 = vld [vmem:[%s14013_s20 + $0xa8] sm:$0xff] }
 0x4b4   : > { %v3875_v51 = vadd.f32 %v17051_v2, %v3343_v58 }
 0x4b5   : > { %v6489_v43 = vmax.f32 %v6457_v19, 0.0  ;;  %6984 = vmatmul.msk.f32.gmra.mxu3 %vm17036_vm12, %v6195_v17  ;;  %v5565_v19 = vpop.f32.mrf.mxu1  ;;  %vm17063_vm12 = vmmov %vm17061_vm0 }
 0x4b6   : > { %v6088_v48 = vpop.f32.mrf.mxu2  ;;  %v4407_v20 = vadd.f32 %v13998_v59, %v3875_v51 }
 0x4b7   : > { %6521 = vst.msk [vmem:[%s14032_s25 + $0x50] sm:$0xff] %vm17038_vm5, %v6489_v43  ;;  %v6128_v36 = vadd.f32 %v6088_v48, %v5596_v3  ;;  %vm17064_vm5 = vmmov %vm17061_vm0 }
 0x4b8   : > { %v6352_v18 = vpop.f32.mrf.mxu3  ;;  %v5067_v30 = vadd.f32 %v5033_v29, %v4407_v20 }
 0x4b9   : > { %v6164_v63 = vadd.f32 %v14118_v11, %v6128_v36  ;;  %v6353_v25 = vadd.f32 %v14018_v7, %v6352_v18 }
 0x4ba   : > { %v5599_v3 = vadd.f32 %v5565_v19, %v5067_v30 }
 0x4bb   : > { %v6196_v22 = vmax.f32 %v6164_v63, 0.0  ;;  %v6458_v16 = vadd.f32 %v6426_v37, %v6353_v25 }
 0x4bd   : > { %v6490_v10 = vmax.f32 %v6458_v16, 0.0  ;;  %6985 = vmatmul.msk.f32.gmra.mxu3 %vm17043_vm7, %v6196_v22  ;;  %vm17065_vm7 = vmmov %vm17061_vm0 }
 0x4be   : > { %v6091_v6 = vpop.f32.mrf.mxu2 }
 0x4bf   : > { %6522 = vst.msk [vmem:[%s14032_s25 + $0x58] sm:$0xff] %vm17045_vm4, %v6490_v10  ;;  %v6129_v44 = vadd.f32 %v6091_v6, %v5597_v34  ;;  %v6433_v6 = vld [vmem:[%s14013_s20 + $0x90] sm:$0xff]  ;;  %vm17066_vm4 = vmmov %vm17061_vm0 }
 0x4c0   : > { %v6355_v1 = vpop.f32.mrf.mxu3 }
 0x4c1   : > { %v6165_v60 = vadd.f32 %v14118_v11, %v6129_v44  ;;  %v6356_v56 = vadd.f32 %v14018_v7, %v6355_v1  ;;  %v6434_v1 = vld [vmem:[%s14013_s20 + $0x98] sm:$0xff] }
 0x4c3   : > { %v6197_v27 = vmax.f32 %v6165_v60, 0.0  ;;  %v6459_v38 = vadd.f32 %v6427_v13, %v6356_v56 }
 0x4c5   : > { %v6491_v28 = vmax.f32 %v6459_v38, 0.0  ;;  %6986 = vmatmul.msk.f32.gmra.mxu3 %vm17050_vm8, %v6197_v27  ;;  %vm17067_vm8 = vmmov %vm17061_vm0 }
 0x4c6   : > { %v6094_v49 = vpop.f32.mrf.mxu2 }
 0x4c7   : > { %6523 = vst.msk [vmem:[%s14032_s25 + $0x60] sm:$0xff] %vm17052_vm13, %v6491_v28  ;;  %v6130_v47 = vadd.f32 %v6094_v49, %v5598_v23  ;;  %v6437_v23 = vld [vmem:[%s14013_s20 + $0xb0] sm:$0xff]  ;;  %vm17068_vm13 = vmmov %vm17061_vm0 }
 0x4c8   : > { %v6358_v50 = vpop.f32.mrf.mxu3 }
 0x4c9   : > { %v6166_v24 = vadd.f32 %v14118_v11, %v6130_v47  ;;  %v6359_v17 = vadd.f32 %v14018_v7, %v6358_v50  ;;  %v6438_v47 = vld [vmem:[%s14013_s20 + $0xb8] sm:$0xff] }
 0x4cb   : > { %v6198_v14 = vmax.f32 %v6166_v24, 0.0  ;;  %v6460_v41 = vadd.f32 %v6428_v26, %v6359_v17  ;;  %v6439_v24 = vld [vmem:[%s14013_s20 + $0xc0] sm:$0xff] }
 0x4cd   : > { %v6492_v43 = vmax.f32 %v6460_v41, 0.0  ;;  %6987 = vmatmul.msk.f32.gmra.mxu3 %vm17053_vm1, %v6198_v14  ;;  %v6440_v41 = vld [vmem:[%s14013_s20 + $0xc8] sm:$0xff]  ;;  %vm17069_vm1 = vmmov %vm17061_vm0 }
 0x4ce   : > { %v6097_v46 = vpop.f32.mrf.mxu2 }
 0x4cf   : > { %6524 = vst.msk [vmem:[%s14032_s25 + $0x68] sm:$0xff] %vm17054_vm11, %v6492_v43  ;;  %v6131_v48 = vadd.f32 %v6097_v46, %v5599_v3  ;;  %vm17070_vm11 = vmmov %vm17061_vm0 }
 0x4d0   : > { %v6361_v59 = vpop.f32.mrf.mxu3 }
 0x4d1   : > { %v6167_v9 = vadd.f32 %v14118_v11, %v6131_v48  ;;  %v6362_v36 = vadd.f32 %v14018_v7, %v6361_v59  ;;  %v6441_v59 = vld [vmem:[%s14013_s20 + $0xd0] sm:$0xff] }
 0x4d3   : > { %v6199_v18 = vmax.f32 %v6167_v9, 0.0  ;;  %v6461_v37 = vadd.f32 %v6429_v15, %v6362_v36 }
 0x4d5   : > { %v6493_v21 = vmax.f32 %v6461_v37, 0.0  ;;  %6988 = vmatmul.msk.f32.gmra.mxu3 %vm17055_vm9, %v6199_v18  ;;  %v6442_v37 = vld [vmem:[%s14013_s20 + $0xd8] sm:$0xff]  ;;  %vm17071_vm9 = vmmov %vm17061_vm0 }
 0x4d7   : > { %6525 = vst.msk [vmem:[%s14032_s25 + $0x70] sm:$0xff] %vm17056_vm10, %v6493_v21  ;;  %vm17072_vm10 = vmmov %vm17061_vm0 }
 0x4d8   : > { %v6364_v8 = vpop.f32.mrf.mxu3 }
 0x4d9   : > { %v6365_v55 = vadd.f32 %v14018_v7, %v6364_v8 }
 0x4db   : > { %v6462_v63 = vadd.f32 %v6430_v62, %v6365_v55 }
 0x4dd   : > { %v6494_v25 = vmax.f32 %v6462_v63, 0.0  ;;  %v6443_v63 = vld [vmem:[%s14013_s20 + $0xe0] sm:$0xff] }
 0x4df   : > { %6526 = vst.msk [vmem:[%s14032_s25 + $0x78] sm:$0xff] %vm17057_vm14, %v6494_v25  ;;  %vm17073_vm14 = vmmov %vm17061_vm0 }
 0x4e0   : > { %v6367_v11 = vpop.f32.mrf.mxu3 }
 0x4e1   : > { %v6368_v57 = vadd.f32 %v14018_v7, %v6367_v11 }
 0x4e3   : > { %v6463_v0 = vadd.f32 %v6431_v53, %v6368_v57 }
 0x4e5   : > { %v6495_v22 = vmax.f32 %v6463_v0, 0.0  ;;  %v6444_v0 = vld [vmem:[%s14013_s20 + $0xe8] sm:$0xff] }
 0x4e7   : > { %6527 = vst.msk [vmem:[%s14032_s25 + $0x80] sm:$0xff] %vm17058_vm15, %v6495_v22 }
 0x4e8   : > { %v6370_v16 = vpop.f32.mrf.mxu3 }
 0x4e9   : > { %v6371_v45 = vadd.f32 %v14018_v7, %v6370_v16 }
 0x4eb   : > { %v6464_v34 = vadd.f32 %v6432_v54, %v6371_v45 }
 0x4ed   : > { %v6496_v10 = vmax.f32 %v6464_v34, 0.0  ;;  %v6445_v34 = vld [vmem:[%s14013_s20 + $0xf0] sm:$0xff] }
 0x4ef   : > { %6528 = vst.msk [vmem:[%s14032_s25 + $0x88] sm:$0xff] %vm17059_vm6, %v6496_v10 }
 0x4f0   : > { %v6373_v33 = vpop.f32.mrf.mxu3 }
 0x4f1   : > { %v6374_v12 = vadd.f32 %v14018_v7, %v6373_v33 }
 0x4f3   : > { %v6465_v35 = vadd.f32 %v6433_v6, %v6374_v12 }
 0x4f5   : > { %v6497_v44 = vmax.f32 %v6465_v35, 0.0  ;;  %v6446_v35 = vld [vmem:[%s14013_s20 + $0xf8] sm:$0xff] }
 0x4f7   : > { %6529 = vst.msk [vmem:[%s14032_s25 + $0x90] sm:$0xff] %vm17060_vm3, %v6497_v44 }
 0x4f8   : > { %v6376_v39 = vpop.f32.mrf.mxu3 }
 0x4f9   : > { %v6377_v13 = vadd.f32 %v14018_v7, %v6376_v39 }
 0x4fb   : > { %v6466_v42 = vadd.f32 %v6434_v1, %v6377_v13 }
 0x4fd   : > { %v6498_v31 = vmax.f32 %v6466_v42, 0.0 }
 0x4ff   : > { %6530 = vst.msk [vmem:[%s14032_s25 + $0x98] sm:$0xff] %vm17061_vm0, %v6498_v31 }
 0x500   : > { %v6379_v4 = vpop.f32.mrf.mxu3 }
 0x501   : > { %v6380_v60 = vadd.f32 %v14018_v7, %v6379_v4 }
 0x503   : > { %v6467_v56 = vadd.f32 %v6435_v32, %v6380_v60 }
 0x505   : > { %v6499_v52 = vmax.f32 %v6467_v56, 0.0 }
 0x507   : > { %6531 = vst.msk [vmem:[%s14032_s25 + $0xa0] sm:$0xff] %vm17062_vm2, %v6499_v52 }
 0x508   : > { %v6382_v5 = vpop.f32.mrf.mxu3 }
 0x509   : > { %v6383_v27 = vadd.f32 %v14018_v7, %v6382_v5 }
 0x50b   : > { %v6468_v38 = vadd.f32 %v6436_v40, %v6383_v27 }
 0x50d   : > { %v6500_v61 = vmax.f32 %v6468_v38, 0.0 }
 0x50f   : > { %6532 = vst.msk [vmem:[%s14032_s25 + $0xa8] sm:$0xff] %vm17063_vm12, %v6500_v61 }
 0x510   : > { %v6385_v58 = vpop.f32.mrf.mxu3 }
 0x511   : > { %v6386_v28 = vadd.f32 %v14018_v7, %v6385_v58 }
 0x513   : > { %v6469_v49 = vadd.f32 %v6437_v23, %v6386_v28 }
 0x515   : > { %v6501_v2 = vmax.f32 %v6469_v49, 0.0 }
 0x517   : > { %6533 = vst.msk [vmem:[%s14032_s25 + $0xb0] sm:$0xff] %vm17064_vm5, %v6501_v2 }
 0x518   : > { %v6388_v51 = vpop.f32.mrf.mxu3 }
 0x519   : > { %v6389_v29 = vadd.f32 %v14018_v7, %v6388_v51 }
 0x51b   : > { %v6470_v50 = vadd.f32 %v6438_v47, %v6389_v29 }
 0x51d   : > { %v6502_v26 = vmax.f32 %v6470_v50, 0.0 }
 0x51f   : > { %6534 = vst.msk [vmem:[%s14032_s25 + $0xb8] sm:$0xff] %vm17065_vm7, %v6502_v26 }
 0x520   : > { %v6391_v20 = vpop.f32.mrf.mxu3 }
 0x521   : > { %v6392_v17 = vadd.f32 %v14018_v7, %v6391_v20 }
 0x523   : > { %v6471_v19 = vadd.f32 %v6439_v24, %v6392_v17 }
 0x525   : > { %v6503_v30 = vmax.f32 %v6471_v19, 0.0 }
 0x527   : > { %6535 = vst.msk [vmem:[%s14032_s25 + $0xc0] sm:$0xff] %vm17066_vm4, %v6503_v30 }
 0x528   : > { %v6394_v14 = vpop.f32.mrf.mxu3 }
 0x529   : > { %v6395_v3 = vadd.f32 %v14018_v7, %v6394_v14 }
 0x52b   : > { %v6472_v43 = vadd.f32 %v6440_v41, %v6395_v3 }
 0x52d   : > { %v6504_v46 = vmax.f32 %v6472_v43, 0.0 }
 0x52f   : > { %6536 = vst.msk [vmem:[%s14032_s25 + $0xc8] sm:$0xff] %vm17067_vm8, %v6504_v46 }
 0x530   : > { %v6397_v48 = vpop.f32.mrf.mxu3 }
 0x531   : > { %v6398_v15 = vadd.f32 %v14018_v7, %v6397_v48 }
 0x533   : > { %v6473_v9 = vadd.f32 %v6441_v59, %v6398_v15 }
 0x535   : > { %v6505_v36 = vmax.f32 %v6473_v9, 0.0 }
 0x537   : > { %6537 = vst.msk [vmem:[%s14032_s25 + $0xd0] sm:$0xff] %vm17068_vm13, %v6505_v36 }
 0x538   : > { %v6400_v18 = vpop.f32.mrf.mxu3 }
 0x539   : > { %v6401_v21 = vadd.f32 %v14018_v7, %v6400_v18 }
 0x53b   : > { %v6474_v8 = vadd.f32 %v6442_v37, %v6401_v21 }
 0x53d   : > { %v6506_v62 = vmax.f32 %v6474_v8, 0.0 }
 0x53f   : > { %6538 = vst.msk [vmem:[%s14032_s25 + $0xd8] sm:$0xff] %vm17069_vm1, %v6506_v62 }
 0x540   : > { %v6403_v55 = vpop.f32.mrf.mxu3 }
 0x541   : > { %v6404_v25 = vadd.f32 %v14018_v7, %v6403_v55 }
 0x543   : > { %v6475_v11 = vadd.f32 %v6443_v63, %v6404_v25 }
 0x545   : > { %v6507_v53 = vmax.f32 %v6475_v11, 0.0 }
 0x547   : > { %6539 = vst.msk [vmem:[%s14032_s25 + $0xe0] sm:$0xff] %vm17070_vm11, %v6507_v53 }
 0x548   : > { %v6406_v57 = vpop.f32.mrf.mxu3 }
 0x549   : > { %v6407_v22 = vadd.f32 %v14018_v7, %v6406_v57 }
 0x54b   : > { %v6476_v16 = vadd.f32 %v6444_v0, %v6407_v22 }
 0x54d   : > { %v6508_v54 = vmax.f32 %v6476_v16, 0.0 }
 0x54f   : > { %6540 = vst.msk [vmem:[%s14032_s25 + $0xe8] sm:$0xff] %vm17071_vm9, %v6508_v54 }
 0x550   : > { %v6409_v45 = vpop.f32.mrf.mxu3 }
 0x551   : > { %v6410_v10 = vadd.f32 %v14018_v7, %v6409_v45 }
 0x553   : > { %v6477_v33 = vadd.f32 %v6445_v34, %v6410_v10 }
 0x555   : > { %v6509_v6 = vmax.f32 %v6477_v33, 0.0 }
 0x557   : > { %6541 = vst.msk [vmem:[%s14032_s25 + $0xf0] sm:$0xff] %vm17072_vm10, %v6509_v6 }
 0x558   : > { %v6412_v12 = vpop.f32.mrf.mxu3 }
 0x559   : > { %v6413_v44 = vadd.f32 %v14018_v7, %v6412_v12 }
 0x55b   : > { %v6478_v39 = vadd.f32 %v6446_v35, %v6413_v44 }
 0x55d   : > { %v6510_v1 = vmax.f32 %v6478_v39, 0.0 }
 0x55f   : > { %6542 = vst.msk [vmem:[%s14032_s25 + $0xf8] sm:$0xff] %vm17073_vm14, %v6510_v1 }
 0x560 PF: > { %s20_s13 = sadd.s32 1, %s7136_s13  }
 0x561   : > { %p17_p4 = scmp.ge.s32.totalorder %s20_s13, 4  }
 0x563   :  { %19 = sbr.rel (!%p17_p4) target bundleno = 1 (0x1), region = 101 }

</bundles_post_ra>
